<compile_context>
chip_gen: v6e
topology: v6e:2x2x1
jax: 0.10.0
libtpu: 0.0.40
codegen_flags: <defaults>
</compile_context>

<pallas_src>
import jax
import jax.numpy as jnp
from jax.experimental import pallas as pl
from jax.experimental.pallas import tpu as pltpu


# ------------------------------ kernels --------------------------------------

def _upconv_kernel(x_ref, w_ref, b_ref, o_ref):
    """ConvTranspose2d(k=2, s=2) for one (batch, row-tile) block.

    x_ref: (1, TH, W, Cin)      bf16
    w_ref: (Cin, 4*Cout)        bf16   lanes ordered ((di, dj), cout)
    b_ref: (1, 4*Cout)          f32    bias tiled over (di, dj)
    o_ref: (1, TH, 2, W, 2*Cout) bf16  [n, i, di, j, (dj, c)] -- row-major
                                       identical to interleaved (N, 2H, 2W, Cout).
    """
    dn = (((2,), (0,)), ((), ()))
    m = jax.lax.dot_general(x_ref[0], w_ref[...], dn,
                            preferred_element_type=jnp.float32) + b_ref[0]
    half = m.shape[-1] // 2                      # = 2*Cout
    # Two direct stores (one per output-row parity) instead of a concat.
    o_ref[0, :, 0, :, :] = m[:, :, :half].astype(o_ref.dtype)
    o_ref[0, :, 1, :, :] = m[:, :, half:].astype(o_ref.dtype)


def _padded_tile(main, top, bot, tile_idx, n_tiles):
    """(TR, Wb, C) row block + single-row halos -> (TR+2, Wb+2, C) zero-padded tile."""
    top = top * (tile_idx > 0).astype(main.dtype)
    bot = bot * (tile_idx < n_tiles - 1).astype(main.dtype)
    rows = jnp.concatenate([top[None], main, bot[None]], axis=0)   # (TR+2, Wb, C)
    zcol = jnp.zeros((rows.shape[0], 1, rows.shape[2]), rows.dtype)
    return jnp.concatenate([zcol, rows, zcol], axis=1)             # (TR+2, Wb+2, C)


def _conv3x3_accum(xp, w_ref, acc=None):
    """3x3 conv of a zero-padded bf16 tile as 9 per-tap MXU dots (K = Cin).

    xp:    (TR+2, Wb+2, C) bf16 padded tile
    w_ref: (9, C, Cout)    bf16, tap index = di*3 + dj
    Accumulates into / returns an f32 (TR, Wb, Cout) accumulator.  The column
    (sublane) shift is done once per dj; the di row shifts are free slices.
    """
    tr, wb = xp.shape[0] - 2, xp.shape[1] - 2
    dn = (((2,), (0,)), ((), ()))
    for dj in range(3):
        xcol = xp[:, dj:dj + wb, :]                 # one sublane shift per dj
        for di in range(3):                         # outer-dim slices: free
            part = jax.lax.dot_general(xcol[di:di + tr], w_ref[di * 3 + dj], dn,
                                       preferred_element_type=jnp.float32)
            acc = part if acc is None else acc + part
    return acc


def _conv1_fused_kernel(x2_ref, x2t_ref, x2b_ref, u_ref, ut_ref, ub_ref,
                        wx_ref, wu_ref, s_ref, b_ref, o_ref):
    """[cat(X2, upconv) -> conv3x3(pad=1) -> BN(eval) -> ReLU] row tile.

    The channel concat is never materialised: the conv weight is split by input
    group and both groups accumulate into one f32 accumulator.
    """
    i = pl.program_id(1)
    nt = pl.num_programs(1)
    x2p = _padded_tile(x2_ref[0], x2t_ref[0, 0], x2b_ref[0, 0], i, nt)
    up = _padded_tile(u_ref[0], ut_ref[0, 0], ub_ref[0, 0], i, nt)
    acc = _conv3x3_accum(x2p, wx_ref)
    acc = _conv3x3_accum(up, wu_ref, acc)
    y = acc * s_ref[0] + b_ref[0]
    o_ref[0] = jnp.maximum(y, 0.0).astype(o_ref.dtype)     # bf16 intermediate


def _conv_kernel(x_ref, xt_ref, xb_ref, w_ref, s_ref, b_ref, o_ref):
    """[conv3x3(pad=1) -> BN(eval) -> ReLU] row tile (single input)."""
    i = pl.program_id(1)
    nt = pl.num_programs(1)
    xp = _padded_tile(x_ref[0], xt_ref[0, 0], xb_ref[0, 0], i, nt)
    acc = _conv3x3_accum(xp, w_ref)
    y = acc * s_ref[0] + b_ref[0]
    o_ref[0] = jnp.maximum(y, 0.0).astype(o_ref.dtype)


# ------------------------------ wrappers --------------------------------------

def _row_specs(shape, tr):
    """main / top-halo / bottom-halo BlockSpecs for an (N, Hb, Wb, C) array."""
    _, hb, wb, c = shape
    main = pl.BlockSpec((1, tr, wb, c), lambda n, i: (n, i, 0, 0))
    top = pl.BlockSpec((1, 1, wb, c),
                       lambda n, i: (n, jnp.maximum(i * tr - 1, 0), 0, 0))
    bot = pl.BlockSpec((1, 1, wb, c),
                       lambda n, i: (n, jnp.minimum((i + 1) * tr, hb - 1), 0, 0))
    return [main, top, bot]


def _const_spec(shape):
    # Constant operand (index map never changes): single-buffer it so a
    # multi-MiB weight does not occupy VMEM twice via pipeline double-buffering.
    return pl.BlockSpec(shape, lambda n, i: (0,) * len(shape),
                        pipeline_mode=pl.Buffered(1))


def _tap_weights(w_oihw):
    """(Cout, Cin, 3, 3) conv weight -> (9, Cin, Cout) bf16, tap = di*3 + dj."""
    cout, cin = w_oihw.shape[0], w_oihw.shape[1]
    return jnp.transpose(w_oihw, (2, 3, 1, 0)).reshape(9, cin, cout).astype(jnp.bfloat16)


def _fold_bn(b_conv, gamma, beta, mean, var, eps):
    """Fold conv bias + eval-mode BN into a per-channel scale / bias (f32)."""
    cout = gamma.shape[0]
    scale = (gamma / jnp.sqrt(var + eps)).astype(jnp.float32)
    bias = ((b_conv - mean) * scale + beta).astype(jnp.float32)
    return scale.reshape(1, cout), bias.reshape(1, cout)


def upconv2x2_stride2(x_nhwc, w_tconv, b, *, row_tile=16,
                      vmem_limit_bytes=64 << 20):
    """ConvTranspose2d(kernel=2, stride=2): (N,H,W,Cin) bf16 -> (N,2H,2W,Cout) bf16."""
    n, h, w, cin = x_nhwc.shape
    cout = w_tconv.shape[1]
    th = min(row_tile, h)
    assert h % th == 0, "row_tile must divide H"
    # (Cin, Cout, kh=di, kw=dj) -> (Cin, di, dj, Cout) -> (Cin, 4*Cout): one MXU dot.
    w_r = jnp.transpose(w_tconv, (0, 2, 3, 1)).reshape(cin, 4 * cout)
    w_r = w_r.astype(jnp.bfloat16)
    b4 = jnp.tile(b, 4).reshape(1, 4 * cout).astype(jnp.float32)

    out5 = pl.pallas_call(
        _upconv_kernel,
        out_shape=jax.ShapeDtypeStruct((n, h, 2, w, 2 * cout), jnp.bfloat16),
        grid=(n, h // th),
        in_specs=[
            pl.BlockSpec((1, th, w, cin), lambda bn, i: (bn, i, 0, 0)),
            _const_spec((cin, 4 * cout)),
            _const_spec((1, 4 * cout)),
        ],
        out_specs=pl.BlockSpec((1, th, 2, w, 2 * cout),
                               lambda bn, i: (bn, i, 0, 0, 0)),
        compiler_params=pltpu.CompilerParams(
            dimension_semantics=("parallel", "parallel"),
            vmem_limit_bytes=vmem_limit_bytes),
        cost_estimate=pl.CostEstimate(
            flops=2 * n * h * w * cin * 4 * cout,
            transcendentals=0,
            bytes_accessed=2 * n * h * w * (cin + 4 * cout) + 2 * cin * 4 * cout),
    )(x_nhwc, w_r, b4)
    # (N, H, 2, W, 2*Cout) is row-major identical to interleaved (N, 2H, 2W, Cout).
    return out5.reshape(n, 2 * h, 2 * w, cout)


def conv3x3_bn_relu_fused_concat(x2, u, w_oihw, b_conv, gamma, beta, mean, var,
                                 *, row_tile=32, eps=1e-5,
                                 vmem_limit_bytes=64 << 20):
    """[cat((X2, U), channel) -> Conv3x3(pad=1) -> BN(eval) -> ReLU], concat fused away."""
    n, hb, wb, c_x2 = x2.shape
    c_u = u.shape[-1]
    cout = w_oihw.shape[0]
    assert u.shape[:3] == (n, hb, wb)
    assert w_oihw.shape[1] == c_x2 + c_u, \
        "conv1 weight input channels must equal cat(X2, upconv(X1)) channels"
    tr = min(row_tile, hb)
    assert hb % tr == 0, "row_tile must divide the spatial height"

    w_x2 = _tap_weights(w_oihw[:, :c_x2])          # X2 channel group
    w_u = _tap_weights(w_oihw[:, c_x2:])           # upconv(X1) channel group
    scale, bias = _fold_bn(b_conv, gamma, beta, mean, var, eps)
    cin = c_x2 + c_u

    return pl.pallas_call(
        _conv1_fused_kernel,
        out_shape=jax.ShapeDtypeStruct((n, hb, wb, cout), jnp.bfloat16),
        grid=(n, hb // tr),
        in_specs=(_row_specs(x2.shape, tr) + _row_specs(u.shape, tr) + [
            _const_spec((9, c_x2, cout)),
            _const_spec((9, c_u, cout)),
            _const_spec((1, cout)),
            _const_spec((1, cout)),
        ]),
        out_specs=pl.BlockSpec((1, tr, wb, cout), lambda bn, i: (bn, i, 0, 0)),
        compiler_params=pltpu.CompilerParams(
            dimension_semantics=("parallel", "parallel"),
            vmem_limit_bytes=vmem_limit_bytes),
        cost_estimate=pl.CostEstimate(
            flops=2 * n * hb * wb * 9 * cin * cout,
            transcendentals=0,
            bytes_accessed=2 * n * hb * wb * (cin + cout) + 2 * 9 * cin * cout),
    )(x2, x2, x2, u, u, u, w_x2, w_u, scale, bias)


def conv3x3_bn_relu(x, w_oihw, b_conv, gamma, beta, mean, var,
                    *, row_tile=32, eps=1e-5, vmem_limit_bytes=64 << 20):
    """Conv2d(3x3, pad=1, stride=1) + BatchNorm(eval) + ReLU, row-tiled, f32 out."""
    n, hb, wb, cin = x.shape
    cout = w_oihw.shape[0]
    assert w_oihw.shape[1] == cin
    tr = min(row_tile, hb)
    assert hb % tr == 0, "row_tile must divide the spatial height"

    w = _tap_weights(w_oihw)
    scale, bias = _fold_bn(b_conv, gamma, beta, mean, var, eps)

    return pl.pallas_call(
        _conv_kernel,
        out_shape=jax.ShapeDtypeStruct((n, hb, wb, cout), jnp.float32),
        grid=(n, hb // tr),
        in_specs=(_row_specs(x.shape, tr) + [
            _const_spec((9, cin, cout)),
            _const_spec((1, cout)),
            _const_spec((1, cout)),
        ]),
        out_specs=pl.BlockSpec((1, tr, wb, cout), lambda bn, i: (bn, i, 0, 0)),
        compiler_params=pltpu.CompilerParams(
            dimension_semantics=("parallel", "parallel"),
            vmem_limit_bytes=vmem_limit_bytes),
        cost_estimate=pl.CostEstimate(
            flops=2 * n * hb * wb * 9 * cin * cout,
            transcendentals=0,
            bytes_accessed=2 * n * hb * wb * cin + 4 * n * hb * wb * cout
            + 2 * 9 * cin * cout),
    )(x, x, x, w, scale, bias)


def upconv_concat_forward(x1_nchw, x2_nchw, p):
    """Matches upconv_concat.forward(X1, X2) with NCHW f32 inputs/outputs."""
    # NCHW -> NHWC and cast to bf16 at the interface (fused by XLA): halves the
    # HBM read of the large skip tensor.  MXU math is bf16 with f32 accumulate.
    x1 = jnp.transpose(x1_nchw, (0, 2, 3, 1)).astype(jnp.bfloat16)
    x2 = jnp.transpose(x2_nchw, (0, 2, 3, 1)).astype(jnp.bfloat16)

    u = upconv2x2_stride2(x1, p["up_w"], p["up_b"])            # bf16 intermediate
    h = conv3x3_bn_relu_fused_concat(                           # concat fused away
        x2, u, p["c1_w"], p["c1_b"],
        p["bn1_g"], p["bn1_b"], p["bn1_m"], p["bn1_v"])         # bf16 intermediate
    y = conv3x3_bn_relu(
        h, p["c2_w"], p["c2_b"],
        p["bn2_g"], p["bn2_b"], p["bn2_m"], p["bn2_v"])         # f32 output
    return jnp.transpose(y, (0, 3, 1, 2))                       # NHWC -> NCHW


def init_params(key, in_channels, out_channels):
    # conv1 consumes cat(X2, upconv(X1)) which has `in_channels` channels,
    # i.e. X2 must carry in_channels - out_channels channels (standard UNet).
    ks = jax.random.split(key, 8)
    f32 = jnp.float32
    return {
        # ConvTranspose2d(in_c, out_c, k=2, s=2): weight (in_c, out_c, 2, 2)
        "up_w": 0.1 * jax.random.normal(ks[0], (in_channels, out_channels, 2, 2), f32),
        "up_b": 0.05 * jax.random.normal(ks[1], (out_channels,), f32),
        # Conv2d(in_c, out_c, 3): weight (out_c, in_c, 3, 3)
        "c1_w": 0.1 * jax.random.normal(ks[2], (out_channels, in_channels, 3, 3), f32),
        "c1_b": 0.05 * jax.random.normal(ks[3], (out_channels,), f32),
        "bn1_g": jnp.ones((out_channels,), f32),
        "bn1_b": jnp.zeros((out_channels,), f32),
        "bn1_m": 0.01 * jax.random.normal(ks[4], (out_channels,), f32),
        "bn1_v": jnp.ones((out_channels,), f32),
        # Conv2d(out_c, out_c, 3)
        "c2_w": 0.1 * jax.random.normal(ks[5], (out_channels, out_channels, 3, 3), f32),
        "c2_b": 0.05 * jax.random.normal(ks[6], (out_channels,), f32),
        "bn2_g": jnp.ones((out_channels,), f32),
        "bn2_b": jnp.zeros((out_channels,), f32),
        "bn2_m": 0.01 * jax.random.normal(ks[7], (out_channels,), f32),
        "bn2_v": jnp.ones((out_channels,), f32),
    }


if __name__ == "__main__":
    key = jax.random.PRNGKey(0)
    k1, k2, kp = jax.random.split(key, 3)

    N = 2
    in_channels = 8      # deep-feature channels; conv1 input = cat -> in_channels
    out_channels = 4     # upconv / skip-connection / output channels
    H = W = 8            # X1 spatial; X2 / output are 2x larger

    # X1: deep feature; X2: skip connection with in_channels - out_channels channels.
    x1 = jax.random.normal(k1, (N, in_channels, H, W), jnp.float32)
    x2 = jax.random.normal(
        k2, (N, in_channels - out_channels, 2 * H, 2 * W), jnp.float32)

    params = init_params(kp, in_channels, out_channels)

    fwd = jax.jit(upconv_concat_forward)
    out = jax.block_until_ready(fwd(x1, x2, params))
    assert out.shape == (N, out_channels, 2 * H, 2 * W), out.shape
    assert bool(jnp.all(jnp.isfinite(out)))
    print("KERNEL_OK")
</pallas_src>

<mosaic_0001>
module attributes {stable_mosaic.version = 11 : i64} {
  func.func @_upconv_kernel(%arg0: i32, %arg1: i32, %arg2: memref<1x8x8x8xbf16, #tpu.memory_space<vmem>>, %arg3: memref<8x16xbf16, #tpu.memory_space<vmem>>, %arg4: memref<1x16xf32, #tpu.memory_space<vmem>>, %arg5: memref<1x8x2x8x8xbf16, #tpu.memory_space<vmem>>) attributes {dimension_semantics = [#tpu.dimension_semantics<parallel>, #tpu.dimension_semantics<parallel>], iteration_bounds = array<i64: 2, 1>, scalar_prefetch = 0 : i64, scratch_operands = 0 : i64, tpu.core_type = #tpu.core_type<tc>, window_params = [{transform_indices = @transform_0, window_bounds = array<i64: 1, 8, 8, 8>}, {pipeline_mode = #tpu.pipeline_mode<synchronous>, transform_indices = @transform_1, window_bounds = array<i64: 8, 16>}, {pipeline_mode = #tpu.pipeline_mode<synchronous>, transform_indices = @transform_2, window_bounds = array<i64: 1, 16>}, {transform_indices = @transform_3, window_bounds = array<i64: 1, 8, 2, 8, 8>}]} {
    %c0 = arith.constant 0 : index
    %c0_0 = arith.constant 0 : index
    %c0_1 = arith.constant 0 : index
    %c0_2 = arith.constant 0 : index
    %0 = vector.load %arg2[%c0, %c0_0, %c0_1, %c0_2] : memref<1x8x8x8xbf16, #tpu.memory_space<vmem>>, vector<1x8x8x8xbf16>
    %1 = vector.shape_cast %0 : vector<1x8x8x8xbf16> to vector<8x8x8xbf16>
    %c0_3 = arith.constant 0 : index
    %c0_4 = arith.constant 0 : index
    %2 = vector.load %arg3[%c0_3, %c0_4] : memref<8x16xbf16, #tpu.memory_space<vmem>>, vector<8x16xbf16>
    %cst = arith.constant dense<0.000000e+00> : vector<8x8x16xf32>
    %3 = tpu.matmul %1, %2, %cst {dimension_numbers = #tpu.dot_dimension_numbers<[2], [0], [0, 1], [1], [0, 0, 0, 1, 1, 1], [], []>} : vector<8x8x8xbf16>, vector<8x16xbf16>, vector<8x8x16xf32> -> vector<8x8x16xf32>
    %c0_5 = arith.constant 0 : index
    %c0_6 = arith.constant 0 : index
    %4 = vector.load %arg4[%c0_5, %c0_6] : memref<1x16xf32, #tpu.memory_space<vmem>>, vector<1x16xf32>
    %5 = vector.shape_cast %4 : vector<1x16xf32> to vector<16xf32>
    %6 = vector.shape_cast %5 : vector<16xf32> to vector<1x1x16xf32>
    %7 = vector.broadcast %6 : vector<1x1x16xf32> to vector<8x8x16xf32>
    %8 = arith.addf %3, %7 : vector<8x8x16xf32>
    %9 = vector.extract_strided_slice %8 {offsets = [0, 0, 0], sizes = [8, 8, 8], strides = [1, 1, 1]} : vector<8x8x16xf32> to vector<8x8x8xf32>
    %10 = arith.truncf %9 : vector<8x8x8xf32> to vector<8x8x8xbf16>
    %c0_7 = arith.constant 0 : index
    %c0_8 = arith.constant 0 : index
    %c0_9 = arith.constant 0 : index
    %c0_10 = arith.constant 0 : index
    %c0_11 = arith.constant 0 : index
    %11 = vector.load %arg5[%c0_7, %c0_8, %c0_9, %c0_10, %c0_11] : memref<1x8x2x8x8xbf16, #tpu.memory_space<vmem>>, vector<1x8x1x8x8xbf16>
    %12 = vector.shape_cast %11 : vector<1x8x1x8x8xbf16> to vector<8x8x8xbf16>
    %13 = vector.shape_cast %10 : vector<8x8x8xbf16> to vector<1x8x1x8x8xbf16>
    tpu.vector_store %arg5[%c0_7, %c0_8, %c0_9, %c0_10, %c0_11], %13 {strides = array<i32>} : memref<1x8x2x8x8xbf16, #tpu.memory_space<vmem>>, vector<1x8x1x8x8xbf16>,
    %14 = vector.extract_strided_slice %8 {offsets = [0, 0, 8], sizes = [8, 8, 8], strides = [1, 1, 1]} : vector<8x8x16xf32> to vector<8x8x8xf32>
    %15 = arith.truncf %14 : vector<8x8x8xf32> to vector<8x8x8xbf16>
    %c0_12 = arith.constant 0 : index
    %c0_13 = arith.constant 0 : index
    %c1 = arith.constant 1 : index
    %c0_14 = arith.constant 0 : index
    %c0_15 = arith.constant 0 : index
    %16 = vector.load %arg5[%c0_12, %c0_13, %c1, %c0_14, %c0_15] : memref<1x8x2x8x8xbf16, #tpu.memory_space<vmem>>, vector<1x8x1x8x8xbf16>
    %17 = vector.shape_cast %16 : vector<1x8x1x8x8xbf16> to vector<8x8x8xbf16>
    %18 = vector.shape_cast %15 : vector<8x8x8xbf16> to vector<1x8x1x8x8xbf16>
    tpu.vector_store %arg5[%c0_12, %c0_13, %c1, %c0_14, %c0_15], %18 {strides = array<i32>} : memref<1x8x2x8x8xbf16, #tpu.memory_space<vmem>>, vector<1x8x1x8x8xbf16>,
    return
  }
  func.func @transform_0(%arg0: i32, %arg1: i32) -> (i32, i32, i32, i32) {
    %c0_i32 = arith.constant 0 : i32
    %c0_i32_0 = arith.constant 0 : i32
    %c0_i32_1 = arith.constant 0 : i32
    return %arg0, %arg1, %c0_i32, %c0_i32_0 : i32, i32, i32, i32
  }
  func.func @transform_1(%arg0: i32, %arg1: i32) -> (i32, i32) {
    %c0_i32 = arith.constant 0 : i32
    %c0_i32_0 = arith.constant 0 : i32
    %c0_i32_1 = arith.constant 0 : i32
    return %c0_i32, %c0_i32_0 : i32, i32
  }
  func.func @transform_2(%arg0: i32, %arg1: i32) -> (i32, i32) {
    %c0_i32 = arith.constant 0 : i32
    %c0_i32_0 = arith.constant 0 : i32
    %c0_i32_1 = arith.constant 0 : i32
    return %c0_i32, %c0_i32_0 : i32, i32
  }
  func.func @transform_3(%arg0: i32, %arg1: i32) -> (i32, i32, i32, i32, i32) {
    %c0_i32 = arith.constant 0 : i32
    %c0_i32_0 = arith.constant 0 : i32
    %c0_i32_1 = arith.constant 0 : i32
    %c0_i32_2 = arith.constant 0 : i32
    return %arg0, %arg1, %c0_i32, %c0_i32_0, %c0_i32_1 : i32, i32, i32, i32, i32
  }
}

module attributes {stable_mosaic.version = 11 : i64} {
  func.func @_conv1_fused_kernel(%arg0: i32, %arg1: i32, %arg2: memref<1x16x16x4xbf16, #tpu.memory_space<vmem>>, %arg3: memref<1x1x16x4xbf16, #tpu.memory_space<vmem>>, %arg4: memref<1x1x16x4xbf16, #tpu.memory_space<vmem>>, %arg5: memref<1x16x16x4xbf16, #tpu.memory_space<vmem>>, %arg6: memref<1x1x16x4xbf16, #tpu.memory_space<vmem>>, %arg7: memref<1x1x16x4xbf16, #tpu.memory_space<vmem>>, %arg8: memref<9x4x4xbf16, #tpu.memory_space<vmem>>, %arg9: memref<9x4x4xbf16, #tpu.memory_space<vmem>>, %arg10: memref<1x4xf32, #tpu.memory_space<vmem>>, %arg11: memref<1x4xf32, #tpu.memory_space<vmem>>, %arg12: memref<1x16x16x4xbf16, #tpu.memory_space<vmem>>) attributes {dimension_semantics = [#tpu.dimension_semantics<parallel>, #tpu.dimension_semantics<parallel>], iteration_bounds = array<i64: 2, 1>, scalar_prefetch = 0 : i64, scratch_operands = 0 : i64, tpu.core_type = #tpu.core_type<tc>, window_params = [{transform_indices = @transform_0, window_bounds = array<i64: 1, 16, 16, 4>}, {transform_indices = @transform_1, window_bounds = array<i64: 1, 1, 16, 4>}, {transform_indices = @transform_2, window_bounds = array<i64: 1, 1, 16, 4>}, {transform_indices = @transform_3, window_bounds = array<i64: 1, 16, 16, 4>}, {transform_indices = @transform_4, window_bounds = array<i64: 1, 1, 16, 4>}, {transform_indices = @transform_5, window_bounds = array<i64: 1, 1, 16, 4>}, {pipeline_mode = #tpu.pipeline_mode<synchronous>, transform_indices = @transform_6, window_bounds = array<i64: 9, 4, 4>}, {pipeline_mode = #tpu.pipeline_mode<synchronous>, transform_indices = @transform_7, window_bounds = array<i64: 9, 4, 4>}, {pipeline_mode = #tpu.pipeline_mode<synchronous>, transform_indices = @transform_8, window_bounds = array<i64: 1, 4>}, {pipeline_mode = #tpu.pipeline_mode<synchronous>, transform_indices = @transform_9, window_bounds = array<i64: 1, 4>}, {transform_indices = @transform_10, window_bounds = array<i64: 1, 16, 16, 4>}]} {
    %c0 = arith.constant 0 : index
    %c0_0 = arith.constant 0 : index
    %c0_1 = arith.constant 0 : index
    %c0_2 = arith.constant 0 : index
    %0 = vector.load %arg2[%c0, %c0_0, %c0_1, %c0_2] : memref<1x16x16x4xbf16, #tpu.memory_space<vmem>>, vector<1x16x16x4xbf16>
    %1 = vector.shape_cast %0 : vector<1x16x16x4xbf16> to vector<16x16x4xbf16>
    %c0_3 = arith.constant 0 : index
    %c0_4 = arith.constant 0 : index
    %c0_5 = arith.constant 0 : index
    %c0_6 = arith.constant 0 : index
    %2 = vector.load %arg3[%c0_3, %c0_4, %c0_5, %c0_6] : memref<1x1x16x4xbf16, #tpu.memory_space<vmem>>, vector<1x1x16x4xbf16>
    %3 = vector.shape_cast %2 : vector<1x1x16x4xbf16> to vector<16x4xbf16>
    %c0_7 = arith.constant 0 : index
    %c0_8 = arith.constant 0 : index
    %c0_9 = arith.constant 0 : index
    %c0_10 = arith.constant 0 : index
    %4 = vector.load %arg4[%c0_7, %c0_8, %c0_9, %c0_10] : memref<1x1x16x4xbf16, #tpu.memory_space<vmem>>, vector<1x1x16x4xbf16>
    %5 = vector.shape_cast %4 : vector<1x1x16x4xbf16> to vector<16x4xbf16>
    %c0_i32 = arith.constant 0 : i32
    %6 = arith.cmpi sgt, %arg1, %c0_i32 : i32
    %7 = arith.extui %6 : i1 to i32
    %8 = arith.sitofp %7 : i32 to f32
    %9 = arith.truncf %8 : f32 to bf16
    %10 = vector.broadcast %9 : bf16 to vector<16x4xbf16>
    %11 = arith.mulf %3, %10 : vector<16x4xbf16>
    %c0_i32_11 = arith.constant 0 : i32
    %12 = arith.cmpi slt, %arg1, %c0_i32_11 : i32
    %13 = arith.extui %12 : i1 to i32
    %14 = arith.sitofp %13 : i32 to f32
    %15 = arith.truncf %14 : f32 to bf16
    %16 = vector.broadcast %15 : bf16 to vector<16x4xbf16>
    %17 = arith.mulf %5, %16 : vector<16x4xbf16>
    %18 = vector.shape_cast %11 : vector<16x4xbf16> to vector<1x16x4xbf16>
    %19 = vector.shape_cast %17 : vector<16x4xbf16> to vector<1x16x4xbf16>
    %20 = tpu.concatenate %18, %1, %19 in 0 : vector<1x16x4xbf16>, vector<16x16x4xbf16>, vector<1x16x4xbf16> -> vector<18x16x4xbf16>
    %cst = arith.constant 0.000000e+00 : bf16
    %21 = vector.broadcast %cst : bf16 to vector<18x1x4xbf16>
    %22 = tpu.concatenate %21, %20, %21 in 1 : vector<18x1x4xbf16>, vector<18x16x4xbf16>, vector<18x1x4xbf16> -> vector<18x18x4xbf16>
    %c0_12 = arith.constant 0 : index
    %c0_13 = arith.constant 0 : index
    %c0_14 = arith.constant 0 : index
    %c0_15 = arith.constant 0 : index
    %23 = vector.load %arg5[%c0_12, %c0_13, %c0_14, %c0_15] : memref<1x16x16x4xbf16, #tpu.memory_space<vmem>>, vector<1x16x16x4xbf16>
    %24 = vector.shape_cast %23 : vector<1x16x16x4xbf16> to vector<16x16x4xbf16>
    %c0_16 = arith.constant 0 : index
    %c0_17 = arith.constant 0 : index
    %c0_18 = arith.constant 0 : index
    %c0_19 = arith.constant 0 : index
    %25 = vector.load %arg6[%c0_16, %c0_17, %c0_18, %c0_19] : memref<1x1x16x4xbf16, #tpu.memory_space<vmem>>, vector<1x1x16x4xbf16>
    %26 = vector.shape_cast %25 : vector<1x1x16x4xbf16> to vector<16x4xbf16>
    %c0_20 = arith.constant 0 : index
    %c0_21 = arith.constant 0 : index
    %c0_22 = arith.constant 0 : index
    %c0_23 = arith.constant 0 : index
    %27 = vector.load %arg7[%c0_20, %c0_21, %c0_22, %c0_23] : memref<1x1x16x4xbf16, #tpu.memory_space<vmem>>, vector<1x1x16x4xbf16>
    %28 = vector.shape_cast %27 : vector<1x1x16x4xbf16> to vector<16x4xbf16>
    %c0_i32_24 = arith.constant 0 : i32
    %29 = arith.cmpi sgt, %arg1, %c0_i32_24 : i32
    %30 = arith.extui %29 : i1 to i32
    %31 = arith.sitofp %30 : i32 to f32
    %32 = arith.truncf %31 : f32 to bf16
    %33 = vector.broadcast %32 : bf16 to vector<16x4xbf16>
    %34 = arith.mulf %26, %33 : vector<16x4xbf16>
    %c0_i32_25 = arith.constant 0 : i32
    %35 = arith.cmpi slt, %arg1, %c0_i32_25 : i32
    %36 = arith.extui %35 : i1 to i32
    %37 = arith.sitofp %36 : i32 to f32
    %38 = arith.truncf %37 : f32 to bf16
    %39 = vector.broadcast %38 : bf16 to vector<16x4xbf16>
    %40 = arith.mulf %28, %39 : vector<16x4xbf16>
    %41 = vector.shape_cast %34 : vector<16x4xbf16> to vector<1x16x4xbf16>
    %42 = vector.shape_cast %40 : vector<16x4xbf16> to vector<1x16x4xbf16>
    %43 = tpu.concatenate %41, %24, %42 in 0 : vector<1x16x4xbf16>, vector<16x16x4xbf16>, vector<1x16x4xbf16> -> vector<18x16x4xbf16>
    %cst_26 = arith.constant 0.000000e+00 : bf16
    %44 = vector.broadcast %cst_26 : bf16 to vector<18x1x4xbf16>
    %45 = tpu.concatenate %44, %43, %44 in 1 : vector<18x1x4xbf16>, vector<18x16x4xbf16>, vector<18x1x4xbf16> -> vector<18x18x4xbf16>
    %46 = vector.extract_strided_slice %22 {offsets = [0, 0, 0], sizes = [18, 16, 4], strides = [1, 1, 1]} : vector<18x18x4xbf16> to vector<18x16x4xbf16>
    %47 = vector.extract_strided_slice %46 {offsets = [0, 0, 0], sizes = [16, 16, 4], strides = [1, 1, 1]} : vector<18x16x4xbf16> to vector<16x16x4xbf16>
    %c0_27 = arith.constant 0 : index
    %c0_28 = arith.constant 0 : index
    %c0_29 = arith.constant 0 : index
    %48 = vector.load %arg8[%c0_27, %c0_28, %c0_29] : memref<9x4x4xbf16, #tpu.memory_space<vmem>>, vector<1x4x4xbf16>
    %49 = vector.shape_cast %48 : vector<1x4x4xbf16> to vector<4x4xbf16>
    %cst_30 = arith.constant dense<0.000000e+00> : vector<16x16x4xf32>
    %50 = tpu.matmul %47, %49, %cst_30 {dimension_numbers = #tpu.dot_dimension_numbers<[2], [0], [0, 1], [1], [0, 0, 0, 1, 1, 1], [], []>} : vector<16x16x4xbf16>, vector<4x4xbf16>, vector<16x16x4xf32> -> vector<16x16x4xf32>
    %51 = vector.extract_strided_slice %46 {offsets = [1, 0, 0], sizes = [16, 16, 4], strides = [1, 1, 1]} : vector<18x16x4xbf16> to vector<16x16x4xbf16>
    %c3 = arith.constant 3 : index
    %c0_31 = arith.constant 0 : index
    %c0_32 = arith.constant 0 : index
    %52 = vector.load %arg8[%c3, %c0_31, %c0_32] : memref<9x4x4xbf16, #tpu.memory_space<vmem>>, vector<1x4x4xbf16>
    %53 = vector.shape_cast %52 : vector<1x4x4xbf16> to vector<4x4xbf16>
    %cst_33 = arith.constant dense<0.000000e+00> : vector<16x16x4xf32>
    %54 = tpu.matmul %51, %53, %cst_33 {dimension_numbers = #tpu.dot_dimension_numbers<[2], [0], [0, 1], [1], [0, 0, 0, 1, 1, 1], [], []>} : vector<16x16x4xbf16>, vector<4x4xbf16>, vector<16x16x4xf32> -> vector<16x16x4xf32>
    %55 = arith.addf %50, %54 : vector<16x16x4xf32>
    %56 = vector.extract_strided_slice %46 {offsets = [2, 0, 0], sizes = [16, 16, 4], strides = [1, 1, 1]} : vector<18x16x4xbf16> to vector<16x16x4xbf16>
    %c6 = arith.constant 6 : index
    %c0_34 = arith.constant 0 : index
    %c0_35 = arith.constant 0 : index
    %57 = vector.load %arg8[%c6, %c0_34, %c0_35] : memref<9x4x4xbf16, #tpu.memory_space<vmem>>, vector<1x4x4xbf16>
    %58 = vector.shape_cast %57 : vector<1x4x4xbf16> to vector<4x4xbf16>
    %cst_36 = arith.constant dense<0.000000e+00> : vector<16x16x4xf32>
    %59 = tpu.matmul %56, %58, %cst_36 {dimension_numbers = #tpu.dot_dimension_numbers<[2], [0], [0, 1], [1], [0, 0, 0, 1, 1, 1], [], []>} : vector<16x16x4xbf16>, vector<4x4xbf16>, vector<16x16x4xf32> -> vector<16x16x4xf32>
    %60 = arith.addf %55, %59 : vector<16x16x4xf32>
    %61 = vector.extract_strided_slice %22 {offsets = [0, 1, 0], sizes = [18, 16, 4], strides = [1, 1, 1]} : vector<18x18x4xbf16> to vector<18x16x4xbf16>
    %62 = vector.extract_strided_slice %61 {offsets = [0, 0, 0], sizes = [16, 16, 4], strides = [1, 1, 1]} : vector<18x16x4xbf16> to vector<16x16x4xbf16>
    %c1 = arith.constant 1 : index
    %c0_37 = arith.constant 0 : index
    %c0_38 = arith.constant 0 : index
    %63 = vector.load %arg8[%c1, %c0_37, %c0_38] : memref<9x4x4xbf16, #tpu.memory_space<vmem>>, vector<1x4x4xbf16>
    %64 = vector.shape_cast %63 : vector<1x4x4xbf16> to vector<4x4xbf16>
    %cst_39 = arith.constant dense<0.000000e+00> : vector<16x16x4xf32>
    %65 = tpu.matmul %62, %64, %cst_39 {dimension_numbers = #tpu.dot_dimension_numbers<[2], [0], [0, 1], [1], [0, 0, 0, 1, 1, 1], [], []>} : vector<16x16x4xbf16>, vector<4x4xbf16>, vector<16x16x4xf32> -> vector<16x16x4xf32>
    %66 = arith.addf %60, %65 : vector<16x16x4xf32>
    %67 = vector.extract_strided_slice %61 {offsets = [1, 0, 0], sizes = [16, 16, 4], strides = [1, 1, 1]} : vector<18x16x4xbf16> to vector<16x16x4xbf16>
    %c4 = arith.constant 4 : index
    %c0_40 = arith.constant 0 : index
    %c0_41 = arith.constant 0 : index
    %68 = vector.load %arg8[%c4, %c0_40, %c0_41] : memref<9x4x4xbf16, #tpu.memory_space<vmem>>, vector<1x4x4xbf16>
    %69 = vector.shape_cast %68 : vector<1x4x4xbf16> to vector<4x4xbf16>
    %cst_42 = arith.constant dense<0.000000e+00> : vector<16x16x4xf32>
    %70 = tpu.matmul %67, %69, %cst_42 {dimension_numbers = #tpu.dot_dimension_numbers<[2], [0], [0, 1], [1], [0, 0, 0, 1, 1, 1], [], []>} : vector<16x16x4xbf16>, vector<4x4xbf16>, vector<16x16x4xf32> -> vector<16x16x4xf32>
    %71 = arith.addf %66, %70 : vector<16x16x4xf32>
    %72 = vector.extract_strided_slice %61 {offsets = [2, 0, 0], sizes = [16, 16, 4], strides = [1, 1, 1]} : vector<18x16x4xbf16> to vector<16x16x4xbf16>
    %c7 = arith.constant 7 : index
    %c0_43 = arith.constant 0 : index
    %c0_44 = arith.constant 0 : index
    %73 = vector.load %arg8[%c7, %c0_43, %c0_44] : memref<9x4x4xbf16, #tpu.memory_space<vmem>>, vector<1x4x4xbf16>
    %74 = vector.shape_cast %73 : vector<1x4x4xbf16> to vector<4x4xbf16>
    %cst_45 = arith.constant dense<0.000000e+00> : vector<16x16x4xf32>
    %75 = tpu.matmul %72, %74, %cst_45 {dimension_numbers = #tpu.dot_dimension_numbers<[2], [0], [0, 1], [1], [0, 0, 0, 1, 1, 1], [], []>} : vector<16x16x4xbf16>, vector<4x4xbf16>, vector<16x16x4xf32> -> vector<16x16x4xf32>
    %76 = arith.addf %71, %75 : vector<16x16x4xf32>
    %77 = vector.extract_strided_slice %22 {offsets = [0, 2, 0], sizes = [18, 16, 4], strides = [1, 1, 1]} : vector<18x18x4xbf16> to vector<18x16x4xbf16>
    %78 = vector.extract_strided_slice %77 {offsets = [0, 0, 0], sizes = [16, 16, 4], strides = [1, 1, 1]} : vector<18x16x4xbf16> to vector<16x16x4xbf16>
    %c2 = arith.constant 2 : index
    %c0_46 = arith.constant 0 : index
    %c0_47 = arith.constant 0 : index
    %79 = vector.load %arg8[%c2, %c0_46, %c0_47] : memref<9x4x4xbf16, #tpu.memory_space<vmem>>, vector<1x4x4xbf16>
    %80 = vector.shape_cast %79 : vector<1x4x4xbf16> to vector<4x4xbf16>
    %cst_48 = arith.constant dense<0.000000e+00> : vector<16x16x4xf32>
    %81 = tpu.matmul %78, %80, %cst_48 {dimension_numbers = #tpu.dot_dimension_numbers<[2], [0], [0, 1], [1], [0, 0, 0, 1, 1, 1], [], []>} : vector<16x16x4xbf16>, vector<4x4xbf16>, vector<16x16x4xf32> -> vector<16x16x4xf32>
    %82 = arith.addf %76, %81 : vector<16x16x4xf32>
    %83 = vector.extract_strided_slice %77 {offsets = [1, 0, 0], sizes = [16, 16, 4], strides = [1, 1, 1]} : vector<18x16x4xbf16> to vector<16x16x4xbf16>
    %c5 = arith.constant 5 : index
    %c0_49 = arith.constant 0 : index
    %c0_50 = arith.constant 0 : index
    %84 = vector.load %arg8[%c5, %c0_49, %c0_50] : memref<9x4x4xbf16, #tpu.memory_space<vmem>>, vector<1x4x4xbf16>
    %85 = vector.shape_cast %84 : vector<1x4x4xbf16> to vector<4x4xbf16>
    %cst_51 = arith.constant dense<0.000000e+00> : vector<16x16x4xf32>
    %86 = tpu.matmul %83, %85, %cst_51 {dimension_numbers = #tpu.dot_dimension_numbers<[2], [0], [0, 1], [1], [0, 0, 0, 1, 1, 1], [], []>} : vector<16x16x4xbf16>, vector<4x4xbf16>, vector<16x16x4xf32> -> vector<16x16x4xf32>
    %87 = arith.addf %82, %86 : vector<16x16x4xf32>
    %88 = vector.extract_strided_slice %77 {offsets = [2, 0, 0], sizes = [16, 16, 4], strides = [1, 1, 1]} : vector<18x16x4xbf16> to vector<16x16x4xbf16>
    %c8 = arith.constant 8 : index
    %c0_52 = arith.constant 0 : index
    %c0_53 = arith.constant 0 : index
    %89 = vector.load %arg8[%c8, %c0_52, %c0_53] : memref<9x4x4xbf16, #tpu.memory_space<vmem>>, vector<1x4x4xbf16>
    %90 = vector.shape_cast %89 : vector<1x4x4xbf16> to vector<4x4xbf16>
    %cst_54 = arith.constant dense<0.000000e+00> : vector<16x16x4xf32>
    %91 = tpu.matmul %88, %90, %cst_54 {dimension_numbers = #tpu.dot_dimension_numbers<[2], [0], [0, 1], [1], [0, 0, 0, 1, 1, 1], [], []>} : vector<16x16x4xbf16>, vector<4x4xbf16>, vector<16x16x4xf32> -> vector<16x16x4xf32>
    %92 = arith.addf %87, %91 : vector<16x16x4xf32>
    %93 = vector.extract_strided_slice %45 {offsets = [0, 0, 0], sizes = [18, 16, 4], strides = [1, 1, 1]} : vector<18x18x4xbf16> to vector<18x16x4xbf16>
    %94 = vector.extract_strided_slice %93 {offsets = [0, 0, 0], sizes = [16, 16, 4], strides = [1, 1, 1]} : vector<18x16x4xbf16> to vector<16x16x4xbf16>
    %c0_55 = arith.constant 0 : index
    %c0_56 = arith.constant 0 : index
    %c0_57 = arith.constant 0 : index
    %95 = vector.load %arg9[%c0_55, %c0_56, %c0_57] : memref<9x4x4xbf16, #tpu.memory_space<vmem>>, vector<1x4x4xbf16>
    %96 = vector.shape_cast %95 : vector<1x4x4xbf16> to vector<4x4xbf16>
    %cst_58 = arith.constant dense<0.000000e+00> : vector<16x16x4xf32>
    %97 = tpu.matmul %94, %96, %cst_58 {dimension_numbers = #tpu.dot_dimension_numbers<[2], [0], [0, 1], [1], [0, 0, 0, 1, 1, 1], [], []>} : vector<16x16x4xbf16>, vector<4x4xbf16>, vector<16x16x4xf32> -> vector<16x16x4xf32>
    %98 = arith.addf %92, %97 : vector<16x16x4xf32>
    %99 = vector.extract_strided_slice %93 {offsets = [1, 0, 0], sizes = [16, 16, 4], strides = [1, 1, 1]} : vector<18x16x4xbf16> to vector<16x16x4xbf16>
    %c3_59 = arith.constant 3 : index
    %c0_60 = arith.constant 0 : index
    %c0_61 = arith.constant 0 : index
    %100 = vector.load %arg9[%c3_59, %c0_60, %c0_61] : memref<9x4x4xbf16, #tpu.memory_space<vmem>>, vector<1x4x4xbf16>
    %101 = vector.shape_cast %100 : vector<1x4x4xbf16> to vector<4x4xbf16>
    %cst_62 = arith.constant dense<0.000000e+00> : vector<16x16x4xf32>
    %102 = tpu.matmul %99, %101, %cst_62 {dimension_numbers = #tpu.dot_dimension_numbers<[2], [0], [0, 1], [1], [0, 0, 0, 1, 1, 1], [], []>} : vector<16x16x4xbf16>, vector<4x4xbf16>, vector<16x16x4xf32> -> vector<16x16x4xf32>
    %103 = arith.addf %98, %102 : vector<16x16x4xf32>
    %104 = vector.extract_strided_slice %93 {offsets = [2, 0, 0], sizes = [16, 16, 4], strides = [1, 1, 1]} : vector<18x16x4xbf16> to vector<16x16x4xbf16>
    %c6_63 = arith.constant 6 : index
    %c0_64 = arith.constant 0 : index
    %c0_65 = arith.constant 0 : index
    %105 = vector.load %arg9[%c6_63, %c0_64, %c0_65] : memref<9x4x4xbf16, #tpu.memory_space<vmem>>, vector<1x4x4xbf16>
    %106 = vector.shape_cast %105 : vector<1x4x4xbf16> to vector<4x4xbf16>
    %cst_66 = arith.constant dense<0.000000e+00> : vector<16x16x4xf32>
    %107 = tpu.matmul %104, %106, %cst_66 {dimension_numbers = #tpu.dot_dimension_numbers<[2], [0], [0, 1], [1], [0, 0, 0, 1, 1, 1], [], []>} : vector<16x16x4xbf16>, vector<4x4xbf16>, vector<16x16x4xf32> -> vector<16x16x4xf32>
    %108 = arith.addf %103, %107 : vector<16x16x4xf32>
    %109 = vector.extract_strided_slice %45 {offsets = [0, 1, 0], sizes = [18, 16, 4], strides = [1, 1, 1]} : vector<18x18x4xbf16> to vector<18x16x4xbf16>
    %110 = vector.extract_strided_slice %109 {offsets = [0, 0, 0], sizes = [16, 16, 4], strides = [1, 1, 1]} : vector<18x16x4xbf16> to vector<16x16x4xbf16>
    %c1_67 = arith.constant 1 : index
    %c0_68 = arith.constant 0 : index
    %c0_69 = arith.constant 0 : index
    %111 = vector.load %arg9[%c1_67, %c0_68, %c0_69] : memref<9x4x4xbf16, #tpu.memory_space<vmem>>, vector<1x4x4xbf16>
    %112 = vector.shape_cast %111 : vector<1x4x4xbf16> to vector<4x4xbf16>
    %cst_70 = arith.constant dense<0.000000e+00> : vector<16x16x4xf32>
    %113 = tpu.matmul %110, %112, %cst_70 {dimension_numbers = #tpu.dot_dimension_numbers<[2], [0], [0, 1], [1], [0, 0, 0, 1, 1, 1], [], []>} : vector<16x16x4xbf16>, vector<4x4xbf16>, vector<16x16x4xf32> -> vector<16x16x4xf32>
    %114 = arith.addf %108, %113 : vector<16x16x4xf32>
    %115 = vector.extract_strided_slice %109 {offsets = [1, 0, 0], sizes = [16, 16, 4], strides = [1, 1, 1]} : vector<18x16x4xbf16> to vector<16x16x4xbf16>
    %c4_71 = arith.constant 4 : index
    %c0_72 = arith.constant 0 : index
    %c0_73 = arith.constant 0 : index
    %116 = vector.load %arg9[%c4_71, %c0_72, %c0_73] : memref<9x4x4xbf16, #tpu.memory_space<vmem>>, vector<1x4x4xbf16>
    %117 = vector.shape_cast %116 : vector<1x4x4xbf16> to vector<4x4xbf16>
    %cst_74 = arith.constant dense<0.000000e+00> : vector<16x16x4xf32>
    %118 = tpu.matmul %115, %117, %cst_74 {dimension_numbers = #tpu.dot_dimension_numbers<[2], [0], [0, 1], [1], [0, 0, 0, 1, 1, 1], [], []>} : vector<16x16x4xbf16>, vector<4x4xbf16>, vector<16x16x4xf32> -> vector<16x16x4xf32>
    %119 = arith.addf %114, %118 : vector<16x16x4xf32>
    %120 = vector.extract_strided_slice %109 {offsets = [2, 0, 0], sizes = [16, 16, 4], strides = [1, 1, 1]} : vector<18x16x4xbf16> to vector<16x16x4xbf16>
    %c7_75 = arith.constant 7 : index
    %c0_76 = arith.constant 0 : index
    %c0_77 = arith.constant 0 : index
    %121 = vector.load %arg9[%c7_75, %c0_76, %c0_77] : memref<9x4x4xbf16, #tpu.memory_space<vmem>>, vector<1x4x4xbf16>
    %122 = vector.shape_cast %121 : vector<1x4x4xbf16> to vector<4x4xbf16>
    %cst_78 = arith.constant dense<0.000000e+00> : vector<16x16x4xf32>
    %123 = tpu.matmul %120, %122, %cst_78 {dimension_numbers = #tpu.dot_dimension_numbers<[2], [0], [0, 1], [1], [0, 0, 0, 1, 1, 1], [], []>} : vector<16x16x4xbf16>, vector<4x4xbf16>, vector<16x16x4xf32> -> vector<16x16x4xf32>
    %124 = arith.addf %119, %123 : vector<16x16x4xf32>
    %125 = vector.extract_strided_slice %45 {offsets = [0, 2, 0], sizes = [18, 16, 4], strides = [1, 1, 1]} : vector<18x18x4xbf16> to vector<18x16x4xbf16>
    %126 = vector.extract_strided_slice %125 {offsets = [0, 0, 0], sizes = [16, 16, 4], strides = [1, 1, 1]} : vector<18x16x4xbf16> to vector<16x16x4xbf16>
    %c2_79 = arith.constant 2 : index
    %c0_80 = arith.constant 0 : index
    %c0_81 = arith.constant 0 : index
    %127 = vector.load %arg9[%c2_79, %c0_80, %c0_81] : memref<9x4x4xbf16, #tpu.memory_space<vmem>>, vector<1x4x4xbf16>
    %128 = vector.shape_cast %127 : vector<1x4x4xbf16> to vector<4x4xbf16>
    %cst_82 = arith.constant dense<0.000000e+00> : vector<16x16x4xf32>
    %129 = tpu.matmul %126, %128, %cst_82 {dimension_numbers = #tpu.dot_dimension_numbers<[2], [0], [0, 1], [1], [0, 0, 0, 1, 1, 1], [], []>} : vector<16x16x4xbf16>, vector<4x4xbf16>, vector<16x16x4xf32> -> vector<16x16x4xf32>
    %130 = arith.addf %124, %129 : vector<16x16x4xf32>
    %131 = vector.extract_strided_slice %125 {offsets = [1, 0, 0], sizes = [16, 16, 4], strides = [1, 1, 1]} : vector<18x16x4xbf16> to vector<16x16x4xbf16>
    %c5_83 = arith.constant 5 : index
    %c0_84 = arith.constant 0 : index
    %c0_85 = arith.constant 0 : index
    %132 = vector.load %arg9[%c5_83, %c0_84, %c0_85] : memref<9x4x4xbf16, #tpu.memory_space<vmem>>, vector<1x4x4xbf16>
    %133 = vector.shape_cast %132 : vector<1x4x4xbf16> to vector<4x4xbf16>
    %cst_86 = arith.constant dense<0.000000e+00> : vector<16x16x4xf32>
    %134 = tpu.matmul %131, %133, %cst_86 {dimension_numbers = #tpu.dot_dimension_numbers<[2], [0], [0, 1], [1], [0, 0, 0, 1, 1, 1], [], []>} : vector<16x16x4xbf16>, vector<4x4xbf16>, vector<16x16x4xf32> -> vector<16x16x4xf32>
    %135 = arith.addf %130, %134 : vector<16x16x4xf32>
    %136 = vector.extract_strided_slice %125 {offsets = [2, 0, 0], sizes = [16, 16, 4], strides = [1, 1, 1]} : vector<18x16x4xbf16> to vector<16x16x4xbf16>
    %c8_87 = arith.constant 8 : index
    %c0_88 = arith.constant 0 : index
    %c0_89 = arith.constant 0 : index
    %137 = vector.load %arg9[%c8_87, %c0_88, %c0_89] : memref<9x4x4xbf16, #tpu.memory_space<vmem>>, vector<1x4x4xbf16>
    %138 = vector.shape_cast %137 : vector<1x4x4xbf16> to vector<4x4xbf16>
    %cst_90 = arith.constant dense<0.000000e+00> : vector<16x16x4xf32>
    %139 = tpu.matmul %136, %138, %cst_90 {dimension_numbers = #tpu.dot_dimension_numbers<[2], [0], [0, 1], [1], [0, 0, 0, 1, 1, 1], [], []>} : vector<16x16x4xbf16>, vector<4x4xbf16>, vector<16x16x4xf32> -> vector<16x16x4xf32>
    %140 = arith.addf %135, %139 : vector<16x16x4xf32>
    %c0_91 = arith.constant 0 : index
    %c0_92 = arith.constant 0 : index
    %141 = vector.load %arg10[%c0_91, %c0_92] : memref<1x4xf32, #tpu.memory_space<vmem>>, vector<1x4xf32>
    %142 = vector.shape_cast %141 : vector<1x4xf32> to vector<4xf32>
    %143 = vector.shape_cast %142 : vector<4xf32> to vector<1x1x4xf32>
    %144 = vector.broadcast %143 : vector<1x1x4xf32> to vector<16x16x4xf32>
    %145 = arith.mulf %140, %144 : vector<16x16x4xf32>
    %c0_93 = arith.constant 0 : index
    %c0_94 = arith.constant 0 : index
    %146 = vector.load %arg11[%c0_93, %c0_94] : memref<1x4xf32, #tpu.memory_space<vmem>>, vector<1x4xf32>
    %147 = vector.shape_cast %146 : vector<1x4xf32> to vector<4xf32>
    %148 = vector.shape_cast %147 : vector<4xf32> to vector<1x1x4xf32>
    %149 = vector.broadcast %148 : vector<1x1x4xf32> to vector<16x16x4xf32>
    %150 = arith.addf %145, %149 : vector<16x16x4xf32>
    %cst_95 = arith.constant 0.000000e+00 : f32
    %151 = vector.broadcast %cst_95 : f32 to vector<16x16x4xf32>
    %152 = arith.maximumf %150, %151 : vector<16x16x4xf32>
    %153 = arith.truncf %152 : vector<16x16x4xf32> to vector<16x16x4xbf16>
    %c0_96 = arith.constant 0 : index
    %c0_97 = arith.constant 0 : index
    %c0_98 = arith.constant 0 : index
    %c0_99 = arith.constant 0 : index
    %154 = vector.load %arg12[%c0_96, %c0_97, %c0_98, %c0_99] : memref<1x16x16x4xbf16, #tpu.memory_space<vmem>>, vector<1x16x16x4xbf16>
    %155 = vector.shape_cast %154 : vector<1x16x16x4xbf16> to vector<16x16x4xbf16>
    %156 = vector.shape_cast %153 : vector<16x16x4xbf16> to vector<1x16x16x4xbf16>
    tpu.vector_store %arg12[%c0_96, %c0_97, %c0_98, %c0_99], %156 {strides = array<i32>} : memref<1x16x16x4xbf16, #tpu.memory_space<vmem>>, vector<1x16x16x4xbf16>,
    return
  }
  func.func @transform_0(%arg0: i32, %arg1: i32) -> (i32, i32, i32, i32) {
    %c0_i32 = arith.constant 0 : i32
    %c0_i32_0 = arith.constant 0 : i32
    %c0_i32_1 = arith.constant 0 : i32
    return %arg0, %arg1, %c0_i32, %c0_i32_0 : i32, i32, i32, i32
  }
  func.func @transform_1(%arg0: i32, %arg1: i32) -> (i32, i32, i32, i32) {
    %c16_i32 = arith.constant 16 : i32
    %0 = arith.muli %arg1, %c16_i32 : i32
    %c1_i32 = arith.constant 1 : i32
    %1 = arith.subi %0, %c1_i32 : i32
    %c0_i32 = arith.constant 0 : i32
    %2 = arith.maxsi %1, %c0_i32 : i32
    %c0_i32_0 = arith.constant 0 : i32
    %c0_i32_1 = arith.constant 0 : i32
    %c0_i32_2 = arith.constant 0 : i32
    return %arg0, %2, %c0_i32_0, %c0_i32_1 : i32, i32, i32, i32
  }
  func.func @transform_2(%arg0: i32, %arg1: i32) -> (i32, i32, i32, i32) {
    %c1_i32 = arith.constant 1 : i32
    %0 = arith.addi %arg1, %c1_i32 : i32
    %c16_i32 = arith.constant 16 : i32
    %1 = arith.muli %0, %c16_i32 : i32
    %c15_i32 = arith.constant 15 : i32
    %2 = arith.minsi %1, %c15_i32 : i32
    %c0_i32 = arith.constant 0 : i32
    %c0_i32_0 = arith.constant 0 : i32
    %c0_i32_1 = arith.constant 0 : i32
    return %arg0, %2, %c0_i32, %c0_i32_0 : i32, i32, i32, i32
  }
  func.func @transform_3(%arg0: i32, %arg1: i32) -> (i32, i32, i32, i32) {
    %c0_i32 = arith.constant 0 : i32
    %c0_i32_0 = arith.constant 0 : i32
    %c0_i32_1 = arith.constant 0 : i32
    return %arg0, %arg1, %c0_i32, %c0_i32_0 : i32, i32, i32, i32
  }
  func.func @transform_4(%arg0: i32, %arg1: i32) -> (i32, i32, i32, i32) {
    %c16_i32 = arith.constant 16 : i32
    %0 = arith.muli %arg1, %c16_i32 : i32
    %c1_i32 = arith.constant 1 : i32
    %1 = arith.subi %0, %c1_i32 : i32
    %c0_i32 = arith.constant 0 : i32
    %2 = arith.maxsi %1, %c0_i32 : i32
    %c0_i32_0 = arith.constant 0 : i32
    %c0_i32_1 = arith.constant 0 : i32
    %c0_i32_2 = arith.constant 0 : i32
    return %arg0, %2, %c0_i32_0, %c0_i32_1 : i32, i32, i32, i32
  }
  func.func @transform_5(%arg0: i32, %arg1: i32) -> (i32, i32, i32, i32) {
    %c1_i32 = arith.constant 1 : i32
    %0 = arith.addi %arg1, %c1_i32 : i32
    %c16_i32 = arith.constant 16 : i32
    %1 = arith.muli %0, %c16_i32 : i32
    %c15_i32 = arith.constant 15 : i32
    %2 = arith.minsi %1, %c15_i32 : i32
    %c0_i32 = arith.constant 0 : i32
    %c0_i32_0 = arith.constant 0 : i32
    %c0_i32_1 = arith.constant 0 : i32
    return %arg0, %2, %c0_i32, %c0_i32_0 : i32, i32, i32, i32
  }
  func.func @transform_6(%arg0: i32, %arg1: i32) -> (i32, i32, i32) {
    %c0_i32 = arith.constant 0 : i32
    %c0_i32_0 = arith.constant 0 : i32
    %c0_i32_1 = arith.constant 0 : i32
    %c0_i32_2 = arith.constant 0 : i32
    return %c0_i32, %c0_i32_0, %c0_i32_1 : i32, i32, i32
  }
  func.func @transform_7(%arg0: i32, %arg1: i32) -> (i32, i32, i32) {
    %c0_i32 = arith.constant 0 : i32
    %c0_i32_0 = arith.constant 0 : i32
    %c0_i32_1 = arith.constant 0 : i32
    %c0_i32_2 = arith.constant 0 : i32
    return %c0_i32, %c0_i32_0, %c0_i32_1 : i32, i32, i32
  }
  func.func @transform_8(%arg0: i32, %arg1: i32) -> (i32, i32) {
    %c0_i32 = arith.constant 0 : i32
    %c0_i32_0 = arith.constant 0 : i32
    %c0_i32_1 = arith.constant 0 : i32
    return %c0_i32, %c0_i32_0 : i32, i32
  }
  func.func @transform_9(%arg0: i32, %arg1: i32) -> (i32, i32) {
    %c0_i32 = arith.constant 0 : i32
    %c0_i32_0 = arith.constant 0 : i32
    %c0_i32_1 = arith.constant 0 : i32
    return %c0_i32, %c0_i32_0 : i32, i32
  }
  func.func @transform_10(%arg0: i32, %arg1: i32) -> (i32, i32, i32, i32) {
    %c0_i32 = arith.constant 0 : i32
    %c0_i32_0 = arith.constant 0 : i32
    %c0_i32_1 = arith.constant 0 : i32
    return %arg0, %arg1, %c0_i32, %c0_i32_0 : i32, i32, i32, i32
  }
}

module attributes {stable_mosaic.version = 11 : i64} {
  func.func @_conv_kernel(%arg0: i32, %arg1: i32, %arg2: memref<1x16x16x4xbf16, #tpu.memory_space<vmem>>, %arg3: memref<1x1x16x4xbf16, #tpu.memory_space<vmem>>, %arg4: memref<1x1x16x4xbf16, #tpu.memory_space<vmem>>, %arg5: memref<9x4x4xbf16, #tpu.memory_space<vmem>>, %arg6: memref<1x4xf32, #tpu.memory_space<vmem>>, %arg7: memref<1x4xf32, #tpu.memory_space<vmem>>, %arg8: memref<1x16x16x4xf32, #tpu.memory_space<vmem>>) attributes {dimension_semantics = [#tpu.dimension_semantics<parallel>, #tpu.dimension_semantics<parallel>], iteration_bounds = array<i64: 2, 1>, scalar_prefetch = 0 : i64, scratch_operands = 0 : i64, tpu.core_type = #tpu.core_type<tc>, window_params = [{transform_indices = @transform_0, window_bounds = array<i64: 1, 16, 16, 4>}, {transform_indices = @transform_1, window_bounds = array<i64: 1, 1, 16, 4>}, {transform_indices = @transform_2, window_bounds = array<i64: 1, 1, 16, 4>}, {pipeline_mode = #tpu.pipeline_mode<synchronous>, transform_indices = @transform_3, window_bounds = array<i64: 9, 4, 4>}, {pipeline_mode = #tpu.pipeline_mode<synchronous>, transform_indices = @transform_4, window_bounds = array<i64: 1, 4>}, {pipeline_mode = #tpu.pipeline_mode<synchronous>, transform_indices = @transform_5, window_bounds = array<i64: 1, 4>}, {transform_indices = @transform_6, window_bounds = array<i64: 1, 16, 16, 4>}]} {
    %c0 = arith.constant 0 : index
    %c0_0 = arith.constant 0 : index
    %c0_1 = arith.constant 0 : index
    %c0_2 = arith.constant 0 : index
    %0 = vector.load %arg2[%c0, %c0_0, %c0_1, %c0_2] : memref<1x16x16x4xbf16, #tpu.memory_space<vmem>>, vector<1x16x16x4xbf16>
    %1 = vector.shape_cast %0 : vector<1x16x16x4xbf16> to vector<16x16x4xbf16>
    %c0_3 = arith.constant 0 : index
    %c0_4 = arith.constant 0 : index
    %c0_5 = arith.constant 0 : index
    %c0_6 = arith.constant 0 : index
    %2 = vector.load %arg3[%c0_3, %c0_4, %c0_5, %c0_6] : memref<1x1x16x4xbf16, #tpu.memory_space<vmem>>, vector<1x1x16x4xbf16>
    %3 = vector.shape_cast %2 : vector<1x1x16x4xbf16> to vector<16x4xbf16>
    %c0_7 = arith.constant 0 : index
    %c0_8 = arith.constant 0 : index
    %c0_9 = arith.constant 0 : index
    %c0_10 = arith.constant 0 : index
    %4 = vector.load %arg4[%c0_7, %c0_8, %c0_9, %c0_10] : memref<1x1x16x4xbf16, #tpu.memory_space<vmem>>, vector<1x1x16x4xbf16>
    %5 = vector.shape_cast %4 : vector<1x1x16x4xbf16> to vector<16x4xbf16>
    %c0_i32 = arith.constant 0 : i32
    %6 = arith.cmpi sgt, %arg1, %c0_i32 : i32
    %7 = arith.extui %6 : i1 to i32
    %8 = arith.sitofp %7 : i32 to f32
    %9 = arith.truncf %8 : f32 to bf16
    %10 = vector.broadcast %9 : bf16 to vector<16x4xbf16>
    %11 = arith.mulf %3, %10 : vector<16x4xbf16>
    %c0_i32_11 = arith.constant 0 : i32
    %12 = arith.cmpi slt, %arg1, %c0_i32_11 : i32
    %13 = arith.extui %12 : i1 to i32
    %14 = arith.sitofp %13 : i32 to f32
    %15 = arith.truncf %14 : f32 to bf16
    %16 = vector.broadcast %15 : bf16 to vector<16x4xbf16>
    %17 = arith.mulf %5, %16 : vector<16x4xbf16>
    %18 = vector.shape_cast %11 : vector<16x4xbf16> to vector<1x16x4xbf16>
    %19 = vector.shape_cast %17 : vector<16x4xbf16> to vector<1x16x4xbf16>
    %20 = tpu.concatenate %18, %1, %19 in 0 : vector<1x16x4xbf16>, vector<16x16x4xbf16>, vector<1x16x4xbf16> -> vector<18x16x4xbf16>
    %cst = arith.constant 0.000000e+00 : bf16
    %21 = vector.broadcast %cst : bf16 to vector<18x1x4xbf16>
    %22 = tpu.concatenate %21, %20, %21 in 1 : vector<18x1x4xbf16>, vector<18x16x4xbf16>, vector<18x1x4xbf16> -> vector<18x18x4xbf16>
    %23 = vector.extract_strided_slice %22 {offsets = [0, 0, 0], sizes = [18, 16, 4], strides = [1, 1, 1]} : vector<18x18x4xbf16> to vector<18x16x4xbf16>
    %24 = vector.extract_strided_slice %23 {offsets = [0, 0, 0], sizes = [16, 16, 4], strides = [1, 1, 1]} : vector<18x16x4xbf16> to vector<16x16x4xbf16>
    %c0_12 = arith.constant 0 : index
    %c0_13 = arith.constant 0 : index
    %c0_14 = arith.constant 0 : index
    %25 = vector.load %arg5[%c0_12, %c0_13, %c0_14] : memref<9x4x4xbf16, #tpu.memory_space<vmem>>, vector<1x4x4xbf16>
    %26 = vector.shape_cast %25 : vector<1x4x4xbf16> to vector<4x4xbf16>
    %cst_15 = arith.constant dense<0.000000e+00> : vector<16x16x4xf32>
    %27 = tpu.matmul %24, %26, %cst_15 {dimension_numbers = #tpu.dot_dimension_numbers<[2], [0], [0, 1], [1], [0, 0, 0, 1, 1, 1], [], []>} : vector<16x16x4xbf16>, vector<4x4xbf16>, vector<16x16x4xf32> -> vector<16x16x4xf32>
    %28 = vector.extract_strided_slice %23 {offsets = [1, 0, 0], sizes = [16, 16, 4], strides = [1, 1, 1]} : vector<18x16x4xbf16> to vector<16x16x4xbf16>
    %c3 = arith.constant 3 : index
    %c0_16 = arith.constant 0 : index
    %c0_17 = arith.constant 0 : index
    %29 = vector.load %arg5[%c3, %c0_16, %c0_17] : memref<9x4x4xbf16, #tpu.memory_space<vmem>>, vector<1x4x4xbf16>
    %30 = vector.shape_cast %29 : vector<1x4x4xbf16> to vector<4x4xbf16>
    %cst_18 = arith.constant dense<0.000000e+00> : vector<16x16x4xf32>
    %31 = tpu.matmul %28, %30, %cst_18 {dimension_numbers = #tpu.dot_dimension_numbers<[2], [0], [0, 1], [1], [0, 0, 0, 1, 1, 1], [], []>} : vector<16x16x4xbf16>, vector<4x4xbf16>, vector<16x16x4xf32> -> vector<16x16x4xf32>
    %32 = arith.addf %27, %31 : vector<16x16x4xf32>
    %33 = vector.extract_strided_slice %23 {offsets = [2, 0, 0], sizes = [16, 16, 4], strides = [1, 1, 1]} : vector<18x16x4xbf16> to vector<16x16x4xbf16>
    %c6 = arith.constant 6 : index
    %c0_19 = arith.constant 0 : index
    %c0_20 = arith.constant 0 : index
    %34 = vector.load %arg5[%c6, %c0_19, %c0_20] : memref<9x4x4xbf16, #tpu.memory_space<vmem>>, vector<1x4x4xbf16>
    %35 = vector.shape_cast %34 : vector<1x4x4xbf16> to vector<4x4xbf16>
    %cst_21 = arith.constant dense<0.000000e+00> : vector<16x16x4xf32>
    %36 = tpu.matmul %33, %35, %cst_21 {dimension_numbers = #tpu.dot_dimension_numbers<[2], [0], [0, 1], [1], [0, 0, 0, 1, 1, 1], [], []>} : vector<16x16x4xbf16>, vector<4x4xbf16>, vector<16x16x4xf32> -> vector<16x16x4xf32>
    %37 = arith.addf %32, %36 : vector<16x16x4xf32>
    %38 = vector.extract_strided_slice %22 {offsets = [0, 1, 0], sizes = [18, 16, 4], strides = [1, 1, 1]} : vector<18x18x4xbf16> to vector<18x16x4xbf16>
    %39 = vector.extract_strided_slice %38 {offsets = [0, 0, 0], sizes = [16, 16, 4], strides = [1, 1, 1]} : vector<18x16x4xbf16> to vector<16x16x4xbf16>
    %c1 = arith.constant 1 : index
    %c0_22 = arith.constant 0 : index
    %c0_23 = arith.constant 0 : index
    %40 = vector.load %arg5[%c1, %c0_22, %c0_23] : memref<9x4x4xbf16, #tpu.memory_space<vmem>>, vector<1x4x4xbf16>
    %41 = vector.shape_cast %40 : vector<1x4x4xbf16> to vector<4x4xbf16>
    %cst_24 = arith.constant dense<0.000000e+00> : vector<16x16x4xf32>
    %42 = tpu.matmul %39, %41, %cst_24 {dimension_numbers = #tpu.dot_dimension_numbers<[2], [0], [0, 1], [1], [0, 0, 0, 1, 1, 1], [], []>} : vector<16x16x4xbf16>, vector<4x4xbf16>, vector<16x16x4xf32> -> vector<16x16x4xf32>
    %43 = arith.addf %37, %42 : vector<16x16x4xf32>
    %44 = vector.extract_strided_slice %38 {offsets = [1, 0, 0], sizes = [16, 16, 4], strides = [1, 1, 1]} : vector<18x16x4xbf16> to vector<16x16x4xbf16>
    %c4 = arith.constant 4 : index
    %c0_25 = arith.constant 0 : index
    %c0_26 = arith.constant 0 : index
    %45 = vector.load %arg5[%c4, %c0_25, %c0_26] : memref<9x4x4xbf16, #tpu.memory_space<vmem>>, vector<1x4x4xbf16>
    %46 = vector.shape_cast %45 : vector<1x4x4xbf16> to vector<4x4xbf16>
    %cst_27 = arith.constant dense<0.000000e+00> : vector<16x16x4xf32>
    %47 = tpu.matmul %44, %46, %cst_27 {dimension_numbers = #tpu.dot_dimension_numbers<[2], [0], [0, 1], [1], [0, 0, 0, 1, 1, 1], [], []>} : vector<16x16x4xbf16>, vector<4x4xbf16>, vector<16x16x4xf32> -> vector<16x16x4xf32>
    %48 = arith.addf %43, %47 : vector<16x16x4xf32>
    %49 = vector.extract_strided_slice %38 {offsets = [2, 0, 0], sizes = [16, 16, 4], strides = [1, 1, 1]} : vector<18x16x4xbf16> to vector<16x16x4xbf16>
    %c7 = arith.constant 7 : index
    %c0_28 = arith.constant 0 : index
    %c0_29 = arith.constant 0 : index
    %50 = vector.load %arg5[%c7, %c0_28, %c0_29] : memref<9x4x4xbf16, #tpu.memory_space<vmem>>, vector<1x4x4xbf16>
    %51 = vector.shape_cast %50 : vector<1x4x4xbf16> to vector<4x4xbf16>
    %cst_30 = arith.constant dense<0.000000e+00> : vector<16x16x4xf32>
    %52 = tpu.matmul %49, %51, %cst_30 {dimension_numbers = #tpu.dot_dimension_numbers<[2], [0], [0, 1], [1], [0, 0, 0, 1, 1, 1], [], []>} : vector<16x16x4xbf16>, vector<4x4xbf16>, vector<16x16x4xf32> -> vector<16x16x4xf32>
    %53 = arith.addf %48, %52 : vector<16x16x4xf32>
    %54 = vector.extract_strided_slice %22 {offsets = [0, 2, 0], sizes = [18, 16, 4], strides = [1, 1, 1]} : vector<18x18x4xbf16> to vector<18x16x4xbf16>
    %55 = vector.extract_strided_slice %54 {offsets = [0, 0, 0], sizes = [16, 16, 4], strides = [1, 1, 1]} : vector<18x16x4xbf16> to vector<16x16x4xbf16>
    %c2 = arith.constant 2 : index
    %c0_31 = arith.constant 0 : index
    %c0_32 = arith.constant 0 : index
    %56 = vector.load %arg5[%c2, %c0_31, %c0_32] : memref<9x4x4xbf16, #tpu.memory_space<vmem>>, vector<1x4x4xbf16>
    %57 = vector.shape_cast %56 : vector<1x4x4xbf16> to vector<4x4xbf16>
    %cst_33 = arith.constant dense<0.000000e+00> : vector<16x16x4xf32>
    %58 = tpu.matmul %55, %57, %cst_33 {dimension_numbers = #tpu.dot_dimension_numbers<[2], [0], [0, 1], [1], [0, 0, 0, 1, 1, 1], [], []>} : vector<16x16x4xbf16>, vector<4x4xbf16>, vector<16x16x4xf32> -> vector<16x16x4xf32>
    %59 = arith.addf %53, %58 : vector<16x16x4xf32>
    %60 = vector.extract_strided_slice %54 {offsets = [1, 0, 0], sizes = [16, 16, 4], strides = [1, 1, 1]} : vector<18x16x4xbf16> to vector<16x16x4xbf16>
    %c5 = arith.constant 5 : index
    %c0_34 = arith.constant 0 : index
    %c0_35 = arith.constant 0 : index
    %61 = vector.load %arg5[%c5, %c0_34, %c0_35] : memref<9x4x4xbf16, #tpu.memory_space<vmem>>, vector<1x4x4xbf16>
    %62 = vector.shape_cast %61 : vector<1x4x4xbf16> to vector<4x4xbf16>
    %cst_36 = arith.constant dense<0.000000e+00> : vector<16x16x4xf32>
    %63 = tpu.matmul %60, %62, %cst_36 {dimension_numbers = #tpu.dot_dimension_numbers<[2], [0], [0, 1], [1], [0, 0, 0, 1, 1, 1], [], []>} : vector<16x16x4xbf16>, vector<4x4xbf16>, vector<16x16x4xf32> -> vector<16x16x4xf32>
    %64 = arith.addf %59, %63 : vector<16x16x4xf32>
    %65 = vector.extract_strided_slice %54 {offsets = [2, 0, 0], sizes = [16, 16, 4], strides = [1, 1, 1]} : vector<18x16x4xbf16> to vector<16x16x4xbf16>
    %c8 = arith.constant 8 : index
    %c0_37 = arith.constant 0 : index
    %c0_38 = arith.constant 0 : index
    %66 = vector.load %arg5[%c8, %c0_37, %c0_38] : memref<9x4x4xbf16, #tpu.memory_space<vmem>>, vector<1x4x4xbf16>
    %67 = vector.shape_cast %66 : vector<1x4x4xbf16> to vector<4x4xbf16>
    %cst_39 = arith.constant dense<0.000000e+00> : vector<16x16x4xf32>
    %68 = tpu.matmul %65, %67, %cst_39 {dimension_numbers = #tpu.dot_dimension_numbers<[2], [0], [0, 1], [1], [0, 0, 0, 1, 1, 1], [], []>} : vector<16x16x4xbf16>, vector<4x4xbf16>, vector<16x16x4xf32> -> vector<16x16x4xf32>
    %69 = arith.addf %64, %68 : vector<16x16x4xf32>
    %c0_40 = arith.constant 0 : index
    %c0_41 = arith.constant 0 : index
    %70 = vector.load %arg6[%c0_40, %c0_41] : memref<1x4xf32, #tpu.memory_space<vmem>>, vector<1x4xf32>
    %71 = vector.shape_cast %70 : vector<1x4xf32> to vector<4xf32>
    %72 = vector.shape_cast %71 : vector<4xf32> to vector<1x1x4xf32>
    %73 = vector.broadcast %72 : vector<1x1x4xf32> to vector<16x16x4xf32>
    %74 = arith.mulf %69, %73 : vector<16x16x4xf32>
    %c0_42 = arith.constant 0 : index
    %c0_43 = arith.constant 0 : index
    %75 = vector.load %arg7[%c0_42, %c0_43] : memref<1x4xf32, #tpu.memory_space<vmem>>, vector<1x4xf32>
    %76 = vector.shape_cast %75 : vector<1x4xf32> to vector<4xf32>
    %77 = vector.shape_cast %76 : vector<4xf32> to vector<1x1x4xf32>
    %78 = vector.broadcast %77 : vector<1x1x4xf32> to vector<16x16x4xf32>
    %79 = arith.addf %74, %78 : vector<16x16x4xf32>
    %cst_44 = arith.constant 0.000000e+00 : f32
    %80 = vector.broadcast %cst_44 : f32 to vector<16x16x4xf32>
    %81 = arith.maximumf %79, %80 : vector<16x16x4xf32>
    %c0_45 = arith.constant 0 : index
    %c0_46 = arith.constant 0 : index
    %c0_47 = arith.constant 0 : index
    %c0_48 = arith.constant 0 : index
    %82 = vector.load %arg8[%c0_45, %c0_46, %c0_47, %c0_48] : memref<1x16x16x4xf32, #tpu.memory_space<vmem>>, vector<1x16x16x4xf32>
    %83 = vector.shape_cast %82 : vector<1x16x16x4xf32> to vector<16x16x4xf32>
    %84 = vector.shape_cast %81 : vector<16x16x4xf32> to vector<1x16x16x4xf32>
    tpu.vector_store %arg8[%c0_45, %c0_46, %c0_47, %c0_48], %84 {strides = array<i32>} : memref<1x16x16x4xf32, #tpu.memory_space<vmem>>, vector<1x16x16x4xf32>,
    return
  }
  func.func @transform_0(%arg0: i32, %arg1: i32) -> (i32, i32, i32, i32) {
    %c0_i32 = arith.constant 0 : i32
    %c0_i32_0 = arith.constant 0 : i32
    %c0_i32_1 = arith.constant 0 : i32
    return %arg0, %arg1, %c0_i32, %c0_i32_0 : i32, i32, i32, i32
  }
  func.func @transform_1(%arg0: i32, %arg1: i32) -> (i32, i32, i32, i32) {
    %c16_i32 = arith.constant 16 : i32
    %0 = arith.muli %arg1, %c16_i32 : i32
    %c1_i32 = arith.constant 1 : i32
    %1 = arith.subi %0, %c1_i32 : i32
    %c0_i32 = arith.constant 0 : i32
    %2 = arith.maxsi %1, %c0_i32 : i32
    %c0_i32_0 = arith.constant 0 : i32
    %c0_i32_1 = arith.constant 0 : i32
    %c0_i32_2 = arith.constant 0 : i32
    return %arg0, %2, %c0_i32_0, %c0_i32_1 : i32, i32, i32, i32
  }
  func.func @transform_2(%arg0: i32, %arg1: i32) -> (i32, i32, i32, i32) {
    %c1_i32 = arith.constant 1 : i32
    %0 = arith.addi %arg1, %c1_i32 : i32
    %c16_i32 = arith.constant 16 : i32
    %1 = arith.muli %0, %c16_i32 : i32
    %c15_i32 = arith.constant 15 : i32
    %2 = arith.minsi %1, %c15_i32 : i32
    %c0_i32 = arith.constant 0 : i32
    %c0_i32_0 = arith.constant 0 : i32
    %c0_i32_1 = arith.constant 0 : i32
    return %arg0, %2, %c0_i32, %c0_i32_0 : i32, i32, i32, i32
  }
  func.func @transform_3(%arg0: i32, %arg1: i32) -> (i32, i32, i32) {
    %c0_i32 = arith.constant 0 : i32
    %c0_i32_0 = arith.constant 0 : i32
    %c0_i32_1 = arith.constant 0 : i32
    %c0_i32_2 = arith.constant 0 : i32
    return %c0_i32, %c0_i32_0, %c0_i32_1 : i32, i32, i32
  }
  func.func @transform_4(%arg0: i32, %arg1: i32) -> (i32, i32) {
    %c0_i32 = arith.constant 0 : i32
    %c0_i32_0 = arith.constant 0 : i32
    %c0_i32_1 = arith.constant 0 : i32
    return %c0_i32, %c0_i32_0 : i32, i32
  }
  func.func @transform_5(%arg0: i32, %arg1: i32) -> (i32, i32) {
    %c0_i32 = arith.constant 0 : i32
    %c0_i32_0 = arith.constant 0 : i32
    %c0_i32_1 = arith.constant 0 : i32
    return %c0_i32, %c0_i32_0 : i32, i32
  }
  func.func @transform_6(%arg0: i32, %arg1: i32) -> (i32, i32, i32, i32) {
    %c0_i32 = arith.constant 0 : i32
    %c0_i32_0 = arith.constant 0 : i32
    %c0_i32_1 = arith.constant 0 : i32
    return %arg0, %arg1, %c0_i32, %c0_i32_0 : i32, i32, i32, i32
  }
}

</mosaic_0001>

<bundles_post_ra>
// kernel: tile.8
= control target key start
LH: loop header
LB: loop body
LE: loop exit
PB: predicated region body
PF: predicated region fallthrough
CT: control target
= control target key end

     0   :  { %s22_s0 = inlined_call_operand.vmem [shape: f32[4], index: 0, kind: input, shape index: {}]   ;;  %s23_s1 = inlined_call_operand.vmem [shape: f32[4,4], index: 1, kind: output, shape index: {}]  }
   0x1   :  { %v4_v0 = vld [vmem:[%s22_s0] ss:$0 sm:$0xff] }
   0x2   :  { %5 = vst [vmem:[%s23_s1] sm:$0xf] %v4_v0 }

// kernel: tile.9
= control target key start
LH: loop header
LB: loop body
LE: loop exit
PB: predicated region body
PF: predicated region fallthrough
CT: control target
= control target key end

     0   :  { %vm8_vm0 = vcmask 31744   ;;  %s40_s8 = smov 4   ;;  %s41_s9 = smov 8   ;;  %vm14_vm1 = vcmask 130144   ;;  %vm20_vm2 = vcmask 97344   ;;  %vm26_vm3 = vcmask 64544   ;;  %s58_s0 = inlined_call_operand.vmem [shape: f32[4,4], index: 0, kind: input, shape index: {}]   ;;  %s59_s1 = inlined_call_operand.vmem [shape: f32[1,16], index: 1, kind: output, shape index: {}]  }
   0x1   :  { %v5_v0 = vld [vmem:[%s58_s0] sm:$0xf]  ;;  %s39_s0 = smov 12  }
   0x2   :  { %6 = vst [vmem:[#allocation1] sm:$0xf] %v5_v0 }
   0x9   :  { %v11_v1 = vld [vmem:[#allocation1 + $0x3] sm:$0x1]   ;;  %v23_v2 = vld [vmem:[#allocation1 + $0x1] sm:$0x1]   ;;  %v7_v3 = vld [vmem:[#allocation1] sm:$0x1]  }
   0xa   :  { %12 = vrot.lane.b32.xlu0 %v11_v1, %s39_s0  ;;  %24 = vrot.lane.b32.xlu1 %v23_v2, %s40_s8  ;;  %v17_v4 = vld [vmem:[#allocation1 + $0x2] sm:$0x1]   ;;  %9 = vst.msk [vmem:[#allocation0] sm:$0x1] %vm8_vm0, %v7_v3  }
   0xe   :  { %18 = vrot.lane.b32.xlu0 %v17_v4, %s41_s9 }
  0x7c   :  { %v13_v5 = vpop.permute.xlu0 %12   ;;  %v25_v6 = vpop.permute.xlu1 %24  }
  0x7d   :  { %15 = vst.msk [vmem:[#allocation0] sm:$0x1] %vm14_vm1, %v13_v5  }
  0x80   :  { %v19_v7 = vpop.permute.xlu0 %18  }
  0x81   :  { %21 = vst.msk [vmem:[#allocation0] sm:$0x1] %vm20_vm2, %v19_v7  }
  0x82   :  { %27 = vst.msk [vmem:[#allocation0] sm:$0x1] %vm26_vm3, %v25_v6  }
  0x89   :  { %v32_v8 = vld [vmem:[#allocation0] sm:$0x1] }
  0x8a   :  { %35 = vst [vmem:[%s59_s1] sm:$0x1] %v32_v8 }

// kernel: upconv_concat_forward.3
= control target key start
LH: loop header
LB: loop body
LE: loop exit
PB: predicated region body
PF: predicated region fallthrough
CT: control target
= control target key end

     0   :  { %s637_s12 = smov 0   ;;  %s639_s13 = smov 0   ;;  %s710_s0 = inlined_call_operand.vmem [shape: bf16[2,8,8,8], index: 0, kind: input, shape index: {}]   ;;  %s711_s1 = inlined_call_operand.vmem [shape: bf16[8,16], index: 1, kind: input, shape index: {}]   ;;  %s712_s2 = inlined_call_operand.vmem [shape: f32[1,16], index: 2, kind: input, shape index: {}]   ;;  %s713_s3 = inlined_call_operand.vmem [shape: bf16[2,8,2,8,8], index: 3, kind: output, shape index: {}]  }
   0x1   :  { %s641_s14 = smov 0  }
   0x2 LB: > { %s25_s15 = sadd.s32 1, %s610_s13  ;;  %p502_p0 = scmp.ge.s32.totalorder %s614_s14, 1  ;;  %s614_s14 = sphi %s641_s14, %s13_s14   ;;  %s610_s13 = sphi %s639_s13, %s715_s13   ;;  %s606_s12 = sphi %s637_s12, %s714_s12  }
   0x3   : > { %p27_p1 = scmp.ge.s32.totalorder %s25_s15, 2  ;;  %p158_p2 = scmp.lt.s32.totalorder %s614_s14, 3 }
   0x5   : > { %s717_s15 = smov (%p27_p1, %s25_s15), 0  ;;  %p159_p3 = pnand %p502_p0, %p158_p2 }
   0x6   : > { %p192_p4 = scmp.lt.s32.totalorder (!%p159_p3), %s606_s12, 1  ;;  %s616_s28 = smov (!%p159_p3), 120  }
   0x7   : > { %162 = sbr.rel (%p159_p3) target bundleno = 344 (0x158), region = 32 }
   0xc   : > { %v221_v0 = vld [vmem:[%s711_s1] sm:$0xf]  ;;  %vm262_vm0 = vcmask 1043456   ;;  %s719_s12 = smov (!%p192_p4, %s606_s12), 1  ;;  %vm249_vm1 = vcmask 64512   ;;  %vm339_vm2 = vcmask 60416  }
   0xd   : > { %561 = vmatprep.subr.msk.bf16.mxu0 %vm262_vm0, %v221_v0  ;;  %562 = vmatprep.subr.msk.bf16.mxu1 %vm262_vm0, %v221_v0  ;;  %v264_v1 = vsel %vm262_vm0, %v221_v0, 0  ;;  %s534_s18 = sshll.u32 %s719_s12, 5  ;;  %v507_v6 = vld [vmem:[%s712_s2] ss:$0 sm:$0xff]  ;;  %s535_s24 = sshll.u32 %s719_s12, 6 }
   0xe   : > { %550 = vmatpush3.bf16.msra.mxu0 %v264_v1  ;;  %560 = vmatpush3.bf16.msra.mxu1 %v264_v1  ;;  %s199_s21 = scalar_lea.vmem %s710_s0, %s534_s18  ;;  %s667_s27 = scalar_lea.vmem %s713_s3, %s535_s24 }
   0xf   : > { %v588_v2 = vld [vmem:[%s199_s21] sm:$0xff]   ;;  %v589_v3 = vld [vmem:[%s199_s21 + $0x10] sm:$0xff]   ;;  %v590_v4 = vld [vmem:[%s199_s21 + $0x8] sm:$0xff]  }
  0x10   : > { %551 = vmatprep.mubr.msk.bf16.mxu0 %vm249_vm1, %v588_v2  ;;  %555 = vmatprep.mubr.msk.bf16.mxu1 %vm249_vm1, %v589_v3  ;;  %v591_v5 = vld [vmem:[%s199_s21 + $0x18] sm:$0xff]  }
  0x11   : > { %552 = vmatmul.mubr.msk.bf16.vlgmr.msra.gmra.mxu0 %vm249_vm1, %v590_v4  ;;  %556 = vmatmul.mubr.msk.bf16.vlgmr.msra.gmra.mxu1 %vm249_vm1, %v591_v5 }
  0xd1   : > { %v553_v7 = vpop.f32.mrf.mxu0  ;;  %v557_v9 = vpop.f32.mrf.mxu1 }
  0xd2   : > { %v309_v8 = vadd.f32 %v553_v7, %v507_v6  ;;  %v325_v10 = vadd.f32 %v557_v9, %v507_v6 }
  0xd3   : > { %v300_v11 = vpop.f32.mrf.mxu0  ;;  %v316_v14 = vpop.f32.mrf.mxu1 }
  0xd4   : > { %v333_v12 = vpack.c.bf16 %v309_v8, %v309_v8  ;;  %v301_v13 = vadd.f32 %v507_v6, %v300_v11  ;;  %v337_v15 = vpack.c.bf16 %v325_v10, %v325_v10  ;;  %v317_v16 = vadd.f32 %v507_v6, %v316_v14 }
  0xd5   : > { %v554_v17 = vpop.f32.mrf.mxu0  ;;  %v558_v20 = vpop.f32.mrf.mxu1 }
  0xd6   : > { %342 = vst.msk [vmem:[%s667_s27 + $0x10] sm:$0xf] %vm339_vm2, %v333_v12  ;;  %v331_v18 = vpack.c.bf16 %v301_v13, %v301_v13  ;;  %v312_v19 = vadd.f32 %v554_v17, %v507_v6  ;;  %376 = vrot.lane.b32.xlu1 %v333_v12, %s616_s28  ;;  %346 = vst.msk [vmem:[%s667_s27 + $0x30] sm:$0xf] %vm339_vm2, %v337_v15  ;;  %v335_v21 = vpack.c.bf16 %v317_v16, %v317_v16 }
  0xd7   : > { %v328_v22 = vadd.f32 %v558_v20, %v507_v6  ;;  %v303_v23 = vpop.f32.mrf.mxu0  ;;  %v319_v26 = vpop.f32.mrf.mxu1 }
  0xd8   : > { %340 = vst.msk [vmem:[%s667_s27] sm:$0xf] %vm339_vm2, %v331_v18  ;;  %v334_v24 = vpack.c.bf16 %v312_v19, %v312_v19  ;;  %v304_v25 = vadd.f32 %v507_v6, %v303_v23  ;;  %372 = vrot.lane.b32.xlu0 %v331_v18, %s616_s28  ;;  %344 = vst.msk [vmem:[%s667_s27 + $0x20] sm:$0xf] %vm339_vm2, %v335_v21  ;;  %v320_v28 = vadd.f32 %v507_v6, %v319_v26 }
  0xd9   : > { %v338_v27 = vpack.c.bf16 %v328_v22, %v328_v22 }
  0xda   : > { %343 = vst.msk [vmem:[%s667_s27 + $0x18] sm:$0xf] %vm339_vm2, %v334_v24  ;;  %v332_v29 = vpack.c.bf16 %v304_v25, %v304_v25  ;;  %378 = vrot.lane.b32.xlu1 %v334_v24, %s616_s28  ;;  %v336_v30 = vpack.c.bf16 %v320_v28, %v320_v28 }
  0xdb   : > { %347 = vst.msk [vmem:[%s667_s27 + $0x38] sm:$0xf] %vm339_vm2, %v338_v27 }
  0xdc   : > { %341 = vst.msk [vmem:[%s667_s27 + $0x8] sm:$0xf] %vm339_vm2, %v332_v29  ;;  %380 = vrot.lane.b32.xlu0 %v335_v21, %s616_s28  ;;  %345 = vst.msk [vmem:[%s667_s27 + $0x28] sm:$0xf] %vm339_vm2, %v336_v30 }
  0xde   : > { %382 = vrot.lane.b32.xlu1 %v336_v30, %s616_s28 }
  0xe0   : > { %374 = vrot.lane.b32.xlu0 %v332_v29, %s616_s28 }
  0xe2   : > { %386 = vrot.lane.b32.xlu1 %v338_v27, %s616_s28 }
  0xe4   : > { %384 = vrot.lane.b32.xlu0 %v337_v15, %s616_s28 }
 0x148   : > { %v377_v31 = vpop.permute.xlu1 %376 }
 0x149   : > { %526 = vst.msk [vmem:[%s667_s27 + $0x14] sm:$0xf] %vm339_vm2, %v377_v31 }
 0x14a   : > { %v373_v32 = vpop.permute.xlu0 %372 }
 0x14b   : > { %524 = vst.msk [vmem:[%s667_s27 + $0x4] sm:$0xf] %vm339_vm2, %v373_v32 }
 0x14c   : > { %v379_v33 = vpop.permute.xlu1 %378 }
 0x14d   : > { %527 = vst.msk [vmem:[%s667_s27 + $0x1c] sm:$0xf] %vm339_vm2, %v379_v33 }
 0x14e   : > { %v381_v34 = vpop.permute.xlu0 %380 }
 0x14f   : > { %528 = vst.msk [vmem:[%s667_s27 + $0x24] sm:$0xf] %vm339_vm2, %v381_v34 }
 0x150   : > { %v383_v35 = vpop.permute.xlu1 %382 }
 0x151   : > { %529 = vst.msk [vmem:[%s667_s27 + $0x2c] sm:$0xf] %vm339_vm2, %v383_v35 }
 0x152   : > { %v375_v36 = vpop.permute.xlu0 %374 }
 0x153   : > { %525 = vst.msk [vmem:[%s667_s27 + $0xc] sm:$0xf] %vm339_vm2, %v375_v36 }
 0x154   : > { %v387_v37 = vpop.permute.xlu1 %386 }
 0x155   : > { %531 = vst.msk [vmem:[%s667_s27 + $0x3c] sm:$0xf] %vm339_vm2, %v387_v37 }
 0x156   : > { %v385_v38 = vpop.permute.xlu0 %384 }
 0x157   : > { %530 = vst.msk [vmem:[%s667_s27 + $0x34] sm:$0xf] %vm339_vm2, %v385_v38 }
 0x158 PF: > { %s13_s14 = sadd.s32 1, %s614_s14   ;;  %s714_s12 = smov %s610_s13 }
 0x159   : > { %p10_p5 = scmp.ge.s32.totalorder %s13_s14, 4   ;;  %s715_s13 = smov %s717_s15 }
 0x15b   :  { %12 = sbr.rel (!%p10_p5) target bundleno = 2 (0x2), region = 63 }

// kernel: upconv_concat_forward.5
= control target key start
LH: loop header
LB: loop body
LE: loop exit
PB: predicated region body
PF: predicated region fallthrough
CT: control target
= control target key end

     0   :  { %s4000_s21 = smov 0   ;;  %s4002_s22 = smov 0   ;;  %s5435_s0 = inlined_call_operand.vmem [shape: bf16[2,16,16,4], index: 0, kind: input, shape index: {}, may-alias: {0,1,2}]   ;;  %s5436_s1 = inlined_call_operand.vmem [shape: bf16[2,16,16,4], index: 1, kind: input, shape index: {}, may-alias: {0,1,2}]   ;;  %s5437_s2 = inlined_call_operand.vmem [shape: bf16[2,16,16,4], index: 2, kind: input, shape index: {}, may-alias: {0,1,2}]   ;;  %s5438_s3 = inlined_call_operand.vmem [shape: bf16[9,4,4], index: 3, kind: input, shape index: {}]   ;;  %s5439_s4 = inlined_call_operand.vmem [shape: f32[1,4], index: 4, kind: input, shape index: {}]   ;;  %s5440_s5 = inlined_call_operand.vmem [shape: f32[1,4], index: 5, kind: input, shape index: {}]   ;;  %s5441_s6 = inlined_call_operand.vmem [shape: f32[2,16,16,4], index: 6, kind: output, shape index: {}]  }
   0x1   :  { %s4004_s23 = smov 0  }
   0x2 LB: > { %s28_s24 = sadd.s32 1, %s3959_s22  ;;  %p3241_p0 = scmp.ge.s32.totalorder %s3963_s23, 1  ;;  %s3963_s23 = sphi %s4004_s23, %s16_s23   ;;  %s3959_s22 = sphi %s4002_s22, %s5525_s22   ;;  %s3955_s21 = sphi %s4000_s21, %s5524_s21  }
   0x3   : > { %p30_p1 = scmp.ge.s32.totalorder %s28_s24, 2  ;;  %p298_p2 = scmp.lt.s32.totalorder %s3963_s23, 3 }
   0x5   : > { %s5527_s24 = smov (%p30_p1, %s28_s24), 0  ;;  %p299_p3 = pnand %p3241_p0, %p298_p2 }
   0x7   : > { %302 = sbr.rel (%p299_p3) target bundleno = 517 (0x205), region = 44 }
   0xc   : > { %v3268_v0 = vld [vmem:[%s5438_s3 + $0x6] sm:$0x3]  ;;  %vm838_vm0 = vcmask 1041408   ;;  %p365_p4 = scmp.lt.s32.totalorder %s3955_s21, 1  ;;  %v786_v2 = vld [vmem:[%s5438_s3] sm:$0x3] }
   0xd   : > { %3892 = vmatprep.subr.msk.bf16.mxu1 %vm838_vm0, %v3268_v0  ;;  %3891 = vmatprep.subr.msk.bf16.mxu0 %vm838_vm0, %v3268_v0  ;;  %v840_v1 = vsel %vm838_vm0, %v3268_v0, 0  ;;  %v3301_v3 = vld [vmem:[%s5438_s3 + $0xc] sm:$0x3]  ;;  %vm747_vm1 = vcmask 1040384   ;;  %vm748_vm2 = vsmask.f32 256 }
   0xe   : > { %3890 = vmatpush3.bf16.msra.mxu1 %v840_v1  ;;  %3584 = vmatpush3.bf16.msra.mxu0 %v840_v1  ;;  %s5529_s21 = smov (!%p365_p4, %s3955_s21), 1  ;;  %vm789_vm3 = vcmask 31744   ;;  %v1007_v6 = vsel %vm838_vm0, %v786_v2, 0  ;;  %vm4051_vm4 = vmand %vm747_vm1, %vm748_vm2  ;;  %v1176_v35 = vsel %vm838_vm0, %v3301_v3, 0  ;;  %v4084_v38 = vld [vmem:[%s5438_s3 + $0x2] sm:$0x3] }
   0xf   : > { %3893 = vmatprep.subr.msk.bf16.mxu1 %vm838_vm0, %v786_v2  ;;  %3894 = vmatprep.subr.msk.bf16.mxu0 %vm838_vm0, %v3301_v3  ;;  %s4035_s7 = sshll.u32 %s5529_s21, 7  ;;  %v4095_v42 = vld [vmem:[%s5438_s3 + $0x8] sm:$0x3]  ;;  %vm1373_vm5 = vsmask.f32 7424  ;;  %vm2252_vm6 = vcmask 1046528  }
  0x10   : > { %s4041_s10 = scalar_lea.vmem %s5435_s0, %s4035_s7  ;;  %s387_s17 = scalar_lea.vmem %s5436_s1, %s4035_s7 }
  0x11   : > { %v3925_v4 = vld [vmem:[%s4041_s10] sm:$0xff]   ;;  %v3927_v11 = vld [vmem:[%s4041_s10 + $0x8] sm:$0xff]   ;;  %v3929_v14 = vld [vmem:[%s4041_s10 + $0x10] sm:$0xff]   ;;  %s3427_s26 = sadd.s32 120, %s4035_s7  ;;  %s3428_s14 = sshll.u32 %s5529_s21, 8 }
  0x12   : > { %v3926_v5 = vld [vmem:[%s4041_s10 + $0x40] sm:$0xff]   ;;  %v593_v7 = vshrl.u32 %v3925_v4, 16  ;;  %v596_v8 = vshll.u32 %v3925_v4, 16  ;;  %v3928_v12 = vld [vmem:[%s4041_s10 + $0x48] sm:$0xff]   ;;  %v600_v17 = vshrl.u32 %v3927_v11, 16  ;;  %v603_v18 = vshll.u32 %v3927_v11, 16  ;;  %s404_s29 = scalar_lea.vmem %s5437_s2, %s3427_s26  ;;  %s5225_s16 = scalar_lea.vmem %s5441_s6, %s3428_s14 }
  0x13   : > { %v649_v9 = vshrl.u32 %v3926_v5, 16  ;;  %v652_v10 = vshll.u32 %v3926_v5, 16  ;;  %v656_v19 = vshrl.u32 %v3928_v12, 16  ;;  %v659_v21 = vshll.u32 %v3928_v12, 16  ;;  %v3930_v24 = vld [vmem:[%s4041_s10 + $0x50] sm:$0xff]   ;;  %v3931_v36 = vld [vmem:[%s4041_s10 + $0x18] sm:$0xff]  }
  0x14   : > { %v4048_v13 = vrot.slane %v593_v7, 7  ;;  %v607_v22 = vshrl.u32 %v3929_v14, 16  ;;  %v610_v23 = vshll.u32 %v3929_v14, 16  ;;  %v4060_v26 = vrot.slane %v600_v17, 7  ;;  %v3932_v37 = vld [vmem:[%s4041_s10 + $0x58] sm:$0xff]   ;;  %v3933_v41 = vld [vmem:[%s4041_s10 + $0x20] sm:$0xff]  }
  0x15   : > { %v4055_v16 = vrot.slane %v649_v9, 7  ;;  %v4062_v27 = vrot.slane %v656_v19, 7  ;;  %v663_v30 = vshrl.u32 %v3930_v24, 16  ;;  %v666_v31 = vshll.u32 %v3930_v24, 16  ;;  %v3934_v51 = vld [vmem:[%s4041_s10 + $0x60] sm:$0xff]   ;;  %v3935_v55 = vld [vmem:[%s4041_s10 + $0x28] sm:$0xff]  }
  0x16   : > { %v598_v20 = vor.u32 %v596_v8, %v4048_v13  ;;  %v4068_v29 = vrot.slane %v607_v22, 7  ;;  %v605_v33 = vor.u32 %v603_v18, %v4060_v26  ;;  %v614_v45 = vshrl.u32 %v3931_v36, 16  ;;  %v3936_v0 = vld [vmem:[%s4041_s10 + $0x68] sm:$0xff]   ;;  %v3937_v3 = vld [vmem:[%s4041_s10 + $0x30] sm:$0xff]   ;;  %v3939_v14 = vld [vmem:[%s4041_s10 + $0x38] sm:$0xff]  }
  0x17   : > { %v654_v25 = vor.u32 %v652_v10, %v4055_v16  ;;  %v661_v34 = vor.u32 %v659_v21, %v4062_v27  ;;  %v4089_v40 = vrot.slane %v663_v30, 7  ;;  %v617_v46 = vshll.u32 %v3931_v36, 16  ;;  %v3938_v8 = vld [vmem:[%s4041_s10 + $0x70] sm:$0xff]   ;;  %v3940_v21 = vld [vmem:[%s4041_s10 + $0x78] sm:$0xff]  }
  0x18   : > { %v4066_v28 = vsel %vm4051_vm4, 0, %v598_v20  ;;  %v612_v39 = vor.u32 %v610_v23, %v4068_v29  ;;  %v4099_v43 = vsel %vm4051_vm4, 0, %v605_v33  ;;  %v670_v49 = vshrl.u32 %v3932_v37, 16 }
  0x19   : > { %3585 = vmatprep.mubr.msk.bf16.mxu0 %vm789_vm3, %v4066_v28  ;;  %v4074_v32 = vsel %vm4051_vm4, 0, %v654_v25  ;;  %v4103_v44 = vsel %vm4051_vm4, 0, %v661_v34  ;;  %v668_v48 = vor.u32 %v666_v31, %v4089_v40  ;;  %v673_v50 = vshll.u32 %v3932_v37, 16  ;;  %v453_v37 = vld [vmem:[%s387_s17] sm:$0xf] }
  0x1a   : > { %3601 = vmatprep.mubr.msk.bf16.mxu1 %vm789_vm3, %v4074_v32  ;;  %3586 = vmatmul.mubr.msk.bf16.vlgmr.msra.gmra.mxu0 %vm789_vm3, %v4099_v43  ;;  %v4111_v47 = vsel %vm4051_vm4, 0, %v612_v39  ;;  %v4115_v52 = vrot.slane %v614_v45, 7  ;;  %v621_v53 = vshrl.u32 %v3933_v41, 16  ;;  %v624_v54 = vshll.u32 %v3933_v41, 16 }
  0x1b   : > { %3602 = vmatmul.mubr.msk.bf16.vlgmr.msra.gmra.mxu1 %vm789_vm3, %v4103_v44  ;;  %3652 = vmatpush3.bf16.msra.mxu0 %v1176_v35  ;;  %v4122_v56 = vsel %vm4051_vm4, 0, %v668_v48  ;;  %v4124_v57 = vrot.slane %v670_v49, 7  ;;  %v677_v58 = vshrl.u32 %v3934_v51, 16  ;;  %v680_v59 = vshll.u32 %v3934_v51, 16 }
  0x1c   : > { %3618 = vmatpush3.bf16.msra.mxu1 %v1007_v6  ;;  %3589 = vmatprep.mubr.msk.bf16.mxu0 %vm789_vm3, %v4111_v47  ;;  %v619_v60 = vor.u32 %v617_v46, %v4115_v52  ;;  %v4131_v61 = vrot.slane %v621_v53, 7  ;;  %v628_v62 = vshrl.u32 %v3935_v55, 16  ;;  %v631_v63 = vshll.u32 %v3935_v55, 16  ;;  %v454_v46 = vld [vmem:[%s387_s17 + $0x4] sm:$0xf] }
  0x1d   : > { %3895 = vmatprep.subr.msk.bf16.mxu1 %vm838_vm0, %v4084_v38  ;;  %3605 = vmatprep.mubr.msk.bf16.mxu1 %vm789_vm3, %v4122_v56  ;;  %v675_v1 = vor.u32 %v673_v50, %v4124_v57  ;;  %v4137_v2 = vrot.slane %v677_v58, 7  ;;  %v684_v7 = vshrl.u32 %v3936_v0, 16  ;;  %v687_v11 = vshll.u32 %v3936_v0, 16 }
  0x1e   : > { %3896 = vmatprep.subr.msk.bf16.mxu0 %vm838_vm0, %v4095_v42  ;;  %v4142_v4 = vsel %vm4051_vm4, 0, %v619_v60  ;;  %v626_v5 = vor.u32 %v624_v54, %v4131_v61  ;;  %v4145_v6 = vrot.slane %v628_v62, 7  ;;  %v635_v12 = vshrl.u32 %v3937_v3, 16 }
  0x1f   : > { %v4150_v9 = vsel %vm4051_vm4, 0, %v675_v1  ;;  %v682_v10 = vor.u32 %v680_v59, %v4137_v2  ;;  %v4159_v19 = vrot.slane %v684_v7, 7  ;;  %v638_v20 = vshll.u32 %v3937_v3, 16 }
  0x20   : > { %v4156_v17 = vsel %vm4051_vm4, 0, %v626_v5  ;;  %v633_v18 = vor.u32 %v631_v63, %v4145_v6  ;;  %v4170_v23 = vrot.slane %v635_v12, 7  ;;  %v691_v24 = vshrl.u32 %v3938_v8, 16 }
  0x21   : > { %v4168_v22 = vsel %vm4051_vm4, 0, %v682_v10  ;;  %v694_v25 = vshll.u32 %v3938_v8, 16  ;;  %v689_v30 = vor.u32 %v687_v11, %v4159_v19  ;;  %v642_v31 = vshrl.u32 %v3939_v14, 16 }
  0x22   : > { %3590 = vmatmul.mubr.msk.bf16.gmra.mxu0 %vm789_vm3, %v4142_v4  ;;  %v640_v33 = vor.u32 %v638_v20, %v4170_v23  ;;  %v4182_v34 = vrot.slane %v691_v24, 7  ;;  %v4186_v35 = vsel %vm4051_vm4, 0, %v633_v18  ;;  %v698_v36 = vshrl.u32 %v3940_v21, 16 }
  0x23   : > { %3606 = vmatmul.mubr.msk.bf16.gmra.mxu1 %vm789_vm3, %v4150_v9  ;;  %3593 = vmatprep.mubr.msk.bf16.mxu0 %vm789_vm3, %v4156_v17  ;;  %v4189_v41 = vrot.slane %v642_v31, 7  ;;  %v645_v45 = vshll.u32 %v3939_v14, 16  ;;  %v474_v48 = vmul.bf16 0.0, %v453_v37  ;;  %v4193_v49 = vsel %vm4051_vm4, 0, %v689_v30 }
  0x24   : > { %3609 = vmatprep.mubr.msk.bf16.mxu1 %vm789_vm3, %v4168_v22  ;;  %v696_v39 = vor.u32 %v694_v25, %v4182_v34  ;;  %v4195_v50 = vrot.slane %v698_v36, 7  ;;  %v701_v51 = vshll.u32 %v3940_v21, 16  ;;  %v475_v53 = vmul.bf16 0.0, %v454_v46 }
  0x25   : > { %v4199_v54 = vsel %vm4051_vm4, 0, %v640_v33  ;;  %v4208_v58 = vsel %vm4051_vm4, %v4048_v13, 0  ;;  %v1385_v60 = vshrl.u32 %v4066_v28, 16  ;;  %v1387_v62 = vshll.u32 %v4066_v28, 16 }
  0x26   : > { %v4203_v55 = vsel %vm4051_vm4, 0, %v696_v39  ;;  %v3250_v59 = vcombine.low %v474_v48, %v475_v53  ;;  %v647_v63 = vor.u32 %v645_v45, %v4189_v41  ;;  %v1392_v0 = vshll.u32 %v4208_v58, 16 }
  0x27   : > { %v4221_v13 = vsel %vm4051_vm4, %v4060_v26, 0  ;;  %v703_v1 = vor.u32 %v701_v51, %v4195_v50  ;;  %v1389_v7 = vrot.slane %v1387_v62, 1  ;;  %v1396_v10 = vshrl.u32 %v4099_v43, 16 }
  0x28   : > { %v586_v3 = vshrl.u32 %v3250_v59, 16  ;;  %v589_v5 = vshll.u32 %v3250_v59, 16  ;;  %v1394_v8 = vrot.slane %v1392_v0, 1  ;;  %v1398_v26 = vshll.u32 %v4099_v43, 16 }
  0x29   : > { %v1390_v12 = vor.u32 %v1389_v7, %v1385_v60  ;;  %v1403_v14 = vshll.u32 %v4221_v13, 16  ;;  %v4235_v18 = vsel %vm4051_vm4, 0, %v647_v63  ;;  %v4240_v20 = vsel %vm4051_vm4, %v4068_v29, 0 }
  0x2a   : > { %3594 = vmatmul.mubr.msk.bf16.gmra.mxu0 %vm789_vm3, %v4186_v35  ;;  %v4229_v11 = vrot.slane %v586_v3, 7  ;;  %v1409_v21 = vshll.u32 %v4111_v47, 16  ;;  %v4245_v24 = vsel %vm4051_vm4, 0, %v703_v1  ;;  %v1400_v31 = vrot.slane %v1398_v26, 1  ;;  %v4301_v26 = vld [vmem:[%s5438_s3 + $0xe] sm:$0x3] }
  0x2b   : > { %3610 = vmatmul.mubr.msk.bf16.gmra.mxu1 %vm789_vm3, %v4193_v49  ;;  %3597 = vmatprep.mubr.msk.bf16.mxu0 %vm789_vm3, %v4199_v54  ;;  %v4249_v30 = vsel %vm1373_vm5, %v1390_v12, %v1394_v8  ;;  %v1405_v33 = vrot.slane %v1403_v14, 1  ;;  %v1407_v36 = vshrl.u32 %v4111_v47, 16  ;;  %v1414_v45 = vshll.u32 %v4240_v20, 16 }
  0x2c   : > { %3613 = vmatprep.mubr.msk.bf16.mxu1 %vm789_vm3, %v4203_v55  ;;  %v591_v25 = vor.u32 %v589_v5, %v4229_v11  ;;  %v1411_v37 = vrot.slane %v1409_v21, 1  ;;  %v1401_v39 = vor.u32 %v1400_v31, %v1396_v10  ;;  %v4264_v46 = vsel %vm4051_vm4, %v4115_v52, 0 }
  0x2d   : > { %v1416_v53 = vrot.slane %v1414_v45, 1  ;;  %v1418_v59 = vshrl.u32 %v4142_v4, 16  ;;  %v1420_v60 = vshll.u32 %v4142_v4, 16  ;;  %v1425_v62 = vshll.u32 %v4264_v46, 16 }
  0x2e   : > { %v4254_v29 = vsel %vm4051_vm4, 0, %v591_v25  ;;  %v4271_v48 = vsel %vm1373_vm5, %v1401_v39, %v1405_v33  ;;  %v1412_v51 = vor.u32 %v1411_v37, %v1407_v36  ;;  %v1599_v52 = vsel %vm838_vm0, %v4084_v38, 0 }
  0x2f   : > { %v4284_v0 = vsel %vm4051_vm4, %v4131_v61, 0  ;;  %v1429_v1 = vshrl.u32 %v4156_v17, 16  ;;  %v1422_v3 = vrot.slane %v1420_v60, 1  ;;  %v1427_v5 = vrot.slane %v1425_v62, 1 }
  0x30   : > { %v4279_v63 = vsel %vm1373_vm5, %v1412_v51, %v1416_v53  ;;  %v1431_v7 = vshll.u32 %v4156_v17, 16  ;;  %v1436_v8 = vshll.u32 %v4284_v0, 16  ;;  %v1811_v10 = vsel %vm838_vm0, %v4095_v42, 0  ;;  %v4311_v42 = vld [vmem:[%s5438_s3 + $0x4] sm:$0x3] }
  0x31   : > { %v4294_v38 = vsel %vm4051_vm4, %v4145_v6, 0  ;;  %v1440_v12 = vshrl.u32 %v4186_v35, 16  ;;  %v1442_v61 = vshll.u32 %v4186_v35, 16  ;;  %v1423_v14 = vor.u32 %v1422_v3, %v1418_v59 }
  0x32   : > { %3598 = vmatmul.mubr.msk.bf16.gmra.mxu0 %vm789_vm3, %v4235_v18  ;;  %v1433_v21 = vrot.slane %v1431_v7, 1  ;;  %v1438_v25 = vrot.slane %v1436_v8, 1  ;;  %v1447_v31 = vshll.u32 %v4294_v38, 16  ;;  %v4316_v33 = vsel %vm4051_vm4, %v4170_v23, 0 }
  0x33   : > { %3614 = vmatmul.mubr.msk.bf16.gmra.mxu1 %vm789_vm3, %v4245_v24  ;;  %3653 = vmatprep.mubr.msk.bf16.mxu0 %vm789_vm3, %v4099_v43  ;;  %v1444_v6 = vrot.slane %v1442_v61, 1  ;;  %v1451_v36 = vshrl.u32 %v4199_v54, 16  ;;  %v1453_v37 = vshll.u32 %v4199_v54, 16  ;;  %v4321_v39 = vsel %vm1373_vm5, %v1423_v14, %v1427_v5 }
  0x34   : > { %3619 = vmatprep.mubr.msk.bf16.mxu1 %vm789_vm3, %v4254_v29  ;;  %v1434_v45 = vor.u32 %v1433_v21, %v1429_v1  ;;  %v1449_v51 = vrot.slane %v1447_v31, 1  ;;  %v1458_v53 = vshll.u32 %v4316_v33, 16  ;;  %v776_v60 = vsel %vm4051_vm4, %v4189_v41, 0 }
  0x35   : > { %v1445_v23 = vor.u32 %v1444_v6, %v1440_v12  ;;  %v1455_v59 = vrot.slane %v1453_v37, 1  ;;  %v1462_v62 = vshrl.u32 %v4235_v18, 16  ;;  %v1464_v3 = vshll.u32 %v4235_v18, 16 }
  0x36   : > { %v1460_v1 = vrot.slane %v1458_v53, 1  ;;  %v1469_v5 = vshll.u32 %v776_v60, 16  ;;  %v2256_v21 = vrot.slane %v4066_v28, 1  ;;  %v2253_v31 = vrot.slane %v4254_v29, 1 }
  0x37   : > { %v4341_v7 = vsel %vm1373_vm5, %v1445_v23, %v1449_v51  ;;  %v1456_v8 = vor.u32 %v1455_v59, %v1451_v36  ;;  %v1466_v41 = vrot.slane %v1464_v3, 1  ;;  %v768_v6 = vsel %vm4051_vm4, %v4229_v11, 0 }
  0x38   : > { %v2254_v36 = vrot.slane %v768_v6, 1  ;;  %v2260_v51 = vrot.slane %v4221_v13, 1  ;;  %v2263_v53 = vrot.slane %v4240_v20, 1  ;;  %v2265_v11 = vrot.slane %v4142_v4, 1 }
  0x39   : > { %v4344_v12 = vsel %vm1373_vm5, %v1456_v8, %v1460_v1  ;;  %v1467_v61 = vor.u32 %v1466_v41, %v1462_v62  ;;  %v2266_v23 = vrot.slane %v4264_v46, 1  ;;  %v2268_v59 = vrot.slane %v4156_v17, 1 }
  0x3a   : > { %3654 = vmatmul.mubr.msk.bf16.vlgmr.msra.gmra.mxu0 %vm789_vm3, %v4111_v47  ;;  %v2272_v46 = vrot.slane %v4294_v38, 1  ;;  %v2275_v62 = vrot.slane %v4316_v33, 1  ;;  %v2277_v1 = vrot.slane %v4235_v18, 1  ;;  %v2278_v3 = vrot.slane %v776_v60, 1  ;;  %v455_v38 = vld [vmem:[%s404_s29] sm:$0xf] }
  0x3b   : > { %3620 = vmatmul.mubr.msk.bf16.vlgmr.msra.gmra.mxu1 %vm789_vm3, %v4066_v28  ;;  %3720 = vmatpush3.bf16.msra.mxu0 %v1811_v10  ;;  %v1471_v10 = vrot.slane %v1469_v5, 1  ;;  %v4375_v28 = vsel %vm2252_vm6, %v2253_v31, %v2254_v36  ;;  %v4402_v20 = vsel %vm2252_vm6, %v2265_v11, %v2266_v23  ;;  %v1381_v36 = vshll.u32 %v768_v6, 16  ;;  %v4475_v23 = vld [vmem:[%s5438_s3 + $0xa] sm:$0x3] }
  0x3c   : > { %3686 = vmatpush3.bf16.msra.mxu1 %v1599_v52  ;;  %3623 = vmatprep.mubr.msk.bf16.mxu1 %vm789_vm3, %v4099_v43  ;;  %v4337_v52 = vsel %vm1373_vm5, %v1434_v45, %v1438_v25  ;;  %v2257_v25 = vrot.slane %v4208_v58, 1  ;;  %v2259_v45 = vrot.slane %v4099_v43, 1  ;;  %v2262_v58 = vrot.slane %v4111_v47, 1 }
  0x3d   : > { %3657 = vmatprep.mubr.msk.bf16.mxu0 %vm789_vm3, %v4142_v4  ;;  %3897 = vmatprep.subr.msk.bf16.mxu1 %vm838_vm0, %v4301_v26  ;;  %v4355_v14 = vsel %vm1373_vm5, %v1467_v61, %v1471_v10  ;;  %v2269_v43 = vrot.slane %v4284_v0, 1  ;;  %v2274_v0 = vrot.slane %v4199_v54, 1  ;;  %v4421_v8 = vsel %vm2252_vm6, %v2277_v1, %v2278_v3 }
  0x3e   : > { %3898 = vmatprep.subr.msk.bf16.mxu0 %vm838_vm0, %v4311_v42  ;;  %v4372_v37 = vsel %vm2252_vm6, %v2256_v21, %v2257_v25  ;;  %v4398_v13 = vsel %vm2252_vm6, %v2262_v58, %v2263_v53  ;;  %v1376_v10 = vshll.u32 %v4254_v29, 16  ;;  %v1374_v25 = vshrl.u32 %v4254_v29, 16 }
  0x3f   : > { %v4418_v5 = vsel %vm2252_vm6, %v2274_v0, %v2275_v62  ;;  %v1383_v58 = vrot.slane %v1381_v36, 1  ;;  %v2023_v53 = vsel %vm838_vm0, %v4301_v26, 0  ;;  %v2350_v11 = vsel %vm838_vm0, %v4311_v42, 0 }
  0x40   : > { %v1378_v31 = vrot.slane %v1376_v10, 1  ;;  %v4502_v26 = vsel %vm4051_vm4, %v4055_v16, 0  ;;  %v1473_v42 = vshrl.u32 %v4074_v32, 16  ;;  %v1486_v16 = vshll.u32 %v4103_v44, 16 }
  0x41   : > { %v4518_v62 = vsel %vm4051_vm4, %v4062_v27, 0  ;;  %v1497_v1 = vshll.u32 %v4122_v56, 16  ;;  %v4524_v3 = vsel %vm4051_vm4, %v4089_v40, 0  ;;  %v4545_v36 = vsel %vm4051_vm4, %v4124_v57, 0 }
  0x42   : > { %3658 = vmatmul.mubr.msk.bf16.gmra.mxu0 %vm789_vm3, %v4156_v17  ;;  %v1502_v27 = vshll.u32 %v4524_v3, 16  ;;  %v1517_v57 = vshrl.u32 %v4168_v22, 16 }
  0x43   : > { %3624 = vmatmul.mubr.msk.bf16.gmra.mxu1 %vm789_vm3, %v4111_v47  ;;  %3661 = vmatprep.mubr.msk.bf16.mxu0 %vm789_vm3, %v4186_v35  ;;  %v4395_v47 = vsel %vm2252_vm6, %v2259_v45, %v2260_v51  ;;  %v1379_v51 = vor.u32 %v1378_v31, %v1374_v25 }
  0x44   : > { %3627 = vmatprep.mubr.msk.bf16.mxu1 %vm789_vm3, %v4142_v4  ;;  %v2271_v4 = vrot.slane %v4186_v35, 1  ;;  %v1504_v31 = vrot.slane %v1502_v27, 1 }
  0x45   : > { %v1384_v6 = vsel %vm1373_vm5, %v1379_v51, %v1383_v58  ;;  %v4551_v51 = vsel %vm4051_vm4, %v4137_v2, 0 }
  0x4a   : > { %3662 = vmatmul.mubr.msk.bf16.gmra.mxu0 %vm789_vm3, %v4199_v54 }
  0x4b   : > { %3628 = vmatmul.mubr.msk.bf16.gmra.mxu1 %vm789_vm3, %v4156_v17  ;;  %3665 = vmatprep.mubr.msk.bf16.mxu0 %vm789_vm3, %v4235_v18  ;;  %v4405_v17 = vsel %vm2252_vm6, %v2268_v59, %v2269_v43  ;;  %v4480_v59 = vld [vmem:[%s5438_s3 + $0x10] sm:$0x3] }
  0x4c   : > { %3631 = vmatprep.mubr.msk.bf16.mxu1 %vm789_vm3, %v4186_v35  ;;  %v4415_v35 = vsel %vm2252_vm6, %v2271_v4, %v2272_v46  ;;  %v1480_v4 = vshll.u32 %v4502_v26, 16 }
  0x4e   : > { %v1482_v0 = vrot.slane %v1480_v4, 1 }
  0x52   : > { %3666 = vmatmul.mubr.msk.bf16.gmra.mxu0 %vm789_vm3, %v4074_v32 }
  0x53   : > { %3632 = vmatmul.mubr.msk.bf16.gmra.mxu1 %vm789_vm3, %v4199_v54  ;;  %3669 = vmatprep.mubr.msk.bf16.mxu0 %vm789_vm3, %v4103_v44  ;;  %v456_v54 = vld [vmem:[%s404_s29 + $0x4] sm:$0xf] }
  0x54   : > { %3635 = vmatprep.mubr.msk.bf16.mxu1 %vm789_vm3, %v4235_v18  ;;  %v493_v18 = vmul.bf16 0.0, %v455_v38  ;;  %v494_v33 = vmul.bf16 0.0, %v456_v54  ;;  %v1484_v38 = vshrl.u32 %v4103_v44, 16  ;;  %v1488_v54 = vrot.slane %v1486_v16, 1 }
  0x55   : > { %v1530_v16 = vshll.u32 %v4193_v49, 16 }
  0x56   : > { %v3267_v60 = vcombine.low %v493_v18, %v494_v33  ;;  %v1491_v18 = vshll.u32 %v4518_v62, 16  ;;  %v1489_v40 = vor.u32 %v1488_v54, %v1484_v38  ;;  %v1541_v38 = vshll.u32 %v4203_v55, 16 }
  0x57   : > { %v4581_v54 = vsel %vm4051_vm4, %v4182_v34, 0 }
  0x58   : > { %v705_v41 = vshrl.u32 %v3267_v60, 16  ;;  %v708_v21 = vshll.u32 %v3267_v60, 16  ;;  %v1495_v60 = vshrl.u32 %v4122_v56, 16  ;;  %v1493_v10 = vrot.slane %v1491_v18, 1 }
  0x5a   : > { %3670 = vmatmul.mubr.msk.bf16.gmra.mxu0 %vm789_vm3, %v4122_v56  ;;  %v4440_v61 = vrot.slane %v705_v41, 7  ;;  %v1499_v41 = vrot.slane %v1497_v1, 1  ;;  %v4554_v58 = vsel %vm1373_vm5, %v1489_v40, %v1493_v10  ;;  %v4575_v1 = vsel %vm4051_vm4, %v4159_v19, 0 }
  0x5b   : > { %3636 = vmatmul.mubr.msk.bf16.gmra.mxu1 %vm789_vm3, %v4074_v32  ;;  %3673 = vmatprep.mubr.msk.bf16.mxu0 %vm789_vm3, %v4150_v9  ;;  %v1535_v27 = vshll.u32 %v4575_v1, 16  ;;  %v1539_v19 = vshrl.u32 %v4203_v55, 16  ;;  %v1543_v10 = vrot.slane %v1541_v38, 1 }
  0x5c   : > { %3639 = vmatprep.mubr.msk.bf16.mxu1 %vm789_vm3, %v4103_v44  ;;  %v710_v45 = vor.u32 %v708_v21, %v4440_v61  ;;  %v1508_v21 = vshll.u32 %v4150_v9, 16  ;;  %v1500_v25 = vor.u32 %v1499_v41, %v1495_v60  ;;  %v1528_v60 = vshrl.u32 %v4193_v49, 16 }
  0x5d   : > { %v1532_v41 = vrot.slane %v1530_v16, 1 }
  0x5e   : > { %v4454_v29 = vsel %vm4051_vm4, 0, %v710_v45  ;;  %v1519_v45 = vshll.u32 %v4168_v22, 16 }
  0x5f   : > { %v1533_v34 = vor.u32 %v1532_v41, %v1528_v60  ;;  %v2293_v41 = vrot.slane %v4551_v51, 1 }
  0x62   : > { %3674 = vmatmul.mubr.msk.bf16.gmra.mxu0 %vm789_vm3, %v4168_v22 }
  0x63   : > { %3640 = vmatmul.mubr.msk.bf16.gmra.mxu1 %vm789_vm3, %v4122_v56  ;;  %3677 = vmatprep.mubr.msk.bf16.mxu0 %vm789_vm3, %v4193_v49 }
  0x64   : > { %3643 = vmatprep.mubr.msk.bf16.mxu1 %vm789_vm3, %v4150_v9 }
  0x6a   : > { %3678 = vmatmul.mubr.msk.bf16.gmra.mxu0 %vm789_vm3, %v4203_v55 }
  0x6b   : > { %3644 = vmatmul.mubr.msk.bf16.gmra.mxu1 %vm789_vm3, %v4168_v22  ;;  %3681 = vmatprep.mubr.msk.bf16.mxu0 %vm789_vm3, %v4245_v24 }
  0x6c   : > { %3647 = vmatprep.mubr.msk.bf16.mxu1 %vm789_vm3, %v4193_v49 }
  0x72   : > { %3682 = vmatmul.mubr.msk.bf16.gmra.mxu0 %vm789_vm3, %v4454_v29 }
  0x73   : > { %3648 = vmatmul.mubr.msk.bf16.gmra.mxu1 %vm789_vm3, %v4203_v55  ;;  %3721 = vmatprep.mubr.msk.bf16.mxu0 %vm789_vm3, %v4249_v30 }
  0x74   : > { %3687 = vmatprep.mubr.msk.bf16.mxu1 %vm789_vm3, %v1384_v6  ;;  %v1506_v6 = vshrl.u32 %v4150_v9, 16 }
  0x7a   : > { %3722 = vmatmul.mubr.msk.bf16.vlgmr.msra.gmra.mxu0 %vm789_vm3, %v4271_v48 }
  0x7b   : > { %3688 = vmatmul.mubr.msk.bf16.vlgmr.msra.gmra.mxu1 %vm789_vm3, %v4249_v30  ;;  %3788 = vmatpush3.bf16.msra.mxu0 %v2350_v11  ;;  %v1475_v30 = vshll.u32 %v4074_v32, 16  ;;  %v1513_v11 = vshll.u32 %v4545_v36, 16 }
  0x7c   : > { %3754 = vmatpush3.bf16.msra.mxu1 %v2023_v53  ;;  %3691 = vmatprep.mubr.msk.bf16.mxu1 %vm789_vm3, %v4271_v48  ;;  %v1510_v53 = vrot.slane %v1508_v21, 1  ;;  %v1546_v21 = vshll.u32 %v4581_v54, 16 }
  0x7d   : > { %3725 = vmatprep.mubr.msk.bf16.mxu0 %vm789_vm3, %v4279_v63  ;;  %3899 = vmatprep.subr.msk.bf16.mxu1 %vm838_vm0, %v4475_v23  ;;  %v1477_v43 = vrot.slane %v1475_v30, 1  ;;  %v4559_v30 = vsel %vm1373_vm5, %v1500_v25, %v1504_v31  ;;  %v1515_v4 = vrot.slane %v1513_v11, 1  ;;  %v1537_v25 = vrot.slane %v1535_v27, 1 }
  0x7e   : > { %3900 = vmatprep.subr.msk.bf16.mxu0 %vm838_vm0, %v4480_v59  ;;  %v1511_v2 = vor.u32 %v1510_v53, %v1506_v6  ;;  %v1798_v31 = vshll.u32 %v4245_v24, 16  ;;  %v1548_v6 = vrot.slane %v1546_v21, 1  ;;  %v4605_v53 = vsel %vm4051_vm4, %v4195_v50, 0 }
  0x7f   : > { %v1478_v46 = vor.u32 %v1477_v43, %v1473_v42  ;;  %v1521_v42 = vrot.slane %v1519_v45, 1  ;;  %v1524_v43 = vshll.u32 %v4551_v51, 16  ;;  %v1544_v45 = vor.u32 %v1543_v10, %v1539_v19 }
  0x80   : > { %v4584_v18 = vsel %vm1373_vm5, %v1511_v2, %v1515_v4  ;;  %v4608_v11 = vsel %vm1373_vm5, %v1533_v34, %v1537_v25  ;;  %v2296_v10 = vrot.slane %v4575_v1, 1  ;;  %v4738_v21 = vsel %vm4051_vm4, %v4440_v61, 0 }
  0x81   : > { %v4529_v33 = vsel %vm1373_vm5, %v1478_v46, %v1482_v0  ;;  %v1522_v46 = vor.u32 %v1521_v42, %v1517_v57  ;;  %v1526_v0 = vrot.slane %v1524_v43, 1  ;;  %v1796_v57 = vshrl.u32 %v4245_v24, 16 }
  0x82   : > { %3726 = vmatmul.mubr.msk.bf16.gmra.mxu0 %vm789_vm3, %v4321_v39  ;;  %v1800_v42 = vrot.slane %v1798_v31, 1  ;;  %v1803_v43 = vshll.u32 %v4605_v53, 16  ;;  %v4613_v2 = vsel %vm1373_vm5, %v1544_v45, %v1548_v6  ;;  %v2015_v45 = vshll.u32 %v4738_v21, 16 }
  0x83   : > { %3692 = vmatmul.mubr.msk.bf16.gmra.mxu1 %vm789_vm3, %v4279_v63  ;;  %3729 = vmatprep.mubr.msk.bf16.mxu0 %vm789_vm3, %v4337_v52  ;;  %v4589_v40 = vsel %vm1373_vm5, %v1522_v46, %v1526_v0  ;;  %v2556_v46 = vsel %vm838_vm0, %v4475_v23, 0  ;;  %v2762_v0 = vsel %vm838_vm0, %v4480_v59, 0 }
  0x84   : > { %3695 = vmatprep.mubr.msk.bf16.mxu1 %vm789_vm3, %v4321_v39  ;;  %v1801_v50 = vor.u32 %v1800_v42, %v1796_v57  ;;  %v1805_v4 = vrot.slane %v1803_v43, 1  ;;  %v2017_v57 = vrot.slane %v2015_v45, 1  ;;  %v2298_v42 = vrot.slane %v4203_v55, 1 }
  0x85   : > { %v2299_v43 = vrot.slane %v4581_v54, 1 }
  0x86   : > { %v4624_v16 = vsel %vm1373_vm5, %v1801_v50, %v1805_v4 }
  0x8a   : > { %3730 = vmatmul.mubr.msk.bf16.gmra.mxu0 %vm789_vm3, %v4341_v7 }
  0x8b   : > { %3696 = vmatmul.mubr.msk.bf16.gmra.mxu1 %vm789_vm3, %v4337_v52  ;;  %3733 = vmatprep.mubr.msk.bf16.mxu0 %vm789_vm3, %v4344_v12 }
  0x8c   : > { %3699 = vmatprep.mubr.msk.bf16.mxu1 %vm789_vm3, %v4341_v7 }
  0x92   : > { %3734 = vmatmul.mubr.msk.bf16.gmra.mxu0 %vm789_vm3, %v4355_v14 }
  0x93   : > { %3700 = vmatmul.mubr.msk.bf16.gmra.mxu1 %vm789_vm3, %v4344_v12  ;;  %3737 = vmatprep.mubr.msk.bf16.mxu0 %vm789_vm3, %v4529_v33 }
  0x94   : > { %3703 = vmatprep.mubr.msk.bf16.mxu1 %vm789_vm3, %v4355_v14 }
  0x9a   : > { %3738 = vmatmul.mubr.msk.bf16.gmra.mxu0 %vm789_vm3, %v4554_v58 }
  0x9b   : > { %3704 = vmatmul.mubr.msk.bf16.gmra.mxu1 %vm789_vm3, %v4529_v33  ;;  %3741 = vmatprep.mubr.msk.bf16.mxu0 %vm789_vm3, %v4559_v30 }
  0x9c   : > { %3707 = vmatprep.mubr.msk.bf16.mxu1 %vm789_vm3, %v4554_v58 }
  0xa2   : > { %3742 = vmatmul.mubr.msk.bf16.gmra.mxu0 %vm789_vm3, %v4584_v18 }
  0xa3   : > { %3708 = vmatmul.mubr.msk.bf16.gmra.mxu1 %vm789_vm3, %v4559_v30  ;;  %3745 = vmatprep.mubr.msk.bf16.mxu0 %vm789_vm3, %v4589_v40 }
  0xa4   : > { %3711 = vmatprep.mubr.msk.bf16.mxu1 %vm789_vm3, %v4584_v18 }
  0xaa   : > { %3746 = vmatmul.mubr.msk.bf16.gmra.mxu0 %vm789_vm3, %v4608_v11 }
  0xab   : > { %3712 = vmatmul.mubr.msk.bf16.gmra.mxu1 %vm789_vm3, %v4589_v40  ;;  %3749 = vmatprep.mubr.msk.bf16.mxu0 %vm789_vm3, %v4613_v2 }
  0xac   : > { %3715 = vmatprep.mubr.msk.bf16.mxu1 %vm789_vm3, %v4608_v11 }
  0xb2   : > { %3750 = vmatmul.mubr.msk.bf16.gmra.mxu0 %vm789_vm3, %v4624_v16 }
  0xb3   : > { %3716 = vmatmul.mubr.msk.bf16.gmra.mxu1 %vm789_vm3, %v4613_v2  ;;  %3789 = vmatprep.mubr.msk.bf16.mxu0 %vm789_vm3, %v4375_v28 }
  0xb4   : > { %3755 = vmatprep.mubr.msk.bf16.mxu1 %vm789_vm3, %v4271_v48  ;;  %v2280_v48 = vrot.slane %v4074_v32, 1  ;;  %v2286_v32 = vrot.slane %v4122_v56, 1 }
  0xba   : > { %3790 = vmatmul.mubr.msk.bf16.vlgmr.msra.gmra.mxu0 %vm789_vm3, %v4372_v37 }
  0xbb   : > { %3756 = vmatmul.mubr.msk.bf16.vlgmr.msra.gmra.mxu1 %vm789_vm3, %v4279_v63  ;;  %3856 = vmatpush3.bf16.msra.mxu0 %v2762_v0  ;;  %v2281_v63 = vrot.slane %v4502_v26, 1  ;;  %v2289_v26 = vrot.slane %v4150_v9, 1  ;;  %v2010_v9 = vshll.u32 %v4454_v29, 16 }
  0xbc   : > { %3822 = vmatpush3.bf16.msra.mxu1 %v2556_v46  ;;  %3759 = vmatprep.mubr.msk.bf16.mxu1 %vm789_vm3, %v4321_v39  ;;  %v2283_v39 = vrot.slane %v4103_v44, 1  ;;  %v2287_v44 = vrot.slane %v4524_v3, 1 }
  0xbd   : > { %3793 = vmatprep.mubr.msk.bf16.mxu0 %vm789_vm3, %v4395_v47  ;;  %v2012_v51 = vrot.slane %v2010_v9, 1 }
  0xc2   : > { %3794 = vmatmul.mubr.msk.bf16.gmra.mxu0 %vm789_vm3, %v4398_v13 }
  0xc3   : > { %3760 = vmatmul.mubr.msk.bf16.gmra.mxu1 %vm789_vm3, %v4337_v52  ;;  %3797 = vmatprep.mubr.msk.bf16.mxu0 %vm789_vm3, %v4402_v20  ;;  %v2284_v52 = vrot.slane %v4518_v62, 1  ;;  %v2290_v62 = vrot.slane %v4545_v36, 1  ;;  %v2292_v36 = vrot.slane %v4168_v22, 1  ;;  %v2008_v22 = vshrl.u32 %v4454_v29, 16 }
  0xc4   : > { %3763 = vmatprep.mubr.msk.bf16.mxu1 %vm789_vm3, %v4341_v7  ;;  %v4675_v7 = vsel %vm2252_vm6, %v2280_v48, %v2281_v63 }
  0xc5   : > { %v4712_v3 = vsel %vm2252_vm6, %v2289_v26, %v2290_v62  ;;  %v4746_v31 = vsel %vm2252_vm6, %v2292_v36, %v2293_v41 }
  0xca   : > { %3798 = vmatmul.mubr.msk.bf16.gmra.mxu0 %vm789_vm3, %v4405_v17 }
  0xcb   : > { %3764 = vmatmul.mubr.msk.bf16.gmra.mxu1 %vm789_vm3, %v4344_v12  ;;  %3801 = vmatprep.mubr.msk.bf16.mxu0 %vm789_vm3, %v4415_v35  ;;  %v4678_v12 = vsel %vm2252_vm6, %v2283_v39, %v2284_v52 }
  0xcc   : > { %3767 = vmatprep.mubr.msk.bf16.mxu1 %vm789_vm3, %v4355_v14 }
  0xd2   : > { %3802 = vmatmul.mubr.msk.bf16.gmra.mxu0 %vm789_vm3, %v4418_v5 }
  0xd3   : > { %3768 = vmatmul.mubr.msk.bf16.gmra.mxu1 %vm789_vm3, %v4529_v33  ;;  %3805 = vmatprep.mubr.msk.bf16.mxu0 %vm789_vm3, %v4421_v8 }
  0xd4   : > { %3771 = vmatprep.mubr.msk.bf16.mxu1 %vm789_vm3, %v4554_v58 }
  0xda   : > { %v4680_v14 = vpop.f32.mrf.mxu0  ;;  %3806 = vmatmul.mubr.msk.bf16.gmra.mxu0 %vm789_vm3, %v4675_v7 }
  0xdb   : > { %v4682_v28 = vpop.f32.mrf.mxu1  ;;  %3772 = vmatmul.mubr.msk.bf16.gmra.mxu1 %vm789_vm3, %v4559_v30  ;;  %3809 = vmatprep.mubr.msk.bf16.mxu0 %vm789_vm3, %v4678_v12  ;;  %v4705_v30 = vsel %vm2252_vm6, %v2286_v32, %v2287_v44 }
  0xdc   : > { %3775 = vmatprep.mubr.msk.bf16.mxu1 %vm789_vm3, %v4584_v18  ;;  %v4694_v23 = vpop.f32.mrf.mxu0 }
  0xdd   : > { %v4696_v59 = vpop.f32.mrf.mxu1 }
  0xde   : > { %v4700_v33 = vpop.f32.mrf.mxu0 }
  0xdf   : > { %v4702_v58 = vpop.f32.mrf.mxu1 }
  0xe0   : > { %v4707_v38 = vpop.f32.mrf.mxu0 }
  0xe1   : > { %v4709_v56 = vpop.f32.mrf.mxu1 }
  0xe2   : > { %v4714_v18 = vpop.f32.mrf.mxu0  ;;  %3810 = vmatmul.mubr.msk.bf16.gmra.mxu0 %vm789_vm3, %v4705_v30 }
  0xe3   : > { %v4716_v60 = vpop.f32.mrf.mxu1  ;;  %3776 = vmatmul.mubr.msk.bf16.gmra.mxu1 %vm789_vm3, %v4589_v40  ;;  %3813 = vmatprep.mubr.msk.bf16.mxu0 %vm789_vm3, %v4712_v3  ;;  %v2295_v40 = vrot.slane %v4193_v49, 1 }
  0xe4   : > { %3779 = vmatprep.mubr.msk.bf16.mxu1 %vm789_vm3, %v4608_v11  ;;  %v4729_v27 = vpop.f32.mrf.mxu0  ;;  %v2013_v11 = vor.u32 %v2012_v51, %v2008_v22 }
  0xe5   : > { %v4731_v19 = vpop.f32.mrf.mxu1  ;;  %v4754_v15 = vsel %vm2252_vm6, %v2295_v40, %v2296_v10 }
  0xe6   : > { %v4740_v34 = vpop.f32.mrf.mxu0  ;;  %v2018_v0 = vsel %vm1373_vm5, %v2013_v11, %v2017_v57 }
  0xe7   : > { %v4742_v25 = vpop.f32.mrf.mxu1 }
  0xe8   : > { %v4749_v49 = vpop.f32.mrf.mxu0 }
  0xe9   : > { %v4751_v1 = vpop.f32.mrf.mxu1 }
  0xea   : > { %v4756_v61 = vpop.f32.mrf.mxu0  ;;  %3814 = vmatmul.mubr.msk.bf16.gmra.mxu0 %vm789_vm3, %v4746_v31 }
  0xeb   : > { %v4758_v6 = vpop.f32.mrf.mxu1  ;;  %3780 = vmatmul.mubr.msk.bf16.gmra.mxu1 %vm789_vm3, %v4613_v2  ;;  %3817 = vmatprep.mubr.msk.bf16.mxu0 %vm789_vm3, %v4754_v15 }
  0xec   : > { %3783 = vmatprep.mubr.msk.bf16.mxu1 %vm789_vm3, %v4624_v16  ;;  %v4770_v50 = vpop.f32.mrf.mxu0  ;;  %v4780_v16 = vsel %vm2252_vm6, %v2298_v42, %v2299_v43 }
  0xed   : > { %v4772_v4 = vpop.f32.mrf.mxu1 }
  0xee   : > { %v4774_v2 = vpop.f32.mrf.mxu0 }
  0xef   : > { %v4776_v46 = vpop.f32.mrf.mxu1 }
  0xf0   : > { %v4782_v48 = vpop.f32.mrf.mxu0 }
  0xf1   : > { %v4784_v63 = vpop.f32.mrf.mxu1 }
  0xf2   : > { %v4786_v55 = vpop.f32.mrf.mxu0  ;;  %3818 = vmatmul.mubr.msk.bf16.gmra.mxu0 %vm789_vm3, %v4780_v16 }
  0xf3   : > { %v4788_v54 = vpop.f32.mrf.mxu1  ;;  %3784 = vmatmul.mubr.msk.bf16.gmra.mxu1 %vm789_vm3, %v2018_v0  ;;  %3857 = vmatprep.mubr.msk.bf16.mxu0 %vm789_vm3, %v4395_v47 }
  0xf4   : > { %3823 = vmatprep.mubr.msk.bf16.mxu1 %vm789_vm3, %v4372_v37  ;;  %v4797_v39 = vpop.f32.mrf.mxu0 }
  0xf5   : > { %v4799_v52 = vpop.f32.mrf.mxu1 }
  0xf6   : > { %v4801_v32 = vpop.f32.mrf.mxu0 }
  0xf7   : > { %v4803_v44 = vpop.f32.mrf.mxu1 }
  0xf8   : > { %v4805_v26 = vpop.f32.mrf.mxu0 }
  0xf9   : > { %v4807_v62 = vpop.f32.mrf.mxu1 }
  0xfa   : > { %v3655_v36 = vpop.f32.mrf.mxu0  ;;  %3858 = vmatmul.mubr.msk.bf16.vlgmr.msra.gmra.mxu0 %vm789_vm3, %v4398_v13 }
  0xfb   : > { %v3621_v9 = vpop.f32.mrf.mxu1  ;;  %3824 = vmatmul.mubr.msk.bf16.vlgmr.msra.gmra.mxu1 %vm789_vm3, %v4395_v47  ;;  %3861 = vmatprep.mubr.msk.bf16.mxu0 %vm789_vm3, %v4402_v20 }
  0xfc   : > { %v1052_v37 = vadd.f32 %v3621_v9, %v4680_v14  ;;  %3827 = vmatprep.mubr.msk.bf16.mxu1 %vm789_vm3, %v4398_v13  ;;  %v1212_v40 = vpop.f32.mrf.mxu0 }
  0xfd   : > { %v1043_v41 = vpop.f32.mrf.mxu1 }
  0xfe   : > { %v4818_v10 = vadd.f32 %v3655_v36, %v1052_v37  ;;  %v1044_v22 = vadd.f32 %v1043_v41, %v4694_v23  ;;  %v3656_v45 = vpop.f32.mrf.mxu0 }
  0xff   : > { %v3622_v51 = vpop.f32.mrf.mxu1 }
 0x100   : > { %v4821_v47 = vadd.f32 %v1212_v40, %v1044_v22  ;;  %v1055_v11 = vadd.f32 %v3622_v51, %v4700_v33  ;;  %v1215_v14 = vpop.f32.mrf.mxu0 }
 0x101   : > { %v1046_v57 = vpop.f32.mrf.mxu1 }
 0x102   : > { %v4824_v42 = vadd.f32 %v3656_v45, %v1055_v11  ;;  %v1047_v13 = vadd.f32 %v1046_v57, %v4707_v38  ;;  %v3659_v0 = vpop.f32.mrf.mxu0  ;;  %3862 = vmatmul.mubr.msk.bf16.gmra.mxu0 %vm789_vm3, %v4405_v17 }
 0x103   : > { %v3625_v43 = vpop.f32.mrf.mxu1  ;;  %3828 = vmatmul.mubr.msk.bf16.gmra.mxu1 %vm789_vm3, %v4402_v20  ;;  %3865 = vmatprep.mubr.msk.bf16.mxu0 %vm789_vm3, %v4415_v35 }
 0x104   : > { %v4831_v23 = vadd.f32 %v1215_v14, %v1047_v13  ;;  %v1068_v9 = vadd.f32 %v3625_v43, %v4714_v18  ;;  %3831 = vmatprep.mubr.msk.bf16.mxu1 %vm789_vm3, %v4405_v17  ;;  %v1228_v38 = vpop.f32.mrf.mxu0 }
 0x105   : > { %v1059_v33 = vpop.f32.mrf.mxu1 }
 0x106   : > { %v4838_v36 = vadd.f32 %v3659_v0, %v1068_v9  ;;  %v1060_v37 = vadd.f32 %v1059_v33, %v4729_v27  ;;  %v3660_v41 = vpop.f32.mrf.mxu0 }
 0x107   : > { %v3626_v20 = vpop.f32.mrf.mxu1 }
 0x108   : > { %v4841_v40 = vadd.f32 %v1228_v38, %v1060_v37  ;;  %v1071_v22 = vadd.f32 %v3626_v20, %v4740_v34  ;;  %v1231_v18 = vpop.f32.mrf.mxu0 }
 0x109   : > { %v1062_v51 = vpop.f32.mrf.mxu1 }
 0x10a   : > { %v4844_v45 = vadd.f32 %v3660_v41, %v1071_v22  ;;  %v1063_v17 = vadd.f32 %v1062_v51, %v4749_v49  ;;  %v3663_v57 = vpop.f32.mrf.mxu0  ;;  %3866 = vmatmul.mubr.msk.bf16.gmra.mxu0 %vm789_vm3, %v4418_v5 }
 0x10b   : > { %v3629_v11 = vpop.f32.mrf.mxu1  ;;  %3832 = vmatmul.mubr.msk.bf16.gmra.mxu1 %vm789_vm3, %v4415_v35  ;;  %3869 = vmatprep.mubr.msk.bf16.mxu0 %vm789_vm3, %v4421_v8 }
 0x10c   : > { %v4851_v27 = vadd.f32 %v1231_v18, %v1063_v17  ;;  %v1084_v14 = vadd.f32 %v3629_v11, %v4756_v61  ;;  %3835 = vmatprep.mubr.msk.bf16.mxu1 %vm789_vm3, %v4418_v5  ;;  %v1244_v49 = vpop.f32.mrf.mxu0 }
 0x10d   : > { %v1075_v34 = vpop.f32.mrf.mxu1 }
 0x10e   : > { %v4858_v13 = vadd.f32 %v3663_v57, %v1084_v14  ;;  %v1076_v43 = vadd.f32 %v1075_v34, %v4770_v50  ;;  %v3664_v0 = vpop.f32.mrf.mxu0 }
 0x10f   : > { %v3630_v35 = vpop.f32.mrf.mxu1 }
 0x110   : > { %v4861_v9 = vadd.f32 %v1244_v49, %v1076_v43  ;;  %v1087_v33 = vadd.f32 %v3630_v35, %v4774_v2  ;;  %v1247_v61 = vpop.f32.mrf.mxu0 }
 0x111   : > { %v1078_v38 = vpop.f32.mrf.mxu1 }
 0x112   : > { %v4864_v37 = vadd.f32 %v3664_v0, %v1087_v33  ;;  %v1079_v5 = vadd.f32 %v1078_v38, %v4782_v48  ;;  %v3667_v41 = vpop.f32.mrf.mxu0  ;;  %3870 = vmatmul.mubr.msk.bf16.gmra.mxu0 %vm789_vm3, %v4675_v7 }
 0x113   : > { %v3633_v20 = vpop.f32.mrf.mxu1  ;;  %3836 = vmatmul.mubr.msk.bf16.gmra.mxu1 %vm789_vm3, %v4421_v8  ;;  %3873 = vmatprep.mubr.msk.bf16.mxu0 %vm789_vm3, %v4678_v12 }
 0x114   : > { %v4871_v50 = vadd.f32 %v1247_v61, %v1079_v5  ;;  %v1100_v22 = vadd.f32 %v3633_v20, %v4786_v55  ;;  %3839 = vmatprep.mubr.msk.bf16.mxu1 %vm789_vm3, %v4675_v7  ;;  %v1260_v48 = vpop.f32.mrf.mxu0 }
 0x115   : > { %v1091_v2 = vpop.f32.mrf.mxu1 }
 0x116   : > { %v4878_v51 = vadd.f32 %v3667_v41, %v1100_v22  ;;  %v1092_v18 = vadd.f32 %v1091_v2, %v4797_v39  ;;  %v3668_v17 = vpop.f32.mrf.mxu0 }
 0x117   : > { %v3634_v8 = vpop.f32.mrf.mxu1 }
 0x118   : > { %v4881_v11 = vadd.f32 %v1260_v48, %v1092_v18  ;;  %v1103_v57 = vadd.f32 %v3634_v8, %v4801_v32  ;;  %v1263_v55 = vpop.f32.mrf.mxu0  ;;  %v2549_v18 = vrot.slane %v4245_v24, 1  ;;  %v2550_v8 = vrot.slane %v4605_v53, 1 }
 0x119   : > { %v1094_v14 = vpop.f32.mrf.mxu1 }
 0x11a   : > { %v4884_v34 = vadd.f32 %v3668_v17, %v1103_v57  ;;  %v1095_v7 = vadd.f32 %v1094_v14, %v4805_v26  ;;  %v3671_v43 = vpop.f32.mrf.mxu0  ;;  %3874 = vmatmul.mubr.msk.bf16.gmra.mxu0 %vm789_vm3, %v4705_v30 }
 0x11b   : > { %v3637_v49 = vpop.f32.mrf.mxu1  ;;  %3840 = vmatmul.mubr.msk.bf16.gmra.mxu1 %vm789_vm3, %v4678_v12  ;;  %3877 = vmatprep.mubr.msk.bf16.mxu0 %vm789_vm3, %v4712_v3 }
 0x11c   : > { %v4891_v39 = vadd.f32 %v1263_v55, %v1095_v7  ;;  %v1116_v35 = vadd.f32 %v3637_v49, %v4682_v28  ;;  %3843 = vmatprep.mubr.msk.bf16.mxu1 %vm789_vm3, %v4705_v30  ;;  %v1276_v26 = vpop.f32.mrf.mxu0  ;;  %v2551_v49 = vsel %vm2252_vm6, %v2549_v18, %v2550_v8 }
 0x11d   : > { %v1107_v32 = vpop.f32.mrf.mxu1 }
 0x11e   : > { %v4898_v0 = vadd.f32 %v3671_v43, %v1116_v35  ;;  %v1108_v33 = vadd.f32 %v1107_v32, %v4696_v59  ;;  %v3672_v38 = vpop.f32.mrf.mxu0 }
 0x11f   : > { %v3638_v12 = vpop.f32.mrf.mxu1 }
 0x120   : > { %v4901_v61 = vadd.f32 %v1276_v26, %v1108_v33  ;;  %v1119_v5 = vadd.f32 %v3638_v12, %v4702_v58  ;;  %v1279_v28 = vpop.f32.mrf.mxu0 }
 0x121   : > { %v1110_v20 = vpop.f32.mrf.mxu1 }
 0x122   : > { %v4904_v41 = vadd.f32 %v3672_v38, %v1119_v5  ;;  %v1111_v30 = vadd.f32 %v1110_v20, %v4709_v56  ;;  %v3675_v2 = vpop.f32.mrf.mxu0  ;;  %3878 = vmatmul.mubr.msk.bf16.gmra.mxu0 %vm789_vm3, %v4746_v31 }
 0x123   : > { %v3641_v22 = vpop.f32.mrf.mxu1  ;;  %3844 = vmatmul.mubr.msk.bf16.gmra.mxu1 %vm789_vm3, %v4712_v3  ;;  %3881 = vmatprep.mubr.msk.bf16.mxu0 %vm789_vm3, %v4754_v15 }
 0x124   : > { %v4911_v59 = vadd.f32 %v1279_v28, %v1111_v30  ;;  %v1132_v48 = vadd.f32 %v3641_v22, %v4716_v60  ;;  %3847 = vmatprep.mubr.msk.bf16.mxu1 %vm789_vm3, %v4746_v31  ;;  %v1292_v56 = vpop.f32.mrf.mxu0 }
 0x125   : > { %v1123_v58 = vpop.f32.mrf.mxu1 }
 0x126   : > { %v4920_v3 = vadd.f32 %v3675_v2, %v1132_v48  ;;  %v1124_v17 = vadd.f32 %v1123_v58, %v4731_v19  ;;  %v3676_v14 = vpop.f32.mrf.mxu0  ;;  %v2755_v19 = vrot.slane %v4454_v29, 1 }
 0x127   : > { %v3642_v57 = vpop.f32.mrf.mxu1 }
 0x128   : > { %v4923_v55 = vadd.f32 %v1292_v56, %v1124_v17  ;;  %v1135_v60 = vadd.f32 %v3642_v57, %v4742_v25  ;;  %v1295_v7 = vpop.f32.mrf.mxu0 }
 0x129   : > { %v1126_v31 = vpop.f32.mrf.mxu1 }
 0x12a   : > { %v4927_v43 = vadd.f32 %v3676_v14, %v1135_v60  ;;  %v1127_v24 = vadd.f32 %v1126_v31, %v4751_v1  ;;  %v3679_v53 = vpop.f32.mrf.mxu0  ;;  %3882 = vmatmul.mubr.msk.bf16.gmra.mxu0 %vm789_vm3, %v4780_v16  ;;  %v2756_v1 = vrot.slane %v4738_v21, 1 }
 0x12b   : > { %v3645_v35 = vpop.f32.mrf.mxu1  ;;  %3848 = vmatmul.mubr.msk.bf16.gmra.mxu1 %vm789_vm3, %v4754_v15  ;;  %3885 = vmatprep.mubr.msk.bf16.mxu0 %vm789_vm3, %v2551_v49 }
 0x12c   : > { %v4935_v32 = vadd.f32 %v1295_v7, %v1127_v24  ;;  %v1148_v25 = vadd.f32 %v3645_v35, %v4758_v6  ;;  %3851 = vmatprep.mubr.msk.bf16.mxu1 %vm789_vm3, %v4780_v16  ;;  %v1308_v33 = vpop.f32.mrf.mxu0  ;;  %v2757_v6 = vsel %vm2252_vm6, %v2755_v19, %v2756_v1 }
 0x12d   : > { %v1139_v26 = vpop.f32.mrf.mxu1 }
 0x12e   : > { %v4942_v12 = vadd.f32 %v3679_v53, %v1148_v25  ;;  %v1140_v15 = vadd.f32 %v1139_v26, %v4772_v4  ;;  %v3680_v5 = vpop.f32.mrf.mxu0 }
 0x12f   : > { %v3646_v38 = vpop.f32.mrf.mxu1 }
 0x130   : > { %v4945_v29 = vadd.f32 %v1308_v33, %v1140_v15  ;;  %v1151_v20 = vadd.f32 %v3646_v38, %v4776_v46  ;;  %v1311_v16 = vpop.f32.mrf.mxu0 }
 0x131   : > { %v1142_v28 = vpop.f32.mrf.mxu1 }
 0x132   : > { %v4949_v30 = vadd.f32 %v3680_v5, %v1151_v20  ;;  %v1143_v21 = vadd.f32 %v1142_v28, %v4784_v63  ;;  %v3683_v2 = vpop.f32.mrf.mxu0  ;;  %3886 = vmatmul.mubr.msk.bf16.gmra.mxu0 %vm789_vm3, %v2757_v6 }
 0x133   : > { %v3649_v22 = vpop.f32.mrf.mxu1  ;;  %3852 = vmatmul.mubr.msk.bf16.gmra.mxu1 %vm789_vm3, %v2551_v49 }
 0x134   : > { %v4954_v4 = vadd.f32 %v1311_v16, %v1143_v21  ;;  %v1164_v48 = vadd.f32 %v3649_v22, %v4788_v54  ;;  %v1324_v46 = vpop.f32.mrf.mxu0 }
 0x135   : > { %v1155_v58 = vpop.f32.mrf.mxu1 }
 0x136   : > { %v4957_v56 = vadd.f32 %v3683_v2, %v1164_v48  ;;  %v1156_v18 = vadd.f32 %v1155_v58, %v4799_v52  ;;  %v3684_v17 = vpop.f32.mrf.mxu0 }
 0x137   : > { %v3650_v8 = vpop.f32.mrf.mxu1 }
 0x138   : > { %v4960_v57 = vadd.f32 %v1324_v46, %v1156_v18  ;;  %v1167_v63 = vadd.f32 %v3650_v8, %v4803_v44  ;;  %v1327_v60 = vpop.f32.mrf.mxu0 }
 0x139   : > { %v1158_v14 = vpop.f32.mrf.mxu1 }
 0x13a   : > { %v4963_v31 = vadd.f32 %v3684_v17, %v1167_v63  ;;  %v1159_v7 = vadd.f32 %v1158_v14, %v4807_v62  ;;  %v3723_v54 = vpop.f32.mrf.mxu0 }
 0x13b   : > { %v3689_v49 = vpop.f32.mrf.mxu1 }
 0x13c   : > { %v4966_v24 = vadd.f32 %v1327_v60, %v1159_v7  ;;  %v1764_v35 = vadd.f32 %v3689_v49, %v4818_v10  ;;  %v1847_v52 = vpop.f32.mrf.mxu0 }
 0x13d   : > { %v1635_v53 = vpop.f32.mrf.mxu1 }
 0x13e   : > { %v4969_v19 = vadd.f32 %v3723_v54, %v1764_v35  ;;  %v1762_v25 = vadd.f32 %v1635_v53, %v4821_v47  ;;  %v3724_v44 = vpop.f32.mrf.mxu0 }
 0x13f   : > { %v3690_v1 = vpop.f32.mrf.mxu1 }
 0x140   : > { %v4972_v26 = vadd.f32 %v1847_v52, %v1762_v25  ;;  %v1765_v33 = vadd.f32 %v3690_v1, %v4824_v42  ;;  %v1850_v62 = vpop.f32.mrf.mxu0 }
 0x141   : > { %v1638_v15 = vpop.f32.mrf.mxu1 }
 0x142   : > { %v4975_v38 = vadd.f32 %v3724_v44, %v1765_v33  ;;  %v1763_v5 = vadd.f32 %v1638_v15, %v4831_v23  ;;  %v3727_v10 = vpop.f32.mrf.mxu0 }
 0x143   : > { %v3693_v20 = vpop.f32.mrf.mxu1 }
 0x144   : > { %v4978_v6 = vadd.f32 %v1850_v62, %v1763_v5  ;;  %v1768_v28 = vadd.f32 %v3693_v20, %v4838_v36  ;;  %v1863_v47 = vpop.f32.mrf.mxu0 }
 0x145   : > { %v1651_v16 = vpop.f32.mrf.mxu1 }
 0x146   : > { %v4981_v21 = vadd.f32 %v3727_v10, %v1768_v28  ;;  %v1766_v22 = vadd.f32 %v1651_v16, %v4841_v40  ;;  %v3728_v42 = vpop.f32.mrf.mxu0 }
 0x147   : > { %v3694_v2 = vpop.f32.mrf.mxu1 }
 0x148   : > { %v4984_v48 = vadd.f32 %v1863_v47, %v1766_v22  ;;  %v1769_v58 = vadd.f32 %v3694_v2, %v4844_v45  ;;  %v1866_v23 = vpop.f32.mrf.mxu0 }
 0x149   : > { %v1654_v46 = vpop.f32.mrf.mxu1 }
 0x14a   : > { %v4987_v18 = vadd.f32 %v3728_v42, %v1769_v58  ;;  %v1767_v8 = vadd.f32 %v1654_v46, %v4851_v27  ;;  %v3731_v36 = vpop.f32.mrf.mxu0 }
 0x14b   : > { %v3697_v17 = vpop.f32.mrf.mxu1 }
 0x14c   : > { %v4990_v63 = vadd.f32 %v1866_v23, %v1767_v8  ;;  %v1772_v14 = vadd.f32 %v3697_v17, %v4858_v13  ;;  %v1879_v40 = vpop.f32.mrf.mxu0 }
 0x14d   : > { %v1667_v60 = vpop.f32.mrf.mxu1 }
 0x14e   : > { %v4993_v7 = vadd.f32 %v3731_v36, %v1772_v14  ;;  %v1770_v49 = vadd.f32 %v1667_v60, %v4861_v9  ;;  %v3732_v45 = vpop.f32.mrf.mxu0 }
 0x14f   : > { %v3698_v54 = vpop.f32.mrf.mxu1 }
 0x150   : > { %v4996_v35 = vadd.f32 %v1879_v40, %v1770_v49  ;;  %v1773_v53 = vadd.f32 %v3698_v54, %v4864_v37  ;;  %v1882_v27 = vpop.f32.mrf.mxu0 }
 0x151   : > { %v1670_v52 = vpop.f32.mrf.mxu1 }
 0x152   : > { %v4999_v25 = vadd.f32 %v3732_v45, %v1773_v53  ;;  %v1771_v1 = vadd.f32 %v1670_v52, %v4871_v50  ;;  %v3735_v13 = vpop.f32.mrf.mxu0 }
 0x153   : > { %v3701_v44 = vpop.f32.mrf.mxu1 }
 0x154   : > { %v5002_v33 = vadd.f32 %v1882_v27, %v1771_v1  ;;  %v1776_v15 = vadd.f32 %v3701_v44, %v4878_v51  ;;  %v1895_v9 = vpop.f32.mrf.mxu0 }
 0x155   : > { %v1683_v62 = vpop.f32.mrf.mxu1 }
 0x156   : > { %v5005_v5 = vadd.f32 %v3735_v13, %v1776_v15  ;;  %v1774_v20 = vadd.f32 %v1683_v62, %v4881_v11  ;;  %v3736_v37 = vpop.f32.mrf.mxu0 }
 0x157   : > { %v3702_v10 = vpop.f32.mrf.mxu1 }
 0x158   : > { %v5008_v28 = vadd.f32 %v1895_v9, %v1774_v20  ;;  %v1777_v16 = vadd.f32 %v3702_v10, %v4884_v34  ;;  %v1898_v50 = vpop.f32.mrf.mxu0 }
 0x159   : > { %v1686_v47 = vpop.f32.mrf.mxu1 }
 0x15a   : > { %v5011_v22 = vadd.f32 %v3736_v37, %v1777_v16  ;;  %v1775_v2 = vadd.f32 %v1686_v47, %v4891_v39  ;;  %v3739_v51 = vpop.f32.mrf.mxu0 }
 0x15b   : > { %v3705_v42 = vpop.f32.mrf.mxu1 }
 0x15c   : > { %v5014_v58 = vadd.f32 %v1898_v50, %v1775_v2  ;;  %v1780_v46 = vadd.f32 %v3705_v42, %v4898_v0  ;;  %v1911_v11 = vpop.f32.mrf.mxu0 }
 0x15d   : > { %v1699_v23 = vpop.f32.mrf.mxu1 }
 0x15e   : > { %v5017_v8 = vadd.f32 %v3739_v51, %v1780_v46  ;;  %v1778_v17 = vadd.f32 %v1699_v23, %v4901_v61  ;;  %v3740_v34 = vpop.f32.mrf.mxu0 }
 0x15f   : > { %v3706_v36 = vpop.f32.mrf.mxu1 }
 0x160   : > { %v5020_v14 = vadd.f32 %v1911_v11, %v1778_v17  ;;  %v1781_v60 = vadd.f32 %v3706_v36, %v4904_v41  ;;  %v1914_v39 = vpop.f32.mrf.mxu0 }
 0x161   : > { %v1702_v40 = vpop.f32.mrf.mxu1 }
 0x162   : > { %v5023_v49 = vadd.f32 %v3740_v34, %v1781_v60  ;;  %v1779_v54 = vadd.f32 %v1702_v40, %v4911_v59  ;;  %v3743_v0 = vpop.f32.mrf.mxu0 }
 0x163   : > { %v3709_v45 = vpop.f32.mrf.mxu1 }
 0x164   : > { %5444 = vst [vmem:[#allocation2_spill] sm:$0xff] %v5023_v49  ;;  %v5026_v53 = vadd.f32 %v1914_v39, %v1779_v54  ;;  %v1784_v52 = vadd.f32 %v3709_v45, %v4920_v3  ;;  %v1927_v61 = vpop.f32.mrf.mxu0 }
 0x165   : > { %v1715_v27 = vpop.f32.mrf.mxu1 }
 0x166   : > { %5445 = vst [vmem:[#allocation3_spill] sm:$0xff] %v5026_v53  ;;  %v5029_v1 = vadd.f32 %v3743_v0, %v1784_v52  ;;  %v1782_v44 = vadd.f32 %v1715_v27, %v4923_v55  ;;  %v3744_v41 = vpop.f32.mrf.mxu0 }
 0x167   : > { %v3710_v13 = vpop.f32.mrf.mxu1 }
 0x168   : > { %5446 = vst [vmem:[#allocation4_spill] sm:$0xff] %v5029_v1  ;;  %v5032_v15 = vadd.f32 %v1927_v61, %v1782_v44  ;;  %v1785_v62 = vadd.f32 %v3710_v13, %v4927_v43  ;;  %v1930_v59 = vpop.f32.mrf.mxu0 }
 0x169   : > { %v1718_v9 = vpop.f32.mrf.mxu1 }
 0x16a   : > { %5447 = vst [vmem:[#allocation5_spill] sm:$0xff] %v5032_v15  ;;  %v5035_v20 = vadd.f32 %v3744_v41, %v1785_v62  ;;  %v1783_v10 = vadd.f32 %v1718_v9, %v4935_v32  ;;  %v3747_v3 = vpop.f32.mrf.mxu0 }
 0x16b   : > { %v3713_v37 = vpop.f32.mrf.mxu1 }
 0x16c   : > { %5448 = vst [vmem:[#allocation6_spill] sm:$0xff] %v5035_v20  ;;  %v5038_v16 = vadd.f32 %v1930_v59, %v1783_v10  ;;  %v1788_v47 = vadd.f32 %v3713_v37, %v4942_v12  ;;  %v1943_v55 = vpop.f32.mrf.mxu0 }
 0x16d   : > { %v1731_v50 = vpop.f32.mrf.mxu1 }
 0x16e   : > { %5449 = vst [vmem:[#allocation7_spill] sm:$0xff] %v5038_v16  ;;  %v5041_v2 = vadd.f32 %v3747_v3, %v1788_v47  ;;  %v1786_v42 = vadd.f32 %v1731_v50, %v4945_v29  ;;  %v3748_v43 = vpop.f32.mrf.mxu0 }
 0x16f   : > { %v3714_v51 = vpop.f32.mrf.mxu1 }
 0x170   : > { %5450 = vst [vmem:[#allocation8_spill] sm:$0xff] %v5041_v2  ;;  %v5044_v46 = vadd.f32 %v1943_v55, %v1786_v42  ;;  %v1789_v23 = vadd.f32 %v3714_v51, %v4949_v30  ;;  %v1946_v32 = vpop.f32.mrf.mxu0 }
 0x171   : > { %v1734_v11 = vpop.f32.mrf.mxu1 }
 0x172   : > { %5451 = vst [vmem:[#allocation9_spill] sm:$0xff] %v5044_v46  ;;  %v5047_v17 = vadd.f32 %v3748_v43, %v1789_v23  ;;  %v1787_v36 = vadd.f32 %v1734_v11, %v4954_v4  ;;  %v3751_v12 = vpop.f32.mrf.mxu0 }
 0x173   : > { %v3717_v34 = vpop.f32.mrf.mxu1 }
 0x174   : > { %5452 = vst [vmem:[#allocation10_spill] sm:$0xff] %v5047_v17  ;;  %v5050_v60 = vadd.f32 %v1946_v32, %v1787_v36  ;;  %v1792_v40 = vadd.f32 %v3717_v34, %v4957_v56  ;;  %v1959_v29 = vpop.f32.mrf.mxu0 }
 0x175   : > { %v1747_v39 = vpop.f32.mrf.mxu1 }
 0x176   : > { %5453 = vst [vmem:[#allocation11_spill] sm:$0xff] %v5050_v60  ;;  %v5053_v54 = vadd.f32 %v3751_v12, %v1792_v40  ;;  %v1790_v45 = vadd.f32 %v1747_v39, %v4960_v57  ;;  %v3752_v30 = vpop.f32.mrf.mxu0 }
 0x177   : > { %v3718_v0 = vpop.f32.mrf.mxu1 }
 0x178   : > { %5454 = vst [vmem:[#allocation12_spill] sm:$0xff] %v5053_v54  ;;  %v5056_v52 = vadd.f32 %v1959_v29, %v1790_v45  ;;  %v1793_v27 = vadd.f32 %v3718_v0, %v4963_v31  ;;  %v1962_v4 = vpop.f32.mrf.mxu0 }
 0x179   : > { %v1750_v61 = vpop.f32.mrf.mxu1 }
 0x17a   : > { %5455 = vst [vmem:[#allocation13_spill] sm:$0xff] %v5056_v52  ;;  %v5059_v44 = vadd.f32 %v3752_v30, %v1793_v27  ;;  %v1791_v13 = vadd.f32 %v1750_v61, %v4966_v24  ;;  %v5062_v56 = vpop.f32.mrf.mxu0 }
 0x17b   : > { %v3757_v41 = vpop.f32.mrf.mxu1 }
 0x17c   : > { %5456 = vst [vmem:[#allocation14_spill] sm:$0xff] %v5059_v44  ;;  %v5064_v62 = vadd.f32 %v1962_v4, %v1791_v13  ;;  %v5066_v59 = vpop.f32.mrf.mxu0 }
 0x17d   : > { %v2059_v9 = vpop.f32.mrf.mxu1 }
 0x17e   : > { %5457 = vst [vmem:[#allocation15_spill] sm:$0xff] %v5064_v62  ;;  %v5070_v10 = vpop.f32.mrf.mxu0 }
 0x17f   : > { %v5068_v57 = vpop.f32.mrf.mxu1 }
 0x180   : > { %v5074_v31 = vpop.f32.mrf.mxu0 }
 0x181   : > { %v5072_v37 = vpop.f32.mrf.mxu1 }
 0x182   : > { %v5078_v47 = vpop.f32.mrf.mxu0 }
 0x183   : > { %v5076_v3 = vpop.f32.mrf.mxu1 }
 0x184   : > { %v5082_v50 = vpop.f32.mrf.mxu0 }
 0x185   : > { %v5080_v24 = vpop.f32.mrf.mxu1 }
 0x186   : > { %v5086_v42 = vpop.f32.mrf.mxu0 }
 0x187   : > { %v5084_v55 = vpop.f32.mrf.mxu1 }
 0x188   : > { %v5090_v43 = vpop.f32.mrf.mxu0 }
 0x189   : > { %v5088_v51 = vpop.f32.mrf.mxu1 }
 0x18a   : > { %v5094_v11 = vpop.f32.mrf.mxu0 }
 0x18b   : > { %v5092_v23 = vpop.f32.mrf.mxu1 }
 0x18c   : > { %v5098_v36 = vpop.f32.mrf.mxu0 }
 0x18d   : > { %v5096_v32 = vpop.f32.mrf.mxu1 }
 0x18e   : > { %v5102_v12 = vpop.f32.mrf.mxu0 }
 0x18f   : > { %v5100_v34 = vpop.f32.mrf.mxu1 }
 0x190   : > { %v5106_v39 = vpop.f32.mrf.mxu0 }
 0x191   : > { %v5104_v40 = vpop.f32.mrf.mxu1 }
 0x192   : > { %v5110_v45 = vpop.f32.mrf.mxu0 }
 0x193   : > { %v5108_v29 = vpop.f32.mrf.mxu1 }
 0x194   : > { %v5114_v30 = vpop.f32.mrf.mxu0 }
 0x195   : > { %v5112_v0 = vpop.f32.mrf.mxu1 }
 0x196   : > { %v5118_v61 = vpop.f32.mrf.mxu0 }
 0x197   : > { %v5116_v27 = vpop.f32.mrf.mxu1 }
 0x198   : > { %v5122_v13 = vpop.f32.mrf.mxu0 }
 0x199   : > { %v5120_v4 = vpop.f32.mrf.mxu1 }
 0x19a   : > { %v5126_v44 = vpop.f32.mrf.mxu0 }
 0x19b   : > { %v5124_v62 = vpop.f32.mrf.mxu1 }
 0x19c   : > { %v5130_v54 = vpop.f32.mrf.mxu0 }
 0x19d   : > { %v5128_v52 = vpop.f32.mrf.mxu1  ;;  %5458 = vst [vmem:[#allocation16_spill] sm:$0xff] %v5130_v54 }
 0x19e   : > { %v5134_v17 = vpop.f32.mrf.mxu0 }
 0x19f   : > { %v5132_v60 = vpop.f32.mrf.mxu1  ;;  %5460 = vst [vmem:[#allocation18_spill] sm:$0xff] %v5134_v17 }
 0x1a0   : > { %5459 = vst [vmem:[#allocation17_spill] sm:$0xff] %v5132_v60  ;;  %v5138_v2 = vpop.f32.mrf.mxu0 }
 0x1a1   : > { %v5136_v46 = vpop.f32.mrf.mxu1  ;;  %5462 = vst [vmem:[#allocation20_spill] sm:$0xff] %v5138_v2 }
 0x1a2   : > { %5461 = vst [vmem:[#allocation19_spill] sm:$0xff] %v5136_v46  ;;  %v5142_v20 = vpop.f32.mrf.mxu0 }
 0x1a3   : > { %v5140_v16 = vpop.f32.mrf.mxu1  ;;  %5464 = vst [vmem:[#allocation22_spill] sm:$0xff] %v5142_v20 }
 0x1a4   : > { %5463 = vst [vmem:[#allocation21_spill] sm:$0xff] %v5140_v16  ;;  %v5146_v1 = vpop.f32.mrf.mxu0 }
 0x1a5   : > { %v5144_v15 = vpop.f32.mrf.mxu1  ;;  %5466 = vst [vmem:[#allocation24_spill] sm:$0xff] %v5146_v1 }
 0x1a6   : > { %5465 = vst [vmem:[#allocation23_spill] sm:$0xff] %v5144_v15  ;;  %v5150_v49 = vpop.f32.mrf.mxu0 }
 0x1a7   : > { %v5148_v53 = vpop.f32.mrf.mxu1  ;;  %5468 = vst [vmem:[#allocation26_spill] sm:$0xff] %v5150_v49 }
 0x1a8   : > { %5467 = vst [vmem:[#allocation25_spill] sm:$0xff] %v5148_v53  ;;  %v5154_v60 = vpop.f32.mrf.mxu0 }
 0x1a9   : > { %v5152_v54 = vpop.f32.mrf.mxu1  ;;  %5470 = vst [vmem:[#allocation28_spill] sm:$0xff] %v5154_v60 }
 0x1aa   : > { %5469 = vst [vmem:[#allocation27_spill] sm:$0xff] %v5152_v54  ;;  %v5158_v46 = vpop.f32.mrf.mxu0 }
 0x1ab   : > { %v5156_v17 = vpop.f32.mrf.mxu1  ;;  %5472 = vst [vmem:[#allocation30_spill] sm:$0xff] %v5158_v46  ;;  %v2188_v46 = vadd.f32 %v3757_v41, %v4969_v19  ;;  %v2187_v41 = vadd.f32 %v5072_v37, %v4978_v6  ;;  %v5209_v6 = vld [vmem:[%s5440_s5] ss:$0 sm:$0xff] }
 0x1ac   : > { %5471 = vst [vmem:[#allocation29_spill] sm:$0xff] %v5156_v17  ;;  %v5162_v16 = vpop.f32.mrf.mxu0 }
 0x1ad   : > { %v5160_v2 = vpop.f32.mrf.mxu1  ;;  %5474 = vst [vmem:[#allocation32_spill] sm:$0xff] %v5162_v16 }
 0x1ae   : > { %5473 = vst [vmem:[#allocation31_spill] sm:$0xff] %v5160_v2  ;;  %v5166_v15 = vpop.f32.mrf.mxu0 }
 0x1af   : > { %v5164_v20 = vpop.f32.mrf.mxu1  ;;  %5476 = vst [vmem:[#allocation34_spill] sm:$0xff] %v5166_v15  ;;  %v2186_v15 = vadd.f32 %v2059_v9, %v4972_v26  ;;  %v5199_v26 = vld [vmem:[%s5439_s4] ss:$0 sm:$0xff] }
 0x1b0   : > { %5475 = vst [vmem:[#allocation33_spill] sm:$0xff] %v5164_v20  ;;  %v5170_v53 = vpop.f32.mrf.mxu0 }
 0x1b1   : > { %v5168_v1 = vpop.f32.mrf.mxu1  ;;  %5478 = vst [vmem:[#allocation36_spill] sm:$0xff] %v5170_v53  ;;  %v2515_v53 = vadd.f32 %v5062_v56, %v2188_v46  ;;  %v2513_v19 = vadd.f32 %v5066_v59, %v2186_v15  ;;  %v2190_v15 = vadd.f32 %v5080_v24, %v4984_v48  ;;  %v2514_v59 = vadd.f32 %v5074_v31, %v2187_v41 }
 0x1b2   : > { %5477 = vst [vmem:[#allocation35_spill] sm:$0xff] %v5168_v1  ;;  %v5174_v54 = vpop.f32.mrf.mxu0  ;;  %v2191_v41 = vadd.f32 %v5088_v51, %v4990_v63  ;;  %v2196_v63 = vadd.f32 %v5092_v23, %v4993_v7 }
 0x1b3   : > { %v5172_v49 = vpop.f32.mrf.mxu1  ;;  %5480 = vst [vmem:[#allocation38_spill] sm:$0xff] %v5174_v54  ;;  %v2189_v54 = vadd.f32 %v5068_v57, %v4975_v38  ;;  %v2192_v57 = vadd.f32 %v5076_v3, %v4981_v21  ;;  %v2193_v21 = vadd.f32 %v5084_v55, %v4987_v18  ;;  %v2517_v31 = vadd.f32 %v5082_v50, %v2190_v15 }
 0x1b4   : > { %5479 = vst [vmem:[#allocation37_spill] sm:$0xff] %v5172_v49  ;;  %v5178_v17 = vpop.f32.mrf.mxu0 }
 0x1b5   : > { %v5176_v60 = vpop.f32.mrf.mxu1  ;;  %v2516_v46 = vadd.f32 %v5070_v10, %v2189_v54  ;;  %v2520_v50 = vadd.f32 %v5086_v42, %v2193_v21 }
 0x1b6   : > { %5481 = vst [vmem:[#allocation39_spill] sm:$0xff] %v5176_v60  ;;  %v5183_v16 = vpop.f32.mrf.mxu0 }
 0x1b7   : > { %v5181_v2 = vpop.f32.mrf.mxu1  ;;  %5482 = vst [vmem:[#allocation40_spill] sm:$0xff] %v5183_v16 }
 0x1b8   : > { %v5188_v1 = vpop.f32.mrf.mxu0 }
 0x1b9   : > { %v5186_v20 = vpop.f32.mrf.mxu1  ;;  %5483 = vst [vmem:[#allocation41_spill] sm:$0xff] %v5188_v1 }
 0x1ba   : > { %v3859_v49 = vpop.f32.mrf.mxu0 }
 0x1bb   : > { %v3825_v60 = vpop.f32.mrf.mxu1 }
 0x1bc   : > { %v2721_v16 = vadd.f32 %v3825_v60, %v2515_v53  ;;  %v2798_v1 = vpop.f32.mrf.mxu0 }
 0x1bd   : > { %v2592_v9 = vpop.f32.mrf.mxu1 }
 0x1be   : > { %v2927_v56 = vadd.f32 %v3859_v49, %v2721_v16  ;;  %v2719_v38 = vadd.f32 %v2592_v9, %v2513_v19  ;;  %v3860_v60 = vpop.f32.mrf.mxu0  ;;  %v2519_v9 = vadd.f32 %v5078_v47, %v2192_v57 }
 0x1bf   : > { %v3826_v53 = vpop.f32.mrf.mxu1 }
 0x1c0   : > { %v2966_v54 = vmul.f32 %v5199_v26, %v2927_v56  ;;  %v2925_v49 = vadd.f32 %v2798_v1, %v2719_v38  ;;  %v2722_v16 = vadd.f32 %v3826_v53, %v2516_v46  ;;  %v2801_v37 = vpop.f32.mrf.mxu0 }
 0x1c1   : > { %v2595_v10 = vpop.f32.mrf.mxu1 }
 0x1c2   : > { %v3005_v48 = vadd.f32 %v5209_v6, %v2966_v54  ;;  %v2964_v3 = vmul.f32 %v5199_v26, %v2925_v49  ;;  %v2928_v24 = vadd.f32 %v3860_v60, %v2722_v16  ;;  %v2720_v19 = vadd.f32 %v2595_v10, %v2514_v59  ;;  %v3863_v1 = vpop.f32.mrf.mxu0 }
 0x1c3   : > { %v3829_v18 = vpop.f32.mrf.mxu1  ;;  %v2518_v54 = vadd.f32 %v5090_v43, %v2191_v41 }
 0x1c4   : > { %v3037_v55 = vmax.f32 %v3005_v48, 0.0  ;;  %v3003_v46 = vadd.f32 %v5209_v6, %v2964_v3  ;;  %v2967_v56 = vmul.f32 %v5199_v26, %v2928_v24  ;;  %v2926_v47 = vadd.f32 %v2801_v37, %v2720_v19  ;;  %v2814_v57 = vpop.f32.mrf.mxu0 }
 0x1c5   : > { %v2725_v51 = vadd.f32 %v3829_v18, %v2519_v9  ;;  %v2608_v38 = vpop.f32.mrf.mxu1  ;;  %v2523_v37 = vadd.f32 %v5094_v11, %v2196_v63  ;;  %v2194_v48 = vadd.f32 %v5096_v32, %v4996_v35  ;;  %v2197_v3 = vadd.f32 %v5100_v34, %v4999_v25 }
 0x1c6   : > { %3069 = vst.msk [vmem:[%s5225_s16 + $0x10] sm:$0xff] %vm789_vm3, %v3037_v55  ;;  %v3035_v15 = vmax.f32 %v3003_v46, 0.0  ;;  %v3006_v53 = vadd.f32 %v5209_v6, %v2967_v56  ;;  %v2965_v60 = vmul.f32 %v5199_v26, %v2926_v47  ;;  %v2723_v59 = vadd.f32 %v2608_v38, %v2517_v31  ;;  %v3864_v42 = vpop.f32.mrf.mxu0 }
 0x1c7   : > { %v2931_v49 = vadd.f32 %v3863_v1, %v2725_v51  ;;  %v3830_v16 = vpop.f32.mrf.mxu1  ;;  %v2195_v11 = vadd.f32 %v5104_v40, %v5002_v33  ;;  %v2521_v56 = vadd.f32 %v5098_v36, %v2194_v48  ;;  %v2524_v47 = vadd.f32 %v5102_v12, %v2197_v3 }
 0x1c8   : > { %3067 = vst.msk [vmem:[%s5225_s16] sm:$0xff] %vm789_vm3, %v3035_v15  ;;  %v3038_v7 = vmax.f32 %v3006_v53, 0.0  ;;  %v3004_v23 = vadd.f32 %v5209_v6, %v2965_v60  ;;  %v2929_v21 = vadd.f32 %v2814_v57, %v2723_v59  ;;  %v2726_v10 = vadd.f32 %v3830_v16, %v2520_v50  ;;  %v2817_v19 = vpop.f32.mrf.mxu0 }
 0x1c9   : > { %v2970_v43 = vmul.f32 %v5199_v26, %v2931_v49  ;;  %v2611_v24 = vpop.f32.mrf.mxu1  ;;  %v2200_v33 = vadd.f32 %v5108_v29, %v5005_v5  ;;  %v2522_v53 = vadd.f32 %v5106_v39, %v2195_v11  ;;  %v2198_v36 = vadd.f32 %v5112_v0, %v5008_v28 }
 0x1ca   : > { %3070 = vst.msk [vmem:[%s5225_s16 + $0x18] sm:$0xff] %vm789_vm3, %v3038_v7  ;;  %v3036_v9 = vmax.f32 %v3004_v23, 0.0  ;;  %v2968_v31 = vmul.f32 %v5199_v26, %v2929_v21  ;;  %v2932_v41 = vadd.f32 %v3864_v42, %v2726_v10  ;;  %v2724_v18 = vadd.f32 %v2611_v24, %v2518_v54  ;;  %v3867_v32 = vpop.f32.mrf.mxu0 }
 0x1cb   : > { %v3009_v1 = vadd.f32 %v5209_v6, %v2970_v43  ;;  %v3833_v35 = vpop.f32.mrf.mxu1  ;;  %v2527_v16 = vadd.f32 %v5110_v45, %v2200_v33  ;;  %v2525_v10 = vadd.f32 %v5114_v30, %v2198_v36  ;;  %v2199_v48 = vadd.f32 %v5120_v4, %v5014_v58  ;;  %v5484_v33 = vld [vmem:[#allocation2_spill] sm:$0xff] }
 0x1cc   : > { %3068 = vst.msk [vmem:[%s5225_s16 + $0x8] sm:$0xff] %vm789_vm3, %v3036_v9  ;;  %v3007_v25 = vadd.f32 %v5209_v6, %v2968_v31  ;;  %v2971_v34 = vmul.f32 %v5199_v26, %v2932_v41  ;;  %v2930_v55 = vadd.f32 %v2817_v19, %v2724_v18  ;;  %v2729_v46 = vadd.f32 %v3833_v35, %v2523_v37  ;;  %v2830_v63 = vpop.f32.mrf.mxu0 }
 0x1cd   : > { %v3041_v40 = vmax.f32 %v3009_v1, 0.0  ;;  %v2624_v50 = vpop.f32.mrf.mxu1  ;;  %v2201_v37 = vadd.f32 %v5116_v27, %v5011_v22  ;;  %v2204_v30 = vadd.f32 %v5124_v62, %v5017_v8  ;;  %v2526_v35 = vadd.f32 %v5122_v13, %v2199_v48 }
 0x1ce   : > { %v3039_v51 = vmax.f32 %v3007_v25, 0.0  ;;  %v3010_v38 = vadd.f32 %v5209_v6, %v2971_v34  ;;  %v2969_v57 = vmul.f32 %v5199_v26, %v2930_v55  ;;  %v2935_v15 = vadd.f32 %v3867_v32, %v2729_v46  ;;  %v3868_v5 = vpop.f32.mrf.mxu0 }
 0x1cf   : > { %3073 = vst.msk [vmem:[%s5225_s16 + $0x30] sm:$0xff] %vm789_vm3, %v3041_v40  ;;  %v2727_v12 = vadd.f32 %v2624_v50, %v2521_v56  ;;  %v3834_v60 = vpop.f32.mrf.mxu1  ;;  %v2528_v1 = vadd.f32 %v5118_v61, %v2201_v37  ;;  %v2202_v8 = vadd.f32 %v5128_v52, %v5020_v14  ;;  %v5485_v61 = vld [vmem:[#allocation17_spill] sm:$0xff] }
 0x1d0   : > { %3071 = vst.msk [vmem:[%s5225_s16 + $0x20] sm:$0xff] %vm789_vm3, %v3039_v51  ;;  %v3042_v29 = vmax.f32 %v3010_v38, 0.0  ;;  %v3008_v59 = vadd.f32 %v5209_v6, %v2969_v57  ;;  %v2974_v54 = vmul.f32 %v5199_v26, %v2935_v15  ;;  %v2730_v49 = vadd.f32 %v3834_v60, %v2524_v47  ;;  %v2833_v7 = vpop.f32.mrf.mxu0  ;;  %v5486_v57 = vld [vmem:[#allocation16_spill] sm:$0xff] }
 0x1d1   : > { %v2933_v39 = vadd.f32 %v2830_v63, %v2727_v12  ;;  %v2627_v42 = vpop.f32.mrf.mxu1  ;;  %v2531_v47 = vadd.f32 %v5126_v44, %v2204_v30  ;;  %v2205_v40 = vadd.f32 %v5485_v61, %v5484_v33  ;;  %v2529_v15 = vadd.f32 %v5486_v57, %v2202_v8  ;;  %v5499_v61 = vld [vmem:[#allocation7_spill] sm:$0xff] }
 0x1d2   : > { %3074 = vst.msk [vmem:[%s5225_s16 + $0x38] sm:$0xff] %vm789_vm3, %v3042_v29  ;;  %v3040_v28 = vmax.f32 %v3008_v59, 0.0  ;;  %v3013_v0 = vadd.f32 %v5209_v6, %v2974_v54  ;;  %v2936_v23 = vadd.f32 %v3868_v5, %v2730_v49  ;;  %v2728_v21 = vadd.f32 %v2627_v42, %v2522_v53  ;;  %v3871_v43 = vpop.f32.mrf.mxu0  ;;  %v5487_v59 = vld [vmem:[#allocation18_spill] sm:$0xff]  ;;  %v5488_v49 = vld [vmem:[#allocation3_spill] sm:$0xff]  ;;  %v5490_v42 = vld [vmem:[#allocation4_spill] sm:$0xff] }
 0x1d3   : > { %v2972_v45 = vmul.f32 %v5199_v26, %v2933_v39  ;;  %v3837_v3 = vpop.f32.mrf.mxu1  ;;  %v2532_v54 = vadd.f32 %v5487_v59, %v2205_v40  ;;  %v5500_v40 = vld [vmem:[#allocation27_spill] sm:$0xff] }
 0x1d4   : > { %3072 = vst.msk [vmem:[%s5225_s16 + $0x28] sm:$0xff] %vm789_vm3, %v3040_v28  ;;  %v3045_v24 = vmax.f32 %v3013_v0, 0.0  ;;  %v2975_v19 = vmul.f32 %v5199_v26, %v2936_v23  ;;  %v2934_v9 = vadd.f32 %v2833_v7, %v2728_v21  ;;  %v2733_v31 = vadd.f32 %v3837_v3, %v2527_v16  ;;  %v2846_v27 = vpop.f32.mrf.mxu0  ;;  %v5489_v16 = vld [vmem:[#allocation19_spill] sm:$0xff]  ;;  %v5491_v7 = vld [vmem:[#allocation21_spill] sm:$0xff] }
 0x1d5   : > { %v3011_v41 = vadd.f32 %v5209_v6, %v2972_v45  ;;  %v2640_v22 = vpop.f32.mrf.mxu1  ;;  %v2203_v39 = vadd.f32 %v5489_v16, %v5488_v49  ;;  %v2208_v28 = vadd.f32 %v5491_v7, %v5490_v42  ;;  %v5492_v3 = vld [vmem:[#allocation5_spill] sm:$0xff]  ;;  %v5503_v16 = vld [vmem:[#allocation8_spill] sm:$0xff] }
 0x1d6   : > { %3077 = vst.msk [vmem:[%s5225_s16 + $0x50] sm:$0xff] %vm789_vm3, %v3045_v24  ;;  %v3014_v58 = vadd.f32 %v5209_v6, %v2975_v19  ;;  %v2973_v4 = vmul.f32 %v5199_v26, %v2934_v9  ;;  %v2939_v18 = vadd.f32 %v3871_v43, %v2733_v31  ;;  %v2731_v11 = vadd.f32 %v2640_v22, %v2525_v10  ;;  %v3872_v25 = vpop.f32.mrf.mxu0  ;;  %v5493_v43 = vld [vmem:[#allocation23_spill] sm:$0xff]  ;;  %v5505_v7 = vld [vmem:[#allocation9_spill] sm:$0xff] }
 0x1d7   : > { %v3043_v62 = vmax.f32 %v3011_v41, 0.0  ;;  %v3838_v32 = vpop.f32.mrf.mxu1  ;;  %v2206_v24 = vadd.f32 %v5493_v43, %v5492_v3  ;;  %v5507_v43 = vld [vmem:[#allocation10_spill] sm:$0xff] }
 0x1d8   : > { %v3046_v34 = vmax.f32 %v3014_v58, 0.0  ;;  %v3012_v55 = vadd.f32 %v5209_v6, %v2973_v4  ;;  %v2978_v46 = vmul.f32 %v5199_v26, %v2939_v18  ;;  %v2937_v56 = vadd.f32 %v2846_v27, %v2731_v11  ;;  %v2849_v14 = vpop.f32.mrf.mxu0  ;;  %v5494_v58 = vld [vmem:[#allocation20_spill] sm:$0xff]  ;;  %v5495_v18 = vld [vmem:[#allocation22_spill] sm:$0xff] }
 0x1d9   : > { %3075 = vst.msk [vmem:[%s5225_s16 + $0x40] sm:$0xff] %vm789_vm3, %v3043_v62  ;;  %v2734_v13 = vadd.f32 %v3838_v32, %v2528_v1  ;;  %v2643_v50 = vpop.f32.mrf.mxu1  ;;  %v2530_v4 = vadd.f32 %v5494_v58, %v2203_v39  ;;  %v2535_v11 = vadd.f32 %v5495_v18, %v2208_v28  ;;  %v5496_v1 = vld [vmem:[#allocation6_spill] sm:$0xff]  ;;  %v5504_v39 = vld [vmem:[#allocation29_spill] sm:$0xff]  ;;  %v5506_v28 = vld [vmem:[#allocation31_spill] sm:$0xff] }
 0x1da   : > { %3078 = vst.msk [vmem:[%s5225_s16 + $0x58] sm:$0xff] %vm789_vm3, %v3046_v34  ;;  %v3044_v52 = vmax.f32 %v3012_v55, 0.0  ;;  %v3017_v63 = vadd.f32 %v5209_v6, %v2978_v46  ;;  %v2976_v51 = vmul.f32 %v5199_v26, %v2937_v56  ;;  %v2732_v38 = vadd.f32 %v2643_v50, %v2526_v35  ;;  %v3875_v36 = vpop.f32.mrf.mxu0  ;;  %v5497_v35 = vld [vmem:[#allocation25_spill] sm:$0xff] }
 0x1db   : > { %v2940_v44 = vadd.f32 %v3872_v25, %v2734_v13  ;;  %v3841_v53 = vpop.f32.mrf.mxu1  ;;  %v2209_v8 = vadd.f32 %v5497_v35, %v5496_v1  ;;  %v2207_v13 = vadd.f32 %v5500_v40, %v5499_v61  ;;  %v2212_v42 = vadd.f32 %v5504_v39, %v5503_v16  ;;  %v5511_v35 = vld [vmem:[#allocation11_spill] sm:$0xff]  ;;  %v5514_v40 = vld [vmem:[#allocation12_spill] sm:$0xff]  ;;  %v5518_v39 = vld [vmem:[#allocation13_spill] sm:$0xff] }
 0x1dc   : > { %3076 = vst.msk [vmem:[%s5225_s16 + $0x48] sm:$0xff] %vm789_vm3, %v3044_v52  ;;  %v3049_v12 = vmax.f32 %v3017_v63, 0.0  ;;  %v3015_v60 = vadd.f32 %v5209_v6, %v2976_v51  ;;  %v2938_v5 = vadd.f32 %v2849_v14, %v2732_v38  ;;  %v2737_v29 = vadd.f32 %v3841_v53, %v2531_v47  ;;  %v2862_v21 = vpop.f32.mrf.mxu0  ;;  %v5498_v47 = vld [vmem:[#allocation24_spill] sm:$0xff] }
 0x1dd   : > { %v2979_v0 = vmul.f32 %v5199_v26, %v2940_v44  ;;  %v2656_v23 = vpop.f32.mrf.mxu1  ;;  %v2533_v33 = vadd.f32 %v5498_v47, %v2206_v24  ;;  %v5508_v24 = vld [vmem:[#allocation33_spill] sm:$0xff] }
 0x1de   : > { %3081 = vst.msk [vmem:[%s5225_s16 + $0x70] sm:$0xff] %vm789_vm3, %v3049_v12  ;;  %v3047_v10 = vmax.f32 %v3015_v60, 0.0  ;;  %v2977_v37 = vmul.f32 %v5199_v26, %v2938_v5  ;;  %v2943_v48 = vadd.f32 %v3875_v36, %v2737_v29  ;;  %v2735_v45 = vadd.f32 %v2656_v23, %v2529_v15  ;;  %v3876_v31 = vpop.f32.mrf.mxu0  ;;  %v5501_v15 = vld [vmem:[#allocation26_spill] sm:$0xff] }
 0x1df   : > { %v3018_v19 = vadd.f32 %v5209_v6, %v2979_v0  ;;  %v3842_v9 = vpop.f32.mrf.mxu1  ;;  %v2536_v44 = vadd.f32 %v5501_v15, %v2209_v8  ;;  %v2210_v0 = vadd.f32 %v5506_v28, %v5505_v7  ;;  %v5512_v8 = vld [vmem:[#allocation35_spill] sm:$0xff]  ;;  %v5520_v28 = vld [vmem:[#allocation14_spill] sm:$0xff] }
 0x1e0   : > { %3079 = vst.msk [vmem:[%s5225_s16 + $0x60] sm:$0xff] %vm789_vm3, %v3047_v10  ;;  %v3016_v30 = vadd.f32 %v5209_v6, %v2977_v37  ;;  %v2982_v41 = vmul.f32 %v5199_v26, %v2943_v48  ;;  %v2941_v22 = vadd.f32 %v2862_v21, %v2735_v45  ;;  %v2738_v27 = vadd.f32 %v3842_v9, %v2532_v54  ;;  %v2865_v25 = vpop.f32.mrf.mxu0  ;;  %v5502_v54 = vld [vmem:[#allocation28_spill] sm:$0xff] }
 0x1e1   : > { %v3050_v62 = vmax.f32 %v3018_v19, 0.0  ;;  %v2659_v32 = vpop.f32.mrf.mxu1  ;;  %v2534_v49 = vadd.f32 %v5502_v54, %v2207_v13  ;;  %v2213_v19 = vadd.f32 %v5508_v24, %v5507_v43  ;;  %v5515_v13 = vld [vmem:[#allocation37_spill] sm:$0xff]  ;;  %v5521_v43 = vld [vmem:[#allocation15_spill] sm:$0xff] }
 0x1e2   : > { %v3048_v34 = vmax.f32 %v3016_v30, 0.0  ;;  %v3021_v55 = vadd.f32 %v5209_v6, %v2982_v41  ;;  %v2980_v46 = vmul.f32 %v5199_v26, %v2941_v22  ;;  %v2944_v56 = vadd.f32 %v3876_v31, %v2738_v27  ;;  %v3879_v52 = vpop.f32.mrf.mxu0 }
 0x1e3   : > { %3082 = vst.msk [vmem:[%s5225_s16 + $0x78] sm:$0xff] %vm789_vm3, %v3050_v62  ;;  %v2736_v50 = vadd.f32 %v2659_v32, %v2530_v4  ;;  %v3845_v14 = vpop.f32.mrf.mxu1  ;;  %v5509_v4 = vld [vmem:[#allocation30_spill] sm:$0xff]  ;;  %v2211_v62 = vadd.f32 %v5512_v8, %v5511_v35  ;;  %v2215_v24 = vadd.f32 %v5186_v20, %v5521_v43 }
 0x1e4   : > { %3080 = vst.msk [vmem:[%s5225_s16 + $0x68] sm:$0xff] %vm789_vm3, %v3048_v34  ;;  %v3053_v63 = vmax.f32 %v3021_v55, 0.0  ;;  %v3019_v51 = vadd.f32 %v5209_v6, %v2980_v46  ;;  %v2983_v38 = vmul.f32 %v5199_v26, %v2944_v56  ;;  %v2741_v57 = vadd.f32 %v3845_v14, %v2535_v11  ;;  %v2878_v12 = vpop.f32.mrf.mxu0  ;;  %v5510_v11 = vld [vmem:[#allocation32_spill] sm:$0xff] }
 0x1e5   : > { %v2942_v53 = vadd.f32 %v2865_v25, %v2736_v50  ;;  %v2672_v36 = vpop.f32.mrf.mxu1  ;;  %v2539_v18 = vadd.f32 %v5509_v4, %v2212_v42  ;;  %v2537_v1 = vadd.f32 %v5510_v11, %v2210_v0  ;;  %v2216_v50 = vadd.f32 %v5515_v13, %v5514_v40  ;;  %v5519_v42 = vld [vmem:[#allocation39_spill] sm:$0xff] }
 0x1e6   : > { %3085 = vst.msk [vmem:[%s5225_s16 + $0x90] sm:$0xff] %vm789_vm3, %v3053_v63  ;;  %v3051_v60 = vmax.f32 %v3019_v51, 0.0  ;;  %v3022_v5 = vadd.f32 %v5209_v6, %v2983_v38  ;;  %v2947_v29 = vadd.f32 %v3879_v52, %v2741_v57  ;;  %v2739_v59 = vadd.f32 %v2672_v36, %v2533_v33  ;;  %v3880_v10 = vpop.f32.mrf.mxu0  ;;  %v5513_v33 = vld [vmem:[#allocation34_spill] sm:$0xff] }
 0x1e7   : > { %v2981_v23 = vmul.f32 %v5199_v26, %v2942_v53  ;;  %v3846_v21 = vpop.f32.mrf.mxu1  ;;  %v2540_v61 = vadd.f32 %v5513_v33, %v2213_v19  ;;  %v2214_v7 = vadd.f32 %v5519_v42, %v5518_v39  ;;  %v2217_v0 = vadd.f32 %v5181_v2, %v5520_v28 }
 0x1e8   : > { %3083 = vst.msk [vmem:[%s5225_s16 + $0x80] sm:$0xff] %vm789_vm3, %v3051_v60  ;;  %v3054_v37 = vmax.f32 %v3022_v5, 0.0  ;;  %v2986_v48 = vmul.f32 %v5199_v26, %v2947_v29  ;;  %v2945_v45 = vadd.f32 %v2878_v12, %v2739_v59  ;;  %v2742_v3 = vadd.f32 %v3846_v21, %v2536_v44  ;;  %v2881_v30 = vpop.f32.mrf.mxu0  ;;  %v5516_v44 = vld [vmem:[#allocation36_spill] sm:$0xff] }
 0x1e9   : > { %v3020_v9 = vadd.f32 %v5209_v6, %v2981_v23  ;;  %v2675_v31 = vpop.f32.mrf.mxu1  ;;  %v2538_v53 = vadd.f32 %v5516_v44, %v2211_v62 }
 0x1ea   : > { %3086 = vst.msk [vmem:[%s5225_s16 + $0x98] sm:$0xff] %vm789_vm3, %v3054_v37  ;;  %v3025_v41 = vadd.f32 %v5209_v6, %v2986_v48  ;;  %v2984_v22 = vmul.f32 %v5199_v26, %v2945_v45  ;;  %v2948_v27 = vadd.f32 %v3880_v10, %v2742_v3  ;;  %v2740_v58 = vadd.f32 %v2675_v31, %v2534_v49  ;;  %v3883_v34 = vpop.f32.mrf.mxu0  ;;  %v5517_v49 = vld [vmem:[#allocation38_spill] sm:$0xff] }
 0x1eb   : > { %v3052_v32 = vmax.f32 %v3020_v9, 0.0  ;;  %v3849_v25 = vpop.f32.mrf.mxu1  ;;  %v2543_v16 = vadd.f32 %v5517_v49, %v2216_v50 }
 0x1ec   : > { %v3057_v55 = vmax.f32 %v3025_v41, 0.0  ;;  %v3023_v46 = vadd.f32 %v5209_v6, %v2984_v22  ;;  %v2987_v56 = vmul.f32 %v5199_v26, %v2948_v27  ;;  %v2946_v47 = vadd.f32 %v2881_v30, %v2740_v58  ;;  %v2894_v63 = vpop.f32.mrf.mxu0  ;;  %v5522_v58 = vld [vmem:[#allocation40_spill] sm:$0xff] }
 0x1ed   : > { %3084 = vst.msk [vmem:[%s5225_s16 + $0x88] sm:$0xff] %vm789_vm3, %v3052_v32  ;;  %v2745_v14 = vadd.f32 %v3849_v25, %v2539_v18  ;;  %v2688_v52 = vpop.f32.mrf.mxu1  ;;  %v2541_v27 = vadd.f32 %v5178_v17, %v2214_v7  ;;  %v2544_v4 = vadd.f32 %v5522_v58, %v2217_v0  ;;  %v5523_v32 = vld [vmem:[#allocation41_spill] sm:$0xff] }
 0x1ee   : > { %3089 = vst.msk [vmem:[%s5225_s16 + $0xb0] sm:$0xff] %vm789_vm3, %v3057_v55  ;;  %v3055_v51 = vmax.f32 %v3023_v46, 0.0  ;;  %v3026_v38 = vadd.f32 %v5209_v6, %v2987_v56  ;;  %v2985_v57 = vmul.f32 %v5199_v26, %v2946_v47  ;;  %v2743_v15 = vadd.f32 %v2688_v52, %v2537_v1  ;;  %v3884_v60 = vpop.f32.mrf.mxu0 }
 0x1ef   : > { %v2951_v36 = vadd.f32 %v3883_v34, %v2745_v14  ;;  %v3850_v12 = vpop.f32.mrf.mxu1  ;;  %v2542_v25 = vadd.f32 %v5523_v32, %v2215_v24 }
 0x1f0   : > { %3087 = vst.msk [vmem:[%s5225_s16 + $0xa0] sm:$0xff] %vm789_vm3, %v3055_v51  ;;  %v3058_v5 = vmax.f32 %v3026_v38, 0.0  ;;  %v3024_v29 = vadd.f32 %v5209_v6, %v2985_v57  ;;  %v2949_v59 = vadd.f32 %v2894_v63, %v2743_v15  ;;  %v2746_v54 = vadd.f32 %v3850_v12, %v2540_v61  ;;  %v2897_v10 = vpop.f32.mrf.mxu0 }
 0x1f1   : > { %v2990_v23 = vmul.f32 %v5199_v26, %v2951_v36  ;;  %v2691_v21 = vpop.f32.mrf.mxu1 }
 0x1f2   : > { %3090 = vst.msk [vmem:[%s5225_s16 + $0xb8] sm:$0xff] %vm789_vm3, %v3058_v5  ;;  %v3056_v37 = vmax.f32 %v3024_v29, 0.0  ;;  %v2988_v48 = vmul.f32 %v5199_v26, %v2949_v59  ;;  %v2952_v45 = vadd.f32 %v3884_v60, %v2746_v54  ;;  %v2744_v3 = vadd.f32 %v2691_v21, %v2538_v53  ;;  %v3887_v31 = vpop.f32.mrf.mxu0 }
 0x1f3   : > { %v3029_v19 = vadd.f32 %v5209_v6, %v2990_v23  ;;  %v3853_v9 = vpop.f32.mrf.mxu1 }
 0x1f4   : > { %3088 = vst.msk [vmem:[%s5225_s16 + $0xa8] sm:$0xff] %vm789_vm3, %v3056_v37  ;;  %v3027_v2 = vadd.f32 %v5209_v6, %v2988_v48  ;;  %v2991_v30 = vmul.f32 %v5199_v26, %v2952_v45  ;;  %v2950_v41 = vadd.f32 %v2897_v10, %v2744_v3  ;;  %v2749_v22 = vadd.f32 %v3853_v9, %v2543_v16  ;;  %v2910_v11 = vpop.f32.mrf.mxu0 }
 0x1f5   : > { %v3061_v18 = vmax.f32 %v3029_v19, 0.0  ;;  %v2704_v20 = vpop.f32.mrf.mxu1 }
 0x1f6   : > { %v3059_v1 = vmax.f32 %v3027_v2, 0.0  ;;  %v3030_v35 = vadd.f32 %v5209_v6, %v2991_v30  ;;  %v2989_v8 = vmul.f32 %v5199_v26, %v2950_v41  ;;  %v2955_v62 = vadd.f32 %v3887_v31, %v2749_v22  ;;  %v3888_v17 = vpop.f32.mrf.mxu0 }
 0x1f7   : > { %3093 = vst.msk [vmem:[%s5225_s16 + $0xd0] sm:$0xff] %vm789_vm3, %v3061_v18  ;;  %v2747_v34 = vadd.f32 %v2704_v20, %v2541_v27  ;;  %v3854_v55 = vpop.f32.mrf.mxu1 }
 0x1f8   : > { %3091 = vst.msk [vmem:[%s5225_s16 + $0xc0] sm:$0xff] %vm789_vm3, %v3059_v1  ;;  %v3062_v46 = vmax.f32 %v3030_v35, 0.0  ;;  %v3028_v56 = vadd.f32 %v5209_v6, %v2989_v8  ;;  %v2994_v47 = vmul.f32 %v5199_v26, %v2955_v62  ;;  %v2750_v33 = vadd.f32 %v3854_v55, %v2544_v4  ;;  %v2913_v51 = vpop.f32.mrf.mxu0 }
 0x1f9   : > { %v2953_v61 = vadd.f32 %v2910_v11, %v2747_v34  ;;  %v2707_v40 = vpop.f32.mrf.mxu1 }
 0x1fa   : > { %3094 = vst.msk [vmem:[%s5225_s16 + $0xd8] sm:$0xff] %vm789_vm3, %v3062_v46  ;;  %v3060_v13 = vmax.f32 %v3028_v56, 0.0  ;;  %v3033_v50 = vadd.f32 %v5209_v6, %v2994_v47  ;;  %v2956_v14 = vadd.f32 %v3888_v17, %v2750_v33  ;;  %v2748_v52 = vadd.f32 %v2707_v40, %v2542_v25 }
 0x1fb   : > { %v2992_v63 = vmul.f32 %v5199_v26, %v2953_v61 }
 0x1fc   : > { %3092 = vst.msk [vmem:[%s5225_s16 + $0xc8] sm:$0xff] %vm789_vm3, %v3060_v13  ;;  %v3065_v38 = vmax.f32 %v3033_v50, 0.0  ;;  %v2995_v57 = vmul.f32 %v5199_v26, %v2956_v14  ;;  %v2954_v15 = vadd.f32 %v2913_v51, %v2748_v52 }
 0x1fd   : > { %v3031_v44 = vadd.f32 %v5209_v6, %v2992_v63 }
 0x1fe   : > { %3097 = vst.msk [vmem:[%s5225_s16 + $0xf0] sm:$0xff] %vm789_vm3, %v3065_v38  ;;  %v3034_v53 = vadd.f32 %v5209_v6, %v2995_v57  ;;  %v2993_v36 = vmul.f32 %v5199_v26, %v2954_v15 }
 0x1ff   : > { %v3063_v12 = vmax.f32 %v3031_v44, 0.0 }
 0x200   : > { %v3066_v60 = vmax.f32 %v3034_v53, 0.0  ;;  %v3032_v5 = vadd.f32 %v5209_v6, %v2993_v36 }
 0x201   : > { %3095 = vst.msk [vmem:[%s5225_s16 + $0xe0] sm:$0xff] %vm789_vm3, %v3063_v12 }
 0x202   : > { %3098 = vst.msk [vmem:[%s5225_s16 + $0xf8] sm:$0xff] %vm789_vm3, %v3066_v60  ;;  %v3064_v29 = vmax.f32 %v3032_v5, 0.0 }
 0x204   : > { %3096 = vst.msk [vmem:[%s5225_s16 + $0xe8] sm:$0xff] %vm789_vm3, %v3064_v29 }
 0x205 PF: > { %s16_s23 = sadd.s32 1, %s3963_s23   ;;  %s5524_s21 = smov %s3959_s22 }
 0x206   : > { %p13_p5 = scmp.ge.s32.totalorder %s16_s23, 4   ;;  %s5525_s22 = smov %s5527_s24 }
 0x208   :  { %15 = sbr.rel (!%p13_p5) target bundleno = 2 (0x2), region = 88 }

// kernel: upconv_concat_forward.4
= control target key start
LH: loop header
LB: loop body
LE: loop exit
PB: predicated region body
PF: predicated region fallthrough
CT: control target
= control target key end

     0   :  { %s7768_s13 = smov 0   ;;  %s7770_s14 = smov 0   ;;  %s10350_s0 = inlined_call_operand.vmem [shape: bf16[2,16,16,4], index: 0, kind: input, shape index: {}, may-alias: {0,1,2}]   ;;  %s10351_s1 = inlined_call_operand.vmem [shape: bf16[2,16,16,4], index: 1, kind: input, shape index: {}, may-alias: {0,1,2}]   ;;  %s10352_s2 = inlined_call_operand.vmem [shape: bf16[2,16,16,4], index: 2, kind: input, shape index: {}, may-alias: {0,1,2}]   ;;  %s10353_s3 = inlined_call_operand.vmem [shape: bf16[2,16,16,4], index: 3, kind: input, shape index: {}, may-alias: {3,4,5}]   ;;  %s10354_s4 = inlined_call_operand.vmem [shape: bf16[2,16,16,4], index: 4, kind: input, shape index: {}, may-alias: {3,4,5}]   ;;  %s10355_s5 = inlined_call_operand.vmem [shape: bf16[2,16,16,4], index: 5, kind: input, shape index: {}, may-alias: {3,4,5}]   ;;  %s10356_s6 = inlined_call_operand.vmem [shape: bf16[9,4,4], index: 6, kind: input, shape index: {}]   ;;  %s10357_s7 = inlined_call_operand.vmem [shape: bf16[9,4,4], index: 7, kind: input, shape index: {}]   ;;  %s10358_s8 = inlined_call_operand.vmem [shape: f32[1,4], index: 8, kind: input, shape index: {}]   ;;  %s10359_s9 = inlined_call_operand.vmem [shape: f32[1,4], index: 9, kind: input, shape index: {}]   ;;  %s10360_s10 = inlined_call_operand.vmem [shape: bf16[2,16,16,4], index: 10, kind: output, shape index: {}]  }
   0x1   :  { %s7772_s15 = smov 0  }
   0x2 LB: > { %s32_s16 = sadd.s32 1, %s7707_s14  ;;  %p6263_p0 = scmp.ge.s32.totalorder %s7711_s15, 1  ;;  %s7711_s15 = sphi %s7772_s15, %s20_s15   ;;  %s7707_s14 = sphi %s7770_s14, %s10657_s14   ;;  %s7703_s13 = sphi %s7768_s13, %s10656_s13  }
   0x3   : > { %p34_p1 = scmp.ge.s32.totalorder %s32_s16, 2  ;;  %p480_p2 = scmp.lt.s32.totalorder %s7711_s15, 3 }
   0x5   : > { %s10659_s16 = smov (%p34_p1, %s32_s16), 0  ;;  %p481_p3 = pnand %p6263_p0, %p480_p2 }
   0x7   : > { %484 = sbr.rel (%p481_p3) target bundleno = 809 (0x329), region = 60 }
   0xc   : > { %v6314_v0 = vld [vmem:[%s10356_s6 + $0x6] sm:$0x3]  ;;  %vm1437_vm0 = vcmask 1041408   ;;  %v1385_v1 = vld [vmem:[%s10356_s6] sm:$0x3]  ;;  %p591_p4 = scmp.lt.s32.totalorder %s7703_s13, 1 }
   0xd   : > { %7615 = vmatprep.subr.msk.bf16.mxu0 %vm1437_vm0, %v6314_v0  ;;  %v1439_v2 = vsel %vm1437_vm0, %v6314_v0, 0  ;;  %7616 = vmatprep.subr.msk.bf16.mxu1 %vm1437_vm0, %v1385_v1  ;;  %v1606_v3 = vsel %vm1437_vm0, %v1385_v1, 0  ;;  %v6347_v4 = vld [vmem:[%s10356_s6 + $0xc] sm:$0x3]  ;;  %v6364_v5 = vld [vmem:[%s10356_s6 + $0x2] sm:$0x3] }
   0xe   : > { %7004 = vmatpush3.bf16.msra.mxu0 %v1439_v2  ;;  %7038 = vmatpush3.bf16.msra.mxu1 %v1606_v3  ;;  %s10661_s13 = smov (!%p591_p4, %s7703_s13), 1  ;;  %vm1019_vm1 = vsmask.f32 256  ;;  %vm1018_vm2 = vcmask 1040384   ;;  %vm1388_vm4 = vcmask 31744   ;;  %v1775_v26 = vsel %vm1437_vm0, %v6347_v4, 0 }
   0xf   : > { %7617 = vmatprep.subr.msk.bf16.mxu0 %vm1437_vm0, %v6347_v4  ;;  %7618 = vmatprep.subr.msk.bf16.mxu1 %vm1437_vm0, %v6364_v5  ;;  %s7804_s25 = sshll.u32 %s10661_s13, 7  ;;  %vm7818_vm3 = vmand %vm1018_vm2, %vm1019_vm1  ;;  %v7845_v35 = vld [vmem:[%s10356_s6 + $0x8] sm:$0x3]  ;;  %v2198_v50 = vsel %vm1437_vm0, %v6364_v5, 0  ;;  %v7875_v51 = vld [vmem:[%s10356_s6 + $0xe] sm:$0x3] }
  0x10   : > { %s7810_s28 = scalar_lea.vmem %s10350_s0, %s7804_s25  ;;  %s613_s11 = scalar_lea.vmem %s10351_s1, %s7804_s25  ;;  %vm1972_vm5 = vsmask.f32 7424  ;;  %vm2851_vm6 = vcmask 1046528   ;;  %vm6025_vm7 = vcmask 27648  }
  0x11   : > { %v7657_v6 = vld [vmem:[%s7810_s28] sm:$0xff]   ;;  %v7658_v7 = vld [vmem:[%s7810_s28 + $0x8] sm:$0xff]   ;;  %v7659_v18 = vld [vmem:[%s7810_s28 + $0x10] sm:$0xff]   ;;  %s6657_s23 = sadd.s32 120, %s7804_s25  ;;  %s8298_s30 = scalar_lea.vmem %s10353_s3, %s7804_s25 }
  0x12   : > { %v864_v8 = vshrl.u32 %v7657_v6, 16  ;;  %v867_v9 = vshll.u32 %v7657_v6, 16  ;;  %v724_v10 = vld [vmem:[%s613_s11] sm:$0xf]  ;;  %v725_v11 = vld [vmem:[%s613_s11 + $0x4] sm:$0xf]  ;;  %s630_s27 = scalar_lea.vmem %s10352_s2, %s6657_s23  ;;  %s658_s26 = scalar_lea.vmem %s10354_s4, %s7804_s25 }
  0x13   : > { %v871_v13 = vshrl.u32 %v7658_v7, 16  ;;  %v874_v14 = vshll.u32 %v7658_v7, 16  ;;  %v745_v15 = vmul.bf16 0.0, %v724_v10  ;;  %v746_v16 = vmul.bf16 0.0, %v725_v11  ;;  %v7660_v21 = vld [vmem:[%s7810_s28 + $0x18] sm:$0xff]   ;;  %v7661_v28 = vld [vmem:[%s7810_s28 + $0x20] sm:$0xff]   ;;  %s675_s21 = scalar_lea.vmem %s10355_s5, %s6657_s23  ;;  %s10148_s13 = scalar_lea.vmem %s10360_s10, %s7804_s25 }
  0x14   : > { %v866_v17 = vrot.slane %v864_v8, 7  ;;  %v878_v23 = vshrl.u32 %v7659_v18, 16  ;;  %v881_v24 = vshll.u32 %v7659_v18, 16  ;;  %v7662_v29 = vld [vmem:[%s7810_s28 + $0x28] sm:$0xff]   ;;  %v885_v33 = vshrl.u32 %v7660_v21, 16  ;;  %v7663_v40 = vld [vmem:[%s7810_s28 + $0x30] sm:$0xff]  }
  0x15   : > { %v7823_v19 = vrot.slane %v871_v13, 7  ;;  %v6278_v20 = vcombine.low %v745_v15, %v746_v16  ;;  %v888_v39 = vshll.u32 %v7660_v21, 16  ;;  %v892_v41 = vshrl.u32 %v7661_v28, 16  ;;  %v7664_v56 = vld [vmem:[%s7810_s28 + $0x38] sm:$0xff]   ;;  %v7665_v59 = vld [vmem:[%s7810_s28 + $0x40] sm:$0xff]  }
  0x16   : > { %v869_v22 = vor.u32 %v867_v9, %v866_v17  ;;  %v7834_v32 = vrot.slane %v878_v23, 7  ;;  %v7852_v38 = vrot.slane %v885_v33, 7  ;;  %v895_v42 = vshll.u32 %v7661_v28, 16  ;;  %v7666_v9 = vld [vmem:[%s7810_s28 + $0x48] sm:$0xff]  }
  0x17   : > { %v876_v25 = vor.u32 %v874_v14, %v7823_v19  ;;  %v857_v27 = vshrl.u32 %v6278_v20, 16  ;;  %v860_v31 = vshll.u32 %v6278_v20, 16  ;;  %v899_v43 = vshrl.u32 %v7662_v29, 16  ;;  %v7667_v14 = vld [vmem:[%s7810_s28 + $0x50] sm:$0xff]  }
  0x18   : > { %v7832_v30 = vsel %vm7818_vm3, 0, %v869_v22  ;;  %v883_v37 = vor.u32 %v881_v24, %v7834_v32  ;;  %v890_v46 = vor.u32 %v888_v39, %v7852_v38  ;;  %v7865_v47 = vrot.slane %v892_v41, 7 }
  0x19   : > { %7005 = vmatprep.mubr.msk.bf16.mxu0 %vm1388_vm4, %v7832_v30  ;;  %v7840_v34 = vsel %vm7818_vm3, 0, %v876_v25  ;;  %v7849_v36 = vrot.slane %v857_v27, 7  ;;  %v906_v48 = vshrl.u32 %v7663_v40, 16  ;;  %v7884_v54 = vrot.slane %v899_v43, 7 }
  0x1a   : > { %7006 = vmatmul.mubr.msk.bf16.vlgmr.msra.gmra.mxu0 %vm1388_vm4, %v7840_v34  ;;  %v7858_v45 = vsel %vm7818_vm3, 0, %v883_v37  ;;  %v7881_v52 = vsel %vm7818_vm3, 0, %v890_v46  ;;  %v897_v53 = vor.u32 %v895_v42, %v7865_v47  ;;  %v902_v55 = vshll.u32 %v7662_v29, 16 }
  0x1b   : > { %7072 = vmatpush3.bf16.msra.mxu0 %v1775_v26  ;;  %v862_v44 = vor.u32 %v860_v31, %v7849_v36  ;;  %7009 = vmatprep.mubr.msk.bf16.mxu0 %vm1388_vm4, %v7858_v45  ;;  %v7889_v57 = vrot.slane %v906_v48, 7  ;;  %v909_v58 = vshll.u32 %v7663_v40, 16  ;;  %v1986_v60 = vshll.u32 %v7832_v30, 16  ;;  %v7668_v26 = vld [vmem:[%s7810_s28 + $0x58] sm:$0xff]   ;;  %v7669_v31 = vld [vmem:[%s7810_s28 + $0x60] sm:$0xff]  }
  0x1c   : > { %7619 = vmatprep.subr.msk.bf16.mxu0 %vm1437_vm0, %v7845_v35  ;;  %v7897_v61 = vsel %vm7818_vm3, 0, %v897_v53  ;;  %v7905_v62 = vsel %vm7818_vm3, %v866_v17, 0  ;;  %v904_v63 = vor.u32 %v902_v55, %v7884_v54  ;;  %v913_v0 = vshrl.u32 %v7664_v56, 16  ;;  %v7671_v53 = vld [vmem:[%s7810_s28 + $0x70] sm:$0xff]  }
  0x1d   : > { %v7869_v49 = vsel %vm7818_vm3, 0, %v862_v44  ;;  %v911_v1 = vor.u32 %v909_v58, %v7889_v57  ;;  %v920_v2 = vshrl.u32 %v7665_v59, 16  ;;  %v1984_v3 = vshrl.u32 %v7832_v30, 16  ;;  %v7670_v44 = vld [vmem:[%s7810_s28 + $0x68] sm:$0xff]  }
  0x1e   : > { %7039 = vmatprep.mubr.msk.bf16.mxu1 %vm1388_vm4, %v7869_v49  ;;  %v1988_v4 = vrot.slane %v1986_v60, 1  ;;  %v1991_v5 = vshll.u32 %v7905_v62, 16  ;;  %v7915_v6 = vsel %vm7818_vm3, 0, %v904_v63  ;;  %v7917_v7 = vrot.slane %v913_v0, 7 }
  0x1f   : > { %7040 = vmatmul.mubr.msk.bf16.vlgmr.msra.gmra.mxu1 %vm1388_vm4, %v7832_v30  ;;  %v916_v8 = vshll.u32 %v7664_v56, 16  ;;  %v7924_v10 = vsel %vm7818_vm3, 0, %v911_v1  ;;  %v7926_v11 = vrot.slane %v920_v2, 7  ;;  %v923_v13 = vshll.u32 %v7665_v59, 16  ;;  %v7672_v1 = vld [vmem:[%s7810_s28 + $0x78] sm:$0xff]  }
  0x20   : > { %7106 = vmatpush3.bf16.msra.mxu1 %v2198_v50  ;;  %7043 = vmatprep.mubr.msk.bf16.mxu1 %vm1388_vm4, %v7840_v34  ;;  %v1989_v15 = vor.u32 %v1988_v4, %v1984_v3  ;;  %v927_v17 = vshrl.u32 %v7666_v9, 16  ;;  %v1993_v18 = vrot.slane %v1991_v5, 1  ;;  %v934_v21 = vshrl.u32 %v7667_v14, 16 }
  0x21   : > { %7620 = vmatprep.subr.msk.bf16.mxu1 %vm1437_vm0, %v7875_v51  ;;  %v918_v16 = vor.u32 %v916_v8, %v7917_v7  ;;  %v925_v20 = vor.u32 %v923_v13, %v7926_v11  ;;  %v930_v25 = vshll.u32 %v7666_v9, 16  ;;  %v937_v29 = vshll.u32 %v7667_v14, 16 }
  0x22   : > { %7010 = vmatmul.mubr.msk.bf16.gmra.mxu0 %vm1388_vm4, %v7881_v52  ;;  %v7938_v22 = vsel %vm1972_vm5, %v1989_v15, %v1993_v18  ;;  %v7944_v24 = vrot.slane %v927_v17, 7  ;;  %v7953_v28 = vrot.slane %v934_v21, 7  ;;  %v941_v37 = vshrl.u32 %v7668_v26, 16 }
  0x23   : > { %7013 = vmatprep.mubr.msk.bf16.mxu0 %vm1388_vm4, %v7897_v61  ;;  %v7942_v23 = vsel %vm7818_vm3, 0, %v918_v16  ;;  %v7951_v27 = vsel %vm7818_vm3, 0, %v925_v20  ;;  %v948_v40 = vshrl.u32 %v7669_v31, 16  ;;  %v944_v43 = vshll.u32 %v7668_v26, 16 }
  0x24   : > { %v932_v33 = vor.u32 %v930_v25, %v7944_v24  ;;  %v939_v39 = vor.u32 %v937_v29, %v7953_v28  ;;  %v7968_v42 = vrot.slane %v941_v37, 7  ;;  %v951_v50 = vshll.u32 %v7669_v31, 16 }
  0x25   : > { %v7977_v48 = vrot.slane %v948_v40, 7  ;;  %v955_v56 = vshrl.u32 %v7670_v44, 16  ;;  %v962_v59 = vshrl.u32 %v7671_v53, 16  ;;  %v958_v0 = vshll.u32 %v7670_v44, 16 }
  0x26   : > { %v7966_v41 = vsel %vm7818_vm3, 0, %v932_v33  ;;  %v7975_v46 = vsel %vm7818_vm3, 0, %v939_v39  ;;  %v946_v55 = vor.u32 %v944_v43, %v7968_v42  ;;  %v965_v4 = vshll.u32 %v7671_v53, 16 }
  0x27   : > { %7044 = vmatmul.mubr.msk.bf16.gmra.mxu1 %vm1388_vm4, %v7858_v45  ;;  %v953_v58 = vor.u32 %v951_v50, %v7977_v48  ;;  %v7992_v63 = vrot.slane %v955_v56, 7  ;;  %v8001_v3 = vrot.slane %v962_v59, 7  ;;  %v969_v8 = vshrl.u32 %v7672_v1, 16 }
  0x28   : > { %7047 = vmatprep.mubr.msk.bf16.mxu1 %vm1388_vm4, %v7881_v52  ;;  %v7990_v60 = vsel %vm7818_vm3, 0, %v946_v55  ;;  %v972_v15 = vshll.u32 %v7672_v1, 16  ;;  %v1975_v17 = vshll.u32 %v7869_v49, 16  ;;  %v1039_v20 = vsel %vm7818_vm3, %v7849_v36, 0 }
  0x29   : > { %v7999_v2 = vsel %vm7818_vm3, 0, %v953_v58  ;;  %v960_v5 = vor.u32 %v958_v0, %v7992_v63  ;;  %v967_v9 = vor.u32 %v965_v4, %v8001_v3  ;;  %v8015_v14 = vrot.slane %v969_v8, 7  ;;  %v8073_v58 = vld [vmem:[%s10356_s6 + $0x4] sm:$0x3] }
  0x2a   : > { %7014 = vmatmul.mubr.msk.bf16.gmra.mxu0 %vm1388_vm4, %v7915_v6  ;;  %v1973_v21 = vshrl.u32 %v7869_v49, 16  ;;  %v1977_v25 = vrot.slane %v1975_v17, 1  ;;  %v1980_v26 = vshll.u32 %v1039_v20, 16  ;;  %v8048_v36 = vsel %vm7818_vm3, %v7823_v19, 0 }
  0x2b   : > { %7017 = vmatprep.mubr.msk.bf16.mxu0 %vm1388_vm4, %v7924_v10  ;;  %v8013_v13 = vsel %vm7818_vm3, 0, %v960_v5  ;;  %v8021_v16 = vsel %vm7818_vm3, 0, %v967_v9  ;;  %v974_v18 = vor.u32 %v972_v15, %v8015_v14  ;;  %v1997_v37 = vshll.u32 %v7840_v34, 16 }
  0x2c   : > { %v1978_v31 = vor.u32 %v1977_v25, %v1973_v21  ;;  %v1982_v33 = vrot.slane %v1980_v26, 1  ;;  %v2855_v39 = vrot.slane %v7832_v30, 1  ;;  %v2856_v40 = vrot.slane %v7905_v62, 1 }
  0x2d   : > { %v8037_v29 = vsel %vm7818_vm3, 0, %v974_v18  ;;  %v2002_v43 = vshll.u32 %v8048_v36, 16  ;;  %v2852_v44 = vrot.slane %v7869_v49, 1  ;;  %v1995_v53 = vshrl.u32 %v7840_v34, 16 }
  0x2e   : > { %v1983_v50 = vsel %vm1972_vm5, %v1978_v31, %v1982_v33  ;;  %v1999_v55 = vrot.slane %v1997_v37, 1  ;;  %v2410_v19 = vsel %vm1437_vm0, %v7845_v35, 0  ;;  %v2853_v56 = vrot.slane %v1039_v20, 1  ;;  %v8105_v20 = vld [vmem:[%s10356_s6 + $0xa] sm:$0x3] }
  0x2f   : > { %7048 = vmatmul.mubr.msk.bf16.gmra.mxu1 %vm1388_vm4, %v7897_v61  ;;  %v2004_v30 = vrot.slane %v2002_v43, 1  ;;  %v8067_v49 = vsel %vm7818_vm3, %v7834_v32, 0  ;;  %v2008_v62 = vshll.u32 %v7858_v45, 16  ;;  %v2019_v59 = vshll.u32 %v7881_v52, 16 }
  0x30   : > { %7051 = vmatprep.mubr.msk.bf16.mxu1 %vm1388_vm4, %v7915_v6  ;;  %v2000_v35 = vor.u32 %v1999_v55, %v1995_v53  ;;  %v8079_v0 = vsel %vm2851_vm6, %v2852_v44, %v2853_v56  ;;  %v8082_v1 = vsel %vm2851_vm6, %v2855_v39, %v2856_v40  ;;  %v8089_v32 = vsel %vm7818_vm3, %v7852_v38, 0 }
  0x31   : > { %v2622_v4 = vsel %vm1437_vm0, %v7875_v51, 0  ;;  %v2006_v5 = vshrl.u32 %v7858_v45, 16  ;;  %v2010_v8 = vrot.slane %v2008_v62, 1  ;;  %v2013_v9 = vshll.u32 %v8067_v49, 16 }
  0x32   : > { %7018 = vmatmul.mubr.msk.bf16.gmra.mxu0 %vm1388_vm4, %v7942_v23  ;;  %v8098_v15 = vsel %vm1972_vm5, %v2000_v35, %v2004_v30  ;;  %v2017_v17 = vshrl.u32 %v7881_v52, 16  ;;  %v2021_v18 = vrot.slane %v2019_v59, 1  ;;  %v2024_v38 = vshll.u32 %v8089_v32, 16 }
  0x33   : > { %7021 = vmatprep.mubr.msk.bf16.mxu0 %vm1388_vm4, %v7951_v27  ;;  %v2011_v51 = vor.u32 %v2010_v8, %v2006_v5  ;;  %v2015_v21 = vrot.slane %v2013_v9, 1  ;;  %v2030_v25 = vshll.u32 %v7897_v61, 16  ;;  %v8117_v33 = vsel %vm7818_vm3, %v7865_v47, 0 }
  0x34   : > { %v2022_v26 = vor.u32 %v2021_v18, %v2017_v17  ;;  %v2026_v31 = vrot.slane %v2024_v38, 1  ;;  %v2041_v37 = vshll.u32 %v7915_v6, 16  ;;  %v8127_v39 = vsel %vm7818_vm3, %v7884_v54, 0 }
  0x35   : > { %v8130_v40 = vsel %vm1972_vm5, %v2011_v51, %v2015_v21  ;;  %v2028_v43 = vshrl.u32 %v7897_v61, 16  ;;  %v2032_v47 = vrot.slane %v2030_v25, 1  ;;  %v2035_v44 = vshll.u32 %v8117_v33, 16 }
  0x36   : > { %v2039_v53 = vshrl.u32 %v7915_v6, 16  ;;  %v2043_v55 = vrot.slane %v2041_v37, 1  ;;  %v2052_v30 = vshll.u32 %v7924_v10, 16  ;;  %v8149_v59 = vsel %vm7818_vm3, %v7889_v57, 0 }
  0x37   : > { %7052 = vmatmul.mubr.msk.bf16.gmra.mxu1 %vm1388_vm4, %v7924_v10  ;;  %v2033_v54 = vor.u32 %v2032_v47, %v2028_v43  ;;  %v2037_v56 = vrot.slane %v2035_v44, 1  ;;  %v8157_v5 = vsel %vm7818_vm3, %v7917_v7, 0  ;;  %v2050_v9 = vshrl.u32 %v7924_v10, 16 }
  0x38   : > { %7055 = vmatprep.mubr.msk.bf16.mxu1 %vm1388_vm4, %v7942_v23  ;;  %v2044_v62 = vor.u32 %v2043_v55, %v2039_v53  ;;  %v2054_v17 = vrot.slane %v2052_v30, 1  ;;  %v2057_v57 = vshll.u32 %v8149_v59, 16  ;;  %v2061_v38 = vshrl.u32 %v7942_v23, 16 }
  0x39   : > { %v8160_v8 = vsel %vm1972_vm5, %v2033_v54, %v2037_v56  ;;  %v2068_v21 = vshll.u32 %v8157_v5, 16  ;;  %v8179_v43 = vsel %vm7818_vm3, %v7926_v11, 0  ;;  %v2085_v47 = vshll.u32 %v7966_v41, 16 }
  0x3a   : > { %7022 = vmatmul.mubr.msk.bf16.gmra.mxu0 %vm1388_vm4, %v7966_v41  ;;  %v2055_v7 = vor.u32 %v2054_v17, %v2050_v9  ;;  %v2059_v25 = vrot.slane %v2057_v57, 1  ;;  %v8188_v44 = vsel %vm7818_vm3, %v7944_v24, 0  ;;  %v2072_v55 = vshrl.u32 %v7951_v27, 16 }
  0x3b   : > { %7025 = vmatprep.mubr.msk.bf16.mxu0 %vm1388_vm4, %v7975_v46  ;;  %v2070_v37 = vrot.slane %v2068_v21, 1  ;;  %v2079_v11 = vshll.u32 %v8179_v43, 16  ;;  %v2083_v56 = vshrl.u32 %v7966_v41, 16  ;;  %v2087_v24 = vrot.slane %v2085_v47, 1 }
  0x3c   : > { %v8191_v53 = vsel %vm1972_vm5, %v2055_v7, %v2059_v25  ;;  %v2090_v30 = vshll.u32 %v8188_v44, 16  ;;  %v2096_v17 = vshll.u32 %v7975_v46, 16  ;;  %v2107_v21 = vshll.u32 %v7990_v60, 16 }
  0x3d   : > { %v2081_v9 = vrot.slane %v2079_v11, 1  ;;  %v2088_v57 = vor.u32 %v2087_v24, %v2083_v56  ;;  %v8223_v7 = vsel %vm7818_vm3, %v7968_v42, 0 }
  0x3e   : > { %v2098_v47 = vrot.slane %v2096_v17, 1  ;;  %v2109_v11 = vrot.slane %v2107_v21, 1  ;;  %v2112_v56 = vshll.u32 %v8223_v7, 16  ;;  %v2129_v17 = vshll.u32 %v8013_v13, 16 }
  0x3f   : > { %7056 = vmatmul.mubr.msk.bf16.gmra.mxu1 %vm1388_vm4, %v7951_v27 }
  0x40   : > { %7059 = vmatprep.mubr.msk.bf16.mxu1 %vm1388_vm4, %v7966_v41 }
  0x42   : > { %7026 = vmatmul.mubr.msk.bf16.gmra.mxu0 %vm1388_vm4, %v7990_v60 }
  0x43   : > { %7029 = vmatprep.mubr.msk.bf16.mxu0 %vm1388_vm4, %v7999_v2 }
  0x47   : > { %7060 = vmatmul.mubr.msk.bf16.gmra.mxu1 %vm1388_vm4, %v7975_v46 }
  0x48   : > { %7063 = vmatprep.mubr.msk.bf16.mxu1 %vm1388_vm4, %v7990_v60 }
  0x4a   : > { %7030 = vmatmul.mubr.msk.bf16.gmra.mxu0 %vm1388_vm4, %v8013_v13 }
  0x4b   : > { %7033 = vmatprep.mubr.msk.bf16.mxu0 %vm1388_vm4, %v8021_v16 }
  0x4f   : > { %7064 = vmatmul.mubr.msk.bf16.gmra.mxu1 %vm1388_vm4, %v7999_v2 }
  0x50   : > { %7067 = vmatprep.mubr.msk.bf16.mxu1 %vm1388_vm4, %v8013_v13 }
  0x52   : > { %7034 = vmatmul.mubr.msk.bf16.gmra.mxu0 %vm1388_vm4, %v8037_v29 }
  0x53   : > { %7073 = vmatprep.mubr.msk.bf16.mxu0 %vm1388_vm4, %v7840_v34 }
  0x57   : > { %7068 = vmatmul.mubr.msk.bf16.gmra.mxu1 %vm1388_vm4, %v8021_v16 }
  0x58   : > { %7107 = vmatprep.mubr.msk.bf16.mxu1 %vm1388_vm4, %v1983_v50  ;;  %v8135_v50 = vsel %vm1972_vm5, %v2022_v26, %v2026_v31  ;;  %v2074_v26 = vshll.u32 %v7951_v27, 16 }
  0x5a   : > { %7074 = vmatmul.mubr.msk.bf16.vlgmr.msra.gmra.mxu0 %vm1388_vm4, %v7858_v45 }
  0x5b   : > { %7140 = vmatpush3.bf16.msra.mxu0 %v2410_v19  ;;  %7077 = vmatprep.mubr.msk.bf16.mxu0 %vm1388_vm4, %v7881_v52  ;;  %v2046_v19 = vshll.u32 %v8127_v39, 16 }
  0x5c   : > { %7621 = vmatprep.subr.msk.bf16.mxu0 %vm1437_vm0, %v8073_v58 }
  0x5d   : > { %v2048_v35 = vrot.slane %v2046_v19, 1  ;;  %v2076_v19 = vrot.slane %v2074_v26, 1 }
  0x5f   : > { %7108 = vmatmul.mubr.msk.bf16.vlgmr.msra.gmra.mxu1 %vm1388_vm4, %v7938_v22  ;;  %v8165_v18 = vsel %vm1972_vm5, %v2044_v62, %v2048_v35  ;;  %v726_v62 = vld [vmem:[%s630_s27] sm:$0xf]  ;;  %v727_v35 = vld [vmem:[%s630_s27 + $0x4] sm:$0xf] }
  0x60   : > { %7174 = vmatpush3.bf16.msra.mxu1 %v2622_v4  ;;  %7111 = vmatprep.mubr.msk.bf16.mxu1 %vm1388_vm4, %v8098_v15  ;;  %v2063_v4 = vshll.u32 %v7942_v23, 16  ;;  %v764_v25 = vmul.bf16 0.0, %v726_v62  ;;  %v765_v26 = vmul.bf16 0.0, %v727_v35  ;;  %v2118_v62 = vshll.u32 %v7999_v2, 16 }
  0x61   : > { %7622 = vmatprep.subr.msk.bf16.mxu1 %vm1437_vm0, %v8105_v20 }
  0x62   : > { %7078 = vmatmul.mubr.msk.bf16.gmra.mxu0 %vm1388_vm4, %v7897_v61  ;;  %v2065_v51 = vrot.slane %v2063_v4, 1  ;;  %v2077_v4 = vor.u32 %v2076_v19, %v2072_v55  ;;  %v2105_v19 = vshrl.u32 %v7990_v60, 16  ;;  %v6295_v42 = vcombine.low %v764_v25, %v765_v26 }
  0x63   : > { %7081 = vmatprep.mubr.msk.bf16.mxu0 %vm1388_vm4, %v7915_v6  ;;  %v2116_v25 = vshrl.u32 %v7999_v2, 16  ;;  %v2120_v26 = vrot.slane %v2118_v62, 1 }
  0x64   : > { %v2066_v31 = vor.u32 %v2065_v51, %v2061_v38  ;;  %v2092_v38 = vrot.slane %v2090_v30, 1  ;;  %v8215_v51 = vsel %vm7818_vm3, %v7953_v28, 0  ;;  %v2110_v35 = vor.u32 %v2109_v11, %v2105_v19 }
  0x65   : > { %v2101_v28 = vshll.u32 %v8215_v51, 16 }
  0x66   : > { %v8201_v54 = vsel %vm1972_vm5, %v2066_v31, %v2070_v37  ;;  %v8226_v31 = vsel %vm1972_vm5, %v2077_v4, %v2081_v9  ;;  %v2094_v37 = vshrl.u32 %v7975_v46, 16  ;;  %v8231_v55 = vsel %vm1972_vm5, %v2088_v57, %v2092_v38 }
  0x67   : > { %7112 = vmatmul.mubr.msk.bf16.gmra.mxu1 %vm1388_vm4, %v8130_v40  ;;  %v2103_v30 = vrot.slane %v2101_v28, 1  ;;  %v2114_v4 = vrot.slane %v2112_v56, 1  ;;  %v8245_v9 = vsel %vm7818_vm3, %v7977_v48, 0  ;;  %v976_v57 = vshrl.u32 %v6295_v42, 16 }
  0x68   : > { %7115 = vmatprep.mubr.msk.bf16.mxu1 %vm1388_vm4, %v8135_v50  ;;  %v2099_v24 = vor.u32 %v2098_v47, %v2094_v37  ;;  %v8253_v38 = vsel %vm7818_vm3, %v7992_v63, 0  ;;  %v2123_v48 = vshll.u32 %v8245_v9, 16  ;;  %v2127_v47 = vshrl.u32 %v8013_v13, 16 }
  0x69   : > { %v2115_v37 = vsel %vm1972_vm5, %v2110_v35, %v2114_v4  ;;  %v2131_v28 = vrot.slane %v2129_v17, 1  ;;  %v2134_v19 = vshll.u32 %v8253_v38, 16  ;;  %v8263_v11 = vrot.slane %v976_v57, 7 }
  0x6a   : > { %7082 = vmatmul.mubr.msk.bf16.gmra.mxu0 %vm1388_vm4, %v7924_v10  ;;  %v8256_v21 = vsel %vm1972_vm5, %v2099_v24, %v2103_v30  ;;  %v979_v56 = vshll.u32 %v6295_v42, 16  ;;  %v2121_v63 = vor.u32 %v2120_v26, %v2116_v25  ;;  %v2125_v24 = vrot.slane %v2123_v48, 1 }
  0x6b   : > { %7085 = vmatprep.mubr.msk.bf16.mxu0 %vm1388_vm4, %v7942_v23  ;;  %v2140_v30 = vshll.u32 %v8021_v16, 16  ;;  %v2132_v62 = vor.u32 %v2131_v28, %v2127_v47  ;;  %v2136_v35 = vrot.slane %v2134_v19, 1  ;;  %v8274_v4 = vsel %vm7818_vm3, %v8001_v3, 0 }
  0x6c   : > { %v981_v42 = vor.u32 %v979_v56, %v8263_v11  ;;  %v2126_v17 = vsel %vm1972_vm5, %v2121_v63, %v2125_v24  ;;  %v2138_v57 = vshrl.u32 %v8021_v16, 16  ;;  %v2145_v26 = vshll.u32 %v8274_v4, 16  ;;  %v6449_v63 = vld [vmem:[%s10356_s6 + $0x10] sm:$0x3] }
  0x6d   : > { %v2142_v25 = vrot.slane %v2140_v30, 1  ;;  %v2137_v48 = vsel %vm1972_vm5, %v2132_v62, %v2136_v35  ;;  %v2949_v56 = vsel %vm1437_vm0, %v8073_v58, 0  ;;  %v3556_v58 = vld [vmem:[%s10357_s7] sm:$0x3]  ;;  %v2859_v62 = vrot.slane %v8048_v36, 1 }
  0x6e   : > { %v8285_v47 = vsel %vm7818_vm3, 0, %v981_v42  ;;  %v2147_v28 = vrot.slane %v2145_v26, 1  ;;  %v2858_v35 = vrot.slane %v7840_v34, 1  ;;  %v3361_v42 = vsel %vm1437_vm0, %v6449_v63, 0 }
  0x6f   : > { %7116 = vmatmul.mubr.msk.bf16.gmra.mxu1 %vm1388_vm4, %v8160_v8  ;;  %10423 = vst [vmem:[#allocation2_spill] sm:$0xff] %v8285_v47  ;;  %v2143_v3 = vor.u32 %v2142_v25, %v2138_v57  ;;  %v2861_v34 = vrot.slane %v7858_v45, 1  ;;  %v3606_v26 = vsel %vm1437_vm0, %v3556_v58, 0  ;;  %v8414_v45 = vld [vmem:[%s10357_s7 + $0xc] sm:$0x3] }
  0x70   : > { %7119 = vmatprep.mubr.msk.bf16.mxu1 %vm1388_vm4, %v8165_v18  ;;  %v8397_v36 = vsel %vm2851_vm6, %v2858_v35, %v2859_v62  ;;  %v2874_v62 = vrot.slane %v8149_v59, 1 }
  0x71   : > { %v2148_v19 = vsel %vm1972_vm5, %v2143_v3, %v2147_v28  ;;  %v2865_v3 = vrot.slane %v8089_v32, 1 }
  0x72   : > { %7086 = vmatmul.mubr.msk.bf16.gmra.mxu0 %vm1388_vm4, %v7951_v27 }
  0x73   : > { %7089 = vmatprep.mubr.msk.bf16.mxu0 %vm1388_vm4, %v7966_v41 }
  0x77   : > { %7120 = vmatmul.mubr.msk.bf16.gmra.mxu1 %vm1388_vm4, %v8191_v53 }
  0x78   : > { %7123 = vmatprep.mubr.msk.bf16.mxu1 %vm1388_vm4, %v8201_v54 }
  0x7a   : > { %7090 = vmatmul.mubr.msk.bf16.gmra.mxu0 %vm1388_vm4, %v7975_v46 }
  0x7b   : > { %7093 = vmatprep.mubr.msk.bf16.mxu0 %vm1388_vm4, %v7990_v60 }
  0x7f   : > { %7124 = vmatmul.mubr.msk.bf16.gmra.mxu1 %vm1388_vm4, %v8226_v31 }
  0x80   : > { %7127 = vmatprep.mubr.msk.bf16.mxu1 %vm1388_vm4, %v8231_v55 }
  0x82   : > { %7094 = vmatmul.mubr.msk.bf16.gmra.mxu0 %vm1388_vm4, %v7999_v2 }
  0x83   : > { %7097 = vmatprep.mubr.msk.bf16.mxu0 %vm1388_vm4, %v8013_v13 }
  0x87   : > { %7128 = vmatmul.mubr.msk.bf16.gmra.mxu1 %vm1388_vm4, %v8256_v21 }
  0x88   : > { %7131 = vmatprep.mubr.msk.bf16.mxu1 %vm1388_vm4, %v2115_v37 }
  0x8a   : > { %7098 = vmatmul.mubr.msk.bf16.gmra.mxu0 %vm1388_vm4, %v8021_v16 }
  0x8b   : > { %7101 = vmatprep.mubr.msk.bf16.mxu0 %vm1388_vm4, %v8037_v29 }
  0x8f   : > { %7132 = vmatmul.mubr.msk.bf16.gmra.mxu1 %vm1388_vm4, %v2126_v17 }
  0x90   : > { %7135 = vmatprep.mubr.msk.bf16.mxu1 %vm1388_vm4, %v2137_v48 }
  0x92   : > { %7102 = vmatmul.mubr.msk.bf16.gmra.mxu0 %vm1388_vm4, %v8285_v47 }
  0x93   : > { %7141 = vmatprep.mubr.msk.bf16.mxu0 %vm1388_vm4, %v7938_v22  ;;  %v3155_v22 = vsel %vm1437_vm0, %v8105_v20, 0  ;;  %v8360_v20 = vsel %vm7818_vm3, %v8015_v14, 0 }
  0x97   : > { %7136 = vmatmul.mubr.msk.bf16.gmra.mxu1 %vm1388_vm4, %v2148_v19 }
  0x98   : > { %7175 = vmatprep.mubr.msk.bf16.mxu1 %vm1388_vm4, %v8098_v15 }
  0x9a   : > { %7142 = vmatmul.mubr.msk.bf16.vlgmr.msra.gmra.mxu0 %vm1388_vm4, %v8098_v15  ;;  %v2397_v15 = vshll.u32 %v8037_v29, 16 }
  0x9b   : > { %7208 = vmatpush3.bf16.msra.mxu0 %v2949_v56  ;;  %7145 = vmatprep.mubr.msk.bf16.mxu0 %vm1388_vm4, %v8130_v40 }
  0x9c   : > { %7623 = vmatprep.subr.msk.bf16.mxu0 %vm1437_vm0, %v6449_v63 }
  0x9f   : > { %7176 = vmatmul.mubr.msk.bf16.vlgmr.msra.gmra.mxu1 %vm1388_vm4, %v8130_v40  ;;  %v2395_v40 = vshrl.u32 %v8037_v29, 16 }
  0xa0   : > { %7242 = vmatpush3.bf16.msra.mxu1 %v3155_v22  ;;  %7179 = vmatprep.mubr.msk.bf16.mxu1 %vm1388_vm4, %v8135_v50 }
  0xa1   : > { %7624 = vmatprep.subr.msk.bf16.mxu1 %vm1437_vm0, %v3556_v58  ;;  %v2867_v58 = vrot.slane %v7897_v61, 1 }
  0xa2   : > { %7146 = vmatmul.mubr.msk.bf16.gmra.mxu0 %vm1388_vm4, %v8135_v50  ;;  %v2399_v50 = vrot.slane %v2397_v15, 1  ;;  %v2868_v15 = vrot.slane %v8117_v33, 1 }
  0xa3   : > { %7149 = vmatprep.mubr.msk.bf16.mxu0 %vm1388_vm4, %v8160_v8 }
  0xa4   : > { %v2400_v14 = vor.u32 %v2399_v50, %v2395_v40 }
  0xa7   : > { %7180 = vmatmul.mubr.msk.bf16.gmra.mxu1 %vm1388_vm4, %v8160_v8  ;;  %v2402_v8 = vshll.u32 %v8360_v20, 16 }
  0xa8   : > { %7183 = vmatprep.mubr.msk.bf16.mxu1 %vm1388_vm4, %v8165_v18 }
  0xaa   : > { %7150 = vmatmul.mubr.msk.bf16.gmra.mxu0 %vm1388_vm4, %v8165_v18  ;;  %v2609_v18 = vshll.u32 %v8285_v47, 16 }
  0xab   : > { %7153 = vmatprep.mubr.msk.bf16.mxu0 %vm1388_vm4, %v8191_v53 }
  0xaf   : > { %7184 = vmatmul.mubr.msk.bf16.gmra.mxu1 %vm1388_vm4, %v8191_v53  ;;  %v8371_v53 = vsel %vm7818_vm3, %v8263_v11, 0 }
  0xb0   : > { %7187 = vmatprep.mubr.msk.bf16.mxu1 %vm1388_vm4, %v8201_v54  ;;  %10424 = vst [vmem:[#allocation3_spill] sm:$0xff] %v8371_v53 }
  0xb2   : > { %7154 = vmatmul.mubr.msk.bf16.gmra.mxu0 %vm1388_vm4, %v8201_v54  ;;  %v2404_v54 = vrot.slane %v2402_v8, 1 }
  0xb3   : > { %7157 = vmatprep.mubr.msk.bf16.mxu0 %vm1388_vm4, %v8226_v31 }
  0xb7   : > { %7188 = vmatmul.mubr.msk.bf16.gmra.mxu1 %vm1388_vm4, %v8226_v31  ;;  %v2607_v31 = vshrl.u32 %v8285_v47, 16 }
  0xb8   : > { %7191 = vmatprep.mubr.msk.bf16.mxu1 %vm1388_vm4, %v8231_v55 }
  0xba   : > { %7158 = vmatmul.mubr.msk.bf16.gmra.mxu0 %vm1388_vm4, %v8231_v55  ;;  %v2611_v55 = vrot.slane %v2609_v18, 1 }
  0xbb   : > { %7161 = vmatprep.mubr.msk.bf16.mxu0 %vm1388_vm4, %v8256_v21 }
  0xbc   : > { %v2612_v24 = vor.u32 %v2611_v55, %v2607_v31  ;;  %v2871_v31 = vrot.slane %v8127_v39, 1 }
  0xbf   : > { %7192 = vmatmul.mubr.msk.bf16.gmra.mxu1 %vm1388_vm4, %v8256_v21  ;;  %v2614_v21 = vshll.u32 %v8371_v53, 16 }
  0xc0   : > { %7195 = vmatprep.mubr.msk.bf16.mxu1 %vm1388_vm4, %v2115_v37 }
  0xc1   : > { %v2616_v30 = vrot.slane %v2614_v21, 1  ;;  %v8442_v21 = vsel %vm2851_vm6, %v2867_v58, %v2868_v15 }
  0xc2   : > { %7162 = vmatmul.mubr.msk.bf16.gmra.mxu0 %vm1388_vm4, %v2115_v37  ;;  %v2405_v37 = vsel %vm1972_vm5, %v2400_v14, %v2404_v54  ;;  %v2870_v54 = vrot.slane %v7915_v6, 1 }
  0xc3   : > { %7165 = vmatprep.mubr.msk.bf16.mxu0 %vm1388_vm4, %v2126_v17  ;;  %v2617_v11 = vsel %vm1972_vm5, %v2612_v24, %v2616_v30 }
  0xc4   : > { %v8453_v6 = vsel %vm2851_vm6, %v2870_v54, %v2871_v31  ;;  %v2883_v54 = vrot.slane %v8188_v44, 1 }
  0xc7   : > { %7196 = vmatmul.mubr.msk.bf16.gmra.mxu1 %vm1388_vm4, %v2126_v17  ;;  %v8392_v17 = vld [vmem:[%s10357_s7 + $0x6] sm:$0x3] }
  0xc8   : > { %7199 = vmatprep.mubr.msk.bf16.mxu1 %vm1388_vm4, %v2137_v48 }
  0xca   : > { %7166 = vmatmul.mubr.msk.bf16.gmra.mxu0 %vm1388_vm4, %v2137_v48 }
  0xcb   : > { %7169 = vmatprep.mubr.msk.bf16.mxu0 %vm1388_vm4, %v2148_v19 }
  0xcf   : > { %7200 = vmatmul.mubr.msk.bf16.gmra.mxu1 %vm1388_vm4, %v2148_v19 }
  0xd0   : > { %7203 = vmatprep.mubr.msk.bf16.mxu1 %vm1388_vm4, %v2405_v37 }
  0xd2   : > { %7170 = vmatmul.mubr.msk.bf16.gmra.mxu0 %vm1388_vm4, %v2405_v37 }
  0xd3   : > { %7209 = vmatprep.mubr.msk.bf16.mxu0 %vm1388_vm4, %v8079_v0  ;;  %v2862_v0 = vrot.slane %v8067_v49, 1 }
  0xd5   : > { %v8409_v28 = vsel %vm2851_vm6, %v2861_v34, %v2862_v0 }
  0xd7   : > { %7204 = vmatmul.mubr.msk.bf16.gmra.mxu1 %vm1388_vm4, %v2617_v11  ;;  %v2873_v11 = vrot.slane %v7924_v10, 1 }
  0xd8   : > { %7243 = vmatprep.mubr.msk.bf16.mxu1 %vm1388_vm4, %v8082_v1 }
  0xda   : > { %v7007_v57 = vpop.f32.mrf.mxu0  ;;  %7210 = vmatmul.mubr.msk.bf16.vlgmr.msra.gmra.mxu0 %vm1388_vm4, %v8082_v1  ;;  %v2864_v1 = vrot.slane %v7881_v52, 1 }
  0xdb   : > { %7276 = vmatpush3.bf16.msra.mxu0 %v3361_v42  ;;  %7213 = vmatprep.mubr.msk.bf16.mxu0 %vm1388_vm4, %v8397_v36 }
  0xdc   : > { %v1475_v25 = vpop.f32.mrf.mxu0  ;;  %7625 = vmatprep.subr.msk.bf16.mxu0 %vm1437_vm0, %v8392_v17  ;;  %v8425_v63 = vsel %vm2851_vm6, %v2864_v1, %v2865_v3  ;;  %v8468_v1 = vsel %vm2851_vm6, %v2873_v11, %v2874_v62  ;;  %v2885_v11 = vrot.slane %v7975_v46, 1  ;;  %v2886_v62 = vrot.slane %v8215_v51, 1  ;;  %v1089_v51 = vld [vmem:[%s658_s26] sm:$0xf] }
  0xde   : > { %v7008_v48 = vpop.f32.mrf.mxu0  ;;  %v8524_v46 = vsel %vm2851_vm6, %v2885_v11, %v2886_v62  ;;  %v2894_v62 = vrot.slane %v8013_v13, 1 }
  0xdf   : > { %v7041_v49 = vpop.f32.mrf.mxu1  ;;  %7244 = vmatmul.mubr.msk.bf16.vlgmr.msra.gmra.mxu1 %vm1388_vm4, %v8397_v36 }
  0xe0   : > { %v1478_v19 = vpop.f32.mrf.mxu0  ;;  %v8418_v56 = vadd.f32 %v7041_v49, %v7007_v57  ;;  %7310 = vmatpush3.bf16.msra.mxu1 %v3606_v26  ;;  %7247 = vmatprep.mubr.msk.bf16.mxu1 %vm1388_vm4, %v8409_v28  ;;  %v2877_v26 = vrot.slane %v8157_v5, 1 }
  0xe1   : > { %v1642_v52 = vpop.f32.mrf.mxu1  ;;  %7626 = vmatprep.subr.msk.bf16.mxu1 %vm1437_vm0, %v8414_v45 }
  0xe2   : > { %v7011_v32 = vpop.f32.mrf.mxu0  ;;  %7214 = vmatmul.mubr.msk.bf16.gmra.mxu0 %vm1388_vm4, %v8409_v28  ;;  %v8429_v22 = vadd.f32 %v1642_v52, %v1475_v25  ;;  %v2876_v25 = vrot.slane %v7942_v23, 1  ;;  %v2879_v52 = vrot.slane %v7951_v27, 1 }
  0xe3   : > { %7217 = vmatprep.mubr.msk.bf16.mxu0 %vm1388_vm4, %v8425_v63  ;;  %v7042_v40 = vpop.f32.mrf.mxu1 }
  0xe4   : > { %v1491_v50 = vpop.f32.mrf.mxu0  ;;  %v8435_v8 = vadd.f32 %v7042_v40, %v7008_v48  ;;  %v8479_v23 = vsel %vm2851_vm6, %v2876_v25, %v2877_v26  ;;  %v2888_v26 = vrot.slane %v7990_v60, 1 }
  0xe5   : > { %v1645_v18 = vpop.f32.mrf.mxu1 }
  0xe6   : > { %v7012_v14 = vpop.f32.mrf.mxu0  ;;  %v8439_v55 = vadd.f32 %v1645_v18, %v1478_v19 }
  0xe7   : > { %v7045_v37 = vpop.f32.mrf.mxu1  ;;  %7248 = vmatmul.mubr.msk.bf16.gmra.mxu1 %vm1388_vm4, %v8425_v63 }
  0xe8   : > { %v1494_v61 = vpop.f32.mrf.mxu0  ;;  %v8446_v33 = vadd.f32 %v7045_v37, %v7011_v32  ;;  %7251 = vmatprep.mubr.msk.bf16.mxu1 %vm1388_vm4, %v8442_v21  ;;  %v2880_v32 = vrot.slane %v8179_v43, 1 }
  0xe9   : > { %v1658_v24 = vpop.f32.mrf.mxu1 }
  0xea   : > { %v7015_v30 = vpop.f32.mrf.mxu0  ;;  %7218 = vmatmul.mubr.msk.bf16.gmra.mxu0 %vm1388_vm4, %v8442_v21  ;;  %v8455_v39 = vadd.f32 %v1658_v24, %v1491_v50  ;;  %v8494_v37 = vsel %vm2851_vm6, %v2879_v52, %v2880_v32 }
  0xeb   : > { %7221 = vmatprep.mubr.msk.bf16.mxu0 %vm1388_vm4, %v8453_v6  ;;  %v7046_v35 = vpop.f32.mrf.mxu1 }
  0xec   : > { %v1507_v42 = vpop.f32.mrf.mxu0  ;;  %v8461_v57 = vadd.f32 %v7046_v35, %v7012_v14  ;;  %v2882_v14 = vrot.slane %v7966_v41, 1 }
  0xed   : > { %v1661_v34 = vpop.f32.mrf.mxu1 }
  0xee   : > { %v7016_v0 = vpop.f32.mrf.mxu0  ;;  %v8465_v48 = vadd.f32 %v1661_v34, %v1494_v61  ;;  %v8505_v44 = vsel %vm2851_vm6, %v2882_v14, %v2883_v54  ;;  %v2891_v14 = vrot.slane %v7999_v2, 1  ;;  %v2892_v54 = vrot.slane %v8245_v9, 1 }
  0xef   : > { %v7049_v3 = vpop.f32.mrf.mxu1  ;;  %7252 = vmatmul.mubr.msk.bf16.gmra.mxu1 %vm1388_vm4, %v8453_v6 }
  0xf0   : > { %v1510_v10 = vpop.f32.mrf.mxu0  ;;  %v8472_v59 = vadd.f32 %v7049_v3, %v7015_v30  ;;  %7255 = vmatprep.mubr.msk.bf16.mxu1 %vm1388_vm4, %v8468_v1  ;;  %v2889_v3 = vrot.slane %v8223_v7, 1 }
  0xf1   : > { %v1674_v49 = vpop.f32.mrf.mxu1 }
  0xf2   : > { %v7019_v19 = vpop.f32.mrf.mxu0  ;;  %7222 = vmatmul.mubr.msk.bf16.gmra.mxu0 %vm1388_vm4, %v8468_v1  ;;  %v8481_v5 = vadd.f32 %v1674_v49, %v1507_v42  ;;  %v1090_v49 = vld [vmem:[%s658_s26 + $0x4] sm:$0xf]  ;;  %v8535_v7 = vsel %vm2851_vm6, %v2888_v26, %v2889_v3  ;;  %v8550_v26 = vsel %vm2851_vm6, %v2891_v14, %v2892_v54 }
  0xf3   : > { %7225 = vmatprep.mubr.msk.bf16.mxu0 %vm1388_vm4, %v8479_v23  ;;  %v7050_v58 = vpop.f32.mrf.mxu1 }
  0xf4   : > { %v1523_v15 = vpop.f32.mrf.mxu0  ;;  %v8487_v40 = vadd.f32 %v7050_v58, %v7016_v0 }
  0xf5   : > { %v1677_v50 = vpop.f32.mrf.mxu1 }
  0xf6   : > { %v7020_v18 = vpop.f32.mrf.mxu0  ;;  %v8491_v31 = vadd.f32 %v1677_v50, %v1510_v10  ;;  %v1094_v50 = vmul.bf16 0.0, %v1090_v49 }
  0xf7   : > { %v7053_v61 = vpop.f32.mrf.mxu1  ;;  %7256 = vmatmul.mubr.msk.bf16.gmra.mxu1 %vm1388_vm4, %v8479_v23 }
  0xf8   : > { %v1526_v27 = vpop.f32.mrf.mxu0  ;;  %v8498_v43 = vadd.f32 %v7053_v61, %v7019_v19  ;;  %7259 = vmatprep.mubr.msk.bf16.mxu1 %vm1388_vm4, %v8494_v37 }
  0xf9   : > { %v1690_v24 = vpop.f32.mrf.mxu1 }
  0xfa   : > { %v7023_v41 = vpop.f32.mrf.mxu0  ;;  %7226 = vmatmul.mubr.msk.bf16.gmra.mxu0 %vm1388_vm4, %v8494_v37  ;;  %v8507_v30 = vadd.f32 %v1690_v24, %v1523_v15  ;;  %v1093_v15 = vmul.bf16 0.0, %v1089_v51 }
  0xfb   : > { %7229 = vmatprep.mubr.msk.bf16.mxu0 %vm1388_vm4, %v8505_v44  ;;  %v7054_v35 = vpop.f32.mrf.mxu1 }
  0xfc   : > { %v1539_v42 = vpop.f32.mrf.mxu0  ;;  %v8517_v34 = vadd.f32 %v7054_v35, %v7020_v18  ;;  %v2895_v35 = vrot.slane %v8253_v38, 1 }
  0xfd   : > { %v1693_v0 = vpop.f32.mrf.mxu1 }
  0xfe   : > { %v7024_v25 = vpop.f32.mrf.mxu0  ;;  %v8521_v10 = vadd.f32 %v1693_v0, %v1526_v27  ;;  %v6296_v0 = vcombine.low %v1093_v15, %v1094_v50  ;;  %v8561_v38 = vsel %vm2851_vm6, %v2894_v62, %v2895_v35  ;;  %v7673_v15 = vld [vmem:[%s8298_s30] sm:$0xff]   ;;  %v7674_v62 = vld [vmem:[%s8298_s30 + $0x8] sm:$0xff]  }
  0xff   : > { %v7057_v19 = vpop.f32.mrf.mxu1  ;;  %7260 = vmatmul.mubr.msk.bf16.gmra.mxu1 %vm1388_vm4, %v8505_v44 }
 0x100   : > { %v1542_v52 = vpop.f32.mrf.mxu0  ;;  %v8528_v32 = vadd.f32 %v7057_v19, %v7023_v41  ;;  %7263 = vmatprep.mubr.msk.bf16.mxu1 %vm1388_vm4, %v8524_v46  ;;  %v1188_v51 = vshrl.u32 %v6296_v0, 16  ;;  %v2897_v19 = vrot.slane %v8021_v16, 1 }
 0x101   : > { %v1706_v60 = vpop.f32.mrf.mxu1 }
 0x102   : > { %v7027_v58 = vpop.f32.mrf.mxu0  ;;  %7230 = vmatmul.mubr.msk.bf16.gmra.mxu0 %vm1388_vm4, %v8524_v46  ;;  %v8537_v18 = vadd.f32 %v1706_v60, %v1539_v42 }
 0x103   : > { %7233 = vmatprep.mubr.msk.bf16.mxu0 %vm1388_vm4, %v8535_v7  ;;  %v7058_v61 = vpop.f32.mrf.mxu1 }
 0x104   : > { %v1555_v27 = vpop.f32.mrf.mxu0  ;;  %v8543_v24 = vadd.f32 %v7058_v61, %v7024_v25  ;;  %v8572_v61 = vrot.slane %v1188_v51, 7 }
 0x105   : > { %v1709_v41 = vpop.f32.mrf.mxu1 }
 0x106   : > { %v7028_v11 = vpop.f32.mrf.mxu0  ;;  %v8547_v42 = vadd.f32 %v1709_v41, %v1542_v52  ;;  %v2898_v52 = vrot.slane %v8274_v4, 1  ;;  %10425 = vst [vmem:[#allocation4_spill] sm:$0xff] %v8572_v61  ;;  %v1191_v41 = vshll.u32 %v6296_v0, 16  ;;  %v1195_v4 = vshrl.u32 %v7673_v15, 16 }
 0x107   : > { %v7061_v3 = vpop.f32.mrf.mxu1  ;;  %7264 = vmatmul.mubr.msk.bf16.gmra.mxu1 %vm1388_vm4, %v8535_v7  ;;  %v3149_v0 = vrot.slane %v8360_v20, 1 }
 0x108   : > { %v1558_v2 = vpop.f32.mrf.mxu0  ;;  %v8554_v9 = vadd.f32 %v7061_v3, %v7027_v58  ;;  %7267 = vmatprep.mubr.msk.bf16.mxu1 %vm1388_vm4, %v8550_v26  ;;  %v8578_v35 = vsel %vm2851_vm6, %v2897_v19, %v2898_v52  ;;  %v1193_v19 = vor.u32 %v1191_v41, %v8572_v61  ;;  %v1202_v52 = vshrl.u32 %v7674_v62, 16  ;;  %v7676_v61 = vld [vmem:[%s8298_s30 + $0x18] sm:$0xff]  }
 0x109   : > { %v1722_v13 = vpop.f32.mrf.mxu1 }
 0x10a   : > { %v7031_v25 = vpop.f32.mrf.mxu0  ;;  %7234 = vmatmul.mubr.msk.bf16.gmra.mxu0 %vm1388_vm4, %v8550_v26  ;;  %v8563_v49 = vadd.f32 %v1722_v13, %v1555_v27 }
 0x10b   : > { %7237 = vmatprep.mubr.msk.bf16.mxu0 %vm1388_vm4, %v8561_v38  ;;  %v7062_v60 = vpop.f32.mrf.mxu1 }
 0x10c   : > { %v1571_v58 = vpop.f32.mrf.mxu0  ;;  %v8570_v50 = vadd.f32 %v7062_v60, %v7028_v11  ;;  %v3148_v11 = vrot.slane %v8037_v29, 1  ;;  %v1198_v29 = vshll.u32 %v7673_v15, 16 }
 0x10d   : > { %v1725_v14 = vpop.f32.mrf.mxu1 }
 0x10e   : > { %v7032_v54 = vpop.f32.mrf.mxu0  ;;  %v8575_v27 = vadd.f32 %v1725_v14, %v1558_v2  ;;  %v8600_v53 = vsel %vm2851_vm6, %v3148_v11, %v3149_v0 }
 0x10f   : > { %v7065_v3 = vpop.f32.mrf.mxu1  ;;  %7268 = vmatmul.mubr.msk.bf16.gmra.mxu1 %vm1388_vm4, %v8561_v38 }
 0x110   : > { %v1574_v16 = vpop.f32.mrf.mxu0  ;;  %v8582_v13 = vadd.f32 %v7065_v3, %v7031_v25  ;;  %7271 = vmatprep.mubr.msk.bf16.mxu1 %vm1388_vm4, %v8578_v35  ;;  %v8595_v3 = vrot.slane %v1195_v4, 7 }
 0x111   : > { %v1738_v2 = vpop.f32.mrf.mxu1 }
 0x112   : > { %10426 = vst [vmem:[#allocation5_spill] sm:$0xff] %v8582_v13  ;;  %v7035_v51 = vpop.f32.mrf.mxu0  ;;  %7238 = vmatmul.mubr.msk.bf16.gmra.mxu0 %vm1388_vm4, %v8578_v35  ;;  %v8591_v60 = vadd.f32 %v1738_v2, %v1571_v58  ;;  %10428 = vst [vmem:[#allocation7_spill] sm:$0xff] %v8595_v3  ;;  %v7675_v13 = vld [vmem:[%s8298_s30 + $0x10] sm:$0xff]   ;;  %v8605_v58 = vsel %vm7818_vm3, 0, %v1193_v19  ;;  %v8607_v2 = vrot.slane %v1202_v52, 7  ;;  %v1200_v11 = vor.u32 %v1198_v29, %v8595_v3 }
 0x113   : > { %7277 = vmatprep.mubr.msk.bf16.mxu0 %vm1388_vm4, %v8397_v36  ;;  %v7066_v25 = vpop.f32.mrf.mxu1  ;;  %10429 = vst [vmem:[#allocation8_spill] sm:$0xff] %v8605_v58  ;;  %v1205_v36 = vshll.u32 %v7674_v62, 16  ;;  %v1209_v62 = vshrl.u32 %v7675_v13, 16  ;;  %v1216_v52 = vshrl.u32 %v7676_v61, 16 }
 0x114   : > { %10427 = vst [vmem:[#allocation6_spill] sm:$0xff] %v8591_v60  ;;  %v1587_v14 = vpop.f32.mrf.mxu0  ;;  %v8597_v20 = vadd.f32 %v7066_v25, %v7032_v54  ;;  %10430 = vst [vmem:[#allocation9_spill] sm:$0xff] %v8607_v2  ;;  %v3807_v54 = vsel %vm1437_vm0, %v8392_v17, 0  ;;  %v8636_v3 = vsel %vm7818_vm3, 0, %v1200_v11 }
 0x115   : > { %v1741_v47 = vpop.f32.mrf.mxu1  ;;  %v1207_v17 = vor.u32 %v1205_v36, %v8607_v2  ;;  %v1212_v36 = vshll.u32 %v7675_v13, 16  ;;  %v1219_v2 = vshll.u32 %v7676_v61, 16  ;;  %v8661_v13 = vld [vmem:[%s10357_s7 + $0x8] sm:$0x3] }
 0x116   : > { %v7036_v41 = vpop.f32.mrf.mxu0  ;;  %v8610_v60 = vadd.f32 %v1741_v47, %v1574_v16  ;;  %v8624_v47 = vld [vmem:[%s10357_s7 + $0x2] sm:$0x3] }
 0x117   : > { %v7069_v4 = vpop.f32.mrf.mxu1  ;;  %7272 = vmatmul.mubr.msk.bf16.gmra.mxu1 %vm1388_vm4, %v8600_v53  ;;  %10431 = vst [vmem:[#allocation10_spill] sm:$0xff] %v8624_v47  ;;  %v8650_v11 = vsel %vm7818_vm3, 0, %v1207_v17 }
 0x118   : > { %v1590_v15 = vpop.f32.mrf.mxu0  ;;  %v8617_v0 = vadd.f32 %v7069_v4, %v7035_v51  ;;  %7311 = vmatprep.mubr.msk.bf16.mxu1 %vm1388_vm4, %v8605_v58  ;;  %v7677_v58 = vld [vmem:[%s8298_s30 + $0x20] sm:$0xff]  }
 0x119   : > { %v1754_v16 = vpop.f32.mrf.mxu1  ;;  %v1223_v17 = vshrl.u32 %v7677_v58, 16 }
 0x11a   : > { %v7075_v19 = vpop.f32.mrf.mxu0  ;;  %7278 = vmatmul.mubr.msk.bf16.vlgmr.msra.gmra.mxu0 %vm1388_vm4, %v8409_v28  ;;  %v8629_v51 = vadd.f32 %v1754_v16, %v1587_v14 }
 0x11b   : > { %v1940_v25 = vadd.f32 %v7075_v19, %v8418_v56  ;;  %7344 = vmatpush3.bf16.msra.mxu0 %v3807_v54  ;;  %7281 = vmatprep.mubr.msk.bf16.mxu0 %vm1388_vm4, %v8425_v63  ;;  %v7070_v29 = vpop.f32.mrf.mxu1  ;;  %v8644_v56 = vrot.slane %v1209_v62, 7  ;;  %v4008_v63 = vsel %vm1437_vm0, %v8414_v45, 0  ;;  %v8652_v19 = vrot.slane %v1216_v52, 7 }
 0x11c   : > { %v1811_v4 = vpop.f32.mrf.mxu0  ;;  %7627 = vmatprep.subr.msk.bf16.mxu0 %vm1437_vm0, %v8624_v47  ;;  %v8641_v28 = vadd.f32 %v7070_v29, %v7036_v41  ;;  %v7678_v47 = vld [vmem:[%s8298_s30 + $0x28] sm:$0xff]  }
 0x11d   : > { %v1938_v14 = vadd.f32 %v1811_v4, %v8429_v22  ;;  %10432 = vst [vmem:[#allocation11_spill] sm:$0xff] %v8644_v56  ;;  %v1757_v54 = vpop.f32.mrf.mxu1  ;;  %10433 = vst [vmem:[#allocation12_spill] sm:$0xff] %v8652_v19  ;;  %v1221_v4 = vor.u32 %v1219_v2, %v8652_v19 }
 0x11e   : > { %v7076_v16 = vpop.f32.mrf.mxu0  ;;  %v8655_v41 = vadd.f32 %v1757_v54, %v1590_v15  ;;  %v1230_v54 = vshrl.u32 %v7678_v47, 16 }
 0x11f   : > { %v1941_v22 = vadd.f32 %v7076_v16, %v8435_v8  ;;  %v7109_v62 = vpop.f32.mrf.mxu1  ;;  %7312 = vmatmul.mubr.msk.bf16.vlgmr.msra.gmra.mxu1 %vm1388_vm4, %v8636_v3  ;;  %v1214_v8 = vor.u32 %v1212_v36, %v8644_v56  ;;  %v8681_v16 = vrot.slane %v1223_v17, 7  ;;  %v1233_v17 = vshll.u32 %v7678_v47, 16  ;;  %v7682_v56 = vld [vmem:[%s8298_s30 + $0x48] sm:$0xff]  }
 0x120   : > { %v1814_v45 = vpop.f32.mrf.mxu0  ;;  %v8665_v29 = vadd.f32 %v7109_v62, %v1940_v25  ;;  %7378 = vmatpush3.bf16.msra.mxu1 %v4008_v63  ;;  %7315 = vmatprep.mubr.msk.bf16.mxu1 %vm1388_vm4, %v8650_v11  ;;  %v1226_v62 = vshll.u32 %v7677_v58, 16 }
 0x121   : > { %v1939_v61 = vadd.f32 %v1814_v45, %v8439_v55  ;;  %v2234_v15 = vpop.f32.mrf.mxu1  ;;  %7628 = vmatprep.subr.msk.bf16.mxu1 %vm1437_vm0, %v8661_v13  ;;  %10434 = vst [vmem:[#allocation13_spill] sm:$0xff] %v8681_v16  ;;  %v8688_v45 = vsel %vm7818_vm3, 0, %v1214_v8 }
 0x122   : > { %v7079_v52 = vpop.f32.mrf.mxu0  ;;  %7282 = vmatmul.mubr.msk.bf16.gmra.mxu0 %vm1388_vm4, %v8442_v21  ;;  %v8676_v25 = vadd.f32 %v2234_v15, %v1938_v14  ;;  %10435 = vst [vmem:[#allocation14_spill] sm:$0xff] %v8688_v45  ;;  %v7679_v14 = vld [vmem:[%s8298_s30 + $0x30] sm:$0xff]  }
 0x123   : > { %v1944_v55 = vadd.f32 %v7079_v52, %v8446_v33  ;;  %7285 = vmatprep.mubr.msk.bf16.mxu0 %vm1388_vm4, %v8453_v6  ;;  %v7110_v36 = vpop.f32.mrf.mxu1  ;;  %v8693_v33 = vsel %vm7818_vm3, 0, %v1221_v4  ;;  %v8695_v6 = vrot.slane %v1230_v54, 7  ;;  %v7680_v52 = vld [vmem:[%s8298_s30 + $0x38] sm:$0xff]   ;;  %v1237_v47 = vshrl.u32 %v7679_v14, 16 }
 0x124   : > { %v1827_v63 = vpop.f32.mrf.mxu0  ;;  %v8683_v21 = vadd.f32 %v7110_v36, %v1941_v22  ;;  %10436 = vst [vmem:[#allocation15_spill] sm:$0xff] %v8693_v33  ;;  %v1228_v36 = vor.u32 %v1226_v62, %v8681_v16 }
 0x125   : > { %v1942_v2 = vadd.f32 %v1827_v63, %v8455_v39  ;;  %v2237_v15 = vpop.f32.mrf.mxu1  ;;  %10437 = vst [vmem:[#allocation16_spill] sm:$0xff] %v8695_v6 }
 0x126   : > { %v7080_v19 = vpop.f32.mrf.mxu0  ;;  %v8698_v58 = vadd.f32 %v2237_v15, %v1939_v61 }
 0x127   : > { %v1945_v22 = vadd.f32 %v7080_v19, %v8461_v57  ;;  %v7113_v39 = vpop.f32.mrf.mxu1  ;;  %7316 = vmatmul.mubr.msk.bf16.gmra.mxu1 %vm1388_vm4, %v8688_v45  ;;  %v1235_v57 = vor.u32 %v1233_v17, %v8695_v6  ;;  %v1244_v19 = vshrl.u32 %v7680_v52, 16  ;;  %v8725_v17 = vrot.slane %v1237_v47, 7 }
 0x128   : > { %v1830_v8 = vpop.f32.mrf.mxu0  ;;  %v8704_v63 = vadd.f32 %v7113_v39, %v1944_v55  ;;  %7319 = vmatprep.mubr.msk.bf16.mxu1 %vm1388_vm4, %v8693_v33  ;;  %v8719_v39 = vsel %vm7818_vm3, 0, %v1228_v36 }
 0x129   : > { %v1943_v4 = vadd.f32 %v1830_v8, %v8465_v48  ;;  %v2250_v61 = vpop.f32.mrf.mxu1  ;;  %v7681_v8 = vld [vmem:[%s8298_s30 + $0x40] sm:$0xff]   ;;  %10438 = vst [vmem:[#allocation17_spill] sm:$0xff] %v8725_v17 }
 0x12a   : > { %v7083_v54 = vpop.f32.mrf.mxu0  ;;  %7286 = vmatmul.mubr.msk.bf16.gmra.mxu0 %vm1388_vm4, %v8468_v1  ;;  %v8712_v15 = vadd.f32 %v2250_v61, %v1942_v2  ;;  %v1240_v2 = vshll.u32 %v7679_v14, 16  ;;  %v1251_v14 = vshrl.u32 %v7681_v8, 16 }
 0x12b   : > { %v1948_v55 = vadd.f32 %v7083_v54, %v8472_v59  ;;  %7289 = vmatprep.mubr.msk.bf16.mxu0 %vm1388_vm4, %v8479_v23  ;;  %v7114_v48 = vpop.f32.mrf.mxu1  ;;  %v8729_v59 = vsel %vm7818_vm3, 0, %v1235_v57  ;;  %v8731_v23 = vrot.slane %v1244_v19, 7  ;;  %v1247_v54 = vshll.u32 %v7680_v52, 16 }
 0x12c   : > { %v1843_v62 = vpop.f32.mrf.mxu0  ;;  %v8722_v16 = vadd.f32 %v7114_v48, %v1945_v22  ;;  %10439 = vst [vmem:[#allocation18_spill] sm:$0xff] %v8729_v59  ;;  %v1242_v52 = vor.u32 %v1240_v2, %v8725_v17  ;;  %v8753_v2 = vrot.slane %v1251_v14, 7  ;;  %v1261_v14 = vshll.u32 %v7682_v56, 16  ;;  %v7686_v17 = vld [vmem:[%s8298_s30 + $0x68] sm:$0xff]  }
 0x12d   : > { %v1946_v1 = vadd.f32 %v1843_v62, %v8481_v5  ;;  %v2253_v61 = vpop.f32.mrf.mxu1  ;;  %10440 = vst [vmem:[#allocation19_spill] sm:$0xff] %v8731_v23 }
 0x12e   : > { %v7084_v6 = vpop.f32.mrf.mxu0  ;;  %v8734_v36 = vadd.f32 %v2253_v61, %v1943_v4  ;;  %10441 = vst [vmem:[#allocation20_spill] sm:$0xff] %v8753_v2 }
 0x12f   : > { %v1949_v22 = vadd.f32 %v7084_v6, %v8487_v40  ;;  %v7117_v48 = vpop.f32.mrf.mxu1  ;;  %7320 = vmatmul.mubr.msk.bf16.gmra.mxu1 %vm1388_vm4, %v8719_v39  ;;  %v1249_v40 = vor.u32 %v1247_v54, %v8731_v23  ;;  %v1258_v6 = vshrl.u32 %v7682_v56, 16  ;;  %v8760_v54 = vsel %vm7818_vm3, 0, %v1242_v52 }
 0x130   : > { %v1846_v5 = vpop.f32.mrf.mxu0  ;;  %v8739_v47 = vadd.f32 %v7117_v48, %v1948_v55  ;;  %7323 = vmatprep.mubr.msk.bf16.mxu1 %vm1388_vm4, %v8729_v59  ;;  %v1254_v48 = vshll.u32 %v7681_v8, 16  ;;  %10442 = vst [vmem:[#allocation21_spill] sm:$0xff] %v8760_v54 }
 0x131   : > { %v1947_v62 = vadd.f32 %v1846_v5, %v8491_v31  ;;  %v2266_v4 = vpop.f32.mrf.mxu1 }
 0x132   : > { %v7087_v57 = vpop.f32.mrf.mxu0  ;;  %7290 = vmatmul.mubr.msk.bf16.gmra.mxu0 %vm1388_vm4, %v8494_v37  ;;  %v8748_v19 = vadd.f32 %v2266_v4, %v1946_v1  ;;  %v7683_v1 = vld [vmem:[%s8298_s30 + $0x50] sm:$0xff]  }
 0x133   : > { %v1952_v55 = vadd.f32 %v7087_v57, %v8498_v43  ;;  %7293 = vmatprep.mubr.msk.bf16.mxu0 %vm1388_vm4, %v8505_v44  ;;  %v7118_v31 = vpop.f32.mrf.mxu1  ;;  %v8765_v43 = vsel %vm7818_vm3, 0, %v1249_v40  ;;  %v8767_v44 = vrot.slane %v1258_v6, 7  ;;  %v7684_v57 = vld [vmem:[%s8298_s30 + $0x58] sm:$0xff]   ;;  %v1265_v56 = vshrl.u32 %v7683_v1, 16 }
 0x134   : > { %v1859_v61 = vpop.f32.mrf.mxu0  ;;  %v8755_v5 = vadd.f32 %v7118_v31, %v1949_v22  ;;  %10443 = vst [vmem:[#allocation22_spill] sm:$0xff] %v8765_v43  ;;  %v1256_v31 = vor.u32 %v1254_v48, %v8753_v2 }
 0x135   : > { %v1950_v37 = vadd.f32 %v1859_v61, %v8507_v30  ;;  %v2269_v4 = vpop.f32.mrf.mxu1  ;;  %10444 = vst [vmem:[#allocation23_spill] sm:$0xff] %v8767_v44 }
 0x136   : > { %v7088_v23 = vpop.f32.mrf.mxu0  ;;  %v8770_v8 = vadd.f32 %v2269_v4, %v1947_v62 }
 0x137   : > { %v1953_v22 = vadd.f32 %v7088_v23, %v8517_v34  ;;  %v7121_v30 = vpop.f32.mrf.mxu1  ;;  %7324 = vmatmul.mubr.msk.bf16.gmra.mxu1 %vm1388_vm4, %v8760_v54  ;;  %v1263_v34 = vor.u32 %v1261_v14, %v8767_v44  ;;  %v1272_v23 = vshrl.u32 %v7684_v57, 16  ;;  %v8797_v14 = vrot.slane %v1265_v56, 7 }
 0x138   : > { %v1862_v52 = vpop.f32.mrf.mxu0  ;;  %v8776_v61 = vadd.f32 %v7121_v30, %v1952_v55  ;;  %7327 = vmatprep.mubr.msk.bf16.mxu1 %vm1388_vm4, %v8765_v43  ;;  %v8791_v30 = vsel %vm7818_vm3, 0, %v1256_v31 }
 0x139   : > { %v1951_v40 = vadd.f32 %v1862_v52, %v8521_v10  ;;  %v2282_v62 = vpop.f32.mrf.mxu1  ;;  %10445 = vst [vmem:[#allocation24_spill] sm:$0xff] %v8791_v30  ;;  %v7685_v52 = vld [vmem:[%s8298_s30 + $0x60] sm:$0xff]   ;;  %10446 = vst [vmem:[#allocation25_spill] sm:$0xff] %v8797_v14 }
 0x13a   : > { %v7091_v6 = vpop.f32.mrf.mxu0  ;;  %7294 = vmatmul.mubr.msk.bf16.gmra.mxu0 %vm1388_vm4, %v8524_v46  ;;  %v8784_v4 = vadd.f32 %v2282_v62, %v1950_v37  ;;  %v1268_v37 = vshll.u32 %v7683_v1, 16  ;;  %v1279_v1 = vshrl.u32 %v7685_v52, 16 }
 0x13b   : > { %v1956_v55 = vadd.f32 %v7091_v6, %v8528_v32  ;;  %7297 = vmatprep.mubr.msk.bf16.mxu0 %vm1388_vm4, %v8535_v7  ;;  %v7122_v10 = vpop.f32.mrf.mxu1  ;;  %v8801_v32 = vsel %vm7818_vm3, 0, %v1263_v34  ;;  %v8803_v7 = vrot.slane %v1272_v23, 7  ;;  %v1275_v6 = vshll.u32 %v7684_v57, 16 }
 0x13c   : > { %v1875_v48 = vpop.f32.mrf.mxu0  ;;  %v8794_v2 = vadd.f32 %v7122_v10, %v1953_v22  ;;  %10447 = vst [vmem:[#allocation26_spill] sm:$0xff] %v8801_v32  ;;  %v1270_v57 = vor.u32 %v1268_v37, %v8797_v14  ;;  %v1282_v37 = vshll.u32 %v7685_v52, 16 }
 0x13d   : > { %v1954_v46 = vadd.f32 %v1875_v48, %v8537_v18  ;;  %v2285_v62 = vpop.f32.mrf.mxu1  ;;  %10448 = vst [vmem:[#allocation27_spill] sm:$0xff] %v8803_v7 }
 0x13e   : > { %v7092_v44 = vpop.f32.mrf.mxu0  ;;  %v8806_v31 = vadd.f32 %v2285_v62, %v1951_v40 }
 0x13f   : > { %v1957_v22 = vadd.f32 %v7092_v44, %v8543_v24  ;;  %v7125_v10 = vpop.f32.mrf.mxu1  ;;  %7328 = vmatmul.mubr.msk.bf16.gmra.mxu1 %vm1388_vm4, %v8791_v30  ;;  %v1277_v24 = vor.u32 %v1275_v6, %v8803_v7  ;;  %v1286_v44 = vshrl.u32 %v7686_v17, 16 }
 0x140   : > { %v1878_v18 = vpop.f32.mrf.mxu0  ;;  %v8811_v56 = vadd.f32 %v7125_v10, %v1956_v55  ;;  %7331 = vmatprep.mubr.msk.bf16.mxu1 %vm1388_vm4, %v8801_v32  ;;  %v8825_v10 = vrot.slane %v1279_v1, 7  ;;  %v1289_v1 = vshll.u32 %v7686_v17, 16 }
 0x141   : > { %v1955_v48 = vadd.f32 %v1878_v18, %v8547_v42  ;;  %v2298_v40 = vpop.f32.mrf.mxu1 }
 0x142   : > { %v7095_v34 = vpop.f32.mrf.mxu0  ;;  %7298 = vmatmul.mubr.msk.bf16.gmra.mxu0 %vm1388_vm4, %v8550_v26  ;;  %v8820_v23 = vadd.f32 %v2298_v40, %v1954_v46  ;;  %10449 = vst [vmem:[#allocation28_spill] sm:$0xff] %v8825_v10  ;;  %v8832_v26 = vsel %vm7818_vm3, 0, %v1270_v57  ;;  %v7687_v46 = vld [vmem:[%s8298_s30 + $0x70] sm:$0xff]   ;;  %v1284_v57 = vor.u32 %v1282_v37, %v8825_v10  ;;  %v10455_v37 = vld [vmem:[#allocation5_spill] sm:$0xff] }
 0x143   : > { %v1960_v55 = vadd.f32 %v7095_v34, %v8554_v9  ;;  %7301 = vmatprep.mubr.msk.bf16.mxu0 %vm1388_vm4, %v8561_v38  ;;  %v7126_v42 = vpop.f32.mrf.mxu1  ;;  %10450 = vst [vmem:[#allocation29_spill] sm:$0xff] %v8832_v26  ;;  %v8837_v9 = vsel %vm7818_vm3, 0, %v1277_v24  ;;  %v8839_v38 = vrot.slane %v1286_v44, 7  ;;  %v1293_v24 = vshrl.u32 %v7687_v46, 16  ;;  %v10453_v44 = vld [vmem:[#allocation2_spill] sm:$0xff] }
 0x144   : > { %v1891_v62 = vpop.f32.mrf.mxu0  ;;  %v8827_v18 = vadd.f32 %v7126_v42, %v1957_v22  ;;  %10451 = vst [vmem:[#allocation30_spill] sm:$0xff] %v8837_v9  ;;  %v8864_v7 = vsel %vm7818_vm3, 0, %v1284_v57 }
 0x145   : > { %v1958_v14 = vadd.f32 %v1891_v62, %v8563_v49  ;;  %v2301_v6 = vpop.f32.mrf.mxu1  ;;  %10452 = vst [vmem:[#allocation31_spill] sm:$0xff] %v8839_v38  ;;  %10457 = vst [vmem:[#allocation5_spill] sm:$0xff] %v8864_v7 }
 0x146   : > { %v7096_v40 = vpop.f32.mrf.mxu0  ;;  %v8841_v34 = vadd.f32 %v2301_v6, %v1955_v48  ;;  %v3354_v6 = vrot.slane %v10453_v44, 1  ;;  %v8869_v44 = vrot.slane %v1293_v24, 7 }
 0x147   : > { %v1961_v52 = vadd.f32 %v7096_v40, %v8570_v50  ;;  %v7129_v22 = vpop.f32.mrf.mxu1  ;;  %7332 = vmatmul.mubr.msk.bf16.gmra.mxu1 %vm1388_vm4, %v8832_v26  ;;  %v1291_v50 = vor.u32 %v1289_v1, %v8839_v38  ;;  %v10458_v1 = vld [vmem:[#allocation6_spill] sm:$0xff] }
 0x148   : > { %v1894_v49 = vpop.f32.mrf.mxu0  ;;  %v8847_v42 = vadd.f32 %v7129_v22, %v1960_v55  ;;  %7335 = vmatprep.mubr.msk.bf16.mxu1 %vm1388_vm4, %v8837_v9 }
 0x149   : > { %v1959_v62 = vadd.f32 %v1894_v49, %v8575_v27  ;;  %v2314_v17 = vpop.f32.mrf.mxu1  ;;  %v10456_v27 = vld [vmem:[#allocation3_spill] sm:$0xff] }
 0x14a   : > { %v7099_v48 = vpop.f32.mrf.mxu0  ;;  %7302 = vmatmul.mubr.msk.bf16.gmra.mxu0 %vm1388_vm4, %v8578_v35  ;;  %v8856_v40 = vadd.f32 %v2314_v17, %v1958_v14  ;;  %v3355_v22 = vrot.slane %v10456_v27, 1  ;;  %10459 = vst [vmem:[#allocation3_spill] sm:$0xff] %v8869_v44  ;;  %v1296_v14 = vshll.u32 %v7687_v46, 16 }
 0x14b   : > { %v1964_v55 = vadd.f32 %v7099_v48, %v10455_v37  ;;  %7305 = vmatprep.mubr.msk.bf16.mxu0 %vm1388_vm4, %v8600_v53  ;;  %v7130_v49 = vpop.f32.mrf.mxu1  ;;  %v8873_v53 = vsel %vm7818_vm3, 0, %v1291_v50 }
 0x14c   : > { %10454 = vst [vmem:[#allocation2_spill] sm:$0xff] %v8856_v40  ;;  %v1907_v10 = vpop.f32.mrf.mxu0  ;;  %v8866_v35 = vadd.f32 %v7130_v49, %v1961_v52  ;;  %10460 = vst [vmem:[#allocation6_spill] sm:$0xff] %v8873_v53  ;;  %v3356_v57 = vsel %vm2851_vm6, %v3354_v6, %v3355_v22  ;;  %v1298_v24 = vor.u32 %v1296_v14, %v8869_v44 }
 0x14d   : > { %v1962_v38 = vadd.f32 %v1907_v10, %v10458_v1  ;;  %v2317_v17 = vpop.f32.mrf.mxu1 }
 0x14e   : > { %v7100_v48 = vpop.f32.mrf.mxu0  ;;  %v8875_v37 = vadd.f32 %v2317_v17, %v1959_v62  ;;  %v8898_v49 = vsel %vm7818_vm3, 0, %v1298_v24 }
 0x14f   : > { %v1965_v27 = vadd.f32 %v7100_v48, %v8597_v20  ;;  %v7133_v40 = vpop.f32.mrf.mxu1  ;;  %7336 = vmatmul.mubr.msk.bf16.gmra.mxu1 %vm1388_vm4, %v8864_v7 }
 0x150   : > { %v1910_v10 = vpop.f32.mrf.mxu0  ;;  %v8881_v52 = vadd.f32 %v7133_v40, %v1964_v55  ;;  %7339 = vmatprep.mubr.msk.bf16.mxu1 %vm1388_vm4, %v8873_v53 }
 0x151   : > { %v1963_v46 = vadd.f32 %v1910_v10, %v8610_v60  ;;  %v2330_v62 = vpop.f32.mrf.mxu1 }
 0x152   : > { %v7103_v50 = vpop.f32.mrf.mxu0  ;;  %7306 = vmatmul.mubr.msk.bf16.gmra.mxu0 %vm1388_vm4, %v3356_v57  ;;  %v8888_v20 = vadd.f32 %v2330_v62, %v1962_v38  ;;  %v10461_v57 = vld [vmem:[#allocation10_spill] sm:$0xff] }
 0x153   : > { %v1968_v6 = vadd.f32 %v7103_v50, %v8617_v0  ;;  %7345 = vmatprep.mubr.msk.bf16.mxu0 %vm1388_vm4, %v8636_v3  ;;  %v7134_v40 = vpop.f32.mrf.mxu1 }
 0x154   : > { %v1923_v55 = vpop.f32.mrf.mxu0  ;;  %v8893_v22 = vadd.f32 %v7134_v40, %v1965_v27  ;;  %v4430_v27 = vsel %vm1437_vm0, %v10461_v57, 0 }
 0x155   : > { %v1966_v60 = vadd.f32 %v1923_v55, %v8629_v51  ;;  %v2333_v1 = vpop.f32.mrf.mxu1 }
 0x156   : > { %v7104_v14 = vpop.f32.mrf.mxu0  ;;  %v8900_v17 = vadd.f32 %v2333_v1, %v1963_v46  ;;  %v8915_v46 = vld [vmem:[%s10357_s7 + $0xe] sm:$0x3] }
 0x157   : > { %v1969_v38 = vadd.f32 %v7104_v14, %v8641_v28  ;;  %v7137_v0 = vpop.f32.mrf.mxu1  ;;  %7340 = vmatmul.mubr.msk.bf16.gmra.mxu1 %vm1388_vm4, %v8898_v49 }
 0x158   : > { %v1926_v48 = vpop.f32.mrf.mxu0  ;;  %v8907_v10 = vadd.f32 %v7137_v0, %v1968_v6  ;;  %7379 = vmatprep.mubr.msk.bf16.mxu1 %vm1388_vm4, %v8650_v11 }
 0x159   : > { %v1967_v51 = vadd.f32 %v1926_v48, %v8655_v41  ;;  %v2346_v28 = vpop.f32.mrf.mxu1  ;;  %v8937_v48 = vld [vmem:[%s10357_s7 + $0x4] sm:$0x3] }
 0x15a   : > { %v7143_v24 = vpop.f32.mrf.mxu0  ;;  %7346 = vmatmul.mubr.msk.bf16.vlgmr.msra.gmra.mxu0 %vm1388_vm4, %v8650_v11  ;;  %v8919_v62 = vadd.f32 %v2346_v28, %v1966_v60  ;;  %v4642_v60 = vsel %vm1437_vm0, %v8661_v13, 0 }
 0x15b   : > { %v2575_v50 = vadd.f32 %v7143_v24, %v8665_v29  ;;  %7412 = vmatpush3.bf16.msra.mxu0 %v4430_v27  ;;  %7349 = vmatprep.mubr.msk.bf16.mxu0 %vm1388_vm4, %v8688_v45  ;;  %v7138_v41 = vpop.f32.mrf.mxu1 }
 0x15c   : > { %v2446_v6 = vpop.f32.mrf.mxu0  ;;  %7629 = vmatprep.subr.msk.bf16.mxu0 %vm1437_vm0, %v8915_v46  ;;  %v8926_v40 = vadd.f32 %v7138_v41, %v1969_v38 }
 0x15d   : > { %v2573_v55 = vadd.f32 %v2446_v6, %v8676_v25  ;;  %v2349_v1 = vpop.f32.mrf.mxu1 }
 0x15e   : > { %v7144_v14 = vpop.f32.mrf.mxu0  ;;  %v8931_v0 = vadd.f32 %v2349_v1, %v1967_v51 }
 0x15f   : > { %v2576_v29 = vadd.f32 %v7144_v14, %v8683_v21  ;;  %v7177_v57 = vpop.f32.mrf.mxu1  ;;  %7380 = vmatmul.mubr.msk.bf16.vlgmr.msra.gmra.mxu1 %vm1388_vm4, %v8688_v45 }
 0x160   : > { %v2449_v38 = vpop.f32.mrf.mxu0  ;;  %v8941_v25 = vadd.f32 %v7177_v57, %v2575_v50  ;;  %7446 = vmatpush3.bf16.msra.mxu1 %v4642_v60  ;;  %7383 = vmatprep.mubr.msk.bf16.mxu1 %vm1388_vm4, %v8693_v33 }
 0x161   : > { %v2574_v13 = vadd.f32 %v2449_v38, %v8698_v58  ;;  %v2658_v27 = vpop.f32.mrf.mxu1  ;;  %7630 = vmatprep.subr.msk.bf16.mxu1 %vm1437_vm0, %v8937_v48 }
 0x162   : > { %v7147_v21 = vpop.f32.mrf.mxu0  ;;  %7350 = vmatmul.mubr.msk.bf16.gmra.mxu0 %vm1388_vm4, %v8693_v33  ;;  %v8950_v51 = vadd.f32 %v2658_v27, %v2573_v55 }
 0x163   : > { %v2579_v28 = vadd.f32 %v7147_v21, %v8704_v63  ;;  %7353 = vmatprep.mubr.msk.bf16.mxu0 %vm1388_vm4, %v8719_v39  ;;  %v7178_v24 = vpop.f32.mrf.mxu1 }
 0x164   : > { %v2462_v58 = vpop.f32.mrf.mxu0  ;;  %v8955_v50 = vadd.f32 %v7178_v24, %v2576_v29 }
 0x165   : > { %v2577_v41 = vadd.f32 %v2462_v58, %v8712_v15  ;;  %v2661_v6 = vpop.f32.mrf.mxu1 }
 0x166   : > { %v7148_v1 = vpop.f32.mrf.mxu0  ;;  %v8958_v60 = vadd.f32 %v2661_v6, %v2574_v13 }
 0x167   : > { %v2580_v14 = vadd.f32 %v7148_v1, %v8722_v16  ;;  %v7181_v57 = vpop.f32.mrf.mxu1  ;;  %7384 = vmatmul.mubr.msk.bf16.gmra.mxu1 %vm1388_vm4, %v8719_v39 }
 0x168   : > { %v2465_v63 = vpop.f32.mrf.mxu0  ;;  %v8963_v55 = vadd.f32 %v7181_v57, %v2579_v28  ;;  %7387 = vmatprep.mubr.msk.bf16.mxu1 %vm1388_vm4, %v8729_v59 }
 0x169   : > { %v2578_v38 = vadd.f32 %v2465_v63, %v8734_v36  ;;  %v2674_v29 = vpop.f32.mrf.mxu1 }
 0x16a   : > { %v7151_v15 = vpop.f32.mrf.mxu0  ;;  %7354 = vmatmul.mubr.msk.bf16.gmra.mxu0 %vm1388_vm4, %v8729_v59  ;;  %v8970_v13 = vadd.f32 %v2674_v29, %v2577_v41 }
 0x16b   : > { %v2583_v16 = vadd.f32 %v7151_v15, %v8739_v47  ;;  %7357 = vmatprep.mubr.msk.bf16.mxu0 %vm1388_vm4, %v8760_v54  ;;  %v7182_v27 = vpop.f32.mrf.mxu1 }
 0x16c   : > { %v2478_v21 = vpop.f32.mrf.mxu0  ;;  %v8975_v28 = vadd.f32 %v7182_v27, %v2580_v14 }
 0x16d   : > { %v2581_v36 = vadd.f32 %v2478_v21, %v8748_v19  ;;  %v2677_v24 = vpop.f32.mrf.mxu1 }
 0x16e   : > { %v7152_v58 = vpop.f32.mrf.mxu0  ;;  %v8978_v6 = vadd.f32 %v2677_v24, %v2578_v38 }
 0x16f   : > { %v2584_v1 = vadd.f32 %v7152_v58, %v8755_v5  ;;  %v7185_v57 = vpop.f32.mrf.mxu1  ;;  %7388 = vmatmul.mubr.msk.bf16.gmra.mxu1 %vm1388_vm4, %v8760_v54 }
 0x170   : > { %v2481_v47 = vpop.f32.mrf.mxu0  ;;  %v8983_v41 = vadd.f32 %v7185_v57, %v2583_v16  ;;  %7391 = vmatprep.mubr.msk.bf16.mxu1 %vm1388_vm4, %v8765_v43 }
 0x171   : > { %v2582_v63 = vadd.f32 %v2481_v47, %v8770_v8  ;;  %v2690_v14 = vpop.f32.mrf.mxu1 }
 0x172   : > { %v7155_v19 = vpop.f32.mrf.mxu0  ;;  %7358 = vmatmul.mubr.msk.bf16.gmra.mxu0 %vm1388_vm4, %v8765_v43  ;;  %v8990_v38 = vadd.f32 %v2690_v14, %v2581_v36 }
 0x173   : > { %v2587_v5 = vadd.f32 %v7155_v19, %v8776_v61  ;;  %7361 = vmatprep.mubr.msk.bf16.mxu0 %vm1388_vm4, %v8791_v30  ;;  %v7186_v29 = vpop.f32.mrf.mxu1 }
 0x174   : > { %v2494_v15 = vpop.f32.mrf.mxu0  ;;  %v8995_v16 = vadd.f32 %v7186_v29, %v2584_v1 }
 0x175   : > { %v2585_v8 = vadd.f32 %v2494_v15, %v8784_v4  ;;  %v2693_v27 = vpop.f32.mrf.mxu1 }
 0x176   : > { %v7156_v21 = vpop.f32.mrf.mxu0  ;;  %v8998_v24 = vadd.f32 %v2693_v27, %v2582_v63  ;;  %v1091_v27 = vld [vmem:[%s675_s21] sm:$0xf] }
 0x177   : > { %v2588_v58 = vadd.f32 %v7156_v21, %v8794_v2  ;;  %v7189_v36 = vpop.f32.mrf.mxu1  ;;  %7392 = vmatmul.mubr.msk.bf16.gmra.mxu1 %vm1388_vm4, %v8791_v30  ;;  %v1092_v21 = vld [vmem:[%s675_s21 + $0x4] sm:$0xf] }
 0x178   : > { %v2497_v61 = vpop.f32.mrf.mxu0  ;;  %v9003_v57 = vadd.f32 %v7189_v36, %v2587_v5  ;;  %7395 = vmatprep.mubr.msk.bf16.mxu1 %vm1388_vm4, %v8801_v32 }
 0x179   : > { %v2586_v47 = vadd.f32 %v2497_v61, %v8806_v31  ;;  %v2706_v1 = vpop.f32.mrf.mxu1  ;;  %v7688_v61 = vld [vmem:[%s8298_s30 + $0x78] sm:$0xff]  }
 0x17a   : > { %v7159_v4 = vpop.f32.mrf.mxu0  ;;  %7362 = vmatmul.mubr.msk.bf16.gmra.mxu0 %vm1388_vm4, %v8801_v32  ;;  %v9015_v2 = vadd.f32 %v2706_v1, %v2585_v8 }
 0x17b   : > { %v2591_v63 = vadd.f32 %v7159_v4, %v8811_v56  ;;  %7365 = vmatprep.mubr.msk.bf16.mxu0 %vm1388_vm4, %v8832_v26  ;;  %v7190_v31 = vpop.f32.mrf.mxu1 }
 0x17c   : > { %10462 = vst [vmem:[#allocation10_spill] sm:$0xff] %v9015_v2  ;;  %v2510_v14 = vpop.f32.mrf.mxu0  ;;  %v9020_v19 = vadd.f32 %v7190_v31, %v2588_v58  ;;  %v1096_v31 = vmul.bf16 0.0, %v1092_v21  ;;  %v1303_v2 = vshll.u32 %v7688_v61, 16 }
 0x17d   : > { %v2589_v5 = vadd.f32 %v2510_v14, %v8820_v23  ;;  %v2709_v29 = vpop.f32.mrf.mxu1  ;;  %v1095_v23 = vmul.bf16 0.0, %v1091_v27  ;;  %v10469_v27 = vld [vmem:[#allocation2_spill] sm:$0xff] }
 0x17e   : > { %10463 = vst [vmem:[#allocation32_spill] sm:$0xff] %v9020_v19  ;;  %v7160_v15 = vpop.f32.mrf.mxu0  ;;  %v9023_v36 = vadd.f32 %v2709_v29, %v2586_v47 }
 0x17f   : > { %v2592_v8 = vadd.f32 %v7160_v15, %v8827_v18  ;;  %v7193_v1 = vpop.f32.mrf.mxu1  ;;  %7396 = vmatmul.mubr.msk.bf16.gmra.mxu1 %vm1388_vm4, %v8832_v26  ;;  %v10467_v15 = vld [vmem:[#allocation8_spill] sm:$0xff] }
 0x180   : > { %10464 = vst [vmem:[#allocation33_spill] sm:$0xff] %v9023_v36  ;;  %v2513_v56 = vpop.f32.mrf.mxu0  ;;  %v9029_v4 = vadd.f32 %v7193_v1, %v2591_v63  ;;  %7399 = vmatprep.mubr.msk.bf16.mxu1 %vm1388_vm4, %v8837_v9  ;;  %v1300_v63 = vshrl.u32 %v7688_v61, 16  ;;  %v10470_v36 = vld [vmem:[#allocation4_spill] sm:$0xff]  ;;  %v4218_v61 = vshll.u32 %v8636_v3, 16 }
 0x181   : > { %v2590_v58 = vadd.f32 %v2513_v56, %v8841_v34  ;;  %v2722_v14 = vpop.f32.mrf.mxu1  ;;  %v4207_v34 = vshll.u32 %v10467_v15, 16 }
 0x182   : > { %10465 = vst [vmem:[#allocation34_spill] sm:$0xff] %v9029_v4  ;;  %v7163_v47 = vpop.f32.mrf.mxu0  ;;  %7366 = vmatmul.mubr.msk.bf16.gmra.mxu0 %vm1388_vm4, %v8837_v9  ;;  %v9036_v18 = vadd.f32 %v2722_v14, %v2589_v5  ;;  %v6313_v4 = vcombine.low %v1095_v23, %v1096_v31  ;;  %v9048_v5 = vsel %vm7818_vm3, %v10470_v36, 0  ;;  %v9053_v19 = vrot.slane %v1300_v63, 7 }
 0x183   : > { %v2595_v29 = vadd.f32 %v7163_v47, %v8847_v42  ;;  %7369 = vmatprep.mubr.msk.bf16.mxu0 %vm1388_vm4, %v8864_v7  ;;  %v7194_v1 = vpop.f32.mrf.mxu1  ;;  %10471 = vst [vmem:[#allocation2_spill] sm:$0xff] %v9048_v5  ;;  %v4212_v36 = vshll.u32 %v9048_v5, 16 }
 0x184   : > { %10466 = vst [vmem:[#allocation35_spill] sm:$0xff] %v9036_v18  ;;  %v2526_v56 = vpop.f32.mrf.mxu0  ;;  %v9042_v44 = vadd.f32 %v7194_v1, %v2592_v8  ;;  %10473 = vst [vmem:[#allocation37_spill] sm:$0xff] %v9053_v19  ;;  %v4205_v8 = vshrl.u32 %v10467_v15, 16  ;;  %v4209_v1 = vrot.slane %v4207_v34, 1 }
 0x185   : > { %v2593_v21 = vadd.f32 %v2526_v56, %v10469_v27  ;;  %v2725_v14 = vpop.f32.mrf.mxu1  ;;  %v4214_v5 = vrot.slane %v4212_v36, 1 }
 0x186   : > { %10468 = vst [vmem:[#allocation36_spill] sm:$0xff] %v9042_v44  ;;  %v7164_v42 = vpop.f32.mrf.mxu0  ;;  %v9050_v47 = vadd.f32 %v2725_v14, %v2590_v58  ;;  %v10477_v14 = vld [vmem:[#allocation9_spill] sm:$0xff] }
 0x187   : > { %v2596_v18 = vadd.f32 %v7164_v42, %v8866_v35  ;;  %v7197_v44 = vpop.f32.mrf.mxu1  ;;  %7400 = vmatmul.mubr.msk.bf16.gmra.mxu1 %vm1388_vm4, %v8864_v7  ;;  %v1307_v35 = vshrl.u32 %v6313_v4, 16  ;;  %v9081_v42 = vsel %vm7818_vm3, %v10477_v14, 0 }
 0x188   : > { %10472 = vst [vmem:[#allocation4_spill] sm:$0xff] %v9050_v47  ;;  %v2529_v23 = vpop.f32.mrf.mxu0  ;;  %v9059_v31 = vadd.f32 %v7197_v44, %v2595_v29  ;;  %7403 = vmatprep.mubr.msk.bf16.mxu1 %vm1388_vm4, %v8873_v53  ;;  %v1305_v44 = vor.u32 %v1303_v2, %v9053_v19  ;;  %v1310_v2 = vshll.u32 %v6313_v4, 16  ;;  %v4216_v19 = vshrl.u32 %v8636_v3, 16 }
 0x189   : > { %v2594_v58 = vadd.f32 %v2529_v23, %v8875_v37  ;;  %v2738_v63 = vpop.f32.mrf.mxu1  ;;  %v10476_v37 = vld [vmem:[#allocation7_spill] sm:$0xff]  ;;  %v9086_v15 = vrot.slane %v1307_v35, 7  ;;  %v4220_v47 = vrot.slane %v4218_v61, 1  ;;  %v4227_v35 = vshrl.u32 %v8650_v11, 16 }
 0x18a   : > { %10474 = vst [vmem:[#allocation38_spill] sm:$0xff] %v9059_v31  ;;  %v7167_v56 = vpop.f32.mrf.mxu0  ;;  %7370 = vmatmul.mubr.msk.bf16.gmra.mxu0 %vm1388_vm4, %v8873_v53  ;;  %v9067_v34 = vadd.f32 %v2738_v63, %v2593_v21  ;;  %v9076_v29 = vsel %vm7818_vm3, %v10476_v37, 0  ;;  %v4210_v63 = vor.u32 %v4209_v1, %v4205_v8  ;;  %v4229_v37 = vshll.u32 %v8650_v11, 16 }
 0x18b   : > { %v2599_v27 = vadd.f32 %v7167_v56, %v8881_v52  ;;  %7373 = vmatprep.mubr.msk.bf16.mxu0 %vm1388_vm4, %v8898_v49  ;;  %v7198_v23 = vpop.f32.mrf.mxu1  ;;  %10478 = vst [vmem:[#allocation7_spill] sm:$0xff] %v9086_v15  ;;  %v4223_v14 = vshll.u32 %v9076_v29, 16 }
 0x18c   : > { %10475 = vst [vmem:[#allocation39_spill] sm:$0xff] %v9067_v34  ;;  %v2542_v21 = vpop.f32.mrf.mxu0  ;;  %v9083_v52 = vadd.f32 %v7198_v23, %v2596_v18  ;;  %v9096_v18 = vsel %vm7818_vm3, 0, %v1305_v44  ;;  %v4215_v36 = vsel %vm1972_vm5, %v4210_v63, %v4214_v5  ;;  %v4221_v23 = vor.u32 %v4220_v47, %v4216_v19 }
 0x18d   : > { %v2597_v56 = vadd.f32 %v2542_v21, %v8888_v20  ;;  %v2741_v34 = vpop.f32.mrf.mxu1  ;;  %10479 = vst [vmem:[#allocation9_spill] sm:$0xff] %v9096_v18  ;;  %v4234_v20 = vshll.u32 %v9081_v42, 16  ;;  %v4225_v21 = vrot.slane %v4223_v14, 1  ;;  %v4240_v5 = vshll.u32 %v8688_v45, 16 }
 0x18e   : > { %v7168_v31 = vpop.f32.mrf.mxu0  ;;  %v9091_v53 = vadd.f32 %v2741_v34, %v2594_v58 }
 0x18f   : > { %v2600_v8 = vadd.f32 %v7168_v31, %v8893_v22  ;;  %v7201_v4 = vpop.f32.mrf.mxu1  ;;  %7404 = vmatmul.mubr.msk.bf16.gmra.mxu1 %vm1388_vm4, %v8898_v49  ;;  %v1312_v22 = vor.u32 %v1310_v2, %v9086_v15  ;;  %v4231_v31 = vrot.slane %v4229_v37, 1  ;;  %v10480_v2 = vld [vmem:[#allocation11_spill] sm:$0xff] }
 0x190   : > { %v2545_v1 = vpop.f32.mrf.mxu0  ;;  %v9103_v61 = vadd.f32 %v7201_v4, %v2599_v27  ;;  %7407 = vmatprep.mubr.msk.bf16.mxu1 %vm1388_vm4, %v9096_v18  ;;  %v9119_v37 = vsel %vm7818_vm3, %v10480_v2, 0 }
 0x191   : > { %v2598_v58 = vadd.f32 %v2545_v1, %v8900_v17  ;;  %v2754_v34 = vpop.f32.mrf.mxu1  ;;  %v4236_v17 = vrot.slane %v4234_v20, 1  ;;  %10481 = vst [vmem:[#allocation11_spill] sm:$0xff] %v9119_v37  ;;  %v9126_v47 = vsel %vm7818_vm3, 0, %v1312_v22  ;;  %v4226_v20 = vsel %vm1972_vm5, %v4221_v23, %v4225_v21 }
 0x192   : > { %v7171_v44 = vpop.f32.mrf.mxu0  ;;  %7374 = vmatmul.mubr.msk.bf16.gmra.mxu0 %vm1388_vm4, %v9096_v18  ;;  %v9112_v63 = vadd.f32 %v2754_v34, %v2597_v56  ;;  %10482 = vst [vmem:[#allocation40_spill] sm:$0xff] %v9126_v47  ;;  %v4238_v34 = vshrl.u32 %v8688_v45, 16 }
 0x193   : > { %v2603_v27 = vadd.f32 %v7171_v44, %v8907_v10  ;;  %7413 = vmatprep.mubr.msk.bf16.mxu0 %vm1388_vm4, %v4215_v36  ;;  %v7202_v4 = vpop.f32.mrf.mxu1  ;;  %v4251_v10 = vshll.u32 %v8693_v33, 16  ;;  %v4232_v36 = vor.u32 %v4231_v31, %v4227_v35  ;;  %v4242_v44 = vrot.slane %v4240_v5, 1  ;;  %v9152_v5 = vld [vmem:[%s10357_s7 + $0xa] sm:$0x3] }
 0x194   : > { %v2558_v1 = vpop.f32.mrf.mxu0  ;;  %v9121_v15 = vadd.f32 %v7202_v4, %v2600_v8  ;;  %v10483_v4 = vld [vmem:[#allocation12_spill] sm:$0xff]  ;;  %v4854_v35 = vsel %vm1437_vm0, %v8915_v46, 0 }
 0x195   : > { %v2601_v19 = vadd.f32 %v2558_v1, %v8919_v62  ;;  %v2757_v56 = vpop.f32.mrf.mxu1  ;;  %v4245_v62 = vshll.u32 %v9119_v37, 16  ;;  %v9138_v22 = vsel %vm7818_vm3, %v10483_v4, 0  ;;  %v4253_v21 = vrot.slane %v4251_v10, 1 }
 0x196   : > { %v7172_v14 = vpop.f32.mrf.mxu0  ;;  %v9131_v2 = vadd.f32 %v2757_v56, %v2598_v58  ;;  %10484 = vst [vmem:[#allocation12_spill] sm:$0xff] %v9138_v22  ;;  %v9156_v46 = vsel %vm1972_vm5, %v4232_v36, %v4236_v17  ;;  %v4273_v36 = vshll.u32 %v8729_v59, 16 }
 0x197   : > { %v2604_v8 = vadd.f32 %v7172_v14, %v8926_v40  ;;  %v7205_v1 = vpop.f32.mrf.mxu1  ;;  %7408 = vmatmul.mubr.msk.bf16.gmra.mxu1 %vm1388_vm4, %v9126_v47  ;;  %v4249_v40 = vshrl.u32 %v8693_v33, 16 }
 0x198   : > { %v2561_v23 = vpop.f32.mrf.mxu0  ;;  %v9144_v31 = vadd.f32 %v7205_v1, %v2603_v27  ;;  %7447 = vmatprep.mubr.msk.bf16.mxu1 %vm1388_vm4, %v4226_v20  ;;  %v4256_v27 = vshll.u32 %v9138_v22, 16  ;;  %v4243_v1 = vor.u32 %v4242_v44, %v4238_v34  ;;  %v5180_v34 = vsel %vm1437_vm0, %v8937_v48, 0  ;;  %v10487_v22 = vld [vmem:[#allocation16_spill] sm:$0xff] }
 0x199   : > { %v2602_v58 = vadd.f32 %v2561_v23, %v8931_v0  ;;  %v2770_v56 = vpop.f32.mrf.mxu1  ;;  %v4262_v0 = vshll.u32 %v8719_v39, 16  ;;  %v4247_v23 = vrot.slane %v4245_v62, 1  ;;  %v4254_v44 = vor.u32 %v4253_v21, %v4249_v40 }
 0x19a   : > { %v7211_v14 = vpop.f32.mrf.mxu0  ;;  %7414 = vmatmul.mubr.msk.bf16.vlgmr.msra.gmra.mxu0 %vm1388_vm4, %v4226_v20  ;;  %v9160_v4 = vadd.f32 %v2770_v56, %v2601_v19  ;;  %v10485_v20 = vld [vmem:[#allocation13_spill] sm:$0xff]  ;;  %v4258_v56 = vrot.slane %v4256_v27, 1  ;;  %v9182_v37 = vsel %vm7818_vm3, %v10487_v22, 0  ;;  %v4275_v40 = vrot.slane %v4273_v36, 1 }
 0x19b   : > { %v3114_v10 = vadd.f32 %v7211_v14, %v8941_v25  ;;  %7480 = vmatpush3.bf16.msra.mxu0 %v4854_v35  ;;  %7417 = vmatprep.mubr.msk.bf16.mxu0 %vm1388_vm4, %v9156_v46  ;;  %v7206_v47 = vpop.f32.mrf.mxu1  ;;  %v9168_v17 = vsel %vm7818_vm3, %v10485_v20, 0  ;;  %v4260_v14 = vshrl.u32 %v8719_v39, 16  ;;  %v4264_v20 = vrot.slane %v4262_v0, 1  ;;  %10488 = vst [vmem:[#allocation16_spill] sm:$0xff] %v9182_v37 }
 0x19c   : > { %v2985_v33 = vpop.f32.mrf.mxu0  ;;  %10486 = vst [vmem:[#allocation13_spill] sm:$0xff] %v9168_v17  ;;  %7631 = vmatprep.subr.msk.bf16.mxu0 %vm1437_vm0, %v9152_v5  ;;  %v9173_v19 = vadd.f32 %v7206_v47, %v2604_v8  ;;  %v4267_v48 = vshll.u32 %v9168_v17, 16  ;;  %v4278_v27 = vshll.u32 %v9182_v37, 16  ;;  %v4282_v37 = vshrl.u32 %v8760_v54, 16  ;;  %v10491_v17 = vld [vmem:[#allocation19_spill] sm:$0xff] }
 0x19d   : > { %v3112_v25 = vadd.f32 %v2985_v33, %v8950_v51  ;;  %v2773_v62 = vpop.f32.mrf.mxu1  ;;  %v9188_v33 = vsel %vm1972_vm5, %v4243_v1, %v4247_v23  ;;  %v9194_v51 = vld [vmem:[%s10357_s7 + $0x10] sm:$0x3]  ;;  %v9208_v23 = vsel %vm1972_vm5, %v4254_v44, %v4258_v56 }
 0x19e   : > { %v7212_v35 = vpop.f32.mrf.mxu0  ;;  %v9184_v45 = vadd.f32 %v2773_v62, %v2602_v58  ;;  %v4271_v58 = vshrl.u32 %v8729_v59, 16  ;;  %v4265_v62 = vor.u32 %v4264_v20, %v4260_v14 }
 0x19f   : > { %v3115_v47 = vadd.f32 %v7212_v35, %v8955_v50  ;;  %v7245_v8 = vpop.f32.mrf.mxu1  ;;  %7448 = vmatmul.mubr.msk.bf16.vlgmr.msra.gmra.mxu1 %vm1388_vm4, %v9156_v46  ;;  %v10489_v35 = vld [vmem:[#allocation17_spill] sm:$0xff] }
 0x1a0   : > { %v2988_v22 = vpop.f32.mrf.mxu0  ;;  %v9199_v21 = vadd.f32 %v7245_v8, %v3114_v10  ;;  %7514 = vmatpush3.bf16.msra.mxu1 %v5180_v34  ;;  %7451 = vmatprep.mubr.msk.bf16.mxu1 %vm1388_vm4, %v9188_v33  ;;  %v4284_v10 = vshll.u32 %v8760_v54, 16  ;;  %v4269_v34 = vrot.slane %v4267_v48, 1  ;;  %v9221_v8 = vsel %vm7818_vm3, %v10489_v35, 0 }
 0x1a1   : > { %v3113_v50 = vadd.f32 %v2988_v22, %v8958_v60  ;;  %v3191_v0 = vpop.f32.mrf.mxu1  ;;  %7632 = vmatprep.subr.msk.bf16.mxu1 %vm1437_vm0, %v9194_v51  ;;  %10490 = vst [vmem:[#allocation17_spill] sm:$0xff] %v9221_v8  ;;  %v4276_v14 = vor.u32 %v4275_v40, %v4271_v58  ;;  %v4289_v59 = vshll.u32 %v9221_v8, 16  ;;  %v9232_v35 = vsel %vm7818_vm3, %v10491_v17, 0 }
 0x1a2   : > { %v7215_v1 = vpop.f32.mrf.mxu0  ;;  %7418 = vmatmul.mubr.msk.bf16.gmra.mxu0 %vm1388_vm4, %v9188_v33  ;;  %v9213_v60 = vadd.f32 %v3191_v0, %v3112_v25  ;;  %v4280_v25 = vrot.slane %v4278_v27, 1  ;;  %v4295_v0 = vshll.u32 %v8765_v43, 16  ;;  %v4286_v48 = vrot.slane %v4284_v10, 1  ;;  %10492 = vst [vmem:[#allocation19_spill] sm:$0xff] %v9232_v35 }
 0x1a3   : > { %v3118_v36 = vadd.f32 %v7215_v1, %v8963_v55  ;;  %7421 = vmatprep.mubr.msk.bf16.mxu0 %vm1388_vm4, %v9208_v23  ;;  %v7246_v44 = vpop.f32.mrf.mxu1  ;;  %v4293_v10 = vshrl.u32 %v8765_v43, 16  ;;  %v4317_v8 = vshll.u32 %v8801_v32, 16 }
 0x1a4   : > { %v3001_v56 = vpop.f32.mrf.mxu0  ;;  %v9223_v20 = vadd.f32 %v7246_v44, %v3115_v47  ;;  %v4297_v17 = vrot.slane %v4295_v0, 1 }
 0x1a5   : > { %v3116_v22 = vadd.f32 %v3001_v56, %v8970_v13  ;;  %v3194_v55 = vpop.f32.mrf.mxu1  ;;  %v9238_v13 = vsel %vm1972_vm5, %v4265_v62, %v4269_v34  ;;  %v9252_v34 = vsel %vm1972_vm5, %v4276_v14, %v4280_v25 }
 0x1a6   : > { %v7216_v1 = vpop.f32.mrf.mxu0  ;;  %v9234_v58 = vadd.f32 %v3194_v55, %v3113_v50  ;;  %v4287_v55 = vor.u32 %v4286_v48, %v4282_v37  ;;  %v4298_v37 = vor.u32 %v4297_v17, %v4293_v10 }
 0x1a7   : > { %v3119_v47 = vadd.f32 %v7216_v1, %v8975_v28  ;;  %v7249_v40 = vpop.f32.mrf.mxu1  ;;  %7452 = vmatmul.mubr.msk.bf16.gmra.mxu1 %vm1388_vm4, %v9208_v23  ;;  %v4300_v28 = vshll.u32 %v9232_v35, 16  ;;  %v4291_v1 = vrot.slane %v4289_v59, 1  ;;  %v10493_v35 = vld [vmem:[#allocation20_spill] sm:$0xff] }
 0x1a8   : > { %v3004_v27 = vpop.f32.mrf.mxu0  ;;  %v9243_v44 = vadd.f32 %v7249_v40, %v3118_v36  ;;  %7455 = vmatprep.mubr.msk.bf16.mxu1 %vm1388_vm4, %v9238_v13  ;;  %v4306_v36 = vshll.u32 %v8791_v30, 16  ;;  %v9263_v43 = vsel %vm7818_vm3, %v10493_v35, 0 }
 0x1a9   : > { %v3117_v56 = vadd.f32 %v3004_v27, %v8978_v6  ;;  %v3207_v50 = vpop.f32.mrf.mxu1  ;;  %10494 = vst [vmem:[#allocation20_spill] sm:$0xff] %v9263_v43  ;;  %v4302_v25 = vrot.slane %v4300_v28, 1 }
 0x1aa   : > { %v7219_v62 = vpop.f32.mrf.mxu0  ;;  %7422 = vmatmul.mubr.msk.bf16.gmra.mxu0 %vm1388_vm4, %v9238_v13  ;;  %v9255_v40 = vadd.f32 %v3207_v50, %v3116_v22  ;;  %v4304_v50 = vshrl.u32 %v8791_v30, 16  ;;  %v4326_v30 = vshrl.u32 %v8832_v26, 16 }
 0x1ab   : > { %v3122_v6 = vadd.f32 %v7219_v62, %v8983_v41  ;;  %7425 = vmatprep.mubr.msk.bf16.mxu0 %vm1388_vm4, %v9252_v34  ;;  %v7250_v0 = vpop.f32.mrf.mxu1  ;;  %v9269_v41 = vsel %vm1972_vm5, %v4287_v55, %v4291_v1  ;;  %v4308_v62 = vrot.slane %v4306_v36, 1  ;;  %v4315_v36 = vshrl.u32 %v8801_v32, 16 }
 0x1ac   : > { %v3017_v27 = vpop.f32.mrf.mxu0  ;;  %v9265_v14 = vadd.f32 %v7250_v0, %v3119_v47  ;;  %10495 = vst [vmem:[#allocation41_spill] sm:$0xff] %v9269_v41  ;;  %v4311_v47 = vshll.u32 %v9263_v43, 16  ;;  %v10496_v0 = vld [vmem:[#allocation23_spill] sm:$0xff] }
 0x1ad   : > { %v3120_v59 = vadd.f32 %v3017_v27, %v8990_v38  ;;  %v3210_v22 = vpop.f32.mrf.mxu1  ;;  %v9280_v38 = vsel %vm7818_vm3, %v10496_v0, 0  ;;  %v4319_v27 = vrot.slane %v4317_v8, 1  ;;  %v4339_v8 = vshll.u32 %v8837_v9, 16  ;;  %v10503_v43 = vld [vmem:[#allocation27_spill] sm:$0xff] }
 0x1ae   : > { %v7220_v48 = vpop.f32.mrf.mxu0  ;;  %v9273_v54 = vadd.f32 %v3210_v22, %v3117_v56  ;;  %10497 = vst [vmem:[#allocation23_spill] sm:$0xff] %v9280_v38  ;;  %v4322_v22 = vshll.u32 %v9280_v38, 16 }
 0x1af   : > { %v3123_v35 = vadd.f32 %v7220_v48, %v8995_v16  ;;  %v7253_v10 = vpop.f32.mrf.mxu1  ;;  %7456 = vmatmul.mubr.msk.bf16.gmra.mxu1 %vm1388_vm4, %v9252_v34  ;;  %v9290_v16 = vsel %vm1972_vm5, %v4298_v37, %v4302_v25  ;;  %v4309_v37 = vor.u32 %v4308_v62, %v4304_v50  ;;  %v4313_v25 = vrot.slane %v4311_v47, 1 }
 0x1b0   : > { %v3020_v17 = vpop.f32.mrf.mxu0  ;;  %v9284_v28 = vadd.f32 %v7253_v10, %v3122_v6  ;;  %7459 = vmatprep.mubr.msk.bf16.mxu1 %vm1388_vm4, %v9269_v41  ;;  %v4328_v6 = vshll.u32 %v8832_v26, 16  ;;  %v4320_v47 = vor.u32 %v4319_v27, %v4315_v36  ;;  %v4337_v36 = vshrl.u32 %v8837_v9, 16 }
 0x1b1   : > { %v3121_v55 = vadd.f32 %v3020_v17, %v8998_v24  ;;  %v3223_v56 = vpop.f32.mrf.mxu1  ;;  %v10500_v17 = vld [vmem:[#allocation25_spill] sm:$0xff]  ;;  %v4341_v27 = vrot.slane %v4339_v8, 1 }
 0x1b2   : > { %10498 = vst [vmem:[#allocation42_spill] sm:$0xff] %v9284_v28  ;;  %v7223_v1 = vpop.f32.mrf.mxu0  ;;  %7426 = vmatmul.mubr.msk.bf16.gmra.mxu0 %vm1388_vm4, %v9269_v41  ;;  %v9297_v48 = vadd.f32 %v3223_v56, %v3120_v59  ;;  %v9305_v32 = vsel %vm7818_vm3, %v10500_v17, 0  ;;  %v10502_v59 = vld [vmem:[#allocation10_spill] sm:$0xff]  ;;  %v10506_v28 = vld [vmem:[#allocation32_spill] sm:$0xff] }
 0x1b3   : > { %v3126_v24 = vadd.f32 %v7223_v1, %v9003_v57  ;;  %7429 = vmatprep.mubr.msk.bf16.mxu0 %vm1388_vm4, %v9290_v16  ;;  %v7254_v0 = vpop.f32.mrf.mxu1  ;;  %10501 = vst [vmem:[#allocation25_spill] sm:$0xff] %v9305_v32  ;;  %v9314_v57 = vsel %vm7818_vm3, %v10503_v43, 0  ;;  %v4324_v1 = vrot.slane %v4322_v22, 1  ;;  %v4342_v26 = vor.u32 %v4341_v27, %v4337_v36 }
 0x1b4   : > { %10499 = vst [vmem:[#allocation43_spill] sm:$0xff] %v9297_v48  ;;  %v3033_v10 = vpop.f32.mrf.mxu0  ;;  %v9308_v38 = vadd.f32 %v7254_v0, %v3123_v35  ;;  %10504 = vst [vmem:[#allocation10_spill] sm:$0xff] %v9314_v57  ;;  %v4330_v48 = vrot.slane %v4328_v6, 1  ;;  %v9321_v35 = vsel %vm1972_vm5, %v4309_v37, %v4313_v25  ;;  %v4333_v0 = vshll.u32 %v9305_v32, 16 }
 0x1b5   : > { %v3124_v56 = vadd.f32 %v3033_v10, %v10502_v59  ;;  %v3226_v50 = vpop.f32.mrf.mxu1  ;;  %10507 = vst [vmem:[#allocation32_spill] sm:$0xff] %v9321_v35  ;;  %v4344_v22 = vshll.u32 %v9314_v57, 16 }
 0x1b6   : > { %v7224_v62 = vpop.f32.mrf.mxu0  ;;  %v9317_v17 = vadd.f32 %v3226_v50, %v3121_v55  ;;  %v10509_v55 = vld [vmem:[#allocation33_spill] sm:$0xff]  ;;  %v9337_v50 = vsel %vm1972_vm5, %v4320_v47, %v4324_v1  ;;  %v4331_v8 = vor.u32 %v4330_v48, %v4326_v30  ;;  %v10514_v30 = vld [vmem:[#allocation35_spill] sm:$0xff] }
 0x1b7   : > { %v3127_v41 = vadd.f32 %v7224_v62, %v10506_v28  ;;  %v7257_v10 = vpop.f32.mrf.mxu1  ;;  %7460 = vmatmul.mubr.msk.bf16.gmra.mxu1 %vm1388_vm4, %v9290_v16  ;;  %v4350_v28 = vshll.u32 %v8864_v7, 16 }
 0x1b8   : > { %10505 = vst [vmem:[#allocation27_spill] sm:$0xff] %v9317_v17  ;;  %v3036_v43 = vpop.f32.mrf.mxu0  ;;  %v9328_v6 = vadd.f32 %v7257_v10, %v3126_v24  ;;  %7463 = vmatprep.mubr.msk.bf16.mxu1 %vm1388_vm4, %v9321_v35  ;;  %v10511_v24 = vld [vmem:[#allocation34_spill] sm:$0xff] }
 0x1b9   : > { %v3125_v59 = vadd.f32 %v3036_v43, %v10509_v55  ;;  %v3239_v37 = vpop.f32.mrf.mxu1  ;;  %v4335_v43 = vrot.slane %v4333_v0, 1  ;;  %v10512_v55 = vld [vmem:[#allocation28_spill] sm:$0xff]  ;;  %v4352_v1 = vrot.slane %v4350_v28, 1 }
 0x1ba   : > { %10508 = vst [vmem:[#allocation44_spill] sm:$0xff] %v9328_v6  ;;  %v7227_v25 = vpop.f32.mrf.mxu0  ;;  %7430 = vmatmul.mubr.msk.bf16.gmra.mxu0 %vm1388_vm4, %v9321_v35  ;;  %v9339_v62 = vadd.f32 %v3239_v37, %v3124_v56  ;;  %v9347_v57 = vsel %vm7818_vm3, %v10512_v55, 0  ;;  %v4346_v6 = vrot.slane %v4344_v22, 1  ;;  %v4348_v56 = vshrl.u32 %v8864_v7, 16  ;;  %v10516_v55 = vld [vmem:[#allocation36_spill] sm:$0xff] }
 0x1bb   : > { %v3130_v10 = vadd.f32 %v7227_v25, %v10511_v24  ;;  %7433 = vmatprep.mubr.msk.bf16.mxu0 %vm1388_vm4, %v9337_v50  ;;  %10513 = vst [vmem:[#allocation34_spill] sm:$0xff] %v9347_v57  ;;  %v7258_v9 = vpop.f32.mrf.mxu1  ;;  %v4355_v0 = vshll.u32 %v9347_v57, 16  ;;  %v10515_v24 = vld [vmem:[#allocation6_spill] sm:$0xff]  ;;  %v9359_v36 = vsel %vm1972_vm5, %v4331_v8, %v4335_v43  ;;  %v10521_v28 = vld [vmem:[#allocation4_spill] sm:$0xff]  ;;  %v4370_v7 = vshrl.u32 %v8898_v49, 16 }
 0x1bc   : > { %10510 = vst [vmem:[#allocation33_spill] sm:$0xff] %v9339_v62  ;;  %v3049_v32 = vpop.f32.mrf.mxu0  ;;  %v9349_v47 = vadd.f32 %v7258_v9, %v3127_v41  ;;  %v4361_v62 = vshll.u32 %v10515_v24, 16  ;;  %10517 = vst [vmem:[#allocation28_spill] sm:$0xff] %v9359_v36  ;;  %v10518_v9 = vld [vmem:[#allocation31_spill] sm:$0xff]  ;;  %v9374_v8 = vsel %vm1972_vm5, %v4342_v26, %v4346_v6  ;;  %v4353_v43 = vor.u32 %v4352_v1, %v4348_v56 }
 0x1bd   : > { %v3128_v48 = vadd.f32 %v3049_v32, %v10514_v30  ;;  %v3242_v37 = vpop.f32.mrf.mxu1  ;;  %v9364_v32 = vsel %vm7818_vm3, %v10518_v9, 0  ;;  %v4372_v26 = vshll.u32 %v8898_v49, 16  ;;  %v10524_v1 = vld [vmem:[#allocation3_spill] sm:$0xff] }
 0x1be   : > { %v7228_v25 = vpop.f32.mrf.mxu0  ;;  %v9355_v35 = vadd.f32 %v3242_v37, %v3125_v59  ;;  %10519 = vst [vmem:[#allocation35_spill] sm:$0xff] %v9364_v32  ;;  %v4363_v9 = vrot.slane %v4361_v62, 1  ;;  %v10526_v62 = vld [vmem:[#allocation39_spill] sm:$0xff] }
 0x1bf   : > { %v3131_v17 = vadd.f32 %v7228_v25, %v10516_v55  ;;  %v7261_v41 = vpop.f32.mrf.mxu1  ;;  %7464 = vmatmul.mubr.msk.bf16.gmra.mxu1 %vm1388_vm4, %v9337_v50  ;;  %v4357_v25 = vrot.slane %v4355_v0, 1  ;;  %v4359_v55 = vshrl.u32 %v10515_v24, 16  ;;  %v9389_v0 = vsel %vm7818_vm3, %v10524_v1, 0 }
 0x1c0   : > { %v3052_v27 = vpop.f32.mrf.mxu0  ;;  %v9368_v22 = vadd.f32 %v7261_v41, %v3130_v10  ;;  %7467 = vmatprep.mubr.msk.bf16.mxu1 %vm1388_vm4, %v9359_v36  ;;  %v4366_v10 = vshll.u32 %v9364_v32, 16  ;;  %10525 = vst [vmem:[#allocation4_spill] sm:$0xff] %v9389_v0  ;;  %v4377_v1 = vshll.u32 %v9389_v0, 16 }
 0x1c1   : > { %v3129_v59 = vadd.f32 %v3052_v27, %v10521_v28  ;;  %v3255_v30 = vpop.f32.mrf.mxu1  ;;  %v10523_v27 = vld [vmem:[#allocation38_spill] sm:$0xff] }
 0x1c2   : > { %10520 = vst [vmem:[#allocation36_spill] sm:$0xff] %v9368_v22  ;;  %v7231_v37 = vpop.f32.mrf.mxu0  ;;  %7434 = vmatmul.mubr.msk.bf16.gmra.mxu0 %vm1388_vm4, %v9359_v36  ;;  %v9380_v41 = vadd.f32 %v3255_v30, %v3128_v48  ;;  %v4368_v57 = vrot.slane %v4366_v10, 1  ;;  %v4374_v36 = vrot.slane %v4372_v26, 1 }
 0x1c3   : > { %v3134_v28 = vadd.f32 %v7231_v37, %v10523_v27  ;;  %7437 = vmatprep.mubr.msk.bf16.mxu0 %vm1388_vm4, %v9374_v8  ;;  %v7262_v6 = vpop.f32.mrf.mxu1  ;;  %v9395_v37 = vsel %vm1972_vm5, %v4353_v43, %v4357_v25  ;;  %v4364_v27 = vor.u32 %v4363_v9, %v4359_v55  ;;  %v10527_v9 = vld [vmem:[#allocation37_spill] sm:$0xff] }
 0x1c4   : > { %10522 = vst [vmem:[#allocation31_spill] sm:$0xff] %v9380_v41  ;;  %v3065_v56 = vpop.f32.mrf.mxu0  ;;  %v9391_v24 = vadd.f32 %v7262_v6, %v3131_v17  ;;  %v9418_v10 = vsel %vm7818_vm3, %v10527_v9, 0  ;;  %v4375_v26 = vor.u32 %v4374_v36, %v4370_v7 }
 0x1c5   : > { %v3132_v32 = vadd.f32 %v3065_v56, %v10526_v62  ;;  %v3258_v48 = vpop.f32.mrf.mxu1  ;;  %v4629_v56 = vshll.u32 %v9096_v18, 16  ;;  %10528 = vst [vmem:[#allocation38_spill] sm:$0xff] %v9418_v10  ;;  %v4379_v62 = vrot.slane %v4377_v1, 1  ;;  %v4634_v9 = vshll.u32 %v9418_v10, 16 }
 0x1c6   : > { %v7232_v30 = vpop.f32.mrf.mxu0  ;;  %v9398_v41 = vadd.f32 %v3258_v48, %v3129_v59  ;;  %v4627_v48 = vshrl.u32 %v9096_v18, 16 }
 0x1c7   : > { %v3135_v22 = vadd.f32 %v7232_v30, %v9083_v52  ;;  %v7265_v17 = vpop.f32.mrf.mxu1  ;;  %7468 = vmatmul.mubr.msk.bf16.gmra.mxu1 %vm1388_vm4, %v9374_v8  ;;  %v9413_v52 = vsel %vm1972_vm5, %v4364_v27, %v4368_v57  ;;  %v9434_v7 = vsel %vm1972_vm5, %v4375_v26, %v4379_v62  ;;  %v10530_v26 = vld [vmem:[#allocation2_spill] sm:$0xff] }
 0x1c8   : > { %v3068_v6 = vpop.f32.mrf.mxu0  ;;  %v9405_v43 = vadd.f32 %v7265_v17, %v3134_v28  ;;  %7471 = vmatprep.mubr.msk.bf16.mxu1 %vm1388_vm4, %v9395_v37  ;;  %v5084_v62 = vrot.slane %v10530_v26, 1  ;;  %v5090_v26 = vrot.slane %v9081_v42, 1  ;;  %v5592_v42 = vsel %vm1437_vm0, %v9194_v51, 0  ;;  %v10531_v51 = vld [vmem:[#allocation14_spill] sm:$0xff] }
 0x1c9   : > { %v3133_v25 = vadd.f32 %v3068_v6, %v9091_v53  ;;  %v3271_v59 = vpop.f32.mrf.mxu1  ;;  %v4631_v6 = vrot.slane %v4629_v56, 1 }
 0x1ca   : > { %v7235_v55 = vpop.f32.mrf.mxu0  ;;  %7438 = vmatmul.mubr.msk.bf16.gmra.mxu0 %vm1388_vm4, %v9395_v37  ;;  %v9420_v28 = vadd.f32 %v3271_v59, %v3132_v32 }
 0x1cb   : > { %v3138_v53 = vadd.f32 %v7235_v55, %v9103_v61  ;;  %7441 = vmatprep.mubr.msk.bf16.mxu0 %vm1388_vm4, %v9413_v52  ;;  %v7266_v30 = vpop.f32.mrf.mxu1  ;;  %v4632_v56 = vor.u32 %v4631_v6, %v4627_v48  ;;  %v10529_v55 = vld [vmem:[#allocation8_spill] sm:$0xff] }
 0x1cc   : > { %v3081_v17 = vpop.f32.mrf.mxu0  ;;  %v9426_v57 = vadd.f32 %v7266_v30, %v3135_v22  ;;  %v5083_v30 = vrot.slane %v10529_v55, 1 }
 0x1cd   : > { %v3136_v27 = vadd.f32 %v3081_v17, %v9112_v63  ;;  %v3274_v32 = vpop.f32.mrf.mxu1 }
 0x1ce   : > { %v7236_v59 = vpop.f32.mrf.mxu0  ;;  %v9430_v0 = vadd.f32 %v3274_v32, %v3133_v25  ;;  %v4636_v25 = vrot.slane %v4634_v9, 1  ;;  %v5085_v55 = vsel %vm2851_vm6, %v5083_v30, %v5084_v62 }
 0x1cf   : > { %v3139_v61 = vadd.f32 %v7236_v59, %v9121_v15  ;;  %v7269_v36 = vpop.f32.mrf.mxu1  ;;  %7472 = vmatmul.mubr.msk.bf16.gmra.mxu1 %vm1388_vm4, %v9413_v52 }
 0x1d0   : > { %v3084_v22 = vpop.f32.mrf.mxu0  ;;  %v9438_v1 = vadd.f32 %v7269_v36, %v3138_v53  ;;  %7475 = vmatprep.mubr.msk.bf16.mxu1 %vm1388_vm4, %v9434_v7  ;;  %v9456_v9 = vsel %vm1972_vm5, %v4632_v56, %v4636_v25  ;;  %v5086_v25 = vrot.slane %v8636_v3, 1 }
 0x1d1   : > { %v3137_v63 = vadd.f32 %v3084_v22, %v9131_v2  ;;  %v3287_v15 = vpop.f32.mrf.mxu1 }
 0x1d2   : > { %v7239_v17 = vpop.f32.mrf.mxu0  ;;  %7442 = vmatmul.mubr.msk.bf16.gmra.mxu0 %vm1388_vm4, %v9434_v7  ;;  %v9447_v32 = vadd.f32 %v3287_v15, %v3136_v27 }
 0x1d3   : > { %v3142_v53 = vadd.f32 %v7239_v17, %v9144_v31  ;;  %7481 = vmatprep.mubr.msk.bf16.mxu0 %vm1388_vm4, %v9156_v46  ;;  %v7270_v2 = vpop.f32.mrf.mxu1  ;;  %v5089_v17 = vrot.slane %v8650_v11, 1 }
 0x1d4   : > { %v3097_v59 = vpop.f32.mrf.mxu0  ;;  %v9452_v48 = vadd.f32 %v7270_v2, %v3139_v61  ;;  %v5386_v61 = vsel %vm1437_vm0, %v9152_v5, 0 }
 0x1d5   : > { %v3140_v6 = vadd.f32 %v3097_v59, %v9160_v4  ;;  %v3290_v36 = vpop.f32.mrf.mxu1 }
 0x1d6   : > { %v7240_v22 = vpop.f32.mrf.mxu0  ;;  %v9459_v27 = vadd.f32 %v3290_v36, %v3137_v63  ;;  %v5087_v63 = vrot.slane %v9076_v29, 1 }
 0x1d7   : > { %v3143_v31 = vadd.f32 %v7240_v22, %v9173_v19  ;;  %v7273_v15 = vpop.f32.mrf.mxu1  ;;  %7476 = vmatmul.mubr.msk.bf16.gmra.mxu1 %vm1388_vm4, %v9456_v9 }
 0x1d8   : > { %v3100_v46 = vpop.f32.mrf.mxu0  ;;  %v9466_v4 = vadd.f32 %v7273_v15, %v3142_v53  ;;  %7515 = vmatprep.mubr.msk.bf16.mxu1 %vm1388_vm4, %v5085_v55  ;;  %v5092_v55 = vrot.slane %v10531_v51, 1 }
 0x1d9   : > { %v3141_v56 = vadd.f32 %v3100_v46, %v9184_v45  ;;  %v3303_v30 = vpop.f32.mrf.mxu1 }
 0x1da   : > { %v7279_v19 = vpop.f32.mrf.mxu0  ;;  %7482 = vmatmul.mubr.msk.bf16.vlgmr.msra.gmra.mxu0 %vm1388_vm4, %v9188_v33  ;;  %v9476_v5 = vadd.f32 %v3303_v30, %v3140_v6  ;;  %v9485_v33 = vsel %vm2851_vm6, %v5086_v25, %v5087_v63  ;;  %v10534_v25 = vld [vmem:[#allocation12_spill] sm:$0xff] }
 0x1db   : > { %v3526_v62 = vadd.f32 %v7279_v19, %v9199_v21  ;;  %7548 = vmatpush3.bf16.msra.mxu0 %v5386_v61  ;;  %7485 = vmatprep.mubr.msk.bf16.mxu0 %vm1388_vm4, %v9208_v23  ;;  %v7274_v3 = vpop.f32.mrf.mxu1  ;;  %v9490_v21 = vsel %vm2851_vm6, %v5089_v17, %v5090_v26  ;;  %v5096_v63 = vrot.slane %v10534_v25, 1 }
 0x1dc   : > { %v3397_v45 = vpop.f32.mrf.mxu0  ;;  %v9481_v29 = vadd.f32 %v7274_v3, %v3143_v31  ;;  %v10532_v31 = vld [vmem:[#allocation11_spill] sm:$0xff] }
 0x1dd   : > { %v3524_v53 = vadd.f32 %v3397_v45, %v9213_v60  ;;  %v3306_v11 = vpop.f32.mrf.mxu1  ;;  %v5093_v15 = vrot.slane %v10532_v31, 1 }
 0x1de   : > { %v7280_v2 = vpop.f32.mrf.mxu0  ;;  %v9492_v59 = vadd.f32 %v3306_v11, %v3141_v56 }
 0x1df   : > { %v3527_v23 = vadd.f32 %v7280_v2, %v9223_v20  ;;  %v7313_v6 = vpop.f32.mrf.mxu1  ;;  %7516 = vmatmul.mubr.msk.bf16.vlgmr.msra.gmra.mxu1 %vm1388_vm4, %v9485_v33  ;;  %v10533_v20 = vld [vmem:[#allocation15_spill] sm:$0xff]  ;;  %v9517_v3 = vsel %vm2851_vm6, %v5092_v55, %v5093_v15  ;;  %v10536_v55 = vld [vmem:[#allocation41_spill] sm:$0xff]  ;;  %v10538_v15 = vld [vmem:[#allocation16_spill] sm:$0xff] }
 0x1e0   : > { %v3400_v60 = vpop.f32.mrf.mxu0  ;;  %v9497_v36 = vadd.f32 %v7313_v6, %v3526_v62  ;;  %7582 = vmatpush3.bf16.msra.mxu1 %v5592_v42  ;;  %7519 = vmatprep.mubr.msk.bf16.mxu1 %vm1388_vm4, %v9490_v21  ;;  %v5095_v56 = vrot.slane %v10533_v20, 1  ;;  %v10535_v6 = vld [vmem:[#allocation13_spill] sm:$0xff]  ;;  %v10539_v20 = vld [vmem:[#allocation42_spill] sm:$0xff] }
 0x1e1   : > { %v3525_v22 = vadd.f32 %v3400_v60, %v9234_v58  ;;  %v3642_v46 = vpop.f32.mrf.mxu1  ;;  %v5099_v60 = vrot.slane %v10535_v6, 1  ;;  %v10541_v6 = vld [vmem:[#allocation27_spill] sm:$0xff] }
 0x1e2   : > { %v7283_v61 = vpop.f32.mrf.mxu0  ;;  %7486 = vmatmul.mubr.msk.bf16.gmra.mxu0 %vm1388_vm4, %v9238_v13  ;;  %v9508_v30 = vadd.f32 %v3642_v46, %v3524_v53  ;;  %v9520_v11 = vsel %vm2851_vm6, %v5095_v56, %v5096_v63  ;;  %v5102_v46 = vrot.slane %v10538_v15, 1  ;;  %v10540_v63 = vld [vmem:[#allocation43_spill] sm:$0xff] }
 0x1e3   : > { %v3530_v58 = vadd.f32 %v7283_v61, %v9243_v44  ;;  %7489 = vmatprep.mubr.msk.bf16.mxu0 %vm1388_vm4, %v9252_v34  ;;  %v7314_v19 = vpop.f32.mrf.mxu1 }
 0x1e4   : > { %v3413_v17 = vpop.f32.mrf.mxu0  ;;  %v9513_v26 = vadd.f32 %v7314_v19, %v3527_v23  ;;  %v5098_v23 = vrot.slane %v8719_v39, 1 }
 0x1e5   : > { %v3528_v62 = vadd.f32 %v3413_v17, %v9255_v40  ;;  %v3645_v13 = vpop.f32.mrf.mxu1 }
 0x1e6   : > { %v7284_v45 = vpop.f32.mrf.mxu0  ;;  %v9522_v53 = vadd.f32 %v3645_v13, %v3525_v22  ;;  %v9547_v19 = vsel %vm2851_vm6, %v5098_v23, %v5099_v60  ;;  %v10542_v23 = vld [vmem:[#allocation21_spill] sm:$0xff] }
 0x1e7   : > { %v3531_v44 = vadd.f32 %v7284_v45, %v9265_v14  ;;  %v7317_v42 = vpop.f32.mrf.mxu1  ;;  %7520 = vmatmul.mubr.msk.bf16.gmra.mxu1 %vm1388_vm4, %v9517_v3  ;;  %v10537_v14 = vld [vmem:[#allocation18_spill] sm:$0xff]  ;;  %v5104_v60 = vrot.slane %v10542_v23, 1 }
 0x1e8   : > { %v3416_v34 = vpop.f32.mrf.mxu0  ;;  %v9527_v2 = vadd.f32 %v7317_v42, %v3530_v58  ;;  %7523 = vmatprep.mubr.msk.bf16.mxu1 %vm1388_vm4, %v9520_v11  ;;  %v5101_v31 = vrot.slane %v10537_v14, 1 }
 0x1e9   : > { %v3529_v40 = vadd.f32 %v3416_v34, %v9273_v54  ;;  %v3658_v22 = vpop.f32.mrf.mxu1 }
 0x1ea   : > { %v7287_v51 = vpop.f32.mrf.mxu0  ;;  %7490 = vmatmul.mubr.msk.bf16.gmra.mxu0 %vm1388_vm4, %v10536_v55  ;;  %v9538_v61 = vadd.f32 %v3658_v22, %v3528_v62  ;;  %v9550_v45 = vsel %vm2851_vm6, %v5101_v31, %v5102_v46  ;;  %v10544_v31 = vld [vmem:[#allocation32_spill] sm:$0xff]  ;;  %v10546_v46 = vld [vmem:[#allocation19_spill] sm:$0xff] }
 0x1eb   : > { %v3534_v54 = vadd.f32 %v7287_v51, %v10539_v20  ;;  %7493 = vmatprep.mubr.msk.bf16.mxu0 %vm1388_vm4, %v9290_v16  ;;  %v7318_v56 = vpop.f32.mrf.mxu1  ;;  %v10543_v51 = vld [vmem:[#allocation17_spill] sm:$0xff]  ;;  %v5108_v20 = vrot.slane %v10546_v46, 1 }
 0x1ec   : > { %v3429_v39 = vpop.f32.mrf.mxu0  ;;  %v9543_v25 = vadd.f32 %v7318_v56, %v3531_v44  ;;  %v5105_v55 = vrot.slane %v10543_v51, 1  ;;  %v10547_v56 = vld [vmem:[#allocation44_spill] sm:$0xff] }
 0x1ed   : > { %v3532_v58 = vadd.f32 %v3429_v39, %v10540_v63  ;;  %v3661_v17 = vpop.f32.mrf.mxu1 }
 0x1ee   : > { %v7288_v13 = vpop.f32.mrf.mxu0  ;;  %v9552_v62 = vadd.f32 %v3661_v17, %v3529_v40 }
 0x1ef   : > { %v3535_v42 = vadd.f32 %v7288_v13, %v9308_v38  ;;  %v7321_v34 = vpop.f32.mrf.mxu1  ;;  %7524 = vmatmul.mubr.msk.bf16.gmra.mxu1 %vm1388_vm4, %v9547_v19  ;;  %v10545_v38 = vld [vmem:[#allocation22_spill] sm:$0xff] }
 0x1f0   : > { %v3432_v16 = vpop.f32.mrf.mxu0  ;;  %v9557_v44 = vadd.f32 %v7321_v34, %v3534_v54  ;;  %7527 = vmatprep.mubr.msk.bf16.mxu1 %vm1388_vm4, %v9550_v45  ;;  %v5107_v15 = vrot.slane %v10545_v38, 1  ;;  %v10548_v34 = vld [vmem:[#allocation33_spill] sm:$0xff] }
 0x1f1   : > { %v3533_v22 = vadd.f32 %v3432_v16, %v10541_v6  ;;  %v3674_v40 = vpop.f32.mrf.mxu1  ;;  %v9577_v6 = vsel %vm2851_vm6, %v5104_v60, %v5105_v55  ;;  %v10549_v60 = vld [vmem:[#allocation24_spill] sm:$0xff] }
 0x1f2   : > { %v7291_v14 = vpop.f32.mrf.mxu0  ;;  %7494 = vmatmul.mubr.msk.bf16.gmra.mxu0 %vm1388_vm4, %v10544_v31  ;;  %v9568_v54 = vadd.f32 %v3674_v40, %v3532_v58  ;;  %v9580_v31 = vsel %vm2851_vm6, %v5107_v15, %v5108_v20  ;;  %v5110_v55 = vrot.slane %v10549_v60, 1  ;;  %v10550_v15 = vld [vmem:[#allocation20_spill] sm:$0xff]  ;;  %v10555_v60 = vld [vmem:[#allocation31_spill] sm:$0xff] }
 0x1f3   : > { %v3538_v39 = vadd.f32 %v7291_v14, %v10547_v56  ;;  %7497 = vmatprep.mubr.msk.bf16.mxu0 %vm1388_vm4, %v9337_v50  ;;  %v7322_v63 = vpop.f32.mrf.mxu1  ;;  %v5111_v46 = vrot.slane %v10550_v15, 1  ;;  %v10551_v56 = vld [vmem:[#allocation28_spill] sm:$0xff] }
 0x1f4   : > { %v3445_v17 = vpop.f32.mrf.mxu0  ;;  %v9573_v13 = vadd.f32 %v7322_v63, %v3535_v42 }
 0x1f5   : > { %v3536_v16 = vadd.f32 %v3445_v17, %v10548_v34  ;;  %v3677_v23 = vpop.f32.mrf.mxu1  ;;  %v10553_v17 = vld [vmem:[#allocation23_spill] sm:$0xff]  ;;  %v9607_v10 = vsel %vm2851_vm6, %v5110_v55, %v5111_v46  ;;  %v10556_v55 = vld [vmem:[#allocation29_spill] sm:$0xff] }
 0x1f6   : > { %v7292_v51 = vpop.f32.mrf.mxu0  ;;  %v9582_v58 = vadd.f32 %v3677_v23, %v3533_v22  ;;  %v5114_v34 = vrot.slane %v10553_v17, 1  ;;  %v10554_v23 = vld [vmem:[#allocation36_spill] sm:$0xff]  ;;  %v5116_v46 = vrot.slane %v10556_v55, 1 }
 0x1f7   : > { %v3539_v40 = vadd.f32 %v7292_v51, %v9349_v47  ;;  %v7325_v14 = vpop.f32.mrf.mxu1  ;;  %7528 = vmatmul.mubr.msk.bf16.gmra.mxu1 %vm1388_vm4, %v9577_v6  ;;  %v10552_v47 = vld [vmem:[#allocation26_spill] sm:$0xff] }
 0x1f8   : > { %v3448_v50 = vpop.f32.mrf.mxu0  ;;  %v9587_v42 = vadd.f32 %v7325_v14, %v3538_v39  ;;  %7531 = vmatprep.mubr.msk.bf16.mxu1 %vm1388_vm4, %v9580_v31  ;;  %v5113_v63 = vrot.slane %v10552_v47, 1 }
 0x1f9   : > { %v3537_v38 = vadd.f32 %v3448_v50, %v9355_v35  ;;  %v3690_v22 = vpop.f32.mrf.mxu1 }
 0x1fa   : > { %v7295_v20 = vpop.f32.mrf.mxu0  ;;  %7498 = vmatmul.mubr.msk.bf16.gmra.mxu0 %vm1388_vm4, %v10551_v56  ;;  %v9598_v39 = vadd.f32 %v3690_v22, %v3536_v16  ;;  %v9610_v17 = vsel %vm2851_vm6, %v5113_v63, %v5114_v34  ;;  %v10557_v63 = vld [vmem:[#allocation25_spill] sm:$0xff] }
 0x1fb   : > { %v3542_v35 = vadd.f32 %v7295_v20, %v10554_v23  ;;  %7501 = vmatprep.mubr.msk.bf16.mxu0 %vm1388_vm4, %v9374_v8  ;;  %v7326_v51 = vpop.f32.mrf.mxu1  ;;  %v5117_v34 = vrot.slane %v10557_v63, 1  ;;  %v10562_v63 = vld [vmem:[#allocation7_spill] sm:$0xff] }
 0x1fc   : > { %v3461_v14 = vpop.f32.mrf.mxu0  ;;  %v9603_v50 = vadd.f32 %v7326_v51, %v3539_v40  ;;  %v9637_v18 = vsel %vm7818_vm3, %v10562_v63, 0  ;;  %v10567_v63 = vld [vmem:[#allocation6_spill] sm:$0xff] }
 0x1fd   : > { %v3540_v15 = vadd.f32 %v3461_v14, %v10555_v60  ;;  %v3693_v56 = vpop.f32.mrf.mxu1  ;;  %v10559_v60 = vld [vmem:[#allocation10_spill] sm:$0xff]  ;;  %10563 = vst [vmem:[#allocation39_spill] sm:$0xff] %v9637_v18 }
 0x1fe   : > { %v7296_v47 = vpop.f32.mrf.mxu0  ;;  %v9612_v16 = vadd.f32 %v3693_v56, %v3537_v38  ;;  %v5120_v56 = vrot.slane %v10559_v60, 1  ;;  %v9643_v60 = vsel %vm2851_vm6, %v5116_v46, %v5117_v34 }
 0x1ff   : > { %v3543_v22 = vadd.f32 %v7296_v47, %v9391_v24  ;;  %v7329_v20 = vpop.f32.mrf.mxu1  ;;  %7532 = vmatmul.mubr.msk.bf16.gmra.mxu1 %vm1388_vm4, %v9607_v10  ;;  %v10558_v24 = vld [vmem:[#allocation30_spill] sm:$0xff] }
 0x200   : > { %v3464_v8 = vpop.f32.mrf.mxu0  ;;  %v9617_v40 = vadd.f32 %v7329_v20, %v3542_v35  ;;  %7535 = vmatprep.mubr.msk.bf16.mxu1 %vm1388_vm4, %v9610_v17  ;;  %v5119_v14 = vrot.slane %v10558_v24, 1  ;;  %v10560_v35 = vld [vmem:[#allocation40_spill] sm:$0xff] }
 0x201   : > { %v3541_v23 = vadd.f32 %v3464_v8, %v9398_v41  ;;  %v3706_v38 = vpop.f32.mrf.mxu1  ;;  %v4841_v47 = vshll.u32 %v10560_v35, 16 }
 0x202   : > { %v7299_v51 = vpop.f32.mrf.mxu0  ;;  %7502 = vmatmul.mubr.msk.bf16.gmra.mxu0 %vm1388_vm4, %v9395_v37  ;;  %v9629_v20 = vadd.f32 %v3706_v38, %v3540_v15  ;;  %v4839_v15 = vshrl.u32 %v10560_v35, 16 }
 0x203   : > { %v3546_v41 = vadd.f32 %v7299_v51, %v9405_v43  ;;  %7505 = vmatprep.mubr.msk.bf16.mxu0 %vm1388_vm4, %v9413_v52  ;;  %v7330_v8 = vpop.f32.mrf.mxu1  ;;  %v9647_v52 = vsel %vm2851_vm6, %v5119_v14, %v5120_v56  ;;  %v4843_v51 = vrot.slane %v4841_v47, 1  ;;  %v10565_v14 = vld [vmem:[#allocation5_spill] sm:$0xff] }
 0x204   : > { %10561 = vst [vmem:[#allocation3_spill] sm:$0xff] %v9629_v20  ;;  %v3477_v55 = vpop.f32.mrf.mxu0  ;;  %v9639_v37 = vadd.f32 %v7330_v8, %v3543_v22  ;;  %v4846_v22 = vshll.u32 %v9637_v18, 16  ;;  %v5122_v56 = vrot.slane %v10565_v14, 1 }
 0x205   : > { %v3544_v24 = vadd.f32 %v3477_v55, %v9420_v28  ;;  %v3709_v43 = vpop.f32.mrf.mxu1 }
 0x206   : > { %v7300_v38 = vpop.f32.mrf.mxu0  ;;  %v9649_v20 = vadd.f32 %v3709_v43, %v3541_v23  ;;  %v10566_v23 = vld [vmem:[#allocation34_spill] sm:$0xff]  ;;  %v5125_v43 = vrot.slane %v10567_v63, 1 }
 0x207   : > { %v3547_v12 = vadd.f32 %v7300_v38, %v9426_v57  ;;  %v7333_v8 = vpop.f32.mrf.mxu1  ;;  %7536 = vmatmul.mubr.msk.bf16.gmra.mxu1 %vm1388_vm4, %v9643_v60  ;;  %v5123_v47 = vrot.slane %v10566_v23, 1  ;;  %v10568_v38 = vld [vmem:[#allocation35_spill] sm:$0xff] }
 0x208   : > { %v3480_v28 = vpop.f32.mrf.mxu0  ;;  %v9655_v46 = vadd.f32 %v7333_v8, %v3546_v41  ;;  %7539 = vmatprep.mubr.msk.bf16.mxu1 %vm1388_vm4, %v9647_v52  ;;  %v5126_v18 = vrot.slane %v10568_v38, 1  ;;  %v4844_v8 = vor.u32 %v4843_v51, %v4839_v15 }
 0x209   : > { %v3545_v34 = vadd.f32 %v3480_v28, %v9430_v0  ;;  %v3722_v55 = vpop.f32.mrf.mxu1  ;;  %v4848_v28 = vrot.slane %v4846_v22, 1 }
 0x20a   : > { %10564 = vst [vmem:[#allocation37_spill] sm:$0xff] %v9655_v46  ;;  %v7303_v57 = vpop.f32.mrf.mxu0  ;;  %7506 = vmatmul.mubr.msk.bf16.gmra.mxu0 %vm1388_vm4, %v9434_v7  ;;  %v9666_v41 = vadd.f32 %v3722_v55, %v3544_v24  ;;  %v9675_v7 = vsel %vm2851_vm6, %v5122_v56, %v5123_v47  ;;  %v9678_v24 = vsel %vm2851_vm6, %v5125_v43, %v5126_v18  ;;  %v5128_v18 = vrot.slane %v8898_v49, 1 }
 0x20b   : > { %v3550_v0 = vadd.f32 %v7303_v57, %v9438_v1  ;;  %7509 = vmatprep.mubr.msk.bf16.mxu0 %vm1388_vm4, %v9456_v9  ;;  %v7334_v14 = vpop.f32.mrf.mxu1  ;;  %v4849_v15 = vsel %vm1972_vm5, %v4844_v8, %v4848_v28 }
 0x20c   : > { %v3493_v23 = vpop.f32.mrf.mxu0  ;;  %v9671_v35 = vadd.f32 %v7334_v14, %v3547_v12 }
 0x20d   : > { %v3548_v46 = vadd.f32 %v3493_v23, %v9447_v32  ;;  %v3725_v63 = vpop.f32.mrf.mxu1 }
 0x20e   : > { %v7304_v38 = vpop.f32.mrf.mxu0  ;;  %v9680_v1 = vadd.f32 %v3725_v63, %v3545_v34  ;;  %v10569_v34 = vld [vmem:[#allocation4_spill] sm:$0xff] }
 0x20f   : > { %v3551_v9 = vadd.f32 %v7304_v38, %v9452_v48  ;;  %v7337_v51 = vpop.f32.mrf.mxu1  ;;  %7540 = vmatmul.mubr.msk.bf16.gmra.mxu1 %vm1388_vm4, %v9675_v7  ;;  %v5129_v56 = vrot.slane %v10569_v34, 1 }
 0x210   : > { %v3496_v12 = vpop.f32.mrf.mxu0  ;;  %v9686_v32 = vadd.f32 %v7337_v51, %v3550_v0  ;;  %7543 = vmatprep.mubr.msk.bf16.mxu1 %vm1388_vm4, %v9678_v24 }
 0x211   : > { %v3549_v22 = vadd.f32 %v3496_v12, %v9459_v27  ;;  %v3738_v47 = vpop.f32.mrf.mxu1  ;;  %v9703_v49 = vsel %vm2851_vm6, %v5128_v18, %v5129_v56 }
 0x212   : > { %v7307_v48 = vpop.f32.mrf.mxu0  ;;  %7510 = vmatmul.mubr.msk.bf16.gmra.mxu0 %vm1388_vm4, %v4849_v15  ;;  %v9694_v55 = vadd.f32 %v3738_v47, %v3548_v46 }
 0x213   : > { %v3554_v57 = vadd.f32 %v7307_v48, %v9466_v4  ;;  %7549 = vmatprep.mubr.msk.bf16.mxu0 %vm1388_vm4, %v9485_v33  ;;  %v7338_v43 = vpop.f32.mrf.mxu1 }
 0x214   : > { %v3509_v27 = vpop.f32.mrf.mxu0  ;;  %v9699_v0 = vadd.f32 %v7338_v43, %v3551_v9 }
 0x215   : > { %v3552_v8 = vadd.f32 %v3509_v27, %v9476_v5  ;;  %v3741_v28 = vpop.f32.mrf.mxu1 }
 0x216   : > { %v7308_v14 = vpop.f32.mrf.mxu0  ;;  %v9705_v23 = vadd.f32 %v3741_v28, %v3549_v22 }
 0x217   : > { %v3555_v46 = vadd.f32 %v7308_v14, %v9481_v29  ;;  %v7341_v63 = vpop.f32.mrf.mxu1  ;;  %7544 = vmatmul.mubr.msk.bf16.gmra.mxu1 %vm1388_vm4, %v9703_v49 }
 0x218   : > { %v3512_v4 = vpop.f32.mrf.mxu0  ;;  %v9710_v33 = vadd.f32 %v7341_v63, %v3554_v57  ;;  %7583 = vmatprep.mubr.msk.bf16.mxu1 %vm1388_vm4, %v9490_v21 }
 0x219   : > { %v3553_v38 = vadd.f32 %v3512_v4, %v9492_v59  ;;  %v3754_v5 = vpop.f32.mrf.mxu1 }
 0x21a   : > { %v7347_v9 = vpop.f32.mrf.mxu0  ;;  %7550 = vmatmul.mubr.msk.bf16.vlgmr.msra.gmra.mxu0 %vm1388_vm4, %v9490_v21  ;;  %v9717_v15 = vadd.f32 %v3754_v5, %v3552_v8 }
 0x21b   : > { %v3972_v29 = vadd.f32 %v7347_v9, %v9497_v36  ;;  %7553 = vmatprep.mubr.msk.bf16.mxu0 %vm1388_vm4, %v9517_v3  ;;  %v7342_v51 = vpop.f32.mrf.mxu1 }
 0x21c   : > { %v3843_v12 = vpop.f32.mrf.mxu0  ;;  %v9722_v22 = vadd.f32 %v7342_v51, %v3555_v46 }
 0x21d   : > { %v3970_v59 = vadd.f32 %v3843_v12, %v9508_v30  ;;  %v3757_v18 = vpop.f32.mrf.mxu1 }
 0x21e   : > { %v7348_v34 = vpop.f32.mrf.mxu0  ;;  %v9725_v56 = vadd.f32 %v3757_v18, %v3553_v38 }
 0x21f   : > { %v3973_v47 = vadd.f32 %v7348_v34, %v9513_v26  ;;  %v7381_v21 = vpop.f32.mrf.mxu1  ;;  %7584 = vmatmul.mubr.msk.bf16.vlgmr.msra.gmra.mxu1 %vm1388_vm4, %v9517_v3 }
 0x220   : > { %v3846_v36 = vpop.f32.mrf.mxu0  ;;  %v9730_v48 = vadd.f32 %v7381_v21, %v3972_v29  ;;  %7587 = vmatprep.mubr.msk.bf16.mxu1 %vm1388_vm4, %v9520_v11 }
 0x221   : > { %v3971_v57 = vadd.f32 %v3846_v36, %v9522_v53  ;;  %v4044_v43 = vpop.f32.mrf.mxu1 }
 0x222   : > { %v7351_v30 = vpop.f32.mrf.mxu0  ;;  %7554 = vmatmul.mubr.msk.bf16.gmra.mxu0 %vm1388_vm4, %v9520_v11  ;;  %v9737_v27 = vadd.f32 %v4044_v43, %v3970_v59 }
 0x223   : > { %v3976_v26 = vadd.f32 %v7351_v30, %v9527_v2  ;;  %7557 = vmatprep.mubr.msk.bf16.mxu0 %vm1388_vm4, %v9547_v19  ;;  %v7382_v3 = vpop.f32.mrf.mxu1 }
 0x224   : > { %v3859_v8 = vpop.f32.mrf.mxu0  ;;  %v9742_v28 = vadd.f32 %v7382_v3, %v3973_v47 }
 0x225   : > { %v3974_v53 = vadd.f32 %v3859_v8, %v9538_v61  ;;  %v4047_v14 = vpop.f32.mrf.mxu1 }
 0x226   : > { %v7352_v46 = vpop.f32.mrf.mxu0  ;;  %v9745_v63 = vadd.f32 %v4047_v14, %v3971_v57 }
 0x227   : > { %v3977_v4 = vadd.f32 %v7352_v46, %v9543_v25  ;;  %v7385_v11 = vpop.f32.mrf.mxu1  ;;  %7588 = vmatmul.mubr.msk.bf16.gmra.mxu1 %vm1388_vm4, %v9547_v19 }
 0x228   : > { %v3862_v2 = vpop.f32.mrf.mxu0  ;;  %v9750_v38 = vadd.f32 %v7385_v11, %v3976_v26  ;;  %7591 = vmatprep.mubr.msk.bf16.mxu1 %vm1388_vm4, %v9550_v45 }
 0x229   : > { %v3975_v5 = vadd.f32 %v3862_v2, %v9552_v62  ;;  %v4060_v9 = vpop.f32.mrf.mxu1 }
 0x22a   : > { %v7355_v61 = vpop.f32.mrf.mxu0  ;;  %7558 = vmatmul.mubr.msk.bf16.gmra.mxu0 %vm1388_vm4, %v9550_v45  ;;  %v9757_v29 = vadd.f32 %v4060_v9, %v3974_v53 }
 0x22b   : > { %v3980_v25 = vadd.f32 %v7355_v61, %v9557_v44  ;;  %7561 = vmatprep.mubr.msk.bf16.mxu0 %vm1388_vm4, %v9577_v6  ;;  %v7386_v19 = vpop.f32.mrf.mxu1 }
 0x22c   : > { %v3875_v51 = vpop.f32.mrf.mxu0  ;;  %v9762_v12 = vadd.f32 %v7386_v19, %v3977_v4 }
 0x22d   : > { %v3978_v62 = vadd.f32 %v3875_v51, %v9568_v54  ;;  %v4063_v59 = vpop.f32.mrf.mxu1 }
 0x22e   : > { %v7356_v18 = vpop.f32.mrf.mxu0  ;;  %v9765_v34 = vadd.f32 %v4063_v59, %v3975_v5 }
 0x22f   : > { %v3981_v47 = vadd.f32 %v7356_v18, %v9573_v13  ;;  %v7389_v45 = vpop.f32.mrf.mxu1  ;;  %7592 = vmatmul.mubr.msk.bf16.gmra.mxu1 %vm1388_vm4, %v9577_v6 }
 0x230   : > { %v3878_v44 = vpop.f32.mrf.mxu0  ;;  %v9770_v21 = vadd.f32 %v7389_v45, %v3980_v25  ;;  %7595 = vmatprep.mubr.msk.bf16.mxu1 %vm1388_vm4, %v9580_v31 }
 0x231   : > { %v3979_v36 = vadd.f32 %v3878_v44, %v9582_v58  ;;  %v4076_v57 = vpop.f32.mrf.mxu1 }
 0x232   : > { %v7359_v54 = vpop.f32.mrf.mxu0  ;;  %7562 = vmatmul.mubr.msk.bf16.gmra.mxu0 %vm1388_vm4, %v9580_v31  ;;  %v9777_v43 = vadd.f32 %v4076_v57, %v3978_v62 }
 0x233   : > { %v3984_v13 = vadd.f32 %v7359_v54, %v9587_v42  ;;  %7565 = vmatprep.mubr.msk.bf16.mxu0 %vm1388_vm4, %v9607_v10  ;;  %v7390_v6 = vpop.f32.mrf.mxu1 }
 0x234   : > { %v3891_v30 = vpop.f32.mrf.mxu0  ;;  %v9782_v26 = vadd.f32 %v7390_v6, %v3981_v47 }
 0x235   : > { %v3982_v58 = vadd.f32 %v3891_v30, %v9598_v39  ;;  %v4079_v3 = vpop.f32.mrf.mxu1 }
 0x236   : > { %v7360_v8 = vpop.f32.mrf.mxu0  ;;  %v9785_v53 = vadd.f32 %v4079_v3, %v3979_v36 }
 0x237   : > { %v3985_v14 = vadd.f32 %v7360_v8, %v9603_v50  ;;  %v7393_v31 = vpop.f32.mrf.mxu1  ;;  %7596 = vmatmul.mubr.msk.bf16.gmra.mxu1 %vm1388_vm4, %v9607_v10 }
 0x238   : > { %v3894_v42 = vpop.f32.mrf.mxu0  ;;  %v9790_v46 = vadd.f32 %v7393_v31, %v3984_v13  ;;  %7599 = vmatprep.mubr.msk.bf16.mxu1 %vm1388_vm4, %v9610_v17 }
 0x239   : > { %v3983_v4 = vadd.f32 %v3894_v42, %v9612_v16  ;;  %v4092_v11 = vpop.f32.mrf.mxu1  ;;  %v10570_v16 = vld [vmem:[#allocation3_spill] sm:$0xff] }
 0x23a   : > { %v7363_v39 = vpop.f32.mrf.mxu0  ;;  %7566 = vmatmul.mubr.msk.bf16.gmra.mxu0 %vm1388_vm4, %v9610_v17  ;;  %v9797_v2 = vadd.f32 %v4092_v11, %v3982_v58  ;;  %v10573_v11 = vld [vmem:[#allocation38_spill] sm:$0xff] }
 0x23b   : > { %v3988_v50 = vadd.f32 %v7363_v39, %v9617_v40  ;;  %7569 = vmatprep.mubr.msk.bf16.mxu0 %vm1388_vm4, %v9643_v60  ;;  %v7394_v10 = vpop.f32.mrf.mxu1  ;;  %v5380_v39 = vrot.slane %v10573_v11, 1 }
 0x23c   : > { %v3907_v5 = vpop.f32.mrf.mxu0  ;;  %v9802_v9 = vadd.f32 %v7394_v10, %v3985_v14 }
 0x23d   : > { %v3986_v61 = vadd.f32 %v3907_v5, %v10570_v16  ;;  %v4095_v25 = vpop.f32.mrf.mxu1 }
 0x23e   : > { %v7364_v19 = vpop.f32.mrf.mxu0  ;;  %v9805_v51 = vadd.f32 %v4095_v25, %v3983_v4 }
 0x23f   : > { %v3989_v62 = vadd.f32 %v7364_v19, %v9639_v37  ;;  %v7397_v17 = vpop.f32.mrf.mxu1  ;;  %7600 = vmatmul.mubr.msk.bf16.gmra.mxu1 %vm1388_vm4, %v9643_v60  ;;  %v10571_v37 = vld [vmem:[#allocation37_spill] sm:$0xff] }
 0x240   : > { %v3910_v40 = vpop.f32.mrf.mxu0  ;;  %v9810_v59 = vadd.f32 %v7397_v17, %v3988_v50  ;;  %7603 = vmatprep.mubr.msk.bf16.mxu1 %vm1388_vm4, %v9647_v52  ;;  %v10574_v17 = vld [vmem:[#allocation40_spill] sm:$0xff] }
 0x241   : > { %v3987_v18 = vadd.f32 %v3910_v40, %v9649_v20  ;;  %v4108_v47 = vpop.f32.mrf.mxu1  ;;  %v5585_v40 = vrot.slane %v10574_v17, 1 }
 0x242   : > { %v7367_v45 = vpop.f32.mrf.mxu0  ;;  %7570 = vmatmul.mubr.msk.bf16.gmra.mxu0 %vm1388_vm4, %v9647_v52  ;;  %v9817_v44 = vadd.f32 %v4108_v47, %v3986_v61 }
 0x243   : > { %v3992_v36 = vadd.f32 %v7367_v45, %v10571_v37  ;;  %7573 = vmatprep.mubr.msk.bf16.mxu0 %vm1388_vm4, %v9675_v7  ;;  %v7398_v60 = vpop.f32.mrf.mxu1 }
 0x244   : > { %v3923_v57 = vpop.f32.mrf.mxu0  ;;  %v9822_v54 = vadd.f32 %v7398_v60, %v3989_v62 }
 0x245   : > { %v3990_v20 = vadd.f32 %v3923_v57, %v9666_v41  ;;  %v4111_v13 = vpop.f32.mrf.mxu1 }
 0x246   : > { %v7368_v6 = vpop.f32.mrf.mxu0  ;;  %v9825_v30 = vadd.f32 %v4111_v13, %v3987_v18 }
 0x247   : > { %v3993_v58 = vadd.f32 %v7368_v6, %v9671_v35  ;;  %v7401_v52 = vpop.f32.mrf.mxu1  ;;  %7604 = vmatmul.mubr.msk.bf16.gmra.mxu1 %vm1388_vm4, %v9675_v7  ;;  %v10572_v7 = vld [vmem:[#allocation9_spill] sm:$0xff] }
 0x248   : > { %v3926_v3 = vpop.f32.mrf.mxu0  ;;  %v9830_v8 = vadd.f32 %v7401_v52, %v3992_v36  ;;  %7607 = vmatprep.mubr.msk.bf16.mxu1 %vm1388_vm4, %v9678_v24  ;;  %v5379_v4 = vrot.slane %v10572_v7, 1 }
 0x249   : > { %v3991_v14 = vadd.f32 %v3926_v3, %v9680_v1  ;;  %v4124_v31 = vpop.f32.mrf.mxu1 }
 0x24a   : > { %v7371_v41 = vpop.f32.mrf.mxu0  ;;  %7574 = vmatmul.mubr.msk.bf16.gmra.mxu0 %vm1388_vm4, %v9678_v24  ;;  %v9837_v42 = vadd.f32 %v4124_v31, %v3990_v20 }
 0x24b   : > { %v3996_v35 = vadd.f32 %v7371_v41, %v9686_v32  ;;  %7577 = vmatprep.mubr.msk.bf16.mxu0 %vm1388_vm4, %v9703_v49  ;;  %v7402_v1 = vpop.f32.mrf.mxu1  ;;  %v5381_v32 = vsel %vm2851_vm6, %v5379_v4, %v5380_v39 }
 0x24c   : > { %v3939_v50 = vpop.f32.mrf.mxu0  ;;  %v9844_v10 = vadd.f32 %v7402_v1, %v3993_v58 }
 0x24d   : > { %v3994_v5 = vadd.f32 %v3939_v50, %v9694_v55  ;;  %v4127_v16 = vpop.f32.mrf.mxu1  ;;  %v10575_v55 = vld [vmem:[#allocation39_spill] sm:$0xff] }
 0x24e   : > { %v7372_v61 = vpop.f32.mrf.mxu0  ;;  %v9847_v24 = vadd.f32 %v4127_v16, %v3991_v14  ;;  %v5586_v45 = vrot.slane %v10575_v55, 1 }
 0x24f   : > { %v3997_v25 = vadd.f32 %v7372_v61, %v9699_v0  ;;  %v7405_v19 = vpop.f32.mrf.mxu1  ;;  %7608 = vmatmul.mubr.msk.bf16.gmra.mxu1 %vm1388_vm4, %v9703_v49 }
 0x250   : > { %v3942_v62 = vpop.f32.mrf.mxu0  ;;  %v9854_v18 = vadd.f32 %v7405_v19, %v3996_v35  ;;  %7611 = vmatprep.mubr.msk.bf16.mxu1 %vm1388_vm4, %v5381_v32 }
 0x251   : > { %v3995_v47 = vadd.f32 %v3942_v62, %v9705_v23  ;;  %v4140_v37 = vpop.f32.mrf.mxu1  ;;  %v5587_v23 = vsel %vm2851_vm6, %v5585_v40, %v5586_v45 }
 0x252   : > { %v7375_v36 = vpop.f32.mrf.mxu0  ;;  %7578 = vmatmul.mubr.msk.bf16.gmra.mxu0 %vm1388_vm4, %v5381_v32  ;;  %v9860_v0 = vadd.f32 %v4140_v37, %v3994_v5 }
 0x253   : > { %v4000_v60 = vadd.f32 %v7375_v36, %v9710_v33  ;;  %v7406_v49 = vpop.f32.mrf.mxu1 }
 0x254   : > { %v3955_v57 = vpop.f32.mrf.mxu0  ;;  %v9863_v20 = vadd.f32 %v7406_v49, %v3997_v25 }
 0x255   : > { %v3998_v13 = vadd.f32 %v3955_v57, %v9717_v15  ;;  %v4143_v6 = vpop.f32.mrf.mxu1 }
 0x256   : > { %v7376_v58 = vpop.f32.mrf.mxu0  ;;  %v9867_v52 = vadd.f32 %v4143_v6, %v3995_v47 }
 0x257   : > { %v4001_v3 = vadd.f32 %v7376_v58, %v9722_v22  ;;  %v7409_v14 = vpop.f32.mrf.mxu1  ;;  %7612 = vmatmul.mubr.msk.bf16.gmra.mxu1 %vm1388_vm4, %v5587_v23 }
 0x258   : > { %v3958_v31 = vpop.f32.mrf.mxu0  ;;  %v9871_v41 = vadd.f32 %v7409_v14, %v4000_v60 }
 0x259   : > { %v3999_v33 = vadd.f32 %v3958_v31, %v9725_v56  ;;  %v4156_v35 = vpop.f32.mrf.mxu1 }
 0x25a   : > { %v7415_v7 = vpop.f32.mrf.mxu0  ;;  %v9874_v4 = vadd.f32 %v4156_v35, %v3998_v13 }
 0x25b   : > { %v4595_v15 = vadd.f32 %v7415_v7, %v9730_v48  ;;  %v7410_v11 = vpop.f32.mrf.mxu1 }
 0x25c   : > { %v4466_v39 = vpop.f32.mrf.mxu0  ;;  %v9877_v1 = vadd.f32 %v7410_v11, %v4001_v3 }
 0x25d   : > { %v4593_v22 = vadd.f32 %v4466_v39, %v9737_v27  ;;  %v4159_v50 = vpop.f32.mrf.mxu1 }
 0x25e   : > { %v7416_v5 = vpop.f32.mrf.mxu0  ;;  %v9880_v16 = vadd.f32 %v4159_v50, %v3999_v33 }
 0x25f   : > { %v4596_v61 = vadd.f32 %v7416_v5, %v9742_v28  ;;  %v7449_v25 = vpop.f32.mrf.mxu1 }
 0x260   : > { %v4469_v56 = vpop.f32.mrf.mxu0  ;;  %v9883_v32 = vadd.f32 %v7449_v25, %v4595_v15 }
 0x261   : > { %v4594_v19 = vadd.f32 %v4469_v56, %v9745_v63  ;;  %v4678_v62 = vpop.f32.mrf.mxu1 }
 0x262   : > { %v7419_v48 = vpop.f32.mrf.mxu0  ;;  %v9886_v17 = vadd.f32 %v4678_v62, %v4593_v22 }
 0x263   : > { %v4599_v40 = vadd.f32 %v7419_v48, %v9750_v38  ;;  %v7450_v47 = vpop.f32.mrf.mxu1 }
 0x264   : > { %v4482_v27 = vpop.f32.mrf.mxu0  ;;  %v9889_v55 = vadd.f32 %v7450_v47, %v4596_v61 }
 0x265   : > { %v4597_v45 = vadd.f32 %v4482_v27, %v9757_v29  ;;  %v4681_v37 = vpop.f32.mrf.mxu1 }
 0x266   : > { %v7420_v28 = vpop.f32.mrf.mxu0  ;;  %v9892_v36 = vadd.f32 %v4681_v37, %v4594_v19 }
 0x267   : > { %v4600_v60 = vadd.f32 %v7420_v28, %v9762_v12  ;;  %v7453_v49 = vpop.f32.mrf.mxu1 }
 0x268   : > { %v4485_v63 = vpop.f32.mrf.mxu0  ;;  %v9895_v57 = vadd.f32 %v7453_v49, %v4599_v40 }
 0x269   : > { %v4598_v13 = vadd.f32 %v4485_v63, %v9765_v34  ;;  %v4694_v23 = vpop.f32.mrf.mxu1 }
 0x26a   : > { %v7423_v38 = vpop.f32.mrf.mxu0  ;;  %v9898_v6 = vadd.f32 %v4694_v23, %v4597_v45 }
 0x26b   : > { %v4603_v58 = vadd.f32 %v7423_v38, %v9770_v21  ;;  %v7454_v3 = vpop.f32.mrf.mxu1 }
 0x26c   : > { %v4498_v29 = vpop.f32.mrf.mxu0  ;;  %v9901_v14 = vadd.f32 %v7454_v3, %v4600_v60 }
 0x26d   : > { %v4601_v31 = vadd.f32 %v4498_v29, %v9777_v43  ;;  %v4697_v33 = vpop.f32.mrf.mxu1 }
 0x26e   : > { %v7424_v12 = vpop.f32.mrf.mxu0  ;;  %v9904_v35 = vadd.f32 %v4697_v33, %v4598_v13 }
 0x26f   : > { %v4604_v7 = vadd.f32 %v7424_v12, %v9782_v26  ;;  %v7457_v15 = vpop.f32.mrf.mxu1 }
 0x270   : > { %v4501_v34 = vpop.f32.mrf.mxu0  ;;  %v9907_v11 = vadd.f32 %v7457_v15, %v4603_v58 }
 0x271   : > { %v4602_v39 = vadd.f32 %v4501_v34, %v9785_v53  ;;  %v4710_v22 = vpop.f32.mrf.mxu1 }
 0x272   : > { %v7427_v21 = vpop.f32.mrf.mxu0  ;;  %v9910_v50 = vadd.f32 %v4710_v22, %v4601_v31 }
 0x273   : > { %v4607_v5 = vadd.f32 %v7427_v21, %v9790_v46  ;;  %v7458_v61 = vpop.f32.mrf.mxu1 }
 0x274   : > { %v4514_v43 = vpop.f32.mrf.mxu0  ;;  %v9913_v25 = vadd.f32 %v7458_v61, %v4604_v7 }
 0x275   : > { %v4605_v56 = vadd.f32 %v4514_v43, %v9797_v2  ;;  %v4713_v19 = vpop.f32.mrf.mxu1 }
 0x276   : > { %v7428_v26 = vpop.f32.mrf.mxu0  ;;  %v9916_v62 = vadd.f32 %v4713_v19, %v4602_v39 }
 0x277   : > { %v4608_v48 = vadd.f32 %v7428_v26, %v9802_v9  ;;  %v7461_v40 = vpop.f32.mrf.mxu1 }
 0x278   : > { %v4517_v53 = vpop.f32.mrf.mxu0  ;;  %v9919_v47 = vadd.f32 %v7461_v40, %v4607_v5 }
 0x279   : > { %v4606_v27 = vadd.f32 %v4517_v53, %v9805_v51  ;;  %v4726_v45 = vpop.f32.mrf.mxu1 }
 0x27a   : > { %v7431_v46 = vpop.f32.mrf.mxu0  ;;  %v9922_v37 = vadd.f32 %v4726_v45, %v4605_v56 }
 0x27b   : > { %v4611_v28 = vadd.f32 %v7431_v46, %v9810_v59  ;;  %v7462_v60 = vpop.f32.mrf.mxu1 }
 0x27c   : > { %v4530_v2 = vpop.f32.mrf.mxu0  ;;  %v9925_v49 = vadd.f32 %v7462_v60, %v4608_v48 }
 0x27d   : > { %v4609_v63 = vadd.f32 %v4530_v2, %v9817_v44  ;;  %v4729_v13 = vpop.f32.mrf.mxu1 }
 0x27e   : > { %v7432_v9 = vpop.f32.mrf.mxu0  ;;  %v9928_v23 = vadd.f32 %v4729_v13, %v4606_v27 }
 0x27f   : > { %v4612_v38 = vadd.f32 %v7432_v9, %v9822_v54  ;;  %v7465_v58 = vpop.f32.mrf.mxu1 }
 0x280   : > { %v4533_v51 = vpop.f32.mrf.mxu0  ;;  %v9931_v3 = vadd.f32 %v7465_v58, %v4611_v28 }
 0x281   : > { %v4610_v29 = vadd.f32 %v4533_v51, %v9825_v30  ;;  %v4742_v31 = vpop.f32.mrf.mxu1 }
 0x282   : > { %v7435_v59 = vpop.f32.mrf.mxu0  ;;  %v9934_v33 = vadd.f32 %v4742_v31, %v4609_v63 }
 0x283   : > { %v4615_v12 = vadd.f32 %v7435_v59, %v9830_v8  ;;  %v7466_v7 = vpop.f32.mrf.mxu1 }
 0x284   : > { %v4546_v44 = vpop.f32.mrf.mxu0  ;;  %v9937_v15 = vadd.f32 %v7466_v7, %v4612_v38 }
 0x285   : > { %v4613_v34 = vadd.f32 %v4546_v44, %v9837_v42  ;;  %v4745_v39 = vpop.f32.mrf.mxu1 }
 0x286   : > { %v7436_v54 = vpop.f32.mrf.mxu0  ;;  %v9940_v22 = vadd.f32 %v4745_v39, %v4610_v29 }
 0x287   : > { %v4616_v21 = vadd.f32 %v7436_v54, %v9844_v10  ;;  %v7469_v5 = vpop.f32.mrf.mxu1 }
 0x288   : > { %10576 = vst [vmem:[#allocation8_spill] sm:$0xff] %v9940_v22  ;;  %v4549_v30 = vpop.f32.mrf.mxu0  ;;  %v9943_v61 = vadd.f32 %v7469_v5, %v4615_v12 }
 0x289   : > { %v4614_v43 = vadd.f32 %v4549_v30, %v9847_v24  ;;  %v4758_v56 = vpop.f32.mrf.mxu1 }
 0x28a   : > { %10577 = vst [vmem:[#allocation2_spill] sm:$0xff] %v9943_v61  ;;  %v7439_v8 = vpop.f32.mrf.mxu0  ;;  %v9946_v19 = vadd.f32 %v4758_v56, %v4613_v34 }
 0x28b   : > { %v4619_v26 = vadd.f32 %v7439_v8, %v9854_v18  ;;  %v7470_v48 = vpop.f32.mrf.mxu1 }
 0x28c   : > { %10578 = vst [vmem:[#allocation14_spill] sm:$0xff] %v9946_v19  ;;  %v4562_v42 = vpop.f32.mrf.mxu0  ;;  %v9949_v40 = vadd.f32 %v7470_v48, %v4616_v21 }
 0x28d   : > { %v4617_v53 = vadd.f32 %v4562_v42, %v9860_v0  ;;  %v4761_v27 = vpop.f32.mrf.mxu1 }
 0x28e   : > { %10579 = vst [vmem:[#allocation11_spill] sm:$0xff] %v9949_v40  ;;  %v7440_v10 = vpop.f32.mrf.mxu0  ;;  %v9952_v45 = vadd.f32 %v4761_v27, %v4614_v43 }
 0x28f   : > { %v4620_v46 = vadd.f32 %v7440_v10, %v9863_v20  ;;  %v7473_v28 = vpop.f32.mrf.mxu1 }
 0x290   : > { %10580 = vst [vmem:[#allocation15_spill] sm:$0xff] %v9952_v45  ;;  %v4565_v24 = vpop.f32.mrf.mxu0  ;;  %v9955_v60 = vadd.f32 %v7473_v28, %v4619_v26 }
 0x291   : > { %v4618_v2 = vadd.f32 %v4565_v24, %v9867_v52  ;;  %v4774_v63 = vpop.f32.mrf.mxu1 }
 0x292   : > { %10581 = vst [vmem:[#allocation12_spill] sm:$0xff] %v9955_v60  ;;  %v7443_v18 = vpop.f32.mrf.mxu0  ;;  %v9958_v13 = vadd.f32 %v4774_v63, %v4617_v53 }
 0x293   : > { %v4623_v9 = vadd.f32 %v7443_v18, %v9871_v41  ;;  %v7474_v38 = vpop.f32.mrf.mxu1 }
 0x294   : > { %10582 = vst [vmem:[#allocation13_spill] sm:$0xff] %v9958_v13  ;;  %v4578_v0 = vpop.f32.mrf.mxu0  ;;  %v9961_v58 = vadd.f32 %v7474_v38, %v4620_v46 }
 0x295   : > { %v4621_v51 = vadd.f32 %v4578_v0, %v9874_v4  ;;  %v4777_v29 = vpop.f32.mrf.mxu1 }
 0x296   : > { %10583 = vst [vmem:[#allocation41_spill] sm:$0xff] %v9961_v58  ;;  %v7444_v20 = vpop.f32.mrf.mxu0  ;;  %v9964_v31 = vadd.f32 %v4777_v29, %v4618_v2 }
 0x297   : > { %v4624_v59 = vadd.f32 %v7444_v20, %v9877_v1  ;;  %v7477_v12 = vpop.f32.mrf.mxu1 }
 0x298   : > { %10584 = vst [vmem:[#allocation18_spill] sm:$0xff] %v9964_v31  ;;  %v4581_v52 = vpop.f32.mrf.mxu0  ;;  %v9967_v7 = vadd.f32 %v7477_v12, %v4623_v9 }
 0x299   : > { %v4622_v44 = vadd.f32 %v4581_v52, %v9880_v16  ;;  %v4790_v34 = vpop.f32.mrf.mxu1 }
 0x29a   : > { %10585 = vst [vmem:[#allocation16_spill] sm:$0xff] %v9967_v7  ;;  %v9970_v41 = vpop.f32.mrf.mxu0  ;;  %v9972_v39 = vadd.f32 %v4790_v34, %v4621_v51 }
 0x29b   : > { %v7478_v54 = vpop.f32.mrf.mxu1 }
 0x29c   : > { %10586 = vst [vmem:[#allocation42_spill] sm:$0xff] %v9972_v39  ;;  %v9974_v21 = vpop.f32.mrf.mxu0  ;;  %v9976_v4 = vadd.f32 %v7478_v54, %v4624_v59 }
 0x29d   : > { %v4793_v5 = vpop.f32.mrf.mxu1 }
 0x29e   : > { %10587 = vst [vmem:[#allocation43_spill] sm:$0xff] %v9976_v4  ;;  %v9978_v30 = vpop.f32.mrf.mxu0  ;;  %v9980_v1 = vadd.f32 %v4793_v5, %v4622_v44 }
 0x29f   : > { %v7517_v43 = vpop.f32.mrf.mxu1 }
 0x2a0   : > { %10588 = vst [vmem:[#allocation27_spill] sm:$0xff] %v9980_v1  ;;  %v9982_v56 = vpop.f32.mrf.mxu0 }
 0x2a1   : > { %v9984_v8 = vpop.f32.mrf.mxu1 }
 0x2a2   : > { %v9986_v16 = vpop.f32.mrf.mxu0 }
 0x2a3   : > { %v9988_v26 = vpop.f32.mrf.mxu1 }
 0x2a4   : > { %v9990_v48 = vpop.f32.mrf.mxu0 }
 0x2a5   : > { %v9992_v42 = vpop.f32.mrf.mxu1 }
 0x2a6   : > { %v9994_v53 = vpop.f32.mrf.mxu0 }
 0x2a7   : > { %v9996_v27 = vpop.f32.mrf.mxu1 }
 0x2a8   : > { %v9998_v10 = vpop.f32.mrf.mxu0 }
 0x2a9   : > { %v10000_v46 = vpop.f32.mrf.mxu1 }
 0x2aa   : > { %v10002_v28 = vpop.f32.mrf.mxu0 }
 0x2ab   : > { %v10004_v24 = vpop.f32.mrf.mxu1 }
 0x2ac   : > { %v10006_v2 = vpop.f32.mrf.mxu0 }
 0x2ad   : > { %v10008_v63 = vpop.f32.mrf.mxu1 }
 0x2ae   : > { %v10010_v18 = vpop.f32.mrf.mxu0 }
 0x2af   : > { %v10012_v9 = vpop.f32.mrf.mxu1 }
 0x2b0   : > { %v10014_v38 = vpop.f32.mrf.mxu0 }
 0x2b1   : > { %v10016_v0 = vpop.f32.mrf.mxu1 }
 0x2b2   : > { %v10018_v51 = vpop.f32.mrf.mxu0 }
 0x2b3   : > { %v10020_v29 = vpop.f32.mrf.mxu1 }
 0x2b4   : > { %v10022_v20 = vpop.f32.mrf.mxu0 }
 0x2b5   : > { %v10024_v59 = vpop.f32.mrf.mxu1 }
 0x2b6   : > { %v10026_v12 = vpop.f32.mrf.mxu0 }
 0x2b7   : > { %v10028_v52 = vpop.f32.mrf.mxu1 }
 0x2b8   : > { %v10030_v44 = vpop.f32.mrf.mxu0 }
 0x2b9   : > { %v10032_v34 = vpop.f32.mrf.mxu1 }
 0x2ba   : > { %v10034_v54 = vpop.f32.mrf.mxu0 }
 0x2bb   : > { %v10036_v5 = vpop.f32.mrf.mxu1 }
 0x2bc   : > { %v10038_v1 = vpop.f32.mrf.mxu0 }
 0x2bd   : > { %v10040_v4 = vpop.f32.mrf.mxu1 }
 0x2be   : > { %v10042_v39 = vpop.f32.mrf.mxu0 }
 0x2bf   : > { %10589 = vst [vmem:[#allocation21_spill] sm:$0xff] %v10042_v39  ;;  %v10044_v7 = vpop.f32.mrf.mxu1 }
 0x2c0   : > { %10590 = vst [vmem:[#allocation17_spill] sm:$0xff] %v10044_v7  ;;  %v10046_v31 = vpop.f32.mrf.mxu0 }
 0x2c1   : > { %10591 = vst [vmem:[#allocation32_spill] sm:$0xff] %v10046_v31  ;;  %v10048_v58 = vpop.f32.mrf.mxu1 }
 0x2c2   : > { %10592 = vst [vmem:[#allocation22_spill] sm:$0xff] %v10048_v58  ;;  %v10050_v13 = vpop.f32.mrf.mxu0 }
 0x2c3   : > { %10593 = vst [vmem:[#allocation19_spill] sm:$0xff] %v10050_v13  ;;  %v10052_v60 = vpop.f32.mrf.mxu1 }
 0x2c4   : > { %10594 = vst [vmem:[#allocation44_spill] sm:$0xff] %v10052_v60  ;;  %v10054_v45 = vpop.f32.mrf.mxu0 }
 0x2c5   : > { %10595 = vst [vmem:[#allocation33_spill] sm:$0xff] %v10054_v45  ;;  %v10056_v40 = vpop.f32.mrf.mxu1 }
 0x2c6   : > { %10596 = vst [vmem:[#allocation24_spill] sm:$0xff] %v10056_v40  ;;  %v10058_v19 = vpop.f32.mrf.mxu0 }
 0x2c7   : > { %10597 = vst [vmem:[#allocation20_spill] sm:$0xff] %v10058_v19  ;;  %v10060_v61 = vpop.f32.mrf.mxu1 }
 0x2c8   : > { %10598 = vst [vmem:[#allocation28_spill] sm:$0xff] %v10060_v61  ;;  %v10062_v22 = vpop.f32.mrf.mxu0 }
 0x2c9   : > { %10599 = vst [vmem:[#allocation26_spill] sm:$0xff] %v10062_v22  ;;  %v10064_v39 = vpop.f32.mrf.mxu1 }
 0x2ca   : > { %10600 = vst [vmem:[#allocation23_spill] sm:$0xff] %v10064_v39  ;;  %v10066_v7 = vpop.f32.mrf.mxu0 }
 0x2cb   : > { %10601 = vst [vmem:[#allocation36_spill] sm:$0xff] %v10066_v7  ;;  %v10068_v31 = vpop.f32.mrf.mxu1 }
 0x2cc   : > { %10602 = vst [vmem:[#allocation31_spill] sm:$0xff] %v10068_v31  ;;  %v10070_v58 = vpop.f32.mrf.mxu0 }
 0x2cd   : > { %10603 = vst [vmem:[#allocation29_spill] sm:$0xff] %v10070_v58  ;;  %v10072_v13 = vpop.f32.mrf.mxu1  ;;  %v5019_v58 = vadd.f32 %v9970_v41, %v9883_v32  ;;  %v5018_v32 = vadd.f32 %v9982_v56, %v9892_v36 }
 0x2ce   : > { %10604 = vst [vmem:[#allocation25_spill] sm:$0xff] %v10072_v13  ;;  %v10074_v60 = vpop.f32.mrf.mxu0 }
 0x2cf   : > { %10605 = vst [vmem:[#allocation30_spill] sm:$0xff] %v10074_v60  ;;  %v10076_v45 = vpop.f32.mrf.mxu1 }
 0x2d0   : > { %10606 = vst [vmem:[#allocation10_spill] sm:$0xff] %v10076_v45  ;;  %v10078_v40 = vpop.f32.mrf.mxu0 }
 0x2d1   : > { %10607 = vst [vmem:[#allocation7_spill] sm:$0xff] %v10078_v40  ;;  %v10080_v19 = vpop.f32.mrf.mxu1  ;;  %v5017_v40 = vadd.f32 %v9974_v21, %v9886_v17 }
 0x2d2   : > { %10608 = vst [vmem:[#allocation5_spill] sm:$0xff] %v10080_v19  ;;  %v10082_v61 = vpop.f32.mrf.mxu0 }
 0x2d3   : > { %10609 = vst [vmem:[#allocation34_spill] sm:$0xff] %v10082_v61  ;;  %v10084_v22 = vpop.f32.mrf.mxu1  ;;  %v5343_v13 = vadd.f32 %v9984_v8, %v5017_v40  ;;  %v10119_v40 = vld [vmem:[%s10358_s8] ss:$0 sm:$0xff] }
 0x2d4   : > { %10610 = vst [vmem:[#allocation6_spill] sm:$0xff] %v10084_v22  ;;  %v10086_v39 = vpop.f32.mrf.mxu0  ;;  %v5345_v22 = vadd.f32 %v7517_v43, %v5019_v58  ;;  %v5023_v58 = vadd.f32 %v9986_v16, %v9895_v57  ;;  %v10127_v57 = vld [vmem:[%s10359_s9] ss:$0 sm:$0xff] }
 0x2d5   : > { %10611 = vst [vmem:[#allocation35_spill] sm:$0xff] %v10086_v39  ;;  %v10088_v7 = vpop.f32.mrf.mxu1  ;;  %v5020_v39 = vadd.f32 %v9978_v30, %v9889_v55  ;;  %v5021_v55 = vadd.f32 %v9990_v48, %v9898_v6 }
 0x2d6   : > { %10612 = vst [vmem:[#allocation4_spill] sm:$0xff] %v10088_v7  ;;  %v10090_v31 = vpop.f32.mrf.mxu0  ;;  %v5349_v16 = vadd.f32 %v9996_v27, %v5023_v58 }
 0x2d7   : > { %10613 = vst [vmem:[#allocation3_spill] sm:$0xff] %v10090_v31  ;;  %v10094_v60 = vpop.f32.mrf.mxu1  ;;  %v5346_v17 = vadd.f32 %v9988_v26, %v5020_v39  ;;  %v5347_v26 = vadd.f32 %v10000_v46, %v5021_v55 }
 0x2d8   : > { %10614 = vst [vmem:[#allocation37_spill] sm:$0xff] %v10094_v60  ;;  %v10096_v45 = vpop.f32.mrf.mxu0 }
 0x2d9   : > { %10615 = vst [vmem:[#allocation9_spill] sm:$0xff] %v10096_v45  ;;  %v10100_v19 = vpop.f32.mrf.mxu1 }
 0x2da   : > { %v7551_v61 = vpop.f32.mrf.mxu0 }
 0x2db   : > { %v10104_v7 = vpop.f32.mrf.mxu1  ;;  %v5551_v41 = vadd.f32 %v7551_v61, %v5345_v22  ;;  %v5344_v22 = vadd.f32 %v9992_v42, %v5018_v32 }
 0x2dc   : > { %v5422_v31 = vpop.f32.mrf.mxu0 }
 0x2dd   : > { %v10109_v45 = vpop.f32.mrf.mxu1  ;;  %v5549_v21 = vadd.f32 %v5422_v31, %v5343_v13  ;;  %v5024_v13 = vadd.f32 %v9994_v53, %v9901_v14 }
 0x2de   : > { %v7552_v60 = vpop.f32.mrf.mxu0 }
 0x2df   : > { %v7585_v30 = vpop.f32.mrf.mxu1  ;;  %v5552_v43 = vadd.f32 %v7552_v60, %v5346_v17  ;;  %v5022_v60 = vadd.f32 %v9998_v10, %v9904_v35  ;;  %v5027_v17 = vadd.f32 %v10002_v28, %v9907_v11 }
 0x2e0   : > { %v5425_v36 = vpop.f32.mrf.mxu0  ;;  %v5757_v61 = vadd.f32 %v7585_v30, %v5551_v41  ;;  %v5350_v41 = vadd.f32 %v10004_v24, %v5024_v13 }
 0x2e1   : > { %v5628_v6 = vpop.f32.mrf.mxu1  ;;  %v5550_v8 = vadd.f32 %v5425_v36, %v5344_v22  ;;  %v5348_v36 = vadd.f32 %v10008_v63, %v5022_v60  ;;  %v5025_v22 = vadd.f32 %v10006_v2, %v9910_v50  ;;  %v5353_v63 = vadd.f32 %v10012_v9, %v5027_v17 }
 0x2e2   : > { %v7555_v31 = vpop.f32.mrf.mxu0  ;;  %v5796_v39 = vmul.f32 %v10119_v40, %v5757_v61  ;;  %v5755_v56 = vadd.f32 %v5628_v6, %v5549_v21  ;;  %v5028_v50 = vadd.f32 %v10010_v18, %v9913_v25  ;;  %v5026_v9 = vadd.f32 %v10014_v38, %v9916_v62 }
 0x2e3   : > { %v7586_v48 = vpop.f32.mrf.mxu1  ;;  %v5555_v21 = vadd.f32 %v7555_v31, %v5349_v16  ;;  %v5029_v62 = vadd.f32 %v10022_v20, %v9922_v37 }
 0x2e4   : > { %v5438_v14 = vpop.f32.mrf.mxu0  ;;  %v5835_v42 = vadd.f32 %v10127_v57, %v5796_v39  ;;  %v5794_v53 = vmul.f32 %v10119_v40, %v5755_v56  ;;  %v5758_v32 = vadd.f32 %v7586_v48, %v5552_v43  ;;  %v5351_v48 = vadd.f32 %v10016_v0, %v5025_v22 }
 0x2e5   : > { %v5631_v27 = vpop.f32.mrf.mxu1  ;;  %v5553_v58 = vadd.f32 %v5438_v14, %v5347_v26  ;;  %v5031_v0 = vadd.f32 %v10018_v51, %v9919_v47 }
 0x2e6   : > { %v7556_v46 = vpop.f32.mrf.mxu0  ;;  %v5867_v55 = vmax.f32 %v5835_v42, 0.0  ;;  %v5833_v35 = vadd.f32 %v10127_v57, %v5794_v53  ;;  %v5797_v10 = vmul.f32 %v10119_v40, %v5758_v32  ;;  %v5756_v30 = vadd.f32 %v5631_v27, %v5550_v8 }
 0x2e7   : > { %v7589_v11 = vpop.f32.mrf.mxu1  ;;  %v5556_v28 = vadd.f32 %v7556_v46, %v5350_v41 }
 0x2e8   : > { %v5441_v24 = vpop.f32.mrf.mxu0  ;;  %v6665_v61 = vpack.c.bf16 %v5867_v55, %v5867_v55  ;;  %v5865_v43 = vmax.f32 %v5833_v35, 0.0  ;;  %v5836_v13 = vadd.f32 %v10127_v57, %v5797_v10  ;;  %v5795_v6 = vmul.f32 %v10119_v40, %v5756_v30 }
 0x2e9   : > { %v5761_v2 = vadd.f32 %v7589_v11, %v5555_v21  ;;  %v5644_v31 = vpop.f32.mrf.mxu1  ;;  %v5554_v39 = vadd.f32 %v5441_v24, %v5348_v36  ;;  %v5354_v21 = vadd.f32 %v10020_v29, %v5028_v50  ;;  %v5352_v29 = vadd.f32 %v10024_v59, %v5026_v9 }
 0x2ea   : > { %v7559_v56 = vpop.f32.mrf.mxu0  ;;  %6028 = vst.msk [vmem:[%s10148_s13 + $0x8] sm:$0xf] %vm6025_vm7, %v6665_v61  ;;  %v6663_v8 = vpack.c.bf16 %v5865_v43, %v5865_v43  ;;  %v5868_v16 = vmax.f32 %v5836_v13, 0.0  ;;  %v5834_v26 = vadd.f32 %v10127_v57, %v5795_v6  ;;  %v5759_v60 = vadd.f32 %v5644_v31, %v5553_v58 }
 0x2eb   : > { %v5800_v25 = vmul.f32 %v10119_v40, %v5761_v2  ;;  %v7590_v18 = vpop.f32.mrf.mxu1  ;;  %v5559_v14 = vadd.f32 %v7559_v56, %v5353_v63  ;;  %v5357_v24 = vadd.f32 %v10028_v52, %v5031_v0  ;;  %v5032_v61 = vadd.f32 %v10026_v12, %v9925_v49 }
 0x2ec   : > { %v5454_v42 = vpop.f32.mrf.mxu0  ;;  %6026 = vst.msk [vmem:[%s10148_s13] sm:$0xf] %vm6025_vm7, %v6663_v8  ;;  %v6666_v53 = vpack.c.bf16 %v5868_v16, %v5868_v16  ;;  %v5866_v32 = vmax.f32 %v5834_v26, 0.0  ;;  %v5798_v41 = vmul.f32 %v10119_v40, %v5759_v60  ;;  %v5762_v17 = vadd.f32 %v7590_v18, %v5556_v28 }
 0x2ed   : > { %v5839_v38 = vadd.f32 %v10127_v57, %v5800_v25  ;;  %v5647_v27 = vpop.f32.mrf.mxu1  ;;  %v5557_v47 = vadd.f32 %v5454_v42, %v5351_v48  ;;  %v5030_v56 = vadd.f32 %v10030_v44, %v9928_v23  ;;  %v5358_v9 = vadd.f32 %v10036_v5, %v5032_v61 }
 0x2ee   : > { %v7560_v58 = vpop.f32.mrf.mxu0  ;;  %6029 = vst.msk [vmem:[%s10148_s13 + $0xc] sm:$0xf] %vm6025_vm7, %v6666_v53  ;;  %v6664_v46 = vpack.c.bf16 %v5866_v32, %v5866_v32  ;;  %v5837_v55 = vadd.f32 %v10127_v57, %v5798_v41  ;;  %v5801_v35 = vmul.f32 %v10119_v40, %v5762_v17  ;;  %v5760_v10 = vadd.f32 %v5647_v27, %v5554_v39 }
 0x2ef   : > { %v5871_v30 = vmax.f32 %v5839_v38, 0.0  ;;  %v7593_v51 = vpop.f32.mrf.mxu1  ;;  %v5560_v36 = vadd.f32 %v7560_v58, %v5354_v21  ;;  %v5355_v39 = vadd.f32 %v10032_v34, %v5029_v62  ;;  %v5035_v34 = vadd.f32 %v10034_v54, %v9931_v3  ;;  %v10616_v3 = vld [vmem:[#allocation21_spill] sm:$0xff] }
 0x2f0   : > { %v5457_v22 = vpop.f32.mrf.mxu0  ;;  %6027 = vst.msk [vmem:[%s10148_s13 + $0x4] sm:$0xf] %vm6025_vm7, %v6664_v46  ;;  %v5869_v37 = vmax.f32 %v5837_v55, 0.0  ;;  %v5840_v20 = vadd.f32 %v10127_v57, %v5801_v35  ;;  %v5799_v11 = vmul.f32 %v10119_v40, %v5760_v10  ;;  %v5765_v28 = vadd.f32 %v7593_v51, %v5559_v14  ;;  %v10618_v51 = vld [vmem:[#allocation22_spill] sm:$0xff] }
 0x2f1   : > { %v6669_v59 = vpack.c.bf16 %v5871_v30, %v5871_v30  ;;  %v5660_v43 = vpop.f32.mrf.mxu1  ;;  %v5558_v13 = vadd.f32 %v5457_v22, %v5352_v29  ;;  %v5356_v41 = vadd.f32 %v10040_v4, %v5030_v56  ;;  %v5033_v5 = vadd.f32 %v10038_v1, %v9934_v33  ;;  %v10617_v4 = vld [vmem:[#allocation17_spill] sm:$0xff]  ;;  %v10619_v22 = vld [vmem:[#allocation8_spill] sm:$0xff] }
 0x2f2   : > { %v7563_v6 = vpop.f32.mrf.mxu0  ;;  %v6667_v63 = vpack.c.bf16 %v5869_v37, %v5869_v37  ;;  %v5872_v50 = vmax.f32 %v5840_v20, 0.0  ;;  %v5838_v2 = vadd.f32 %v10127_v57, %v5799_v11  ;;  %v5804_v31 = vmul.f32 %v10119_v40, %v5765_v28  ;;  %v10620_v37 = vld [vmem:[#allocation32_spill] sm:$0xff] }
 0x2f3   : > { %6032 = vst.msk [vmem:[%s10148_s13 + $0x18] sm:$0xf] %vm6025_vm7, %v6669_v59  ;;  %v5763_v49 = vadd.f32 %v5660_v43, %v5557_v47  ;;  %v7594_v12 = vpop.f32.mrf.mxu1  ;;  %v5563_v52 = vadd.f32 %v7563_v6, %v5357_v24  ;;  %v5036_v54 = vadd.f32 %v10616_v3, %v9937_v15  ;;  %v5361_v46 = vadd.f32 %v10617_v4, %v5035_v34  ;;  %v10625_v34 = vld [vmem:[#allocation14_spill] sm:$0xff]  ;;  %v10627_v3 = vld [vmem:[#allocation28_spill] sm:$0xff] }
 0x2f4   : > { %v5470_v8 = vpop.f32.mrf.mxu0  ;;  %6030 = vst.msk [vmem:[%s10148_s13 + $0x10] sm:$0xf] %vm6025_vm7, %v6667_v63  ;;  %v6670_v16 = vpack.c.bf16 %v5872_v50, %v5872_v50  ;;  %v5870_v26 = vmax.f32 %v5838_v2, 0.0  ;;  %v5843_v60 = vadd.f32 %v10127_v57, %v5804_v31  ;;  %v5766_v48 = vadd.f32 %v7594_v12, %v5560_v36  ;;  %v10621_v63 = vld [vmem:[#allocation44_spill] sm:$0xff]  ;;  %v10622_v2 = vld [vmem:[#allocation2_spill] sm:$0xff]  ;;  %v10623_v31 = vld [vmem:[#allocation19_spill] sm:$0xff] }
 0x2f5   : > { %v5802_v23 = vmul.f32 %v10119_v40, %v5763_v49  ;;  %v5663_v44 = vpop.f32.mrf.mxu1  ;;  %v5561_v25 = vadd.f32 %v5470_v8, %v5355_v39  ;;  %v5359_v36 = vadd.f32 %v10618_v51, %v5033_v5  ;;  %v5034_v20 = vadd.f32 %v10620_v37, %v10619_v22 }
 0x2f6   : > { %v7564_v18 = vpop.f32.mrf.mxu0  ;;  %6033 = vst.msk [vmem:[%s10148_s13 + $0x1c] sm:$0xf] %vm6025_vm7, %v6670_v16  ;;  %v6668_v14 = vpack.c.bf16 %v5870_v26, %v5870_v26  ;;  %v5875_v42 = vmax.f32 %v5843_v60, 0.0  ;;  %v5805_v53 = vmul.f32 %v10119_v40, %v5766_v48  ;;  %v5764_v32 = vadd.f32 %v5663_v44, %v5558_v13  ;;  %v10624_v48 = vld [vmem:[#allocation24_spill] sm:$0xff] }
 0x2f7   : > { %v5841_v17 = vadd.f32 %v10127_v57, %v5802_v23  ;;  %v7597_v21 = vpop.f32.mrf.mxu1  ;;  %v5564_v33 = vadd.f32 %v7564_v18, %v5358_v9  ;;  %v5362_v50 = vadd.f32 %v10621_v63, %v5036_v54  ;;  %v5039_v39 = vadd.f32 %v10623_v31, %v10622_v2  ;;  %v10626_v23 = vld [vmem:[#allocation33_spill] sm:$0xff] }
 0x2f8   : > { %v5473_v0 = vpop.f32.mrf.mxu0  ;;  %6031 = vst.msk [vmem:[%s10148_s13 + $0x14] sm:$0xf] %vm6025_vm7, %v6668_v14  ;;  %v6673_v62 = vpack.c.bf16 %v5875_v42, %v5875_v42  ;;  %v5844_v38 = vadd.f32 %v10127_v57, %v5805_v53  ;;  %v5803_v27 = vmul.f32 %v10119_v40, %v5764_v32  ;;  %v5769_v58 = vadd.f32 %v7597_v21, %v5563_v52  ;;  %v10629_v21 = vld [vmem:[#allocation20_spill] sm:$0xff] }
 0x2f9   : > { %v5873_v55 = vmax.f32 %v5841_v17, 0.0  ;;  %v5676_v1 = vpop.f32.mrf.mxu1  ;;  %v5562_v35 = vadd.f32 %v5473_v0, %v5356_v41  ;;  %v5360_v9 = vadd.f32 %v10624_v48, %v5034_v20  ;;  %v5037_v44 = vadd.f32 %v10626_v23, %v10625_v34  ;;  %v10628_v17 = vld [vmem:[#allocation11_spill] sm:$0xff] }
 0x2fa   : > { %v7567_v10 = vpop.f32.mrf.mxu0  ;;  %6036 = vst.msk [vmem:[%s10148_s13 + $0x28] sm:$0xf] %vm6025_vm7, %v6673_v62  ;;  %v5876_v15 = vmax.f32 %v5844_v38, 0.0  ;;  %v5842_v29 = vadd.f32 %v10127_v57, %v5803_v27  ;;  %v5808_v30 = vmul.f32 %v10119_v40, %v5769_v58  ;;  %v5767_v47 = vadd.f32 %v5676_v1, %v5561_v25  ;;  %v10630_v62 = vld [vmem:[#allocation15_spill] sm:$0xff]  ;;  %v10631_v38 = vld [vmem:[#allocation26_spill] sm:$0xff] }
 0x2fb   : > { %v6671_v11 = vpack.c.bf16 %v5873_v55, %v5873_v55  ;;  %v7598_v28 = vpop.f32.mrf.mxu1  ;;  %v5567_v24 = vadd.f32 %v7567_v10, %v5361_v46  ;;  %v5365_v54 = vadd.f32 %v10627_v3, %v5039_v39  ;;  %v5040_v0 = vadd.f32 %v10629_v21, %v10628_v17  ;;  %v10632_v10 = vld [vmem:[#allocation23_spill] sm:$0xff] }
 0x2fc   : > { %v5486_v61 = vpop.f32.mrf.mxu0  ;;  %v6674_v59 = vpack.c.bf16 %v5876_v15, %v5876_v15  ;;  %v5874_v43 = vmax.f32 %v5842_v29, 0.0  ;;  %v5847_v13 = vadd.f32 %v10127_v57, %v5808_v30  ;;  %v5806_v6 = vmul.f32 %v10119_v40, %v5767_v47 }
 0x2fd   : > { %6034 = vst.msk [vmem:[%s10148_s13 + $0x20] sm:$0xf] %vm6025_vm7, %v6671_v11  ;;  %v5770_v56 = vadd.f32 %v7598_v28, %v5564_v33  ;;  %v5679_v49 = vpop.f32.mrf.mxu1  ;;  %v5565_v12 = vadd.f32 %v5486_v61, %v5359_v36  ;;  %v5038_v27 = vadd.f32 %v10631_v38, %v10630_v62  ;;  %v5363_v15 = vadd.f32 %v10632_v10, %v5037_v44  ;;  %v10633_v28 = vld [vmem:[#allocation31_spill] sm:$0xff]  ;;  %v10634_v61 = vld [vmem:[#allocation12_spill] sm:$0xff]  ;;  %v10642_v38 = vld [vmem:[#allocation5_spill] sm:$0xff] }
 0x2fe   : > { %v7568_v52 = vpop.f32.mrf.mxu0  ;;  %6037 = vst.msk [vmem:[%s10148_s13 + $0x2c] sm:$0xf] %vm6025_vm7, %v6674_v59  ;;  %v6672_v8 = vpack.c.bf16 %v5874_v43, %v5874_v43  ;;  %v5879_v16 = vmax.f32 %v5847_v13, 0.0  ;;  %v5845_v26 = vadd.f32 %v10127_v57, %v5806_v6  ;;  %v5768_v60 = vadd.f32 %v5679_v49, %v5562_v35  ;;  %v10635_v59 = vld [vmem:[#allocation36_spill] sm:$0xff]  ;;  %v10636_v49 = vld [vmem:[#allocation25_spill] sm:$0xff] }
 0x2ff   : > { %v5809_v25 = vmul.f32 %v10119_v40, %v5770_v56  ;;  %v7601_v18 = vpop.f32.mrf.mxu1  ;;  %v5568_v14 = vadd.f32 %v7568_v52, %v5362_v50  ;;  %v5043_v43 = vadd.f32 %v10635_v59, %v10634_v61  ;;  %v10637_v52 = vld [vmem:[#allocation13_spill] sm:$0xff] }
 0x300   : > { %v5489_v42 = vpop.f32.mrf.mxu0  ;;  %6035 = vst.msk [vmem:[%s10148_s13 + $0x24] sm:$0xf] %vm6025_vm7, %v6672_v8  ;;  %v6677_v53 = vpack.c.bf16 %v5879_v16, %v5879_v16  ;;  %v5877_v32 = vmax.f32 %v5845_v26, 0.0  ;;  %v5807_v41 = vmul.f32 %v10119_v40, %v5768_v60  ;;  %v5773_v5 = vadd.f32 %v7601_v18, %v5567_v24  ;;  %v10638_v8 = vld [vmem:[#allocation29_spill] sm:$0xff]  ;;  %v10639_v18 = vld [vmem:[#allocation10_spill] sm:$0xff] }
 0x301   : > { %v5848_v58 = vadd.f32 %v10127_v57, %v5809_v25  ;;  %v5692_v4 = vpop.f32.mrf.mxu1  ;;  %v5566_v30 = vadd.f32 %v5489_v42, %v5360_v9  ;;  %v5366_v24 = vadd.f32 %v10633_v28, %v5040_v0  ;;  %v5041_v16 = vadd.f32 %v10638_v8, %v10637_v52  ;;  %v10640_v42 = vld [vmem:[#allocation41_spill] sm:$0xff] }
 0x302   : > { %v7571_v46 = vpop.f32.mrf.mxu0  ;;  %6040 = vst.msk [vmem:[%s10148_s13 + $0x38] sm:$0xf] %vm6025_vm7, %v6677_v53  ;;  %v6675_v55 = vpack.c.bf16 %v5877_v32, %v5877_v32  ;;  %v5846_v33 = vadd.f32 %v10127_v57, %v5807_v41  ;;  %v5812_v1 = vmul.f32 %v10119_v40, %v5773_v5  ;;  %v5771_v35 = vadd.f32 %v5692_v4, %v5565_v12  ;;  %v10641_v53 = vld [vmem:[#allocation30_spill] sm:$0xff]  ;;  %v10644_v4 = vld [vmem:[#allocation7_spill] sm:$0xff] }
 0x303   : > { %v5880_v29 = vmax.f32 %v5848_v58, 0.0  ;;  %v7602_v47 = vpop.f32.mrf.mxu1  ;;  %v5571_v51 = vadd.f32 %v7571_v46, %v5365_v54  ;;  %v5364_v12 = vadd.f32 %v10636_v49, %v5038_v27  ;;  %v5044_v32 = vadd.f32 %v10641_v53, %v10640_v42  ;;  %v10643_v58 = vld [vmem:[#allocation18_spill] sm:$0xff] }
 0x304   : > { %v5502_v36 = vpop.f32.mrf.mxu0  ;;  %6038 = vst.msk [vmem:[%s10148_s13 + $0x30] sm:$0xf] %vm6025_vm7, %v6675_v55  ;;  %v5878_v22 = vmax.f32 %v5846_v33, 0.0  ;;  %v5851_v37 = vadd.f32 %v10127_v57, %v5812_v1  ;;  %v5810_v20 = vmul.f32 %v10119_v40, %v5771_v35  ;;  %v5774_v11 = vadd.f32 %v7602_v47, %v5568_v14  ;;  %v10645_v55 = vld [vmem:[#allocation16_spill] sm:$0xff]  ;;  %v10646_v33 = vld [vmem:[#allocation34_spill] sm:$0xff] }
 0x305   : > { %v6678_v13 = vpack.c.bf16 %v5880_v29, %v5880_v29  ;;  %v5695_v6 = vpop.f32.mrf.mxu1  ;;  %v5569_v63 = vadd.f32 %v5502_v36, %v5363_v15  ;;  %v5369_v14 = vadd.f32 %v10639_v18, %v5043_v43  ;;  %v5367_v27 = vadd.f32 %v10642_v38, %v5041_v16  ;;  %v10647_v36 = vld [vmem:[#allocation6_spill] sm:$0xff] }
 0x306   : > { %v7572_v50 = vpop.f32.mrf.mxu0  ;;  %v6676_v2 = vpack.c.bf16 %v5878_v22, %v5878_v22  ;;  %v5883_v31 = vmax.f32 %v5851_v37, 0.0  ;;  %v5849_v39 = vadd.f32 %v10127_v57, %v5810_v20  ;;  %v5813_v56 = vmul.f32 %v10119_v40, %v5774_v11 }
 0x307   : > { %6041 = vst.msk [vmem:[%s10148_s13 + $0x3c] sm:$0xf] %vm6025_vm7, %v6678_v13  ;;  %v5772_v26 = vadd.f32 %v5695_v6, %v5566_v30  ;;  %v7605_v60 = vpop.f32.mrf.mxu1  ;;  %v5572_v48 = vadd.f32 %v7572_v50, %v5366_v24  ;;  %v5042_v46 = vadd.f32 %v10644_v4, %v10643_v58  ;;  %v5047_v1 = vadd.f32 %v10646_v33, %v10645_v55  ;;  %v10648_v6 = vld [vmem:[#allocation4_spill] sm:$0xff]  ;;  %v10649_v50 = vld [vmem:[#allocation42_spill] sm:$0xff] }
 0x308   : > { %v5505_v9 = vpop.f32.mrf.mxu0  ;;  %6039 = vst.msk [vmem:[%s10148_s13 + $0x34] sm:$0xf] %vm6025_vm7, %v6676_v2  ;;  %v6681_v34 = vpack.c.bf16 %v5883_v31, %v5883_v31  ;;  %v5881_v23 = vmax.f32 %v5849_v39, 0.0  ;;  %v5852_v44 = vadd.f32 %v10127_v57, %v5813_v56  ;;  %v5777_v25 = vadd.f32 %v7605_v60, %v5571_v51  ;;  %v10650_v2 = vld [vmem:[#allocation35_spill] sm:$0xff]  ;;  %v10651_v60 = vld [vmem:[#allocation37_spill] sm:$0xff] }
 0x309   : > { %v5811_v41 = vmul.f32 %v10119_v40, %v5772_v26  ;;  %v5708_v5 = vpop.f32.mrf.mxu1  ;;  %v5570_v3 = vadd.f32 %v5505_v9, %v5364_v12  ;;  %v5370_v22 = vadd.f32 %v10647_v36, %v5044_v32  ;;  %v5045_v31 = vadd.f32 %v10650_v2, %v10649_v50  ;;  %v10652_v9 = vld [vmem:[#allocation43_spill] sm:$0xff] }
 0x30a   : > { %v7575_v54 = vpop.f32.mrf.mxu0  ;;  %6044 = vst.msk [vmem:[%s10148_s13 + $0x48] sm:$0xf] %vm6025_vm7, %v6681_v34  ;;  %v6679_v17 = vpack.c.bf16 %v5881_v23, %v5881_v23  ;;  %v5884_v21 = vmax.f32 %v5852_v44, 0.0  ;;  %v5816_v0 = vmul.f32 %v10119_v40, %v5777_v25  ;;  %v5775_v62 = vadd.f32 %v5708_v5, %v5569_v63  ;;  %v10653_v34 = vld [vmem:[#allocation3_spill] sm:$0xff] }
 0x30b   : > { %v5850_v35 = vadd.f32 %v10127_v57, %v5811_v41  ;;  %v7606_v10 = vpop.f32.mrf.mxu1  ;;  %v5575_v20 = vadd.f32 %v7575_v54, %v5369_v14  ;;  %v5368_v63 = vadd.f32 %v10648_v6, %v5042_v46  ;;  %v5048_v23 = vadd.f32 %v10653_v34, %v10652_v9  ;;  %v10654_v5 = vld [vmem:[#allocation27_spill] sm:$0xff] }
 0x30c   : > { %v5518_v15 = vpop.f32.mrf.mxu0  ;;  %6042 = vst.msk [vmem:[%s10148_s13 + $0x40] sm:$0xf] %vm6025_vm7, %v6679_v17  ;;  %v6682_v29 = vpack.c.bf16 %v5884_v21, %v5884_v21  ;;  %v5855_v30 = vadd.f32 %v10127_v57, %v5816_v0  ;;  %v5814_v47 = vmul.f32 %v10119_v40, %v5775_v62  ;;  %v5778_v51 = vadd.f32 %v7606_v10, %v5572_v48 }
 0x30d   : > { %v5882_v37 = vmax.f32 %v5850_v35, 0.0  ;;  %v5711_v11 = vpop.f32.mrf.mxu1  ;;  %v5573_v28 = vadd.f32 %v5518_v15, %v5367_v27  ;;  %v5373_v48 = vadd.f32 %v10651_v60, %v5047_v1  ;;  %v5371_v46 = vadd.f32 %v10100_v19, %v5045_v31 }
 0x30e   : > { %v7576_v24 = vpop.f32.mrf.mxu0  ;;  %6045 = vst.msk [vmem:[%s10148_s13 + $0x4c] sm:$0xf] %vm6025_vm7, %v6682_v29  ;;  %v5887_v61 = vmax.f32 %v5855_v30, 0.0  ;;  %v5853_v59 = vadd.f32 %v10127_v57, %v5814_v47  ;;  %v5817_v43 = vmul.f32 %v10119_v40, %v5778_v51  ;;  %v5776_v13 = vadd.f32 %v5711_v11, %v5570_v3  ;;  %v10655_v3 = vld [vmem:[#allocation9_spill] sm:$0xff] }
 0x30f   : > { %v6680_v39 = vpack.c.bf16 %v5882_v37, %v5882_v37  ;;  %v7609_v56 = vpop.f32.mrf.mxu1  ;;  %v5576_v49 = vadd.f32 %v7576_v24, %v5370_v22  ;;  %v5046_v54 = vadd.f32 %v10655_v3, %v10654_v5  ;;  %v5374_v55 = vadd.f32 %v10104_v7, %v5048_v23 }
 0x310   : > { %v5521_v12 = vpop.f32.mrf.mxu0  ;;  %v6685_v52 = vpack.c.bf16 %v5887_v61, %v5887_v61  ;;  %v5885_v8 = vmax.f32 %v5853_v59, 0.0  ;;  %v5856_v16 = vadd.f32 %v10127_v57, %v5817_v43  ;;  %v5815_v26 = vmul.f32 %v10119_v40, %v5776_v13 }
 0x311   : > { %6043 = vst.msk [vmem:[%s10148_s13 + $0x44] sm:$0xf] %vm6025_vm7, %v6680_v39  ;;  %v5781_v44 = vadd.f32 %v7609_v56, %v5575_v20  ;;  %v5724_v25 = vpop.f32.mrf.mxu1  ;;  %v5574_v18 = vadd.f32 %v5521_v12, %v5368_v63  ;;  %v5372_v47 = vadd.f32 %v10109_v45, %v5046_v54 }
 0x312   : > { %v7579_v14 = vpop.f32.mrf.mxu0  ;;  %6048 = vst.msk [vmem:[%s10148_s13 + $0x58] sm:$0xf] %vm6025_vm7, %v6685_v52  ;;  %v6683_v42 = vpack.c.bf16 %v5885_v8, %v5885_v8  ;;  %v5888_v53 = vmax.f32 %v5856_v16, 0.0  ;;  %v5854_v32 = vadd.f32 %v10127_v57, %v5815_v26  ;;  %v5779_v41 = vadd.f32 %v5724_v25, %v5573_v28 }
 0x313   : > { %v5820_v17 = vmul.f32 %v10119_v40, %v5781_v44  ;;  %v7610_v21 = vpop.f32.mrf.mxu1  ;;  %v5579_v0 = vadd.f32 %v7579_v14, %v5373_v48 }
 0x314   : > { %v5534_v62 = vpop.f32.mrf.mxu0  ;;  %6046 = vst.msk [vmem:[%s10148_s13 + $0x50] sm:$0xf] %vm6025_vm7, %v6683_v42  ;;  %v6686_v38 = vpack.c.bf16 %v5888_v53, %v5888_v53  ;;  %v5886_v27 = vmax.f32 %v5854_v32, 0.0  ;;  %v5818_v58 = vmul.f32 %v10119_v40, %v5779_v41  ;;  %v5782_v4 = vadd.f32 %v7610_v21, %v5576_v49 }
 0x315   : > { %v5859_v33 = vadd.f32 %v10127_v57, %v5820_v17  ;;  %v5727_v1 = vpop.f32.mrf.mxu1  ;;  %v5577_v36 = vadd.f32 %v5534_v62, %v5371_v46 }
 0x316   : > { %v7580_v35 = vpop.f32.mrf.mxu0  ;;  %6049 = vst.msk [vmem:[%s10148_s13 + $0x5c] sm:$0xf] %vm6025_vm7, %v6686_v38  ;;  %v6684_v10 = vpack.c.bf16 %v5886_v27, %v5886_v27  ;;  %v5857_v15 = vadd.f32 %v10127_v57, %v5818_v58  ;;  %v5821_v29 = vmul.f32 %v10119_v40, %v5782_v4  ;;  %v5780_v30 = vadd.f32 %v5727_v1, %v5574_v18 }
 0x317   : > { %v5891_v51 = vmax.f32 %v5859_v33, 0.0  ;;  %v7613_v19 = vpop.f32.mrf.mxu1  ;;  %v5580_v22 = vadd.f32 %v7580_v35, %v5374_v55 }
 0x318   : > { %v5537_v7 = vpop.f32.mrf.mxu0  ;;  %6047 = vst.msk [vmem:[%s10148_s13 + $0x54] sm:$0xf] %vm6025_vm7, %v6684_v10  ;;  %v5889_v37 = vmax.f32 %v5857_v15, 0.0  ;;  %v5860_v20 = vadd.f32 %v10127_v57, %v5821_v29  ;;  %v5819_v11 = vmul.f32 %v10119_v40, %v5780_v30  ;;  %v5785_v28 = vadd.f32 %v7613_v19, %v5579_v0 }
 0x319   : > { %v6689_v24 = vpack.c.bf16 %v5891_v51, %v5891_v51  ;;  %v5740_v61 = vpop.f32.mrf.mxu1  ;;  %v5578_v59 = vadd.f32 %v5537_v7, %v5372_v47 }
 0x31a   : > { %v6687_v45 = vpack.c.bf16 %v5889_v37, %v5889_v37  ;;  %v5892_v43 = vmax.f32 %v5860_v20, 0.0  ;;  %v5858_v13 = vadd.f32 %v10127_v57, %v5819_v11  ;;  %v5824_v6 = vmul.f32 %v10119_v40, %v5785_v28 }
 0x31b   : > { %6052 = vst.msk [vmem:[%s10148_s13 + $0x68] sm:$0xf] %vm6025_vm7, %v6689_v24  ;;  %v5783_v63 = vadd.f32 %v5740_v61, %v5577_v36  ;;  %v7614_v50 = vpop.f32.mrf.mxu1 }
 0x31c   : > { %6050 = vst.msk [vmem:[%s10148_s13 + $0x60] sm:$0xf] %vm6025_vm7, %v6687_v45  ;;  %v6690_v2 = vpack.c.bf16 %v5892_v43, %v5892_v43  ;;  %v5890_v31 = vmax.f32 %v5858_v13, 0.0  ;;  %v5863_v39 = vadd.f32 %v10127_v57, %v5824_v6  ;;  %v5786_v56 = vadd.f32 %v7614_v50, %v5580_v22 }
 0x31d   : > { %v5822_v49 = vmul.f32 %v10119_v40, %v5783_v63  ;;  %v5743_v12 = vpop.f32.mrf.mxu1 }
 0x31e   : > { %6053 = vst.msk [vmem:[%s10148_s13 + $0x6c] sm:$0xf] %vm6025_vm7, %v6690_v2  ;;  %v6688_v52 = vpack.c.bf16 %v5890_v31, %v5890_v31  ;;  %v5895_v8 = vmax.f32 %v5863_v39, 0.0  ;;  %v5825_v16 = vmul.f32 %v10119_v40, %v5786_v56  ;;  %v5784_v26 = vadd.f32 %v5743_v12, %v5578_v59 }
 0x31f   : > { %v5861_v60 = vadd.f32 %v10127_v57, %v5822_v49 }
 0x320   : > { %6051 = vst.msk [vmem:[%s10148_s13 + $0x64] sm:$0xf] %vm6025_vm7, %v6688_v52  ;;  %v6693_v48 = vpack.c.bf16 %v5895_v8, %v5895_v8  ;;  %v5864_v9 = vadd.f32 %v10127_v57, %v5825_v16  ;;  %v5823_v34 = vmul.f32 %v10119_v40, %v5784_v26 }
 0x321   : > { %v5893_v23 = vmax.f32 %v5861_v60, 0.0 }
 0x322   : > { %6056 = vst.msk [vmem:[%s10148_s13 + $0x78] sm:$0xf] %vm6025_vm7, %v6693_v48  ;;  %v5896_v44 = vmax.f32 %v5864_v9, 0.0  ;;  %v5862_v25 = vadd.f32 %v10127_v57, %v5823_v34 }
 0x323   : > { %v6691_v18 = vpack.c.bf16 %v5893_v23, %v5893_v23 }
 0x324   : > { %v6694_v14 = vpack.c.bf16 %v5896_v44, %v5896_v44  ;;  %v5894_v42 = vmax.f32 %v5862_v25, 0.0 }
 0x325   : > { %6054 = vst.msk [vmem:[%s10148_s13 + $0x70] sm:$0xf] %vm6025_vm7, %v6691_v18 }
 0x326   : > { %6057 = vst.msk [vmem:[%s10148_s13 + $0x7c] sm:$0xf] %vm6025_vm7, %v6694_v14  ;;  %v6692_v53 = vpack.c.bf16 %v5894_v42, %v5894_v42 }
 0x328   : > { %6055 = vst.msk [vmem:[%s10148_s13 + $0x74] sm:$0xf] %vm6025_vm7, %v6692_v53 }
 0x329 PF: > { %s20_s15 = sadd.s32 1, %s7711_s15   ;;  %s10656_s13 = smov %s7707_s14 }
 0x32a   : > { %p17_p5 = scmp.ge.s32.totalorder %s20_s15, 4   ;;  %s10657_s14 = smov %s10659_s16 }
 0x32c   :  { %19 = sbr.rel (!%p17_p5) target bundleno = 2 (0x2), region = 121 }

</bundles_post_ra>
